<compile_context>
chip_gen: v5e
topology: v5e:2x2
jax: 0.10.0
libtpu: 0.0.40
codegen_flags: <defaults>
</compile_context>

<pallas_src>
import functools

import jax
import jax.numpy as jnp
from jax import lax
from jax.experimental import pallas as pl
from jax.experimental.pallas import tpu as pltpu


def _hamburger_kernel(x_ref, w1_ref, b1_ref, bases_ref, w2_ref, b2_ref, o_ref,
                      ab_scr, xc_scr,
                      *, md_s, md_r, eval_steps, inv_t, mu_unroll, batch_tile):
    eps = 1e-6
    bf16 = jnp.bfloat16
    C = w1_ref.shape[0]
    R = md_r
    D = C // md_s
    N = x_ref.shape[-1]

    w1b = w1_ref[...]                                 # (C, C) bf16 (pre-cast in wrapper)
    w2b = w2_ref[...]                                 # (C, C) bf16
    b1 = b1_ref[...].astype(jnp.float32)              # (C, 1)
    b2 = b2_ref[...].astype(jnp.float32)              # (C, 1)

    for bt in range(batch_tile):
        # --- ham_in: 1x1 conv (bias) + ReLU -----------------------------------
        y = jnp.dot(w1b, x_ref[bt].astype(bf16),
                    preferred_element_type=jnp.float32) + b1
        y = jnp.maximum(y, 0.0)                       # (C, N) f32

        # --- NMF2D (eval) per segment, with ham_out fused in -------------------
        z = None
        for si in range(md_s):
            idx = bt * md_s + si
            xs_b = y[si * D:(si + 1) * D, :].astype(bf16)            # (D, N)
            # stage xs once per (batch, segment); only small panels refresh per step
            ab_scr[idx, :, :N] = xs_b                                # [xs | .]
            xc_scr[idx, :D, :] = xs_b                                # [xs ; .]
            bases = bases_ref[si].astype(jnp.float32)                # (D, R)

            # coefT = softmax over R of ((inv_t * bases)^T @ xs)  -> (R, N)
            blog = bases if inv_t == 1.0 else inv_t * bases
            logits = lax.dot_general(blog.astype(bf16), xs_b,
                                     (((0,), (0,)), ((), ())),
                                     preferred_element_type=jnp.float32)
            logits = logits - jnp.max(logits, axis=0, keepdims=True)
            e = jnp.exp(logits)
            coefT = e * pl.reciprocal(jnp.sum(e, axis=0, keepdims=True),
                                      approx=True)

            def mu_step(bases, coefT, idx=idx):
                bases_b = bases.astype(bf16)
                ab_scr[idx, :, N:] = bases_b
                # ONE dot gives numT (R,N) and btb (R,R):  bases^T @ [xs | bases]
                f1 = lax.dot_general(bases_b, ab_scr[idx],
                                     (((0,), (0,)), ((), ())),
                                     preferred_element_type=jnp.float32)
                numT, btb = f1[:, :N], f1[:, N:]
                denT = jnp.dot(btb.astype(bf16), coefT.astype(bf16),
                               preferred_element_type=jnp.float32)       # (R, N)
                coefT = coefT * numT / (denT + eps)                      # exact recips
                coefT_b = coefT.astype(bf16)
                xc_scr[idx, D:, :] = coefT_b
                # ONE dot gives num_b (D,R) and ctc (R,R):  [xs ; coefT] @ coefT^T
                f2 = lax.dot_general(xc_scr[idx], coefT_b,
                                     (((1,), (1,)), ((), ())),
                                     preferred_element_type=jnp.float32)
                num_b, ctc = f2[:D, :], f2[D:, :]
                den_b = jnp.dot(bases_b, ctc.astype(bf16),
                                preferred_element_type=jnp.float32)      # (D, R)
                bases = bases * num_b / (den_b + eps)
                return bases, coefT

            if mu_unroll:
                for _ in range(eval_steps):
                    bases, coefT = mu_step(bases, coefT)
            else:
                bases, coefT = lax.fori_loop(0, eval_steps,
                                             lambda _, c: mu_step(*c),
                                             (bases, coefT))

            # compute_coef: one final coef refresh, then reconstruction.
            bases_b = bases.astype(bf16)
            ab_scr[idx, :, N:] = bases_b
            f1 = lax.dot_general(bases_b, ab_scr[idx], (((0,), (0,)), ((), ())),
                                 preferred_element_type=jnp.float32)
            numT, btb = f1[:, :N], f1[:, N:]
            denT = jnp.dot(btb.astype(bf16), coefT.astype(bf16),
                           preferred_element_type=jnp.float32)
            coefT = coefT * numT / (denT + eps)

            recon = jnp.dot(bases_b, coefT.astype(bf16),
                            preferred_element_type=jnp.float32)          # (D, N)
            # fused ham_out slice: z += w2[:, seg] @ recon
            part = jnp.dot(w2b[:, si * D:(si + 1) * D], recon.astype(bf16),
                           preferred_element_type=jnp.float32)           # (C, N)
            z = part if z is None else z + part

        # --- ham_out bias (norm_cfg=None default), residual + ReLU -------------
        z = z + b2
        o_ref[bt] = jnp.maximum(x_ref[bt].astype(jnp.float32) + z,
                                0.0).astype(o_ref.dtype)


def hamburger_forward(x_nchw, params, *, md_s=1, md_r=16, eval_steps=7, inv_t=1.0,
                      mu_unroll=True, batch_tile=None):
    B, C, H, W = x_nchw.shape
    N = H * W
    D = C // md_s
    R = md_r
    if batch_tile is None:
        # Two independent NMF chains per grid step give the MXU independent work to
        # hide the serial tiny-dot latency chain.  (On v7x with very small B, prefer
        # batch_tile=1 so the parallel grid axis can feed both TensorCores.)
        batch_tile = 2 if B % 2 == 0 else 1
    assert B % batch_tile == 0, "batch must be divisible by batch_tile"
    Bt = batch_tile

    x = x_nchw.reshape(B, C, N)
    w1 = params["w1"].astype(jnp.bfloat16)   # pre-cast: halves weight DMA/VMEM bytes
    w2 = params["w2"].astype(jnp.bfloat16)
    b1 = params["b1"].astype(jnp.float32)
    b2 = params["b2"].astype(jnp.float32)
    bases = params["bases"].astype(jnp.float32)

    # --- scoped-VMEM request derived from the actual slabs -----------------------
    io_bytes = 2 * 2 * (Bt * C * N * 4)                      # dbl-buffered x + out blocks
    w_bytes = 2 * (2 * C * C * 2 + 2 * C * 4 + md_s * D * R * 4)
    scr_bytes = Bt * md_s * (D * (N + R) + (D + R) * N) * 2  # bf16 staging scratches
    tmp_bytes = 2 * Bt * (2 * C * N + D * N + 2 * R * N) * 4  # y, z, recon, coefT, ...
    need = io_bytes + w_bytes + scr_bytes + tmp_bytes + (8 << 20)   # + headroom
    try:
        phys = pltpu.get_tpu_info().vmem_capacity_bytes      # 128 MiB v5e/v6e, 64 MiB v7x
    except Exception:
        phys = 64 * 1024 * 1024
    vmem_limit = int(min(max(need, 16 << 20), int(phys * 0.85)))

    kernel = functools.partial(_hamburger_kernel, md_s=md_s, md_r=R,
                               eval_steps=eval_steps, inv_t=float(inv_t),
                               mu_unroll=mu_unroll, batch_tile=Bt)
    out = pl.pallas_call(
        kernel,
        out_shape=jax.ShapeDtypeStruct((B, C, N), x.dtype),
        grid_spec=pltpu.PrefetchScalarGridSpec(
            num_scalar_prefetch=0,
            grid=(B // Bt,),
            in_specs=[
                pl.BlockSpec((Bt, C, N), lambda b: (b, 0, 0)),       # x
                pl.BlockSpec((C, C), lambda b: (0, 0)),              # w1 (bf16)
                pl.BlockSpec((C, 1), lambda b: (0, 0)),              # b1
                pl.BlockSpec((md_s, D, R), lambda b: (0, 0, 0)),     # bases
                pl.BlockSpec((C, C), lambda b: (0, 0)),              # w2 (bf16)
                pl.BlockSpec((C, 1), lambda b: (0, 0)),              # b2
            ],
            out_specs=pl.BlockSpec((Bt, C, N), lambda b: (b, 0, 0)),
            scratch_shapes=[
                pltpu.VMEM((Bt * md_s, D, N + R), jnp.bfloat16),     # [xs | bases]
                pltpu.VMEM((Bt * md_s, D + R, N), jnp.bfloat16),     # [xs ; coefT]
            ],
        ),
        compiler_params=pltpu.CompilerParams(
            dimension_semantics=("parallel",),
            vmem_limit_bytes=vmem_limit,
        ),
    )(x, w1, b1, bases, w2, b2)
    return out.reshape(B, C, H, W)


def hamburger_ref(x_nchw, params, *, md_s=1, md_r=16, eval_steps=7, inv_t=1.0):
    """Pure-JAX f32 reference mirroring the PyTorch forward (eval mode)."""
    eps = 1e-6
    B, C, H, W = x_nchw.shape
    N = H * W
    D = C // md_s
    x = x_nchw.reshape(B, C, N)
    w1, b1, bases_p, w2, b2 = (params["w1"], params["b1"], params["bases"],
                               params["w2"], params["b2"])
    y = jnp.maximum(jnp.einsum("oc,bcn->bon", w1, x) + b1[None], 0.0)
    xs = y.reshape(B * md_s, D, N)
    bases = jnp.tile(bases_p, (B, 1, 1))                              # repeat(batch,1,1)
    coef = jax.nn.softmax(
        inv_t * jnp.einsum("bdn,bdr->bnr", xs, bases), axis=-1)
    for _ in range(eval_steps):
        num = jnp.einsum("bdn,bdr->bnr", xs, bases)
        den = jnp.einsum("bnr,brk->bnk", coef,
                         jnp.einsum("bdr,bdk->brk", bases, bases))
        coef = coef * num / (den + eps)
        num = jnp.einsum("bdn,bnr->bdr", xs, coef)
        den = jnp.einsum("bdr,brk->bdk", bases,
                         jnp.einsum("bnr,bnk->brk", coef, coef))
        bases = bases * num / (den + eps)
    num = jnp.einsum("bdn,bdr->bnr", xs, bases)
    den = jnp.einsum("bnr,brk->bnk", coef,
                     jnp.einsum("bdr,bdk->brk", bases, bases))
    coef = coef * num / (den + eps)
    ham = jnp.einsum("bdr,bnr->bdn", bases, coef).reshape(B, C, N)
    z = jnp.einsum("oc,bcn->bon", w2, ham) + b2[None]
    return jnp.maximum(x + z, 0.0).reshape(B, C, H, W)


if __name__ == "__main__":
    # Small, module-consistent shapes.
    B, C, H, W = 2, 32, 16, 16
    md_s, md_r, eval_steps, inv_t = 1, 16, 7, 1.0
    D = C // md_s

    key = jax.random.PRNGKey(0)
    k = jax.random.split(key, 6)
    x = jax.random.normal(k[0], (B, C, H, W), jnp.float32)

    # Deterministic synthetic parameters (shapes from __init__).
    w1 = 0.1 * jax.random.normal(k[1], (C, C), jnp.float32)           # ham_in 1x1 conv
    b1 = 0.1 * jax.random.normal(k[2], (C, 1), jnp.float32)
    w2 = 0.1 * jax.random.normal(k[3], (C, C), jnp.float32)           # ham_out 1x1 conv
    b2 = 0.1 * jax.random.normal(k[4], (C, 1), jnp.float32)
    bases = jax.random.uniform(k[5], (md_s, D, md_r), jnp.float32)
    # f.normalize(..., dim=1) equivalent
    bases = bases / jnp.maximum(
        jnp.linalg.norm(bases, axis=1, keepdims=True), 1e-12)

    params = dict(w1=w1, b1=b1, bases=bases, w2=w2, b2=b2)

    out = hamburger_forward(x, params, md_s=md_s, md_r=md_r,
                            eval_steps=eval_steps, inv_t=inv_t)
    out = jax.block_until_ready(out)

    ref = hamburger_ref(x, params, md_s=md_s, md_r=md_r,
                        eval_steps=eval_steps, inv_t=inv_t)
    assert out.shape == (B, C, H, W)
    # bf16 MXU operands (f32 accumulation + exact MU reciprocals): tighter than v2.
    assert jnp.allclose(out, ref, atol=3e-2, rtol=3e-2), "mismatch vs JAX reference"

    print("KERNEL_OK")
</pallas_src>

<mosaic_0001>
module attributes {stable_mosaic.version = 11 : i64} {
  func.func @_hamburger_kernel(%arg0: i32, %arg1: memref<2x32x256xf32, #tpu.memory_space<vmem>>, %arg2: memref<32x32xbf16, #tpu.memory_space<vmem>>, %arg3: memref<32x1xf32, #tpu.memory_space<vmem>>, %arg4: memref<1x32x16xf32, #tpu.memory_space<vmem>>, %arg5: memref<32x32xbf16, #tpu.memory_space<vmem>>, %arg6: memref<32x1xf32, #tpu.memory_space<vmem>>, %arg7: memref<2x32x256xf32, #tpu.memory_space<vmem>>, %arg8: memref<2x32x272xbf16, #tpu.memory_space<vmem>>, %arg9: memref<2x48x256xbf16, #tpu.memory_space<vmem>>) attributes {dimension_semantics = [#tpu.dimension_semantics<parallel>], iteration_bounds = array<i64: 1>, scalar_prefetch = 0 : i64, scratch_operands = 2 : i64, tpu.core_type = #tpu.core_type<tc>, window_params = [{transform_indices = @transform_0, window_bounds = array<i64: 2, 32, 256>}, {pipeline_mode = #tpu.pipeline_mode<synchronous>, transform_indices = @transform_1, window_bounds = array<i64: 32, 32>}, {pipeline_mode = #tpu.pipeline_mode<synchronous>, transform_indices = @transform_2, window_bounds = array<i64: 32, 1>}, {pipeline_mode = #tpu.pipeline_mode<synchronous>, transform_indices = @transform_3, window_bounds = array<i64: 1, 32, 16>}, {pipeline_mode = #tpu.pipeline_mode<synchronous>, transform_indices = @transform_4, window_bounds = array<i64: 32, 32>}, {pipeline_mode = #tpu.pipeline_mode<synchronous>, transform_indices = @transform_5, window_bounds = array<i64: 32, 1>}, {transform_indices = @transform_6, window_bounds = array<i64: 2, 32, 256>}]} {
    %c0 = arith.constant 0 : index
    %c0_0 = arith.constant 0 : index
    %0 = vector.load %arg2[%c0, %c0_0] : memref<32x32xbf16, #tpu.memory_space<vmem>>, vector<32x32xbf16>
    %c0_1 = arith.constant 0 : index
    %c0_2 = arith.constant 0 : index
    %1 = vector.load %arg5[%c0_1, %c0_2] : memref<32x32xbf16, #tpu.memory_space<vmem>>, vector<32x32xbf16>
    %c0_3 = arith.constant 0 : index
    %c0_4 = arith.constant 0 : index
    %2 = vector.load %arg3[%c0_3, %c0_4] : memref<32x1xf32, #tpu.memory_space<vmem>>, vector<32x1xf32>
    %c0_5 = arith.constant 0 : index
    %c0_6 = arith.constant 0 : index
    %3 = vector.load %arg6[%c0_5, %c0_6] : memref<32x1xf32, #tpu.memory_space<vmem>>, vector<32x1xf32>
    %c0_7 = arith.constant 0 : index
    %c0_8 = arith.constant 0 : index
    %c0_9 = arith.constant 0 : index
    %4 = vector.load %arg1[%c0_7, %c0_8, %c0_9] : memref<2x32x256xf32, #tpu.memory_space<vmem>>, vector<1x32x256xf32>
    %5 = vector.shape_cast %4 : vector<1x32x256xf32> to vector<32x256xf32>
    %6 = arith.truncf %5 : vector<32x256xf32> to vector<32x256xbf16>
    %cst = arith.constant dense<0.000000e+00> : vector<32x256xf32>
    %7 = tpu.matmul %0, %6, %cst {dimension_numbers = #tpu.dot_dimension_numbers<[1], [0], [0], [1], [0, 0, 1, 1], [], []>} : vector<32x32xbf16>, vector<32x256xbf16>, vector<32x256xf32> -> vector<32x256xf32>
    %8 = vector.broadcast %2 : vector<32x1xf32> to vector<32x256xf32>
    %9 = arith.addf %7, %8 : vector<32x256xf32>
    %cst_10 = arith.constant 0.000000e+00 : f32
    %10 = vector.broadcast %cst_10 : f32 to vector<32x256xf32>
    %11 = arith.maximumf %9, %10 : vector<32x256xf32>
    %12 = arith.truncf %11 : vector<32x256xf32> to vector<32x256xbf16>
    %c0_11 = arith.constant 0 : index
    %c0_12 = arith.constant 0 : index
    %c0_13 = arith.constant 0 : index
    %13 = vector.load %arg8[%c0_11, %c0_12, %c0_13] : memref<2x32x272xbf16, #tpu.memory_space<vmem>>, vector<1x32x256xbf16>
    %14 = vector.shape_cast %13 : vector<1x32x256xbf16> to vector<32x256xbf16>
    %15 = vector.shape_cast %12 : vector<32x256xbf16> to vector<1x32x256xbf16>
    tpu.vector_store %arg8[%c0_11, %c0_12, %c0_13], %15 {strides = array<i32>} : memref<2x32x272xbf16, #tpu.memory_space<vmem>>, vector<1x32x256xbf16>,
    %c0_14 = arith.constant 0 : index
    %c0_15 = arith.constant 0 : index
    %c0_16 = arith.constant 0 : index
    %16 = vector.load %arg9[%c0_14, %c0_15, %c0_16] : memref<2x48x256xbf16, #tpu.memory_space<vmem>>, vector<1x32x256xbf16>
    %17 = vector.shape_cast %16 : vector<1x32x256xbf16> to vector<32x256xbf16>
    %18 = vector.shape_cast %12 : vector<32x256xbf16> to vector<1x32x256xbf16>
    tpu.vector_store %arg9[%c0_14, %c0_15, %c0_16], %18 {strides = array<i32>} : memref<2x48x256xbf16, #tpu.memory_space<vmem>>, vector<1x32x256xbf16>,
    %c0_17 = arith.constant 0 : index
    %c0_18 = arith.constant 0 : index
    %c0_19 = arith.constant 0 : index
    %19 = vector.load %arg4[%c0_17, %c0_18, %c0_19] : memref<1x32x16xf32, #tpu.memory_space<vmem>>, vector<1x32x16xf32>
    %20 = vector.shape_cast %19 : vector<1x32x16xf32> to vector<32x16xf32>
    %21 = arith.truncf %20 : vector<32x16xf32> to vector<32x16xbf16>
    %cst_20 = arith.constant dense<0.000000e+00> : vector<16x256xf32>
    %22 = tpu.matmul %21, %12, %cst_20 {dimension_numbers = #tpu.dot_dimension_numbers<[0], [0], [1], [1], [0, 1, 1, 1], [], []>} : vector<32x16xbf16>, vector<32x256xbf16>, vector<16x256xf32> -> vector<16x256xf32>
    %cst_21 = arith.constant dense<0xFF800000> : vector<256xf32>
    %23 = vector.multi_reduction <maximumf>, %22, %cst_21 [0] : vector<16x256xf32> to vector<256xf32>
    %24 = vector.shape_cast %23 : vector<256xf32> to vector<1x256xf32>
    %25 = vector.broadcast %24 : vector<1x256xf32> to vector<16x256xf32>
    %26 = arith.subf %22, %25 : vector<16x256xf32>
    %27 = math.exp %26 : vector<16x256xf32>
    %cst_22 = arith.constant dense<0.000000e+00> : vector<256xf32>
    %28 = vector.multi_reduction <add>, %27, %cst_22 [0] : vector<16x256xf32> to vector<256xf32>
    %29 = vector.shape_cast %28 : vector<256xf32> to vector<1x256xf32>
    %30 = tpu.reciprocal %29 {approx = true} : vector<1x256xf32> -> vector<1x256xf32>
    %31 = vector.broadcast %30 : vector<1x256xf32> to vector<16x256xf32>
    %32 = arith.mulf %27, %31 : vector<16x256xf32>
    %33 = arith.truncf %20 : vector<32x16xf32> to vector<32x16xbf16>
    %c0_23 = arith.constant 0 : index
    %c0_24 = arith.constant 0 : index
    %c256 = arith.constant 256 : index
    %34 = vector.load %arg8[%c0_23, %c0_24, %c256] : memref<2x32x272xbf16, #tpu.memory_space<vmem>>, vector<1x32x16xbf16>
    %35 = vector.shape_cast %34 : vector<1x32x16xbf16> to vector<32x16xbf16>
    %36 = vector.shape_cast %33 : vector<32x16xbf16> to vector<1x32x16xbf16>
    tpu.vector_store %arg8[%c0_23, %c0_24, %c256], %36 {strides = array<i32>} : memref<2x32x272xbf16, #tpu.memory_space<vmem>>, vector<1x32x16xbf16>,
    %c0_25 = arith.constant 0 : index
    %c0_26 = arith.constant 0 : index
    %c0_27 = arith.constant 0 : index
    %37 = vector.load %arg8[%c0_25, %c0_26, %c0_27] : memref<2x32x272xbf16, #tpu.memory_space<vmem>>, vector<1x32x272xbf16>
    %38 = vector.shape_cast %37 : vector<1x32x272xbf16> to vector<32x272xbf16>
    %cst_28 = arith.constant dense<0.000000e+00> : vector<16x272xf32>
    %39 = tpu.matmul %33, %38, %cst_28 {dimension_numbers = #tpu.dot_dimension_numbers<[0], [0], [1], [1], [0, 1, 1, 1], [], []>} : vector<32x16xbf16>, vector<32x272xbf16>, vector<16x272xf32> -> vector<16x272xf32>
    %40 = vector.extract_strided_slice %39 {offsets = [0, 0], sizes = [16, 256], strides = [1, 1]} : vector<16x272xf32> to vector<16x256xf32>
    %41 = vector.extract_strided_slice %39 {offsets = [0, 256], sizes = [16, 16], strides = [1, 1]} : vector<16x272xf32> to vector<16x16xf32>
    %42 = arith.truncf %41 : vector<16x16xf32> to vector<16x16xbf16>
    %43 = arith.truncf %32 : vector<16x256xf32> to vector<16x256xbf16>
    %cst_29 = arith.constant dense<0.000000e+00> : vector<16x256xf32>
    %44 = tpu.matmul %42, %43, %cst_29 {dimension_numbers = #tpu.dot_dimension_numbers<[1], [0], [0], [1], [0, 0, 1, 1], [], []>} : vector<16x16xbf16>, vector<16x256xbf16>, vector<16x256xf32> -> vector<16x256xf32>
    %45 = arith.mulf %32, %40 : vector<16x256xf32>
    %cst_30 = arith.constant 9.99999997E-7 : f32
    %46 = vector.broadcast %cst_30 : f32 to vector<16x256xf32>
    %47 = arith.addf %44, %46 : vector<16x256xf32>
    %48 = arith.divf %45, %47 : vector<16x256xf32>
    %49 = arith.truncf %48 : vector<16x256xf32> to vector<16x256xbf16>
    %c0_31 = arith.constant 0 : index
    %c32 = arith.constant 32 : index
    %c0_32 = arith.constant 0 : index
    %50 = vector.load %arg9[%c0_31, %c32, %c0_32] : memref<2x48x256xbf16, #tpu.memory_space<vmem>>, vector<1x16x256xbf16>
    %51 = vector.shape_cast %50 : vector<1x16x256xbf16> to vector<16x256xbf16>
    %52 = vector.shape_cast %49 : vector<16x256xbf16> to vector<1x16x256xbf16>
    tpu.vector_store %arg9[%c0_31, %c32, %c0_32], %52 {strides = array<i32>} : memref<2x48x256xbf16, #tpu.memory_space<vmem>>, vector<1x16x256xbf16>,
    %c0_33 = arith.constant 0 : index
    %c0_34 = arith.constant 0 : index
    %c0_35 = arith.constant 0 : index
    %53 = vector.load %arg9[%c0_33, %c0_34, %c0_35] : memref<2x48x256xbf16, #tpu.memory_space<vmem>>, vector<1x48x256xbf16>
    %54 = vector.shape_cast %53 : vector<1x48x256xbf16> to vector<48x256xbf16>
    %cst_36 = arith.constant dense<0.000000e+00> : vector<48x16xf32>
    %55 = tpu.matmul %54, %49, %cst_36 {dimension_numbers = #tpu.dot_dimension_numbers<[1], [1], [0], [0], [0, 0, 1, 0], [], []>} : vector<48x256xbf16>, vector<16x256xbf16>, vector<48x16xf32> -> vector<48x16xf32>
    %56 = vector.extract_strided_slice %55 {offsets = [0, 0], sizes = [32, 16], strides = [1, 1]} : vector<48x16xf32> to vector<32x16xf32>
    %57 = vector.extract_strided_slice %55 {offsets = [32, 0], sizes = [16, 16], strides = [1, 1]} : vector<48x16xf32> to vector<16x16xf32>
    %58 = arith.truncf %57 : vector<16x16xf32> to vector<16x16xbf16>
    %cst_37 = arith.constant dense<0.000000e+00> : vector<32x16xf32>
    %59 = tpu.matmul %33, %58, %cst_37 {dimension_numbers = #tpu.dot_dimension_numbers<[1], [0], [0], [1], [0, 0, 1, 1], [], []>} : vector<32x16xbf16>, vector<16x16xbf16>, vector<32x16xf32> -> vector<32x16xf32>
    %60 = arith.mulf %20, %56 : vector<32x16xf32>
    %cst_38 = arith.constant 9.99999997E-7 : f32
    %61 = vector.broadcast %cst_38 : f32 to vector<32x16xf32>
    %62 = arith.addf %59, %61 : vector<32x16xf32>
    %63 = arith.divf %60, %62 : vector<32x16xf32>
    %64 = arith.truncf %63 : vector<32x16xf32> to vector<32x16xbf16>
    %c0_39 = arith.constant 0 : index
    %c0_40 = arith.constant 0 : index
    %c256_41 = arith.constant 256 : index
    %65 = vector.load %arg8[%c0_39, %c0_40, %c256_41] : memref<2x32x272xbf16, #tpu.memory_space<vmem>>, vector<1x32x16xbf16>
    %66 = vector.shape_cast %65 : vector<1x32x16xbf16> to vector<32x16xbf16>
    %67 = vector.shape_cast %64 : vector<32x16xbf16> to vector<1x32x16xbf16>
    tpu.vector_store %arg8[%c0_39, %c0_40, %c256_41], %67 {strides = array<i32>} : memref<2x32x272xbf16, #tpu.memory_space<vmem>>, vector<1x32x16xbf16>,
    %c0_42 = arith.constant 0 : index
    %c0_43 = arith.constant 0 : index
    %c0_44 = arith.constant 0 : index
    %68 = vector.load %arg8[%c0_42, %c0_43, %c0_44] : memref<2x32x272xbf16, #tpu.memory_space<vmem>>, vector<1x32x272xbf16>
    %69 = vector.shape_cast %68 : vector<1x32x272xbf16> to vector<32x272xbf16>
    %cst_45 = arith.constant dense<0.000000e+00> : vector<16x272xf32>
    %70 = tpu.matmul %64, %69, %cst_45 {dimension_numbers = #tpu.dot_dimension_numbers<[0], [0], [1], [1], [0, 1, 1, 1], [], []>} : vector<32x16xbf16>, vector<32x272xbf16>, vector<16x272xf32> -> vector<16x272xf32>
    %71 = vector.extract_strided_slice %70 {offsets = [0, 0], sizes = [16, 256], strides = [1, 1]} : vector<16x272xf32> to vector<16x256xf32>
    %72 = vector.extract_strided_slice %70 {offsets = [0, 256], sizes = [16, 16], strides = [1, 1]} : vector<16x272xf32> to vector<16x16xf32>
    %73 = arith.truncf %72 : vector<16x16xf32> to vector<16x16xbf16>
    %74 = arith.truncf %48 : vector<16x256xf32> to vector<16x256xbf16>
    %cst_46 = arith.constant dense<0.000000e+00> : vector<16x256xf32>
    %75 = tpu.matmul %73, %74, %cst_46 {dimension_numbers = #tpu.dot_dimension_numbers<[1], [0], [0], [1], [0, 0, 1, 1], [], []>} : vector<16x16xbf16>, vector<16x256xbf16>, vector<16x256xf32> -> vector<16x256xf32>
    %76 = arith.mulf %48, %71 : vector<16x256xf32>
    %cst_47 = arith.constant 9.99999997E-7 : f32
    %77 = vector.broadcast %cst_47 : f32 to vector<16x256xf32>
    %78 = arith.addf %75, %77 : vector<16x256xf32>
    %79 = arith.divf %76, %78 : vector<16x256xf32>
    %80 = arith.truncf %79 : vector<16x256xf32> to vector<16x256xbf16>
    %c0_48 = arith.constant 0 : index
    %c32_49 = arith.constant 32 : index
    %c0_50 = arith.constant 0 : index
    %81 = vector.load %arg9[%c0_48, %c32_49, %c0_50] : memref<2x48x256xbf16, #tpu.memory_space<vmem>>, vector<1x16x256xbf16>
    %82 = vector.shape_cast %81 : vector<1x16x256xbf16> to vector<16x256xbf16>
    %83 = vector.shape_cast %80 : vector<16x256xbf16> to vector<1x16x256xbf16>
    tpu.vector_store %arg9[%c0_48, %c32_49, %c0_50], %83 {strides = array<i32>} : memref<2x48x256xbf16, #tpu.memory_space<vmem>>, vector<1x16x256xbf16>,
    %c0_51 = arith.constant 0 : index
    %c0_52 = arith.constant 0 : index
    %c0_53 = arith.constant 0 : index
    %84 = vector.load %arg9[%c0_51, %c0_52, %c0_53] : memref<2x48x256xbf16, #tpu.memory_space<vmem>>, vector<1x48x256xbf16>
    %85 = vector.shape_cast %84 : vector<1x48x256xbf16> to vector<48x256xbf16>
    %cst_54 = arith.constant dense<0.000000e+00> : vector<48x16xf32>
    %86 = tpu.matmul %85, %80, %cst_54 {dimension_numbers = #tpu.dot_dimension_numbers<[1], [1], [0], [0], [0, 0, 1, 0], [], []>} : vector<48x256xbf16>, vector<16x256xbf16>, vector<48x16xf32> -> vector<48x16xf32>
    %87 = vector.extract_strided_slice %86 {offsets = [0, 0], sizes = [32, 16], strides = [1, 1]} : vector<48x16xf32> to vector<32x16xf32>
    %88 = vector.extract_strided_slice %86 {offsets = [32, 0], sizes = [16, 16], strides = [1, 1]} : vector<48x16xf32> to vector<16x16xf32>
    %89 = arith.truncf %88 : vector<16x16xf32> to vector<16x16xbf16>
    %cst_55 = arith.constant dense<0.000000e+00> : vector<32x16xf32>
    %90 = tpu.matmul %64, %89, %cst_55 {dimension_numbers = #tpu.dot_dimension_numbers<[1], [0], [0], [1], [0, 0, 1, 1], [], []>} : vector<32x16xbf16>, vector<16x16xbf16>, vector<32x16xf32> -> vector<32x16xf32>
    %91 = arith.mulf %63, %87 : vector<32x16xf32>
    %cst_56 = arith.constant 9.99999997E-7 : f32
    %92 = vector.broadcast %cst_56 : f32 to vector<32x16xf32>
    %93 = arith.addf %90, %92 : vector<32x16xf32>
    %94 = arith.divf %91, %93 : vector<32x16xf32>
    %95 = arith.truncf %94 : vector<32x16xf32> to vector<32x16xbf16>
    %c0_57 = arith.constant 0 : index
    %c0_58 = arith.constant 0 : index
    %c256_59 = arith.constant 256 : index
    %96 = vector.load %arg8[%c0_57, %c0_58, %c256_59] : memref<2x32x272xbf16, #tpu.memory_space<vmem>>, vector<1x32x16xbf16>
    %97 = vector.shape_cast %96 : vector<1x32x16xbf16> to vector<32x16xbf16>
    %98 = vector.shape_cast %95 : vector<32x16xbf16> to vector<1x32x16xbf16>
    tpu.vector_store %arg8[%c0_57, %c0_58, %c256_59], %98 {strides = array<i32>} : memref<2x32x272xbf16, #tpu.memory_space<vmem>>, vector<1x32x16xbf16>,
    %c0_60 = arith.constant 0 : index
    %c0_61 = arith.constant 0 : index
    %c0_62 = arith.constant 0 : index
    %99 = vector.load %arg8[%c0_60, %c0_61, %c0_62] : memref<2x32x272xbf16, #tpu.memory_space<vmem>>, vector<1x32x272xbf16>
    %100 = vector.shape_cast %99 : vector<1x32x272xbf16> to vector<32x272xbf16>
    %cst_63 = arith.constant dense<0.000000e+00> : vector<16x272xf32>
    %101 = tpu.matmul %95, %100, %cst_63 {dimension_numbers = #tpu.dot_dimension_numbers<[0], [0], [1], [1], [0, 1, 1, 1], [], []>} : vector<32x16xbf16>, vector<32x272xbf16>, vector<16x272xf32> -> vector<16x272xf32>
    %102 = vector.extract_strided_slice %101 {offsets = [0, 0], sizes = [16, 256], strides = [1, 1]} : vector<16x272xf32> to vector<16x256xf32>
    %103 = vector.extract_strided_slice %101 {offsets = [0, 256], sizes = [16, 16], strides = [1, 1]} : vector<16x272xf32> to vector<16x16xf32>
    %104 = arith.truncf %103 : vector<16x16xf32> to vector<16x16xbf16>
    %105 = arith.truncf %79 : vector<16x256xf32> to vector<16x256xbf16>
    %cst_64 = arith.constant dense<0.000000e+00> : vector<16x256xf32>
    %106 = tpu.matmul %104, %105, %cst_64 {dimension_numbers = #tpu.dot_dimension_numbers<[1], [0], [0], [1], [0, 0, 1, 1], [], []>} : vector<16x16xbf16>, vector<16x256xbf16>, vector<16x256xf32> -> vector<16x256xf32>
    %107 = arith.mulf %79, %102 : vector<16x256xf32>
    %cst_65 = arith.constant 9.99999997E-7 : f32
    %108 = vector.broadcast %cst_65 : f32 to vector<16x256xf32>
    %109 = arith.addf %106, %108 : vector<16x256xf32>
    %110 = arith.divf %107, %109 : vector<16x256xf32>
    %111 = arith.truncf %110 : vector<16x256xf32> to vector<16x256xbf16>
    %c0_66 = arith.constant 0 : index
    %c32_67 = arith.constant 32 : index
    %c0_68 = arith.constant 0 : index
    %112 = vector.load %arg9[%c0_66, %c32_67, %c0_68] : memref<2x48x256xbf16, #tpu.memory_space<vmem>>, vector<1x16x256xbf16>
    %113 = vector.shape_cast %112 : vector<1x16x256xbf16> to vector<16x256xbf16>
    %114 = vector.shape_cast %111 : vector<16x256xbf16> to vector<1x16x256xbf16>
    tpu.vector_store %arg9[%c0_66, %c32_67, %c0_68], %114 {strides = array<i32>} : memref<2x48x256xbf16, #tpu.memory_space<vmem>>, vector<1x16x256xbf16>,
    %c0_69 = arith.constant 0 : index
    %c0_70 = arith.constant 0 : index
    %c0_71 = arith.constant 0 : index
    %115 = vector.load %arg9[%c0_69, %c0_70, %c0_71] : memref<2x48x256xbf16, #tpu.memory_space<vmem>>, vector<1x48x256xbf16>
    %116 = vector.shape_cast %115 : vector<1x48x256xbf16> to vector<48x256xbf16>
    %cst_72 = arith.constant dense<0.000000e+00> : vector<48x16xf32>
    %117 = tpu.matmul %116, %111, %cst_72 {dimension_numbers = #tpu.dot_dimension_numbers<[1], [1], [0], [0], [0, 0, 1, 0], [], []>} : vector<48x256xbf16>, vector<16x256xbf16>, vector<48x16xf32> -> vector<48x16xf32>
    %118 = vector.extract_strided_slice %117 {offsets = [0, 0], sizes = [32, 16], strides = [1, 1]} : vector<48x16xf32> to vector<32x16xf32>
    %119 = vector.extract_strided_slice %117 {offsets = [32, 0], sizes = [16, 16], strides = [1, 1]} : vector<48x16xf32> to vector<16x16xf32>
    %120 = arith.truncf %119 : vector<16x16xf32> to vector<16x16xbf16>
    %cst_73 = arith.constant dense<0.000000e+00> : vector<32x16xf32>
    %121 = tpu.matmul %95, %120, %cst_73 {dimension_numbers = #tpu.dot_dimension_numbers<[1], [0], [0], [1], [0, 0, 1, 1], [], []>} : vector<32x16xbf16>, vector<16x16xbf16>, vector<32x16xf32> -> vector<32x16xf32>
    %122 = arith.mulf %94, %118 : vector<32x16xf32>
    %cst_74 = arith.constant 9.99999997E-7 : f32
    %123 = vector.broadcast %cst_74 : f32 to vector<32x16xf32>
    %124 = arith.addf %121, %123 : vector<32x16xf32>
    %125 = arith.divf %122, %124 : vector<32x16xf32>
    %126 = arith.truncf %125 : vector<32x16xf32> to vector<32x16xbf16>
    %c0_75 = arith.constant 0 : index
    %c0_76 = arith.constant 0 : index
    %c256_77 = arith.constant 256 : index
    %127 = vector.load %arg8[%c0_75, %c0_76, %c256_77] : memref<2x32x272xbf16, #tpu.memory_space<vmem>>, vector<1x32x16xbf16>
    %128 = vector.shape_cast %127 : vector<1x32x16xbf16> to vector<32x16xbf16>
    %129 = vector.shape_cast %126 : vector<32x16xbf16> to vector<1x32x16xbf16>
    tpu.vector_store %arg8[%c0_75, %c0_76, %c256_77], %129 {strides = array<i32>} : memref<2x32x272xbf16, #tpu.memory_space<vmem>>, vector<1x32x16xbf16>,
    %c0_78 = arith.constant 0 : index
    %c0_79 = arith.constant 0 : index
    %c0_80 = arith.constant 0 : index
    %130 = vector.load %arg8[%c0_78, %c0_79, %c0_80] : memref<2x32x272xbf16, #tpu.memory_space<vmem>>, vector<1x32x272xbf16>
    %131 = vector.shape_cast %130 : vector<1x32x272xbf16> to vector<32x272xbf16>
    %cst_81 = arith.constant dense<0.000000e+00> : vector<16x272xf32>
    %132 = tpu.matmul %126, %131, %cst_81 {dimension_numbers = #tpu.dot_dimension_numbers<[0], [0], [1], [1], [0, 1, 1, 1], [], []>} : vector<32x16xbf16>, vector<32x272xbf16>, vector<16x272xf32> -> vector<16x272xf32>
    %133 = vector.extract_strided_slice %132 {offsets = [0, 0], sizes = [16, 256], strides = [1, 1]} : vector<16x272xf32> to vector<16x256xf32>
    %134 = vector.extract_strided_slice %132 {offsets = [0, 256], sizes = [16, 16], strides = [1, 1]} : vector<16x272xf32> to vector<16x16xf32>
    %135 = arith.truncf %134 : vector<16x16xf32> to vector<16x16xbf16>
    %136 = arith.truncf %110 : vector<16x256xf32> to vector<16x256xbf16>
    %cst_82 = arith.constant dense<0.000000e+00> : vector<16x256xf32>
    %137 = tpu.matmul %135, %136, %cst_82 {dimension_numbers = #tpu.dot_dimension_numbers<[1], [0], [0], [1], [0, 0, 1, 1], [], []>} : vector<16x16xbf16>, vector<16x256xbf16>, vector<16x256xf32> -> vector<16x256xf32>
    %138 = arith.mulf %110, %133 : vector<16x256xf32>
    %cst_83 = arith.constant 9.99999997E-7 : f32
    %139 = vector.broadcast %cst_83 : f32 to vector<16x256xf32>
    %140 = arith.addf %137, %139 : vector<16x256xf32>
    %141 = arith.divf %138, %140 : vector<16x256xf32>
    %142 = arith.truncf %141 : vector<16x256xf32> to vector<16x256xbf16>
    %c0_84 = arith.constant 0 : index
    %c32_85 = arith.constant 32 : index
    %c0_86 = arith.constant 0 : index
    %143 = vector.load %arg9[%c0_84, %c32_85, %c0_86] : memref<2x48x256xbf16, #tpu.memory_space<vmem>>, vector<1x16x256xbf16>
    %144 = vector.shape_cast %143 : vector<1x16x256xbf16> to vector<16x256xbf16>
    %145 = vector.shape_cast %142 : vector<16x256xbf16> to vector<1x16x256xbf16>
    tpu.vector_store %arg9[%c0_84, %c32_85, %c0_86], %145 {strides = array<i32>} : memref<2x48x256xbf16, #tpu.memory_space<vmem>>, vector<1x16x256xbf16>,
    %c0_87 = arith.constant 0 : index
    %c0_88 = arith.constant 0 : index
    %c0_89 = arith.constant 0 : index
    %146 = vector.load %arg9[%c0_87, %c0_88, %c0_89] : memref<2x48x256xbf16, #tpu.memory_space<vmem>>, vector<1x48x256xbf16>
    %147 = vector.shape_cast %146 : vector<1x48x256xbf16> to vector<48x256xbf16>
    %cst_90 = arith.constant dense<0.000000e+00> : vector<48x16xf32>
    %148 = tpu.matmul %147, %142, %cst_90 {dimension_numbers = #tpu.dot_dimension_numbers<[1], [1], [0], [0], [0, 0, 1, 0], [], []>} : vector<48x256xbf16>, vector<16x256xbf16>, vector<48x16xf32> -> vector<48x16xf32>
    %149 = vector.extract_strided_slice %148 {offsets = [0, 0], sizes = [32, 16], strides = [1, 1]} : vector<48x16xf32> to vector<32x16xf32>
    %150 = vector.extract_strided_slice %148 {offsets = [32, 0], sizes = [16, 16], strides = [1, 1]} : vector<48x16xf32> to vector<16x16xf32>
    %151 = arith.truncf %150 : vector<16x16xf32> to vector<16x16xbf16>
    %cst_91 = arith.constant dense<0.000000e+00> : vector<32x16xf32>
    %152 = tpu.matmul %126, %151, %cst_91 {dimension_numbers = #tpu.dot_dimension_numbers<[1], [0], [0], [1], [0, 0, 1, 1], [], []>} : vector<32x16xbf16>, vector<16x16xbf16>, vector<32x16xf32> -> vector<32x16xf32>
    %153 = arith.mulf %125, %149 : vector<32x16xf32>
    %cst_92 = arith.constant 9.99999997E-7 : f32
    %154 = vector.broadcast %cst_92 : f32 to vector<32x16xf32>
    %155 = arith.addf %152, %154 : vector<32x16xf32>
    %156 = arith.divf %153, %155 : vector<32x16xf32>
    %157 = arith.truncf %156 : vector<32x16xf32> to vector<32x16xbf16>
    %c0_93 = arith.constant 0 : index
    %c0_94 = arith.constant 0 : index
    %c256_95 = arith.constant 256 : index
    %158 = vector.load %arg8[%c0_93, %c0_94, %c256_95] : memref<2x32x272xbf16, #tpu.memory_space<vmem>>, vector<1x32x16xbf16>
    %159 = vector.shape_cast %158 : vector<1x32x16xbf16> to vector<32x16xbf16>
    %160 = vector.shape_cast %157 : vector<32x16xbf16> to vector<1x32x16xbf16>
    tpu.vector_store %arg8[%c0_93, %c0_94, %c256_95], %160 {strides = array<i32>} : memref<2x32x272xbf16, #tpu.memory_space<vmem>>, vector<1x32x16xbf16>,
    %c0_96 = arith.constant 0 : index
    %c0_97 = arith.constant 0 : index
    %c0_98 = arith.constant 0 : index
    %161 = vector.load %arg8[%c0_96, %c0_97, %c0_98] : memref<2x32x272xbf16, #tpu.memory_space<vmem>>, vector<1x32x272xbf16>
    %162 = vector.shape_cast %161 : vector<1x32x272xbf16> to vector<32x272xbf16>
    %cst_99 = arith.constant dense<0.000000e+00> : vector<16x272xf32>
    %163 = tpu.matmul %157, %162, %cst_99 {dimension_numbers = #tpu.dot_dimension_numbers<[0], [0], [1], [1], [0, 1, 1, 1], [], []>} : vector<32x16xbf16>, vector<32x272xbf16>, vector<16x272xf32> -> vector<16x272xf32>
    %164 = vector.extract_strided_slice %163 {offsets = [0, 0], sizes = [16, 256], strides = [1, 1]} : vector<16x272xf32> to vector<16x256xf32>
    %165 = vector.extract_strided_slice %163 {offsets = [0, 256], sizes = [16, 16], strides = [1, 1]} : vector<16x272xf32> to vector<16x16xf32>
    %166 = arith.truncf %165 : vector<16x16xf32> to vector<16x16xbf16>
    %167 = arith.truncf %141 : vector<16x256xf32> to vector<16x256xbf16>
    %cst_100 = arith.constant dense<0.000000e+00> : vector<16x256xf32>
    %168 = tpu.matmul %166, %167, %cst_100 {dimension_numbers = #tpu.dot_dimension_numbers<[1], [0], [0], [1], [0, 0, 1, 1], [], []>} : vector<16x16xbf16>, vector<16x256xbf16>, vector<16x256xf32> -> vector<16x256xf32>
    %169 = arith.mulf %141, %164 : vector<16x256xf32>
    %cst_101 = arith.constant 9.99999997E-7 : f32
    %170 = vector.broadcast %cst_101 : f32 to vector<16x256xf32>
    %171 = arith.addf %168, %170 : vector<16x256xf32>
    %172 = arith.divf %169, %171 : vector<16x256xf32>
    %173 = arith.truncf %172 : vector<16x256xf32> to vector<16x256xbf16>
    %c0_102 = arith.constant 0 : index
    %c32_103 = arith.constant 32 : index
    %c0_104 = arith.constant 0 : index
    %174 = vector.load %arg9[%c0_102, %c32_103, %c0_104] : memref<2x48x256xbf16, #tpu.memory_space<vmem>>, vector<1x16x256xbf16>
    %175 = vector.shape_cast %174 : vector<1x16x256xbf16> to vector<16x256xbf16>
    %176 = vector.shape_cast %173 : vector<16x256xbf16> to vector<1x16x256xbf16>
    tpu.vector_store %arg9[%c0_102, %c32_103, %c0_104], %176 {strides = array<i32>} : memref<2x48x256xbf16, #tpu.memory_space<vmem>>, vector<1x16x256xbf16>,
    %c0_105 = arith.constant 0 : index
    %c0_106 = arith.constant 0 : index
    %c0_107 = arith.constant 0 : index
    %177 = vector.load %arg9[%c0_105, %c0_106, %c0_107] : memref<2x48x256xbf16, #tpu.memory_space<vmem>>, vector<1x48x256xbf16>
    %178 = vector.shape_cast %177 : vector<1x48x256xbf16> to vector<48x256xbf16>
    %cst_108 = arith.constant dense<0.000000e+00> : vector<48x16xf32>
    %179 = tpu.matmul %178, %173, %cst_108 {dimension_numbers = #tpu.dot_dimension_numbers<[1], [1], [0], [0], [0, 0, 1, 0], [], []>} : vector<48x256xbf16>, vector<16x256xbf16>, vector<48x16xf32> -> vector<48x16xf32>
    %180 = vector.extract_strided_slice %179 {offsets = [0, 0], sizes = [32, 16], strides = [1, 1]} : vector<48x16xf32> to vector<32x16xf32>
    %181 = vector.extract_strided_slice %179 {offsets = [32, 0], sizes = [16, 16], strides = [1, 1]} : vector<48x16xf32> to vector<16x16xf32>
    %182 = arith.truncf %181 : vector<16x16xf32> to vector<16x16xbf16>
    %cst_109 = arith.constant dense<0.000000e+00> : vector<32x16xf32>
    %183 = tpu.matmul %157, %182, %cst_109 {dimension_numbers = #tpu.dot_dimension_numbers<[1], [0], [0], [1], [0, 0, 1, 1], [], []>} : vector<32x16xbf16>, vector<16x16xbf16>, vector<32x16xf32> -> vector<32x16xf32>
    %184 = arith.mulf %156, %180 : vector<32x16xf32>
    %cst_110 = arith.constant 9.99999997E-7 : f32
    %185 = vector.broadcast %cst_110 : f32 to vector<32x16xf32>
    %186 = arith.addf %183, %185 : vector<32x16xf32>
    %187 = arith.divf %184, %186 : vector<32x16xf32>
    %188 = arith.truncf %187 : vector<32x16xf32> to vector<32x16xbf16>
    %c0_111 = arith.constant 0 : index
    %c0_112 = arith.constant 0 : index
    %c256_113 = arith.constant 256 : index
    %189 = vector.load %arg8[%c0_111, %c0_112, %c256_113] : memref<2x32x272xbf16, #tpu.memory_space<vmem>>, vector<1x32x16xbf16>
    %190 = vector.shape_cast %189 : vector<1x32x16xbf16> to vector<32x16xbf16>
    %191 = vector.shape_cast %188 : vector<32x16xbf16> to vector<1x32x16xbf16>
    tpu.vector_store %arg8[%c0_111, %c0_112, %c256_113], %191 {strides = array<i32>} : memref<2x32x272xbf16, #tpu.memory_space<vmem>>, vector<1x32x16xbf16>,
    %c0_114 = arith.constant 0 : index
    %c0_115 = arith.constant 0 : index
    %c0_116 = arith.constant 0 : index
    %192 = vector.load %arg8[%c0_114, %c0_115, %c0_116] : memref<2x32x272xbf16, #tpu.memory_space<vmem>>, vector<1x32x272xbf16>
    %193 = vector.shape_cast %192 : vector<1x32x272xbf16> to vector<32x272xbf16>
    %cst_117 = arith.constant dense<0.000000e+00> : vector<16x272xf32>
    %194 = tpu.matmul %188, %193, %cst_117 {dimension_numbers = #tpu.dot_dimension_numbers<[0], [0], [1], [1], [0, 1, 1, 1], [], []>} : vector<32x16xbf16>, vector<32x272xbf16>, vector<16x272xf32> -> vector<16x272xf32>
    %195 = vector.extract_strided_slice %194 {offsets = [0, 0], sizes = [16, 256], strides = [1, 1]} : vector<16x272xf32> to vector<16x256xf32>
    %196 = vector.extract_strided_slice %194 {offsets = [0, 256], sizes = [16, 16], strides = [1, 1]} : vector<16x272xf32> to vector<16x16xf32>
    %197 = arith.truncf %196 : vector<16x16xf32> to vector<16x16xbf16>
    %198 = arith.truncf %172 : vector<16x256xf32> to vector<16x256xbf16>
    %cst_118 = arith.constant dense<0.000000e+00> : vector<16x256xf32>
    %199 = tpu.matmul %197, %198, %cst_118 {dimension_numbers = #tpu.dot_dimension_numbers<[1], [0], [0], [1], [0, 0, 1, 1], [], []>} : vector<16x16xbf16>, vector<16x256xbf16>, vector<16x256xf32> -> vector<16x256xf32>
    %200 = arith.mulf %172, %195 : vector<16x256xf32>
    %cst_119 = arith.constant 9.99999997E-7 : f32
    %201 = vector.broadcast %cst_119 : f32 to vector<16x256xf32>
    %202 = arith.addf %199, %201 : vector<16x256xf32>
    %203 = arith.divf %200, %202 : vector<16x256xf32>
    %204 = arith.truncf %203 : vector<16x256xf32> to vector<16x256xbf16>
    %c0_120 = arith.constant 0 : index
    %c32_121 = arith.constant 32 : index
    %c0_122 = arith.constant 0 : index
    %205 = vector.load %arg9[%c0_120, %c32_121, %c0_122] : memref<2x48x256xbf16, #tpu.memory_space<vmem>>, vector<1x16x256xbf16>
    %206 = vector.shape_cast %205 : vector<1x16x256xbf16> to vector<16x256xbf16>
    %207 = vector.shape_cast %204 : vector<16x256xbf16> to vector<1x16x256xbf16>
    tpu.vector_store %arg9[%c0_120, %c32_121, %c0_122], %207 {strides = array<i32>} : memref<2x48x256xbf16, #tpu.memory_space<vmem>>, vector<1x16x256xbf16>,
    %c0_123 = arith.constant 0 : index
    %c0_124 = arith.constant 0 : index
    %c0_125 = arith.constant 0 : index
    %208 = vector.load %arg9[%c0_123, %c0_124, %c0_125] : memref<2x48x256xbf16, #tpu.memory_space<vmem>>, vector<1x48x256xbf16>
    %209 = vector.shape_cast %208 : vector<1x48x256xbf16> to vector<48x256xbf16>
    %cst_126 = arith.constant dense<0.000000e+00> : vector<48x16xf32>
    %210 = tpu.matmul %209, %204, %cst_126 {dimension_numbers = #tpu.dot_dimension_numbers<[1], [1], [0], [0], [0, 0, 1, 0], [], []>} : vector<48x256xbf16>, vector<16x256xbf16>, vector<48x16xf32> -> vector<48x16xf32>
    %211 = vector.extract_strided_slice %210 {offsets = [0, 0], sizes = [32, 16], strides = [1, 1]} : vector<48x16xf32> to vector<32x16xf32>
    %212 = vector.extract_strided_slice %210 {offsets = [32, 0], sizes = [16, 16], strides = [1, 1]} : vector<48x16xf32> to vector<16x16xf32>
    %213 = arith.truncf %212 : vector<16x16xf32> to vector<16x16xbf16>
    %cst_127 = arith.constant dense<0.000000e+00> : vector<32x16xf32>
    %214 = tpu.matmul %188, %213, %cst_127 {dimension_numbers = #tpu.dot_dimension_numbers<[1], [0], [0], [1], [0, 0, 1, 1], [], []>} : vector<32x16xbf16>, vector<16x16xbf16>, vector<32x16xf32> -> vector<32x16xf32>
    %215 = arith.mulf %187, %211 : vector<32x16xf32>
    %cst_128 = arith.constant 9.99999997E-7 : f32
    %216 = vector.broadcast %cst_128 : f32 to vector<32x16xf32>
    %217 = arith.addf %214, %216 : vector<32x16xf32>
    %218 = arith.divf %215, %217 : vector<32x16xf32>
    %219 = arith.truncf %218 : vector<32x16xf32> to vector<32x16xbf16>
    %c0_129 = arith.constant 0 : index
    %c0_130 = arith.constant 0 : index
    %c256_131 = arith.constant 256 : index
    %220 = vector.load %arg8[%c0_129, %c0_130, %c256_131] : memref<2x32x272xbf16, #tpu.memory_space<vmem>>, vector<1x32x16xbf16>
    %221 = vector.shape_cast %220 : vector<1x32x16xbf16> to vector<32x16xbf16>
    %222 = vector.shape_cast %219 : vector<32x16xbf16> to vector<1x32x16xbf16>
    tpu.vector_store %arg8[%c0_129, %c0_130, %c256_131], %222 {strides = array<i32>} : memref<2x32x272xbf16, #tpu.memory_space<vmem>>, vector<1x32x16xbf16>,
    %c0_132 = arith.constant 0 : index
    %c0_133 = arith.constant 0 : index
    %c0_134 = arith.constant 0 : index
    %223 = vector.load %arg8[%c0_132, %c0_133, %c0_134] : memref<2x32x272xbf16, #tpu.memory_space<vmem>>, vector<1x32x272xbf16>
    %224 = vector.shape_cast %223 : vector<1x32x272xbf16> to vector<32x272xbf16>
    %cst_135 = arith.constant dense<0.000000e+00> : vector<16x272xf32>
    %225 = tpu.matmul %219, %224, %cst_135 {dimension_numbers = #tpu.dot_dimension_numbers<[0], [0], [1], [1], [0, 1, 1, 1], [], []>} : vector<32x16xbf16>, vector<32x272xbf16>, vector<16x272xf32> -> vector<16x272xf32>
    %226 = vector.extract_strided_slice %225 {offsets = [0, 0], sizes = [16, 256], strides = [1, 1]} : vector<16x272xf32> to vector<16x256xf32>
    %227 = vector.extract_strided_slice %225 {offsets = [0, 256], sizes = [16, 16], strides = [1, 1]} : vector<16x272xf32> to vector<16x16xf32>
    %228 = arith.truncf %227 : vector<16x16xf32> to vector<16x16xbf16>
    %229 = arith.truncf %203 : vector<16x256xf32> to vector<16x256xbf16>
    %cst_136 = arith.constant dense<0.000000e+00> : vector<16x256xf32>
    %230 = tpu.matmul %228, %229, %cst_136 {dimension_numbers = #tpu.dot_dimension_numbers<[1], [0], [0], [1], [0, 0, 1, 1], [], []>} : vector<16x16xbf16>, vector<16x256xbf16>, vector<16x256xf32> -> vector<16x256xf32>
    %231 = arith.mulf %203, %226 : vector<16x256xf32>
    %cst_137 = arith.constant 9.99999997E-7 : f32
    %232 = vector.broadcast %cst_137 : f32 to vector<16x256xf32>
    %233 = arith.addf %230, %232 : vector<16x256xf32>
    %234 = arith.divf %231, %233 : vector<16x256xf32>
    %235 = arith.truncf %234 : vector<16x256xf32> to vector<16x256xbf16>
    %c0_138 = arith.constant 0 : index
    %c32_139 = arith.constant 32 : index
    %c0_140 = arith.constant 0 : index
    %236 = vector.load %arg9[%c0_138, %c32_139, %c0_140] : memref<2x48x256xbf16, #tpu.memory_space<vmem>>, vector<1x16x256xbf16>
    %237 = vector.shape_cast %236 : vector<1x16x256xbf16> to vector<16x256xbf16>
    %238 = vector.shape_cast %235 : vector<16x256xbf16> to vector<1x16x256xbf16>
    tpu.vector_store %arg9[%c0_138, %c32_139, %c0_140], %238 {strides = array<i32>} : memref<2x48x256xbf16, #tpu.memory_space<vmem>>, vector<1x16x256xbf16>,
    %c0_141 = arith.constant 0 : index
    %c0_142 = arith.constant 0 : index
    %c0_143 = arith.constant 0 : index
    %239 = vector.load %arg9[%c0_141, %c0_142, %c0_143] : memref<2x48x256xbf16, #tpu.memory_space<vmem>>, vector<1x48x256xbf16>
    %240 = vector.shape_cast %239 : vector<1x48x256xbf16> to vector<48x256xbf16>
    %cst_144 = arith.constant dense<0.000000e+00> : vector<48x16xf32>
    %241 = tpu.matmul %240, %235, %cst_144 {dimension_numbers = #tpu.dot_dimension_numbers<[1], [1], [0], [0], [0, 0, 1, 0], [], []>} : vector<48x256xbf16>, vector<16x256xbf16>, vector<48x16xf32> -> vector<48x16xf32>
    %242 = vector.extract_strided_slice %241 {offsets = [0, 0], sizes = [32, 16], strides = [1, 1]} : vector<48x16xf32> to vector<32x16xf32>
    %243 = vector.extract_strided_slice %241 {offsets = [32, 0], sizes = [16, 16], strides = [1, 1]} : vector<48x16xf32> to vector<16x16xf32>
    %244 = arith.truncf %243 : vector<16x16xf32> to vector<16x16xbf16>
    %cst_145 = arith.constant dense<0.000000e+00> : vector<32x16xf32>
    %245 = tpu.matmul %219, %244, %cst_145 {dimension_numbers = #tpu.dot_dimension_numbers<[1], [0], [0], [1], [0, 0, 1, 1], [], []>} : vector<32x16xbf16>, vector<16x16xbf16>, vector<32x16xf32> -> vector<32x16xf32>
    %246 = arith.mulf %218, %242 : vector<32x16xf32>
    %cst_146 = arith.constant 9.99999997E-7 : f32
    %247 = vector.broadcast %cst_146 : f32 to vector<32x16xf32>
    %248 = arith.addf %245, %247 : vector<32x16xf32>
    %249 = arith.divf %246, %248 : vector<32x16xf32>
    %250 = arith.truncf %249 : vector<32x16xf32> to vector<32x16xbf16>
    %c0_147 = arith.constant 0 : index
    %c0_148 = arith.constant 0 : index
    %c256_149 = arith.constant 256 : index
    %251 = vector.load %arg8[%c0_147, %c0_148, %c256_149] : memref<2x32x272xbf16, #tpu.memory_space<vmem>>, vector<1x32x16xbf16>
    %252 = vector.shape_cast %251 : vector<1x32x16xbf16> to vector<32x16xbf16>
    %253 = vector.shape_cast %250 : vector<32x16xbf16> to vector<1x32x16xbf16>
    tpu.vector_store %arg8[%c0_147, %c0_148, %c256_149], %253 {strides = array<i32>} : memref<2x32x272xbf16, #tpu.memory_space<vmem>>, vector<1x32x16xbf16>,
    %c0_150 = arith.constant 0 : index
    %c0_151 = arith.constant 0 : index
    %c0_152 = arith.constant 0 : index
    %254 = vector.load %arg8[%c0_150, %c0_151, %c0_152] : memref<2x32x272xbf16, #tpu.memory_space<vmem>>, vector<1x32x272xbf16>
    %255 = vector.shape_cast %254 : vector<1x32x272xbf16> to vector<32x272xbf16>
    %cst_153 = arith.constant dense<0.000000e+00> : vector<16x272xf32>
    %256 = tpu.matmul %250, %255, %cst_153 {dimension_numbers = #tpu.dot_dimension_numbers<[0], [0], [1], [1], [0, 1, 1, 1], [], []>} : vector<32x16xbf16>, vector<32x272xbf16>, vector<16x272xf32> -> vector<16x272xf32>
    %257 = vector.extract_strided_slice %256 {offsets = [0, 0], sizes = [16, 256], strides = [1, 1]} : vector<16x272xf32> to vector<16x256xf32>
    %258 = vector.extract_strided_slice %256 {offsets = [0, 256], sizes = [16, 16], strides = [1, 1]} : vector<16x272xf32> to vector<16x16xf32>
    %259 = arith.truncf %258 : vector<16x16xf32> to vector<16x16xbf16>
    %260 = arith.truncf %234 : vector<16x256xf32> to vector<16x256xbf16>
    %cst_154 = arith.constant dense<0.000000e+00> : vector<16x256xf32>
    %261 = tpu.matmul %259, %260, %cst_154 {dimension_numbers = #tpu.dot_dimension_numbers<[1], [0], [0], [1], [0, 0, 1, 1], [], []>} : vector<16x16xbf16>, vector<16x256xbf16>, vector<16x256xf32> -> vector<16x256xf32>
    %262 = arith.mulf %234, %257 : vector<16x256xf32>
    %cst_155 = arith.constant 9.99999997E-7 : f32
    %263 = vector.broadcast %cst_155 : f32 to vector<16x256xf32>
    %264 = arith.addf %261, %263 : vector<16x256xf32>
    %265 = arith.divf %262, %264 : vector<16x256xf32>
    %266 = arith.truncf %265 : vector<16x256xf32> to vector<16x256xbf16>
    %cst_156 = arith.constant dense<0.000000e+00> : vector<32x256xf32>
    %267 = tpu.matmul %250, %266, %cst_156 {dimension_numbers = #tpu.dot_dimension_numbers<[1], [0], [0], [1], [0, 0, 1, 1], [], []>} : vector<32x16xbf16>, vector<16x256xbf16>, vector<32x256xf32> -> vector<32x256xf32>
    %268 = arith.truncf %267 : vector<32x256xf32> to vector<32x256xbf16>
    %cst_157 = arith.constant dense<0.000000e+00> : vector<32x256xf32>
    %269 = tpu.matmul %1, %268, %cst_157 {dimension_numbers = #tpu.dot_dimension_numbers<[1], [0], [0], [1], [0, 0, 1, 1], [], []>} : vector<32x32xbf16>, vector<32x256xbf16>, vector<32x256xf32> -> vector<32x256xf32>
    %270 = vector.broadcast %3 : vector<32x1xf32> to vector<32x256xf32>
    %271 = arith.addf %269, %270 : vector<32x256xf32>
    %c0_158 = arith.constant 0 : index
    %c0_159 = arith.constant 0 : index
    %c0_160 = arith.constant 0 : index
    %272 = vector.load %arg1[%c0_158, %c0_159, %c0_160] : memref<2x32x256xf32, #tpu.memory_space<vmem>>, vector<1x32x256xf32>
    %273 = vector.shape_cast %272 : vector<1x32x256xf32> to vector<32x256xf32>
    %274 = arith.addf %273, %271 : vector<32x256xf32>
    %cst_161 = arith.constant 0.000000e+00 : f32
    %275 = vector.broadcast %cst_161 : f32 to vector<32x256xf32>
    %276 = arith.maximumf %274, %275 : vector<32x256xf32>
    %c0_162 = arith.constant 0 : index
    %c0_163 = arith.constant 0 : index
    %c0_164 = arith.constant 0 : index
    %277 = vector.load %arg7[%c0_162, %c0_163, %c0_164] : memref<2x32x256xf32, #tpu.memory_space<vmem>>, vector<1x32x256xf32>
    %278 = vector.shape_cast %277 : vector<1x32x256xf32> to vector<32x256xf32>
    %279 = vector.shape_cast %276 : vector<32x256xf32> to vector<1x32x256xf32>
    tpu.vector_store %arg7[%c0_162, %c0_163, %c0_164], %279 {strides = array<i32>} : memref<2x32x256xf32, #tpu.memory_space<vmem>>, vector<1x32x256xf32>,
    %c1 = arith.constant 1 : index
    %c0_165 = arith.constant 0 : index
    %c0_166 = arith.constant 0 : index
    %280 = vector.load %arg1[%c1, %c0_165, %c0_166] : memref<2x32x256xf32, #tpu.memory_space<vmem>>, vector<1x32x256xf32>
    %281 = vector.shape_cast %280 : vector<1x32x256xf32> to vector<32x256xf32>
    %282 = arith.truncf %281 : vector<32x256xf32> to vector<32x256xbf16>
    %cst_167 = arith.constant dense<0.000000e+00> : vector<32x256xf32>
    %283 = tpu.matmul %0, %282, %cst_167 {dimension_numbers = #tpu.dot_dimension_numbers<[1], [0], [0], [1], [0, 0, 1, 1], [], []>} : vector<32x32xbf16>, vector<32x256xbf16>, vector<32x256xf32> -> vector<32x256xf32>
    %284 = vector.broadcast %2 : vector<32x1xf32> to vector<32x256xf32>
    %285 = arith.addf %283, %284 : vector<32x256xf32>
    %cst_168 = arith.constant 0.000000e+00 : f32
    %286 = vector.broadcast %cst_168 : f32 to vector<32x256xf32>
    %287 = arith.maximumf %285, %286 : vector<32x256xf32>
    %288 = arith.truncf %287 : vector<32x256xf32> to vector<32x256xbf16>
    %c1_169 = arith.constant 1 : index
    %c0_170 = arith.constant 0 : index
    %c0_171 = arith.constant 0 : index
    %289 = vector.load %arg8[%c1_169, %c0_170, %c0_171] : memref<2x32x272xbf16, #tpu.memory_space<vmem>>, vector<1x32x256xbf16>
    %290 = vector.shape_cast %289 : vector<1x32x256xbf16> to vector<32x256xbf16>
    %291 = vector.shape_cast %288 : vector<32x256xbf16> to vector<1x32x256xbf16>
    tpu.vector_store %arg8[%c1_169, %c0_170, %c0_171], %291 {strides = array<i32>} : memref<2x32x272xbf16, #tpu.memory_space<vmem>>, vector<1x32x256xbf16>,
    %c1_172 = arith.constant 1 : index
    %c0_173 = arith.constant 0 : index
    %c0_174 = arith.constant 0 : index
    %292 = vector.load %arg9[%c1_172, %c0_173, %c0_174] : memref<2x48x256xbf16, #tpu.memory_space<vmem>>, vector<1x32x256xbf16>
    %293 = vector.shape_cast %292 : vector<1x32x256xbf16> to vector<32x256xbf16>
    %294 = vector.shape_cast %288 : vector<32x256xbf16> to vector<1x32x256xbf16>
    tpu.vector_store %arg9[%c1_172, %c0_173, %c0_174], %294 {strides = array<i32>} : memref<2x48x256xbf16, #tpu.memory_space<vmem>>, vector<1x32x256xbf16>,
    %c0_175 = arith.constant 0 : index
    %c0_176 = arith.constant 0 : index
    %c0_177 = arith.constant 0 : index
    %295 = vector.load %arg4[%c0_175, %c0_176, %c0_177] : memref<1x32x16xf32, #tpu.memory_space<vmem>>, vector<1x32x16xf32>
    %296 = vector.shape_cast %295 : vector<1x32x16xf32> to vector<32x16xf32>
    %297 = arith.truncf %296 : vector<32x16xf32> to vector<32x16xbf16>
    %cst_178 = arith.constant dense<0.000000e+00> : vector<16x256xf32>
    %298 = tpu.matmul %297, %288, %cst_178 {dimension_numbers = #tpu.dot_dimension_numbers<[0], [0], [1], [1], [0, 1, 1, 1], [], []>} : vector<32x16xbf16>, vector<32x256xbf16>, vector<16x256xf32> -> vector<16x256xf32>
    %cst_179 = arith.constant dense<0xFF800000> : vector<256xf32>
    %299 = vector.multi_reduction <maximumf>, %298, %cst_179 [0] : vector<16x256xf32> to vector<256xf32>
    %300 = vector.shape_cast %299 : vector<256xf32> to vector<1x256xf32>
    %301 = vector.broadcast %300 : vector<1x256xf32> to vector<16x256xf32>
    %302 = arith.subf %298, %301 : vector<16x256xf32>
    %303 = math.exp %302 : vector<16x256xf32>
    %cst_180 = arith.constant dense<0.000000e+00> : vector<256xf32>
    %304 = vector.multi_reduction <add>, %303, %cst_180 [0] : vector<16x256xf32> to vector<256xf32>
    %305 = vector.shape_cast %304 : vector<256xf32> to vector<1x256xf32>
    %306 = tpu.reciprocal %305 {approx = true} : vector<1x256xf32> -> vector<1x256xf32>
    %307 = vector.broadcast %306 : vector<1x256xf32> to vector<16x256xf32>
    %308 = arith.mulf %303, %307 : vector<16x256xf32>
    %309 = arith.truncf %296 : vector<32x16xf32> to vector<32x16xbf16>
    %c1_181 = arith.constant 1 : index
    %c0_182 = arith.constant 0 : index
    %c256_183 = arith.constant 256 : index
    %310 = vector.load %arg8[%c1_181, %c0_182, %c256_183] : memref<2x32x272xbf16, #tpu.memory_space<vmem>>, vector<1x32x16xbf16>
    %311 = vector.shape_cast %310 : vector<1x32x16xbf16> to vector<32x16xbf16>
    %312 = vector.shape_cast %309 : vector<32x16xbf16> to vector<1x32x16xbf16>
    tpu.vector_store %arg8[%c1_181, %c0_182, %c256_183], %312 {strides = array<i32>} : memref<2x32x272xbf16, #tpu.memory_space<vmem>>, vector<1x32x16xbf16>,
    %c1_184 = arith.constant 1 : index
    %c0_185 = arith.constant 0 : index
    %c0_186 = arith.constant 0 : index
    %313 = vector.load %arg8[%c1_184, %c0_185, %c0_186] : memref<2x32x272xbf16, #tpu.memory_space<vmem>>, vector<1x32x272xbf16>
    %314 = vector.shape_cast %313 : vector<1x32x272xbf16> to vector<32x272xbf16>
    %cst_187 = arith.constant dense<0.000000e+00> : vector<16x272xf32>
    %315 = tpu.matmul %309, %314, %cst_187 {dimension_numbers = #tpu.dot_dimension_numbers<[0], [0], [1], [1], [0, 1, 1, 1], [], []>} : vector<32x16xbf16>, vector<32x272xbf16>, vector<16x272xf32> -> vector<16x272xf32>
    %316 = vector.extract_strided_slice %315 {offsets = [0, 0], sizes = [16, 256], strides = [1, 1]} : vector<16x272xf32> to vector<16x256xf32>
    %317 = vector.extract_strided_slice %315 {offsets = [0, 256], sizes = [16, 16], strides = [1, 1]} : vector<16x272xf32> to vector<16x16xf32>
    %318 = arith.truncf %317 : vector<16x16xf32> to vector<16x16xbf16>
    %319 = arith.truncf %308 : vector<16x256xf32> to vector<16x256xbf16>
    %cst_188 = arith.constant dense<0.000000e+00> : vector<16x256xf32>
    %320 = tpu.matmul %318, %319, %cst_188 {dimension_numbers = #tpu.dot_dimension_numbers<[1], [0], [0], [1], [0, 0, 1, 1], [], []>} : vector<16x16xbf16>, vector<16x256xbf16>, vector<16x256xf32> -> vector<16x256xf32>
    %321 = arith.mulf %308, %316 : vector<16x256xf32>
    %cst_189 = arith.constant 9.99999997E-7 : f32
    %322 = vector.broadcast %cst_189 : f32 to vector<16x256xf32>
    %323 = arith.addf %320, %322 : vector<16x256xf32>
    %324 = arith.divf %321, %323 : vector<16x256xf32>
    %325 = arith.truncf %324 : vector<16x256xf32> to vector<16x256xbf16>
    %c1_190 = arith.constant 1 : index
    %c32_191 = arith.constant 32 : index
    %c0_192 = arith.constant 0 : index
    %326 = vector.load %arg9[%c1_190, %c32_191, %c0_192] : memref<2x48x256xbf16, #tpu.memory_space<vmem>>, vector<1x16x256xbf16>
    %327 = vector.shape_cast %326 : vector<1x16x256xbf16> to vector<16x256xbf16>
    %328 = vector.shape_cast %325 : vector<16x256xbf16> to vector<1x16x256xbf16>
    tpu.vector_store %arg9[%c1_190, %c32_191, %c0_192], %328 {strides = array<i32>} : memref<2x48x256xbf16, #tpu.memory_space<vmem>>, vector<1x16x256xbf16>,
    %c1_193 = arith.constant 1 : index
    %c0_194 = arith.constant 0 : index
    %c0_195 = arith.constant 0 : index
    %329 = vector.load %arg9[%c1_193, %c0_194, %c0_195] : memref<2x48x256xbf16, #tpu.memory_space<vmem>>, vector<1x48x256xbf16>
    %330 = vector.shape_cast %329 : vector<1x48x256xbf16> to vector<48x256xbf16>
    %cst_196 = arith.constant dense<0.000000e+00> : vector<48x16xf32>
    %331 = tpu.matmul %330, %325, %cst_196 {dimension_numbers = #tpu.dot_dimension_numbers<[1], [1], [0], [0], [0, 0, 1, 0], [], []>} : vector<48x256xbf16>, vector<16x256xbf16>, vector<48x16xf32> -> vector<48x16xf32>
    %332 = vector.extract_strided_slice %331 {offsets = [0, 0], sizes = [32, 16], strides = [1, 1]} : vector<48x16xf32> to vector<32x16xf32>
    %333 = vector.extract_strided_slice %331 {offsets = [32, 0], sizes = [16, 16], strides = [1, 1]} : vector<48x16xf32> to vector<16x16xf32>
    %334 = arith.truncf %333 : vector<16x16xf32> to vector<16x16xbf16>
    %cst_197 = arith.constant dense<0.000000e+00> : vector<32x16xf32>
    %335 = tpu.matmul %309, %334, %cst_197 {dimension_numbers = #tpu.dot_dimension_numbers<[1], [0], [0], [1], [0, 0, 1, 1], [], []>} : vector<32x16xbf16>, vector<16x16xbf16>, vector<32x16xf32> -> vector<32x16xf32>
    %336 = arith.mulf %296, %332 : vector<32x16xf32>
    %cst_198 = arith.constant 9.99999997E-7 : f32
    %337 = vector.broadcast %cst_198 : f32 to vector<32x16xf32>
    %338 = arith.addf %335, %337 : vector<32x16xf32>
    %339 = arith.divf %336, %338 : vector<32x16xf32>
    %340 = arith.truncf %339 : vector<32x16xf32> to vector<32x16xbf16>
    %c1_199 = arith.constant 1 : index
    %c0_200 = arith.constant 0 : index
    %c256_201 = arith.constant 256 : index
    %341 = vector.load %arg8[%c1_199, %c0_200, %c256_201] : memref<2x32x272xbf16, #tpu.memory_space<vmem>>, vector<1x32x16xbf16>
    %342 = vector.shape_cast %341 : vector<1x32x16xbf16> to vector<32x16xbf16>
    %343 = vector.shape_cast %340 : vector<32x16xbf16> to vector<1x32x16xbf16>
    tpu.vector_store %arg8[%c1_199, %c0_200, %c256_201], %343 {strides = array<i32>} : memref<2x32x272xbf16, #tpu.memory_space<vmem>>, vector<1x32x16xbf16>,
    %c1_202 = arith.constant 1 : index
    %c0_203 = arith.constant 0 : index
    %c0_204 = arith.constant 0 : index
    %344 = vector.load %arg8[%c1_202, %c0_203, %c0_204] : memref<2x32x272xbf16, #tpu.memory_space<vmem>>, vector<1x32x272xbf16>
    %345 = vector.shape_cast %344 : vector<1x32x272xbf16> to vector<32x272xbf16>
    %cst_205 = arith.constant dense<0.000000e+00> : vector<16x272xf32>
    %346 = tpu.matmul %340, %345, %cst_205 {dimension_numbers = #tpu.dot_dimension_numbers<[0], [0], [1], [1], [0, 1, 1, 1], [], []>} : vector<32x16xbf16>, vector<32x272xbf16>, vector<16x272xf32> -> vector<16x272xf32>
    %347 = vector.extract_strided_slice %346 {offsets = [0, 0], sizes = [16, 256], strides = [1, 1]} : vector<16x272xf32> to vector<16x256xf32>
    %348 = vector.extract_strided_slice %346 {offsets = [0, 256], sizes = [16, 16], strides = [1, 1]} : vector<16x272xf32> to vector<16x16xf32>
    %349 = arith.truncf %348 : vector<16x16xf32> to vector<16x16xbf16>
    %350 = arith.truncf %324 : vector<16x256xf32> to vector<16x256xbf16>
    %cst_206 = arith.constant dense<0.000000e+00> : vector<16x256xf32>
    %351 = tpu.matmul %349, %350, %cst_206 {dimension_numbers = #tpu.dot_dimension_numbers<[1], [0], [0], [1], [0, 0, 1, 1], [], []>} : vector<16x16xbf16>, vector<16x256xbf16>, vector<16x256xf32> -> vector<16x256xf32>
    %352 = arith.mulf %324, %347 : vector<16x256xf32>
    %cst_207 = arith.constant 9.99999997E-7 : f32
    %353 = vector.broadcast %cst_207 : f32 to vector<16x256xf32>
    %354 = arith.addf %351, %353 : vector<16x256xf32>
    %355 = arith.divf %352, %354 : vector<16x256xf32>
    %356 = arith.truncf %355 : vector<16x256xf32> to vector<16x256xbf16>
    %c1_208 = arith.constant 1 : index
    %c32_209 = arith.constant 32 : index
    %c0_210 = arith.constant 0 : index
    %357 = vector.load %arg9[%c1_208, %c32_209, %c0_210] : memref<2x48x256xbf16, #tpu.memory_space<vmem>>, vector<1x16x256xbf16>
    %358 = vector.shape_cast %357 : vector<1x16x256xbf16> to vector<16x256xbf16>
    %359 = vector.shape_cast %356 : vector<16x256xbf16> to vector<1x16x256xbf16>
    tpu.vector_store %arg9[%c1_208, %c32_209, %c0_210], %359 {strides = array<i32>} : memref<2x48x256xbf16, #tpu.memory_space<vmem>>, vector<1x16x256xbf16>,
    %c1_211 = arith.constant 1 : index
    %c0_212 = arith.constant 0 : index
    %c0_213 = arith.constant 0 : index
    %360 = vector.load %arg9[%c1_211, %c0_212, %c0_213] : memref<2x48x256xbf16, #tpu.memory_space<vmem>>, vector<1x48x256xbf16>
    %361 = vector.shape_cast %360 : vector<1x48x256xbf16> to vector<48x256xbf16>
    %cst_214 = arith.constant dense<0.000000e+00> : vector<48x16xf32>
    %362 = tpu.matmul %361, %356, %cst_214 {dimension_numbers = #tpu.dot_dimension_numbers<[1], [1], [0], [0], [0, 0, 1, 0], [], []>} : vector<48x256xbf16>, vector<16x256xbf16>, vector<48x16xf32> -> vector<48x16xf32>
    %363 = vector.extract_strided_slice %362 {offsets = [0, 0], sizes = [32, 16], strides = [1, 1]} : vector<48x16xf32> to vector<32x16xf32>
    %364 = vector.extract_strided_slice %362 {offsets = [32, 0], sizes = [16, 16], strides = [1, 1]} : vector<48x16xf32> to vector<16x16xf32>
    %365 = arith.truncf %364 : vector<16x16xf32> to vector<16x16xbf16>
    %cst_215 = arith.constant dense<0.000000e+00> : vector<32x16xf32>
    %366 = tpu.matmul %340, %365, %cst_215 {dimension_numbers = #tpu.dot_dimension_numbers<[1], [0], [0], [1], [0, 0, 1, 1], [], []>} : vector<32x16xbf16>, vector<16x16xbf16>, vector<32x16xf32> -> vector<32x16xf32>
    %367 = arith.mulf %339, %363 : vector<32x16xf32>
    %cst_216 = arith.constant 9.99999997E-7 : f32
    %368 = vector.broadcast %cst_216 : f32 to vector<32x16xf32>
    %369 = arith.addf %366, %368 : vector<32x16xf32>
    %370 = arith.divf %367, %369 : vector<32x16xf32>
    %371 = arith.truncf %370 : vector<32x16xf32> to vector<32x16xbf16>
    %c1_217 = arith.constant 1 : index
    %c0_218 = arith.constant 0 : index
    %c256_219 = arith.constant 256 : index
    %372 = vector.load %arg8[%c1_217, %c0_218, %c256_219] : memref<2x32x272xbf16, #tpu.memory_space<vmem>>, vector<1x32x16xbf16>
    %373 = vector.shape_cast %372 : vector<1x32x16xbf16> to vector<32x16xbf16>
    %374 = vector.shape_cast %371 : vector<32x16xbf16> to vector<1x32x16xbf16>
    tpu.vector_store %arg8[%c1_217, %c0_218, %c256_219], %374 {strides = array<i32>} : memref<2x32x272xbf16, #tpu.memory_space<vmem>>, vector<1x32x16xbf16>,
    %c1_220 = arith.constant 1 : index
    %c0_221 = arith.constant 0 : index
    %c0_222 = arith.constant 0 : index
    %375 = vector.load %arg8[%c1_220, %c0_221, %c0_222] : memref<2x32x272xbf16, #tpu.memory_space<vmem>>, vector<1x32x272xbf16>
    %376 = vector.shape_cast %375 : vector<1x32x272xbf16> to vector<32x272xbf16>
    %cst_223 = arith.constant dense<0.000000e+00> : vector<16x272xf32>
    %377 = tpu.matmul %371, %376, %cst_223 {dimension_numbers = #tpu.dot_dimension_numbers<[0], [0], [1], [1], [0, 1, 1, 1], [], []>} : vector<32x16xbf16>, vector<32x272xbf16>, vector<16x272xf32> -> vector<16x272xf32>
    %378 = vector.extract_strided_slice %377 {offsets = [0, 0], sizes = [16, 256], strides = [1, 1]} : vector<16x272xf32> to vector<16x256xf32>
    %379 = vector.extract_strided_slice %377 {offsets = [0, 256], sizes = [16, 16], strides = [1, 1]} : vector<16x272xf32> to vector<16x16xf32>
    %380 = arith.truncf %379 : vector<16x16xf32> to vector<16x16xbf16>
    %381 = arith.truncf %355 : vector<16x256xf32> to vector<16x256xbf16>
    %cst_224 = arith.constant dense<0.000000e+00> : vector<16x256xf32>
    %382 = tpu.matmul %380, %381, %cst_224 {dimension_numbers = #tpu.dot_dimension_numbers<[1], [0], [0], [1], [0, 0, 1, 1], [], []>} : vector<16x16xbf16>, vector<16x256xbf16>, vector<16x256xf32> -> vector<16x256xf32>
    %383 = arith.mulf %355, %378 : vector<16x256xf32>
    %cst_225 = arith.constant 9.99999997E-7 : f32
    %384 = vector.broadcast %cst_225 : f32 to vector<16x256xf32>
    %385 = arith.addf %382, %384 : vector<16x256xf32>
    %386 = arith.divf %383, %385 : vector<16x256xf32>
    %387 = arith.truncf %386 : vector<16x256xf32> to vector<16x256xbf16>
    %c1_226 = arith.constant 1 : index
    %c32_227 = arith.constant 32 : index
    %c0_228 = arith.constant 0 : index
    %388 = vector.load %arg9[%c1_226, %c32_227, %c0_228] : memref<2x48x256xbf16, #tpu.memory_space<vmem>>, vector<1x16x256xbf16>
    %389 = vector.shape_cast %388 : vector<1x16x256xbf16> to vector<16x256xbf16>
    %390 = vector.shape_cast %387 : vector<16x256xbf16> to vector<1x16x256xbf16>
    tpu.vector_store %arg9[%c1_226, %c32_227, %c0_228], %390 {strides = array<i32>} : memref<2x48x256xbf16, #tpu.memory_space<vmem>>, vector<1x16x256xbf16>,
    %c1_229 = arith.constant 1 : index
    %c0_230 = arith.constant 0 : index
    %c0_231 = arith.constant 0 : index
    %391 = vector.load %arg9[%c1_229, %c0_230, %c0_231] : memref<2x48x256xbf16, #tpu.memory_space<vmem>>, vector<1x48x256xbf16>
    %392 = vector.shape_cast %391 : vector<1x48x256xbf16> to vector<48x256xbf16>
    %cst_232 = arith.constant dense<0.000000e+00> : vector<48x16xf32>
    %393 = tpu.matmul %392, %387, %cst_232 {dimension_numbers = #tpu.dot_dimension_numbers<[1], [1], [0], [0], [0, 0, 1, 0], [], []>} : vector<48x256xbf16>, vector<16x256xbf16>, vector<48x16xf32> -> vector<48x16xf32>
    %394 = vector.extract_strided_slice %393 {offsets = [0, 0], sizes = [32, 16], strides = [1, 1]} : vector<48x16xf32> to vector<32x16xf32>
    %395 = vector.extract_strided_slice %393 {offsets = [32, 0], sizes = [16, 16], strides = [1, 1]} : vector<48x16xf32> to vector<16x16xf32>
    %396 = arith.truncf %395 : vector<16x16xf32> to vector<16x16xbf16>
    %cst_233 = arith.constant dense<0.000000e+00> : vector<32x16xf32>
    %397 = tpu.matmul %371, %396, %cst_233 {dimension_numbers = #tpu.dot_dimension_numbers<[1], [0], [0], [1], [0, 0, 1, 1], [], []>} : vector<32x16xbf16>, vector<16x16xbf16>, vector<32x16xf32> -> vector<32x16xf32>
    %398 = arith.mulf %370, %394 : vector<32x16xf32>
    %cst_234 = arith.constant 9.99999997E-7 : f32
    %399 = vector.broadcast %cst_234 : f32 to vector<32x16xf32>
    %400 = arith.addf %397, %399 : vector<32x16xf32>
    %401 = arith.divf %398, %400 : vector<32x16xf32>
    %402 = arith.truncf %401 : vector<32x16xf32> to vector<32x16xbf16>
    %c1_235 = arith.constant 1 : index
    %c0_236 = arith.constant 0 : index
    %c256_237 = arith.constant 256 : index
    %403 = vector.load %arg8[%c1_235, %c0_236, %c256_237] : memref<2x32x272xbf16, #tpu.memory_space<vmem>>, vector<1x32x16xbf16>
    %404 = vector.shape_cast %403 : vector<1x32x16xbf16> to vector<32x16xbf16>
    %405 = vector.shape_cast %402 : vector<32x16xbf16> to vector<1x32x16xbf16>
    tpu.vector_store %arg8[%c1_235, %c0_236, %c256_237], %405 {strides = array<i32>} : memref<2x32x272xbf16, #tpu.memory_space<vmem>>, vector<1x32x16xbf16>,
    %c1_238 = arith.constant 1 : index
    %c0_239 = arith.constant 0 : index
    %c0_240 = arith.constant 0 : index
    %406 = vector.load %arg8[%c1_238, %c0_239, %c0_240] : memref<2x32x272xbf16, #tpu.memory_space<vmem>>, vector<1x32x272xbf16>
    %407 = vector.shape_cast %406 : vector<1x32x272xbf16> to vector<32x272xbf16>
    %cst_241 = arith.constant dense<0.000000e+00> : vector<16x272xf32>
    %408 = tpu.matmul %402, %407, %cst_241 {dimension_numbers = #tpu.dot_dimension_numbers<[0], [0], [1], [1], [0, 1, 1, 1], [], []>} : vector<32x16xbf16>, vector<32x272xbf16>, vector<16x272xf32> -> vector<16x272xf32>
    %409 = vector.extract_strided_slice %408 {offsets = [0, 0], sizes = [16, 256], strides = [1, 1]} : vector<16x272xf32> to vector<16x256xf32>
    %410 = vector.extract_strided_slice %408 {offsets = [0, 256], sizes = [16, 16], strides = [1, 1]} : vector<16x272xf32> to vector<16x16xf32>
    %411 = arith.truncf %410 : vector<16x16xf32> to vector<16x16xbf16>
    %412 = arith.truncf %386 : vector<16x256xf32> to vector<16x256xbf16>
    %cst_242 = arith.constant dense<0.000000e+00> : vector<16x256xf32>
    %413 = tpu.matmul %411, %412, %cst_242 {dimension_numbers = #tpu.dot_dimension_numbers<[1], [0], [0], [1], [0, 0, 1, 1], [], []>} : vector<16x16xbf16>, vector<16x256xbf16>, vector<16x256xf32> -> vector<16x256xf32>
    %414 = arith.mulf %386, %409 : vector<16x256xf32>
    %cst_243 = arith.constant 9.99999997E-7 : f32
    %415 = vector.broadcast %cst_243 : f32 to vector<16x256xf32>
    %416 = arith.addf %413, %415 : vector<16x256xf32>
    %417 = arith.divf %414, %416 : vector<16x256xf32>
    %418 = arith.truncf %417 : vector<16x256xf32> to vector<16x256xbf16>
    %c1_244 = arith.constant 1 : index
    %c32_245 = arith.constant 32 : index
    %c0_246 = arith.constant 0 : index
    %419 = vector.load %arg9[%c1_244, %c32_245, %c0_246] : memref<2x48x256xbf16, #tpu.memory_space<vmem>>, vector<1x16x256xbf16>
    %420 = vector.shape_cast %419 : vector<1x16x256xbf16> to vector<16x256xbf16>
    %421 = vector.shape_cast %418 : vector<16x256xbf16> to vector<1x16x256xbf16>
    tpu.vector_store %arg9[%c1_244, %c32_245, %c0_246], %421 {strides = array<i32>} : memref<2x48x256xbf16, #tpu.memory_space<vmem>>, vector<1x16x256xbf16>,
    %c1_247 = arith.constant 1 : index
    %c0_248 = arith.constant 0 : index
    %c0_249 = arith.constant 0 : index
    %422 = vector.load %arg9[%c1_247, %c0_248, %c0_249] : memref<2x48x256xbf16, #tpu.memory_space<vmem>>, vector<1x48x256xbf16>
    %423 = vector.shape_cast %422 : vector<1x48x256xbf16> to vector<48x256xbf16>
    %cst_250 = arith.constant dense<0.000000e+00> : vector<48x16xf32>
    %424 = tpu.matmul %423, %418, %cst_250 {dimension_numbers = #tpu.dot_dimension_numbers<[1], [1], [0], [0], [0, 0, 1, 0], [], []>} : vector<48x256xbf16>, vector<16x256xbf16>, vector<48x16xf32> -> vector<48x16xf32>
    %425 = vector.extract_strided_slice %424 {offsets = [0, 0], sizes = [32, 16], strides = [1, 1]} : vector<48x16xf32> to vector<32x16xf32>
    %426 = vector.extract_strided_slice %424 {offsets = [32, 0], sizes = [16, 16], strides = [1, 1]} : vector<48x16xf32> to vector<16x16xf32>
    %427 = arith.truncf %426 : vector<16x16xf32> to vector<16x16xbf16>
    %cst_251 = arith.constant dense<0.000000e+00> : vector<32x16xf32>
    %428 = tpu.matmul %402, %427, %cst_251 {dimension_numbers = #tpu.dot_dimension_numbers<[1], [0], [0], [1], [0, 0, 1, 1], [], []>} : vector<32x16xbf16>, vector<16x16xbf16>, vector<32x16xf32> -> vector<32x16xf32>
    %429 = arith.mulf %401, %425 : vector<32x16xf32>
    %cst_252 = arith.constant 9.99999997E-7 : f32
    %430 = vector.broadcast %cst_252 : f32 to vector<32x16xf32>
    %431 = arith.addf %428, %430 : vector<32x16xf32>
    %432 = arith.divf %429, %431 : vector<32x16xf32>
    %433 = arith.truncf %432 : vector<32x16xf32> to vector<32x16xbf16>
    %c1_253 = arith.constant 1 : index
    %c0_254 = arith.constant 0 : index
    %c256_255 = arith.constant 256 : index
    %434 = vector.load %arg8[%c1_253, %c0_254, %c256_255] : memref<2x32x272xbf16, #tpu.memory_space<vmem>>, vector<1x32x16xbf16>
    %435 = vector.shape_cast %434 : vector<1x32x16xbf16> to vector<32x16xbf16>
    %436 = vector.shape_cast %433 : vector<32x16xbf16> to vector<1x32x16xbf16>
    tpu.vector_store %arg8[%c1_253, %c0_254, %c256_255], %436 {strides = array<i32>} : memref<2x32x272xbf16, #tpu.memory_space<vmem>>, vector<1x32x16xbf16>,
    %c1_256 = arith.constant 1 : index
    %c0_257 = arith.constant 0 : index
    %c0_258 = arith.constant 0 : index
    %437 = vector.load %arg8[%c1_256, %c0_257, %c0_258] : memref<2x32x272xbf16, #tpu.memory_space<vmem>>, vector<1x32x272xbf16>
    %438 = vector.shape_cast %437 : vector<1x32x272xbf16> to vector<32x272xbf16>
    %cst_259 = arith.constant dense<0.000000e+00> : vector<16x272xf32>
    %439 = tpu.matmul %433, %438, %cst_259 {dimension_numbers = #tpu.dot_dimension_numbers<[0], [0], [1], [1], [0, 1, 1, 1], [], []>} : vector<32x16xbf16>, vector<32x272xbf16>, vector<16x272xf32> -> vector<16x272xf32>
    %440 = vector.extract_strided_slice %439 {offsets = [0, 0], sizes = [16, 256], strides = [1, 1]} : vector<16x272xf32> to vector<16x256xf32>
    %441 = vector.extract_strided_slice %439 {offsets = [0, 256], sizes = [16, 16], strides = [1, 1]} : vector<16x272xf32> to vector<16x16xf32>
    %442 = arith.truncf %441 : vector<16x16xf32> to vector<16x16xbf16>
    %443 = arith.truncf %417 : vector<16x256xf32> to vector<16x256xbf16>
    %cst_260 = arith.constant dense<0.000000e+00> : vector<16x256xf32>
    %444 = tpu.matmul %442, %443, %cst_260 {dimension_numbers = #tpu.dot_dimension_numbers<[1], [0], [0], [1], [0, 0, 1, 1], [], []>} : vector<16x16xbf16>, vector<16x256xbf16>, vector<16x256xf32> -> vector<16x256xf32>
    %445 = arith.mulf %417, %440 : vector<16x256xf32>
    %cst_261 = arith.constant 9.99999997E-7 : f32
    %446 = vector.broadcast %cst_261 : f32 to vector<16x256xf32>
    %447 = arith.addf %444, %446 : vector<16x256xf32>
    %448 = arith.divf %445, %447 : vector<16x256xf32>
    %449 = arith.truncf %448 : vector<16x256xf32> to vector<16x256xbf16>
    %c1_262 = arith.constant 1 : index
    %c32_263 = arith.constant 32 : index
    %c0_264 = arith.constant 0 : index
    %450 = vector.load %arg9[%c1_262, %c32_263, %c0_264] : memref<2x48x256xbf16, #tpu.memory_space<vmem>>, vector<1x16x256xbf16>
    %451 = vector.shape_cast %450 : vector<1x16x256xbf16> to vector<16x256xbf16>
    %452 = vector.shape_cast %449 : vector<16x256xbf16> to vector<1x16x256xbf16>
    tpu.vector_store %arg9[%c1_262, %c32_263, %c0_264], %452 {strides = array<i32>} : memref<2x48x256xbf16, #tpu.memory_space<vmem>>, vector<1x16x256xbf16>,
    %c1_265 = arith.constant 1 : index
    %c0_266 = arith.constant 0 : index
    %c0_267 = arith.constant 0 : index
    %453 = vector.load %arg9[%c1_265, %c0_266, %c0_267] : memref<2x48x256xbf16, #tpu.memory_space<vmem>>, vector<1x48x256xbf16>
    %454 = vector.shape_cast %453 : vector<1x48x256xbf16> to vector<48x256xbf16>
    %cst_268 = arith.constant dense<0.000000e+00> : vector<48x16xf32>
    %455 = tpu.matmul %454, %449, %cst_268 {dimension_numbers = #tpu.dot_dimension_numbers<[1], [1], [0], [0], [0, 0, 1, 0], [], []>} : vector<48x256xbf16>, vector<16x256xbf16>, vector<48x16xf32> -> vector<48x16xf32>
    %456 = vector.extract_strided_slice %455 {offsets = [0, 0], sizes = [32, 16], strides = [1, 1]} : vector<48x16xf32> to vector<32x16xf32>
    %457 = vector.extract_strided_slice %455 {offsets = [32, 0], sizes = [16, 16], strides = [1, 1]} : vector<48x16xf32> to vector<16x16xf32>
    %458 = arith.truncf %457 : vector<16x16xf32> to vector<16x16xbf16>
    %cst_269 = arith.constant dense<0.000000e+00> : vector<32x16xf32>
    %459 = tpu.matmul %433, %458, %cst_269 {dimension_numbers = #tpu.dot_dimension_numbers<[1], [0], [0], [1], [0, 0, 1, 1], [], []>} : vector<32x16xbf16>, vector<16x16xbf16>, vector<32x16xf32> -> vector<32x16xf32>
    %460 = arith.mulf %432, %456 : vector<32x16xf32>
    %cst_270 = arith.constant 9.99999997E-7 : f32
    %461 = vector.broadcast %cst_270 : f32 to vector<32x16xf32>
    %462 = arith.addf %459, %461 : vector<32x16xf32>
    %463 = arith.divf %460, %462 : vector<32x16xf32>
    %464 = arith.truncf %463 : vector<32x16xf32> to vector<32x16xbf16>
    %c1_271 = arith.constant 1 : index
    %c0_272 = arith.constant 0 : index
    %c256_273 = arith.constant 256 : index
    %465 = vector.load %arg8[%c1_271, %c0_272, %c256_273] : memref<2x32x272xbf16, #tpu.memory_space<vmem>>, vector<1x32x16xbf16>
    %466 = vector.shape_cast %465 : vector<1x32x16xbf16> to vector<32x16xbf16>
    %467 = vector.shape_cast %464 : vector<32x16xbf16> to vector<1x32x16xbf16>
    tpu.vector_store %arg8[%c1_271, %c0_272, %c256_273], %467 {strides = array<i32>} : memref<2x32x272xbf16, #tpu.memory_space<vmem>>, vector<1x32x16xbf16>,
    %c1_274 = arith.constant 1 : index
    %c0_275 = arith.constant 0 : index
    %c0_276 = arith.constant 0 : index
    %468 = vector.load %arg8[%c1_274, %c0_275, %c0_276] : memref<2x32x272xbf16, #tpu.memory_space<vmem>>, vector<1x32x272xbf16>
    %469 = vector.shape_cast %468 : vector<1x32x272xbf16> to vector<32x272xbf16>
    %cst_277 = arith.constant dense<0.000000e+00> : vector<16x272xf32>
    %470 = tpu.matmul %464, %469, %cst_277 {dimension_numbers = #tpu.dot_dimension_numbers<[0], [0], [1], [1], [0, 1, 1, 1], [], []>} : vector<32x16xbf16>, vector<32x272xbf16>, vector<16x272xf32> -> vector<16x272xf32>
    %471 = vector.extract_strided_slice %470 {offsets = [0, 0], sizes = [16, 256], strides = [1, 1]} : vector<16x272xf32> to vector<16x256xf32>
    %472 = vector.extract_strided_slice %470 {offsets = [0, 256], sizes = [16, 16], strides = [1, 1]} : vector<16x272xf32> to vector<16x16xf32>
    %473 = arith.truncf %472 : vector<16x16xf32> to vector<16x16xbf16>
    %474 = arith.truncf %448 : vector<16x256xf32> to vector<16x256xbf16>
    %cst_278 = arith.constant dense<0.000000e+00> : vector<16x256xf32>
    %475 = tpu.matmul %473, %474, %cst_278 {dimension_numbers = #tpu.dot_dimension_numbers<[1], [0], [0], [1], [0, 0, 1, 1], [], []>} : vector<16x16xbf16>, vector<16x256xbf16>, vector<16x256xf32> -> vector<16x256xf32>
    %476 = arith.mulf %448, %471 : vector<16x256xf32>
    %cst_279 = arith.constant 9.99999997E-7 : f32
    %477 = vector.broadcast %cst_279 : f32 to vector<16x256xf32>
    %478 = arith.addf %475, %477 : vector<16x256xf32>
    %479 = arith.divf %476, %478 : vector<16x256xf32>
    %480 = arith.truncf %479 : vector<16x256xf32> to vector<16x256xbf16>
    %c1_280 = arith.constant 1 : index
    %c32_281 = arith.constant 32 : index
    %c0_282 = arith.constant 0 : index
    %481 = vector.load %arg9[%c1_280, %c32_281, %c0_282] : memref<2x48x256xbf16, #tpu.memory_space<vmem>>, vector<1x16x256xbf16>
    %482 = vector.shape_cast %481 : vector<1x16x256xbf16> to vector<16x256xbf16>
    %483 = vector.shape_cast %480 : vector<16x256xbf16> to vector<1x16x256xbf16>
    tpu.vector_store %arg9[%c1_280, %c32_281, %c0_282], %483 {strides = array<i32>} : memref<2x48x256xbf16, #tpu.memory_space<vmem>>, vector<1x16x256xbf16>,
    %c1_283 = arith.constant 1 : index
    %c0_284 = arith.constant 0 : index
    %c0_285 = arith.constant 0 : index
    %484 = vector.load %arg9[%c1_283, %c0_284, %c0_285] : memref<2x48x256xbf16, #tpu.memory_space<vmem>>, vector<1x48x256xbf16>
    %485 = vector.shape_cast %484 : vector<1x48x256xbf16> to vector<48x256xbf16>
    %cst_286 = arith.constant dense<0.000000e+00> : vector<48x16xf32>
    %486 = tpu.matmul %485, %480, %cst_286 {dimension_numbers = #tpu.dot_dimension_numbers<[1], [1], [0], [0], [0, 0, 1, 0], [], []>} : vector<48x256xbf16>, vector<16x256xbf16>, vector<48x16xf32> -> vector<48x16xf32>
    %487 = vector.extract_strided_slice %486 {offsets = [0, 0], sizes = [32, 16], strides = [1, 1]} : vector<48x16xf32> to vector<32x16xf32>
    %488 = vector.extract_strided_slice %486 {offsets = [32, 0], sizes = [16, 16], strides = [1, 1]} : vector<48x16xf32> to vector<16x16xf32>
    %489 = arith.truncf %488 : vector<16x16xf32> to vector<16x16xbf16>
    %cst_287 = arith.constant dense<0.000000e+00> : vector<32x16xf32>
    %490 = tpu.matmul %464, %489, %cst_287 {dimension_numbers = #tpu.dot_dimension_numbers<[1], [0], [0], [1], [0, 0, 1, 1], [], []>} : vector<32x16xbf16>, vector<16x16xbf16>, vector<32x16xf32> -> vector<32x16xf32>
    %491 = arith.mulf %463, %487 : vector<32x16xf32>
    %cst_288 = arith.constant 9.99999997E-7 : f32
    %492 = vector.broadcast %cst_288 : f32 to vector<32x16xf32>
    %493 = arith.addf %490, %492 : vector<32x16xf32>
    %494 = arith.divf %491, %493 : vector<32x16xf32>
    %495 = arith.truncf %494 : vector<32x16xf32> to vector<32x16xbf16>
    %c1_289 = arith.constant 1 : index
    %c0_290 = arith.constant 0 : index
    %c256_291 = arith.constant 256 : index
    %496 = vector.load %arg8[%c1_289, %c0_290, %c256_291] : memref<2x32x272xbf16, #tpu.memory_space<vmem>>, vector<1x32x16xbf16>
    %497 = vector.shape_cast %496 : vector<1x32x16xbf16> to vector<32x16xbf16>
    %498 = vector.shape_cast %495 : vector<32x16xbf16> to vector<1x32x16xbf16>
    tpu.vector_store %arg8[%c1_289, %c0_290, %c256_291], %498 {strides = array<i32>} : memref<2x32x272xbf16, #tpu.memory_space<vmem>>, vector<1x32x16xbf16>,
    %c1_292 = arith.constant 1 : index
    %c0_293 = arith.constant 0 : index
    %c0_294 = arith.constant 0 : index
    %499 = vector.load %arg8[%c1_292, %c0_293, %c0_294] : memref<2x32x272xbf16, #tpu.memory_space<vmem>>, vector<1x32x272xbf16>
    %500 = vector.shape_cast %499 : vector<1x32x272xbf16> to vector<32x272xbf16>
    %cst_295 = arith.constant dense<0.000000e+00> : vector<16x272xf32>
    %501 = tpu.matmul %495, %500, %cst_295 {dimension_numbers = #tpu.dot_dimension_numbers<[0], [0], [1], [1], [0, 1, 1, 1], [], []>} : vector<32x16xbf16>, vector<32x272xbf16>, vector<16x272xf32> -> vector<16x272xf32>
    %502 = vector.extract_strided_slice %501 {offsets = [0, 0], sizes = [16, 256], strides = [1, 1]} : vector<16x272xf32> to vector<16x256xf32>
    %503 = vector.extract_strided_slice %501 {offsets = [0, 256], sizes = [16, 16], strides = [1, 1]} : vector<16x272xf32> to vector<16x16xf32>
    %504 = arith.truncf %503 : vector<16x16xf32> to vector<16x16xbf16>
    %505 = arith.truncf %479 : vector<16x256xf32> to vector<16x256xbf16>
    %cst_296 = arith.constant dense<0.000000e+00> : vector<16x256xf32>
    %506 = tpu.matmul %504, %505, %cst_296 {dimension_numbers = #tpu.dot_dimension_numbers<[1], [0], [0], [1], [0, 0, 1, 1], [], []>} : vector<16x16xbf16>, vector<16x256xbf16>, vector<16x256xf32> -> vector<16x256xf32>
    %507 = arith.mulf %479, %502 : vector<16x256xf32>
    %cst_297 = arith.constant 9.99999997E-7 : f32
    %508 = vector.broadcast %cst_297 : f32 to vector<16x256xf32>
    %509 = arith.addf %506, %508 : vector<16x256xf32>
    %510 = arith.divf %507, %509 : vector<16x256xf32>
    %511 = arith.truncf %510 : vector<16x256xf32> to vector<16x256xbf16>
    %c1_298 = arith.constant 1 : index
    %c32_299 = arith.constant 32 : index
    %c0_300 = arith.constant 0 : index
    %512 = vector.load %arg9[%c1_298, %c32_299, %c0_300] : memref<2x48x256xbf16, #tpu.memory_space<vmem>>, vector<1x16x256xbf16>
    %513 = vector.shape_cast %512 : vector<1x16x256xbf16> to vector<16x256xbf16>
    %514 = vector.shape_cast %511 : vector<16x256xbf16> to vector<1x16x256xbf16>
    tpu.vector_store %arg9[%c1_298, %c32_299, %c0_300], %514 {strides = array<i32>} : memref<2x48x256xbf16, #tpu.memory_space<vmem>>, vector<1x16x256xbf16>,
    %c1_301 = arith.constant 1 : index
    %c0_302 = arith.constant 0 : index
    %c0_303 = arith.constant 0 : index
    %515 = vector.load %arg9[%c1_301, %c0_302, %c0_303] : memref<2x48x256xbf16, #tpu.memory_space<vmem>>, vector<1x48x256xbf16>
    %516 = vector.shape_cast %515 : vector<1x48x256xbf16> to vector<48x256xbf16>
    %cst_304 = arith.constant dense<0.000000e+00> : vector<48x16xf32>
    %517 = tpu.matmul %516, %511, %cst_304 {dimension_numbers = #tpu.dot_dimension_numbers<[1], [1], [0], [0], [0, 0, 1, 0], [], []>} : vector<48x256xbf16>, vector<16x256xbf16>, vector<48x16xf32> -> vector<48x16xf32>
    %518 = vector.extract_strided_slice %517 {offsets = [0, 0], sizes = [32, 16], strides = [1, 1]} : vector<48x16xf32> to vector<32x16xf32>
    %519 = vector.extract_strided_slice %517 {offsets = [32, 0], sizes = [16, 16], strides = [1, 1]} : vector<48x16xf32> to vector<16x16xf32>
    %520 = arith.truncf %519 : vector<16x16xf32> to vector<16x16xbf16>
    %cst_305 = arith.constant dense<0.000000e+00> : vector<32x16xf32>
    %521 = tpu.matmul %495, %520, %cst_305 {dimension_numbers = #tpu.dot_dimension_numbers<[1], [0], [0], [1], [0, 0, 1, 1], [], []>} : vector<32x16xbf16>, vector<16x16xbf16>, vector<32x16xf32> -> vector<32x16xf32>
    %522 = arith.mulf %494, %518 : vector<32x16xf32>
    %cst_306 = arith.constant 9.99999997E-7 : f32
    %523 = vector.broadcast %cst_306 : f32 to vector<32x16xf32>
    %524 = arith.addf %521, %523 : vector<32x16xf32>
    %525 = arith.divf %522, %524 : vector<32x16xf32>
    %526 = arith.truncf %525 : vector<32x16xf32> to vector<32x16xbf16>
    %c1_307 = arith.constant 1 : index
    %c0_308 = arith.constant 0 : index
    %c256_309 = arith.constant 256 : index
    %527 = vector.load %arg8[%c1_307, %c0_308, %c256_309] : memref<2x32x272xbf16, #tpu.memory_space<vmem>>, vector<1x32x16xbf16>
    %528 = vector.shape_cast %527 : vector<1x32x16xbf16> to vector<32x16xbf16>
    %529 = vector.shape_cast %526 : vector<32x16xbf16> to vector<1x32x16xbf16>
    tpu.vector_store %arg8[%c1_307, %c0_308, %c256_309], %529 {strides = array<i32>} : memref<2x32x272xbf16, #tpu.memory_space<vmem>>, vector<1x32x16xbf16>,
    %c1_310 = arith.constant 1 : index
    %c0_311 = arith.constant 0 : index
    %c0_312 = arith.constant 0 : index
    %530 = vector.load %arg8[%c1_310, %c0_311, %c0_312] : memref<2x32x272xbf16, #tpu.memory_space<vmem>>, vector<1x32x272xbf16>
    %531 = vector.shape_cast %530 : vector<1x32x272xbf16> to vector<32x272xbf16>
    %cst_313 = arith.constant dense<0.000000e+00> : vector<16x272xf32>
    %532 = tpu.matmul %526, %531, %cst_313 {dimension_numbers = #tpu.dot_dimension_numbers<[0], [0], [1], [1], [0, 1, 1, 1], [], []>} : vector<32x16xbf16>, vector<32x272xbf16>, vector<16x272xf32> -> vector<16x272xf32>
    %533 = vector.extract_strided_slice %532 {offsets = [0, 0], sizes = [16, 256], strides = [1, 1]} : vector<16x272xf32> to vector<16x256xf32>
    %534 = vector.extract_strided_slice %532 {offsets = [0, 256], sizes = [16, 16], strides = [1, 1]} : vector<16x272xf32> to vector<16x16xf32>
    %535 = arith.truncf %534 : vector<16x16xf32> to vector<16x16xbf16>
    %536 = arith.truncf %510 : vector<16x256xf32> to vector<16x256xbf16>
    %cst_314 = arith.constant dense<0.000000e+00> : vector<16x256xf32>
    %537 = tpu.matmul %535, %536, %cst_314 {dimension_numbers = #tpu.dot_dimension_numbers<[1], [0], [0], [1], [0, 0, 1, 1], [], []>} : vector<16x16xbf16>, vector<16x256xbf16>, vector<16x256xf32> -> vector<16x256xf32>
    %538 = arith.mulf %510, %533 : vector<16x256xf32>
    %cst_315 = arith.constant 9.99999997E-7 : f32
    %539 = vector.broadcast %cst_315 : f32 to vector<16x256xf32>
    %540 = arith.addf %537, %539 : vector<16x256xf32>
    %541 = arith.divf %538, %540 : vector<16x256xf32>
    %542 = arith.truncf %541 : vector<16x256xf32> to vector<16x256xbf16>
    %cst_316 = arith.constant dense<0.000000e+00> : vector<32x256xf32>
    %543 = tpu.matmul %526, %542, %cst_316 {dimension_numbers = #tpu.dot_dimension_numbers<[1], [0], [0], [1], [0, 0, 1, 1], [], []>} : vector<32x16xbf16>, vector<16x256xbf16>, vector<32x256xf32> -> vector<32x256xf32>
    %544 = arith.truncf %543 : vector<32x256xf32> to vector<32x256xbf16>
    %cst_317 = arith.constant dense<0.000000e+00> : vector<32x256xf32>
    %545 = tpu.matmul %1, %544, %cst_317 {dimension_numbers = #tpu.dot_dimension_numbers<[1], [0], [0], [1], [0, 0, 1, 1], [], []>} : vector<32x32xbf16>, vector<32x256xbf16>, vector<32x256xf32> -> vector<32x256xf32>
    %546 = vector.broadcast %3 : vector<32x1xf32> to vector<32x256xf32>
    %547 = arith.addf %545, %546 : vector<32x256xf32>
    %c1_318 = arith.constant 1 : index
    %c0_319 = arith.constant 0 : index
    %c0_320 = arith.constant 0 : index
    %548 = vector.load %arg1[%c1_318, %c0_319, %c0_320] : memref<2x32x256xf32, #tpu.memory_space<vmem>>, vector<1x32x256xf32>
    %549 = vector.shape_cast %548 : vector<1x32x256xf32> to vector<32x256xf32>
    %550 = arith.addf %549, %547 : vector<32x256xf32>
    %cst_321 = arith.constant 0.000000e+00 : f32
    %551 = vector.broadcast %cst_321 : f32 to vector<32x256xf32>
    %552 = arith.maximumf %550, %551 : vector<32x256xf32>
    %c1_322 = arith.constant 1 : index
    %c0_323 = arith.constant 0 : index
    %c0_324 = arith.constant 0 : index
    %553 = vector.load %arg7[%c1_322, %c0_323, %c0_324] : memref<2x32x256xf32, #tpu.memory_space<vmem>>, vector<1x32x256xf32>
    %554 = vector.shape_cast %553 : vector<1x32x256xf32> to vector<32x256xf32>
    %555 = vector.shape_cast %552 : vector<32x256xf32> to vector<1x32x256xf32>
    tpu.vector_store %arg7[%c1_322, %c0_323, %c0_324], %555 {strides = array<i32>} : memref<2x32x256xf32, #tpu.memory_space<vmem>>, vector<1x32x256xf32>,
    return
  }
  func.func @transform_0(%arg0: i32) -> (i32, i32, i32) {
    %c0_i32 = arith.constant 0 : i32
    %c0_i32_0 = arith.constant 0 : i32
    %c0_i32_1 = arith.constant 0 : i32
    return %arg0, %c0_i32, %c0_i32_0 : i32, i32, i32
  }
  func.func @transform_1(%arg0: i32) -> (i32, i32) {
    %c0_i32 = arith.constant 0 : i32
    %c0_i32_0 = arith.constant 0 : i32
    %c0_i32_1 = arith.constant 0 : i32
    return %c0_i32, %c0_i32_0 : i32, i32
  }
  func.func @transform_2(%arg0: i32) -> (i32, i32) {
    %c0_i32 = arith.constant 0 : i32
    %c0_i32_0 = arith.constant 0 : i32
    %c0_i32_1 = arith.constant 0 : i32
    return %c0_i32, %c0_i32_0 : i32, i32
  }
  func.func @transform_3(%arg0: i32) -> (i32, i32, i32) {
    %c0_i32 = arith.constant 0 : i32
    %c0_i32_0 = arith.constant 0 : i32
    %c0_i32_1 = arith.constant 0 : i32
    %c0_i32_2 = arith.constant 0 : i32
    return %c0_i32, %c0_i32_0, %c0_i32_1 : i32, i32, i32
  }
  func.func @transform_4(%arg0: i32) -> (i32, i32) {
    %c0_i32 = arith.constant 0 : i32
    %c0_i32_0 = arith.constant 0 : i32
    %c0_i32_1 = arith.constant 0 : i32
    return %c0_i32, %c0_i32_0 : i32, i32
  }
  func.func @transform_5(%arg0: i32) -> (i32, i32) {
    %c0_i32 = arith.constant 0 : i32
    %c0_i32_0 = arith.constant 0 : i32
    %c0_i32_1 = arith.constant 0 : i32
    return %c0_i32, %c0_i32_0 : i32, i32
  }
  func.func @transform_6(%arg0: i32) -> (i32, i32, i32) {
    %c0_i32 = arith.constant 0 : i32
    %c0_i32_0 = arith.constant 0 : i32
    %c0_i32_1 = arith.constant 0 : i32
    return %arg0, %c0_i32, %c0_i32_0 : i32, i32, i32
  }
}

</mosaic_0001>

<bundles_post_ra>
// kernel: tpu_custom_call.1
= control target key start
LH: loop header
LB: loop body
LE: loop exit
PB: predicated region body
PF: predicated region fallthrough
CT: control target
= control target key end

     0   :  { %11 = vsyncpa [#allocation5], 0  ;;  %s9714_s0 = inlined_call_operand.hbm [shape: f32[2,32,256], index: 0, kind: input, shape index: {}]   ;;  %s9715_s1 = inlined_call_operand.vmem [shape: bf16[32,32], index: 1, kind: input, shape index: {}]   ;;  %s9716_s2 = inlined_call_operand.vmem [shape: f32[32,1], index: 2, kind: input, shape index: {}]   ;;  %s9717_s3 = inlined_call_operand.vmem [shape: f32[1,32,16], index: 3, kind: input, shape index: {}]   ;;  %s9718_s4 = inlined_call_operand.vmem [shape: bf16[32,32], index: 4, kind: input, shape index: {}]   ;;  %s9719_s5 = inlined_call_operand.vmem [shape: f32[32,1], index: 5, kind: input, shape index: {}]   ;;  %s9720_s6 = inlined_call_operand.hbm [shape: f32[2,32,256], index: 6, kind: output, shape index: {}]  }
   0x1   :  { %12 = vsyncpa [#allocation6], 0  ;;  %s17_s23 = sshll.u32 %s9714_s0, 4  ;;  %s8223_s24 = smov [#allocation4]   ;;  %s18_s23 = int_to_ptr.hbm [resolvable:$true] %s17_s23 }
   0x2   :  { %s19_s25 = sshll.u32 %s8223_s24, 4  ;;  %s8224_s26 = smov 256   ;;  %s20_s25 = int_to_ptr.vmem [resolvable:$true] %s19_s25 }
   0x3   :  { %s8225_s27 = smov 16  }
   0x4   :  { %25 = dma.hbm_to_vmem [thread:$0]  %s18_s23, 2048, %s20_s25, [#allocation5], %s8224_s26, %s8224_s26, %s8225_s27  }
   0x5   :  { %8219 = dma.done.wait [#allocation5], 2048  }
   0x6   :  { %8220 = vsyncadd [#allocation5], 4294965248  ;;  %v8226_v0 = vmov 0   ;;  %v61_v1 = vld [vmem:[#allocation4 + $0x20] sm:$0xff]  ;;  %v63_v2 = vld [vmem:[#allocation4 + $0x30] sm:$0xff]  ;;  %vm297_vm0 = vcmask 125952  }
   0x7   :  { %7901 = vset.pattern.permute.xlu1 %v8226_v0  ;;  %7900 = vset.pattern.permute.xlu0 %v8226_v0  ;;  %v62_v3 = vld [vmem:[#allocation4 + $0x28] sm:$0xff]  ;;  %v67_v4 = vpack.c.bf16 %v63_v2, %v61_v1  ;;  %v64_v5 = vld [vmem:[#allocation4 + $0x38] sm:$0xff]  ;;  %v8274_v6 = vld [vmem:[%s9717_s3] sm:$0xff]  ;;  %vm99_vm1 = vcmask 261120   ;;  %vm391_vm2 = vcmask 130048   ;;  %s6826_s0 = sshll.u32 %s9720_s6, 4  ;;  %s6827_s0 = int_to_ptr.hbm [resolvable:$true] %s6826_s0 }
   0x8   :  { %v8279_v7 = vld [vmem:[%s9717_s3 + $0x8] sm:$0xff]  ;;  %v68_v8 = vpack.c.bf16 %v64_v5, %v62_v3  ;;  %v168_v9 = vpack.c.bf16 %v8274_v6, %v8274_v6  ;;  %v57_v11 = vld [vmem:[#allocation4] sm:$0xff]  ;;  %v59_v12 = vld [vmem:[#allocation4 + $0x10] sm:$0xff] }
   0x9   :  { %v169_v10 = vpack.c.bf16 %v8279_v7, %v8279_v7  ;;  %v58_v13 = vld [vmem:[#allocation4 + $0x8] sm:$0xff]  ;;  %112 = vmatpush.bf16.msra.mxu0 %v67_v4  ;;  %v65_v14 = vpack.c.bf16 %v59_v12, %v57_v11  ;;  %v60_v15 = vld [vmem:[#allocation4 + $0x18] sm:$0xff]  ;;  %v49_v16 = vld [vmem:[%s9716_s2] sm:$0xff] }
   0xa   :  { %131 = vmatpush.bf16.msra.mxu1 %v68_v8  ;;  %v176_v17 = vunpack.c.l.b16 %v168_v9  ;;  %298 = vst.msk [vmem:[#allocation2 + $0x8] sm:$0xf] %vm297_vm0, %v168_v9  ;;  %v66_v19 = vpack.c.bf16 %v60_v15, %v58_v13  ;;  %71 = vperm.xlu1 %7901, %v49_v16   ;;  %v8292_v20 = vld [vmem:[%s9717_s3 + $0x10] sm:$0xff]  ;;  %v8297_v21 = vld [vmem:[%s9717_s3 + $0x18] sm:$0xff]  ;;  %v7711_v25 = vld [vmem:[%s9715_s1] sm:$0xff] }
   0xb   :  { %v177_v18 = vunpack.c.l.b16 %v169_v10  ;;  %299 = vst.msk [vmem:[#allocation2 + $0x14] sm:$0xf] %vm297_vm0, %v169_v10  ;;  %v170_v22 = vpack.c.bf16 %v8292_v20, %v8292_v20  ;;  %v51_v23 = vld [vmem:[%s9716_s2 + $0x10] sm:$0xff]  ;;  %v171_v26 = vpack.c.bf16 %v8297_v21, %v8297_v21  ;;  %v50_v27 = vld [vmem:[%s9716_s2 + $0x8] sm:$0xff]  ;;  %v52_v28 = vld [vmem:[%s9716_s2 + $0x18] sm:$0xff] }
   0xc   :  { %81 = vperm.xlu0 %7900, %v51_v23   ;;  %v7712_v32 = vld [vmem:[%s9715_s1 + $0x8] sm:$0xff] }
   0xd   :  { %v8305_v24 = vpack.c.b16 %v177_v18, %v176_v17  ;;  %113 = vmatpush.bf16.msra.mxu0 %v65_v14  ;;  %300 = vst.msk [vmem:[#allocation2 + $0x20] sm:$0xf] %vm297_vm0, %v170_v22  ;;  %v178_v29 = vunpack.c.l.b16 %v170_v22  ;;  %v179_v30 = vunpack.c.l.b16 %v171_v26 }
   0xe   :  { %132 = vmatpush.bf16.msra.mxu1 %v66_v19  ;;  %301 = vst.msk [vmem:[#allocation2 + $0x2c] sm:$0xf] %vm297_vm0, %v171_v26 }
   0xf   :  { %184 = vxpose.xlu2.c.b16.start [1/2] (short) (narrow) %v8305_v24, 16  ;;  %v8323_v31 = vpack.c.b16 %v179_v30, %v178_v29 }
  0x10   :  { %6847 = vmatmul.msk.bf16.vlgmr.msra.gmra.mxu0 %vm99_vm1, %v7711_v25 }
  0x11   :  { %6849 = vmatmul.msk.bf16.vlgmr.msra.gmra.mxu1 %vm99_vm1, %v7711_v25  ;;  %v6863_v37 = vld [vmem:[#allocation2 + $0x8] sm:$0xf] }
  0x12   :  { %76 = vperm.xlu1 %7901, %v50_v27   ;;  %v7717_v38 = vld [vmem:[#allocation2 + $0x10] sm:$0xf0] }
  0x13   :  { %v6864_v39 = vor.u32 %v7717_v38, %v6863_v37 }
  0x14   :  { %86 = vperm.xlu0 %7900, %v52_v28   ;;  %v6875_v33 = vld [vmem:[#allocation2 + $0x20] sm:$0xf] }
  0x15   :  { %v7720_v34 = vld [vmem:[#allocation2 + $0x28] sm:$0xf0] }
  0x16   :  { %v6876_v35 = vor.u32 %v7720_v34, %v6875_v33 }
  0x18   :  { %376 = vmatpush.bf16.msrb.mxu0 %v6876_v35 }
  0x1c   :  { %377 = vmatpush.bf16.msrb.mxu0 %v6864_v39 }
  0x1f   :  { %185 = vxpose.xlu2.c.b16.end [2/2] (short) (narrow) %v8323_v31, 16 }
  0x20   :  { %6848 = vmatmul.msk.bf16.gmra.mxu0 %vm99_vm1, %v7712_v32 }
  0x21   :  { %6850 = vmatmul.msk.bf16.gmra.mxu1 %vm99_vm1, %v7712_v32 }
  0x7c   :  { %v8331_v36 = vpop.permute.xlu1 %71 }
  0x7e   :  { %v8339_v54 = vpop.permute.xlu0 %81 }
  0x84   :  { %v8335_v47 = vpop.permute.xlu1 %76 }
  0x86   :  { %v8343_v63 = vpop.permute.xlu0 %86 }
  0x8d   :  { %v115_v40 = vpop.f32.mrf.mxu0 }
  0x8e   :  { %v116_v41 = vadd.f32 %v115_v40, %v8331_v36  ;;  %v134_v42 = vpop.f32.mrf.mxu1 }
  0x8f   :  { %v135_v43 = vadd.f32 %v134_v42, %v8331_v36 }
  0x90   :  { %v144_v44 = vmax.f32 %v116_v41, 0.0 }
  0x91   :  { %v145_v45 = vmax.f32 %v135_v43, 0.0 }
  0x93   :  { %v152_v46 = vpack.c.bf16 %v145_v45, %v144_v44 }
  0x95   :  { %156 = vst [vmem:[#allocation2] sm:$0xff] %v152_v46  ;;  %v117_v48 = vpop.f32.mrf.mxu0  ;;  %v204_v19 = vunpack.c.l.b16 %v152_v46  ;;  %v205_v22 = vunpack.c.h.b16 %v152_v46 }
  0x96   :  { %160 = vst [vmem:[#allocation3] sm:$0xff] %v152_v46  ;;  %v118_v49 = vadd.f32 %v117_v48, %v8335_v47  ;;  %v136_v50 = vpop.f32.mrf.mxu1 }
  0x97   :  { %v137_v51 = vadd.f32 %v136_v50, %v8335_v47 }
  0x98   :  { %v146_v52 = vmax.f32 %v118_v49, 0.0 }
  0x99   :  { %v147_v53 = vmax.f32 %v137_v51, 0.0 }
  0x9b   :  { %v153_v55 = vpack.c.bf16 %v147_v53, %v146_v52 }
  0x9c   :  { %v6855_v35 = vld [vmem:[#allocation2] sm:$0xf]  ;;  %v7715_v37 = vld [vmem:[#allocation2 + $0x4] sm:$0xf] }
  0x9d   :  { %157 = vst [vmem:[#allocation2 + $0xc] sm:$0xff] %v153_v55  ;;  %v120_v56 = vpop.f32.mrf.mxu0  ;;  %v206_v17 = vunpack.c.l.b16 %v153_v55  ;;  %v207_v18 = vunpack.c.h.b16 %v153_v55 }
  0x9e   :  { %161 = vst [vmem:[#allocation3 + $0x8] sm:$0xff] %v153_v55  ;;  %v121_v57 = vadd.f32 %v120_v56, %v8339_v54  ;;  %v139_v58 = vpop.f32.mrf.mxu1 }
  0x9f   :  { %v140_v59 = vadd.f32 %v139_v58, %v8339_v54  ;;  %v212_v23 = vpack.c.b16 %v206_v17, %v204_v19  ;;  %v213_v25 = vpack.c.b16 %v207_v18, %v205_v22 }
  0xa0   :  { %v148_v60 = vmax.f32 %v121_v57, 0.0 }
  0xa1   :  { %v149_v61 = vmax.f32 %v140_v59, 0.0 }
  0xa3   :  { %v154_v62 = vpack.c.bf16 %v149_v61, %v148_v60 }
  0xa4   :  { %v7716_v33 = vld [vmem:[#allocation2 + $0x8] sm:$0xf0]  ;;  %v6857_v34 = vld [vmem:[#allocation2 + $0xc] sm:$0xf0] }
  0xa5   :  { %158 = vst [vmem:[#allocation2 + $0x18] sm:$0xff] %v154_v62  ;;  %v122_v1 = vpop.f32.mrf.mxu0  ;;  %v208_v10 = vunpack.c.l.b16 %v154_v62  ;;  %v209_v12 = vunpack.c.h.b16 %v154_v62  ;;  %v6856_v38 = vor.u32 %v7716_v33, %v6855_v35  ;;  %v6860_v39 = vor.u32 %v7715_v37, %v6857_v34 }
  0xa6   :  { %162 = vst [vmem:[#allocation3 + $0x10] sm:$0xff] %v154_v62  ;;  %v123_v2 = vadd.f32 %v122_v1, %v8343_v63  ;;  %v141_v3 = vpop.f32.mrf.mxu1 }
  0xa7   :  { %v142_v4 = vadd.f32 %v141_v3, %v8343_v63 }
  0xa8   :  { %v150_v5 = vmax.f32 %v123_v2, 0.0 }
  0xa9   :  { %v151_v8 = vmax.f32 %v142_v4, 0.0 }
  0xab   :  { %v155_v9 = vpack.c.bf16 %v151_v8, %v150_v5 }
  0xac   :  { %v6867_v26 = vld [vmem:[#allocation2 + $0x18] sm:$0xf]  ;;  %v7718_v28 = vld [vmem:[#allocation2 + $0x1c] sm:$0xf] }
  0xad   :  { %159 = vst [vmem:[#allocation2 + $0x24] sm:$0xff] %v155_v9  ;;  %v210_v11 = vunpack.c.l.b16 %v155_v9  ;;  %v211_v13 = vunpack.c.h.b16 %v155_v9 }
  0xae   :  { %163 = vst [vmem:[#allocation3 + $0x18] sm:$0xff] %v155_v9 }
  0xaf   :  { %v214_v15 = vpack.c.b16 %v210_v11, %v208_v10  ;;  %v215_v16 = vpack.c.b16 %v211_v13, %v209_v12 }
  0xb0   :  { %v192_v14 = vpop.trf.xlu2 }
  0xb1   :  { %6879 = vmatmul.msk.bf16.vlgmr.msrb.gmra.mxu0 %vm99_vm1, %v192_v14  ;;  %229 = vmatpush.bf16.msra.mxu2 %v214_v15 }
  0xb2   :  { %243 = vmatpush.bf16.msra.mxu3 %v215_v16 }
  0xb4   :  { %v7719_v27 = vld [vmem:[#allocation2 + $0x20] sm:$0xf0]  ;;  %v6869_v29 = vld [vmem:[#allocation2 + $0x24] sm:$0xf0] }
  0xb5   :  { %230 = vmatpush.bf16.msra.mxu2 %v212_v23  ;;  %v6868_v30 = vor.u32 %v7719_v27, %v6867_v26  ;;  %v6872_v32 = vor.u32 %v7718_v28, %v6869_v29 }
  0xb6   :  { %244 = vmatpush.bf16.msra.mxu3 %v213_v25 }
  0xb8   :  { %6851 = vmatmul.msk.bf16.vlgmr.msra.gmra.mxu2 %vm99_vm1, %v192_v14 }
  0xb9   :  { %348 = vmatpush.bf16.msrb.mxu2 %v6868_v30  ;;  %6852 = vmatmul.msk.bf16.vlgmr.msra.gmra.mxu3 %vm99_vm1, %v192_v14 }
  0xba   :  { %362 = vmatpush.bf16.msrb.mxu3 %v6872_v32 }
  0xbd   :  { %349 = vmatpush.bf16.msrb.mxu2 %v6856_v38  ;;  %v7731_v38 = vld [vmem:[#allocation2 + $0x20] sm:$0xf0] }
  0xbe   :  { %363 = vmatpush.bf16.msrb.mxu3 %v6860_v39 }
  0xc8   :  { %6877 = vmatmul.msk.bf16.vlgmr.msrb.gmra.mxu2 %vm99_vm1, %v192_v14 }
  0xc9   :  { %6878 = vmatmul.msk.bf16.vlgmr.msrb.gmra.mxu3 %vm99_vm1, %v192_v14 }
 0x12e   :  { %v379_v28 = vpop.f32.mrf.mxu0 }
 0x136   :  { %v381_v39 = vpop.f32.mrf.mxu0 }
 0x13b   :  { %v232_v40 = vpop.f32.mrf.mxu2 }
 0x13c   :  { %v246_v41 = vpop.f32.mrf.mxu3 }
 0x143   :  { %v234_v42 = vpop.f32.mrf.mxu2 }
 0x144   :  { %v248_v43 = vpop.f32.mrf.mxu3  ;;  %v251_v44 = vmax.f32 %v232_v40, %v234_v42 }
 0x145   :  { %v258_v45 = vmax.f32 %v246_v41, %v248_v43 }
 0x146   :  { %v252_v46 = vrot.slane %v251_v44, 4 }
 0x147   :  { %v259_v48 = vrot.slane %v258_v45, 4 }
 0x148   :  { %v253_v49 = vmax.f32 %v251_v44, %v252_v46  ;;  %v384_v44 = vpack.c.bf16 %v381_v39, %v379_v28  ;;  %v6924_v46 = vld [vmem:[#allocation2 + $0x24] sm:$0xf0] }
 0x149   :  { %v260_v50 = vmax.f32 %v258_v45, %v259_v48  ;;  %v7728_v45 = vld [vmem:[#allocation2 + $0x8] sm:$0xf0]  ;;  %v6910_v48 = vld [vmem:[#allocation2] sm:$0xf] }
 0x14a   :  { %v254_v51 = vrot.slane %v253_v49, 2 }
 0x14b   :  { %v261_v52 = vrot.slane %v260_v50, 2 }
 0x14c   :  { %v255_v53 = vmax.f32 %v253_v49, %v254_v51  ;;  %v6911_v49 = vor.u32 %v7728_v45, %v6910_v48 }
 0x14d   :  { %v262_v55 = vmax.f32 %v260_v50, %v261_v52  ;;  %v7730_v50 = vld [vmem:[#allocation2 + $0x1c] sm:$0xf]  ;;  %v6912_v52 = vld [vmem:[#allocation2 + $0xc] sm:$0xf0] }
 0x14e   :  { %v256_v56 = vrot.slane %v255_v53, 1  ;;  %v6927_v51 = vor.u32 %v7730_v50, %v6924_v46 }
 0x14f   :  { %v263_v57 = vrot.slane %v262_v55, 1 }
 0x150   :  { %v257_v58 = vmax.f32 %v255_v53, %v256_v56  ;;  %v7727_v53 = vld [vmem:[#allocation2 + $0x4] sm:$0xf]  ;;  %v351_v56 = vpop.f32.mrf.mxu2 }
 0x151   :  { %v264_v59 = vmax.f32 %v262_v55, %v263_v57  ;;  %v6915_v55 = vor.u32 %v7727_v53, %v6912_v52 }
 0x152   :  { %v265_v60 = vsub.f32 %v232_v40, %v257_v58  ;;  %v267_v61 = vsub.f32 %v234_v42, %v257_v58  ;;  %v6922_v42 = vld [vmem:[#allocation2 + $0x18] sm:$0xf] }
 0x153   :  { %v266_v62 = vsub.f32 %v246_v41, %v264_v59  ;;  %v268_v1 = vsub.f32 %v248_v43, %v264_v59  ;;  %v6923_v43 = vor.u32 %v7731_v38, %v6922_v42 }
 0x154   :  { %v269_v2 = vmul.f32 1.442695, %v265_v60  ;;  %v273_v3 = vmul.f32 1.442695, %v267_v61 }
 0x155   :  { %v271_v4 = vmul.f32 1.442695, %v266_v62  ;;  %v275_v5 = vmul.f32 1.442695, %v268_v1 }
 0x156   :  { %7903 = vpow2.f32 %v269_v2 }
 0x157   :  { %7905 = vpow2.f32 %v273_v3 }
 0x158   :  { %7907 = vpow2.f32 %v271_v4  ;;  %v8366_v57 = vpop.f32.mrf.mxu2 }
 0x159   :  { %7909 = vpow2.f32 %v275_v5 }
 0x15c   :  { %v7904_v8 = vpop.eup %7903 }
 0x15d   :  { %v7906_v9 = vpop.eup %7905 }
 0x15e   :  { %v7908_v10 = vpop.eup %7907  ;;  %v277_v11 = vadd.f32 %v7906_v9, %v7904_v8 }
 0x15f   :  { %v7910_v12 = vpop.eup %7909 }
 0x160   :  { %v278_v13 = vrot.slane %v277_v11, 4  ;;  %v284_v14 = vadd.f32 %v7910_v12, %v7908_v10 }
 0x162   :  { %v279_v15 = vadd.f32 %v278_v13, %v277_v11  ;;  %v285_v16 = vrot.slane %v284_v14, 4 }
 0x164   :  { %v286_v17 = vadd.f32 %v285_v16, %v284_v14  ;;  %v280_v18 = vrot.slane %v279_v15, 2 }
 0x166   :  { %v281_v19 = vadd.f32 %v280_v18, %v279_v15  ;;  %v287_v22 = vrot.slane %v286_v17, 2 }
 0x168   :  { %v282_v23 = vrot.slane %v281_v19, 1  ;;  %v288_v25 = vadd.f32 %v287_v22, %v286_v17 }
 0x16a   :  { %v283_v26 = vadd.f32 %v282_v23, %v281_v19  ;;  %v289_v27 = vrot.slane %v288_v25, 1 }
 0x16c   :  { %7911 = vrcp.f32 %v283_v26  ;;  %v290_v29 = vadd.f32 %v289_v27, %v288_v25  ;;  %v365_v27 = vpop.f32.mrf.mxu3 }
 0x16e   :  { %7913 = vrcp.f32 %v290_v29 }
 0x172   :  { %v7912_v30 = vpop.eup %7911 }
 0x173   :  { %v8352_v32 = vmul.f32 %v7912_v30, %v7904_v8  ;;  %v8354_v33 = vmul.f32 %v7912_v30, %v7906_v9 }
 0x174   :  { %v7914_v34 = vpop.eup %7913 }
 0x175   :  { %v8356_v35 = vmul.f32 %v7914_v34, %v7908_v10  ;;  %v8358_v37 = vmul.f32 %v7914_v34, %v7910_v12  ;;  %v385_v40 = vpack.c.bf16 %v8354_v33, %v8352_v32  ;;  %v387_v30 = vmul.f32 %v351_v56, %v8352_v32 }
 0x177   :  { %v386_v41 = vpack.c.bf16 %v8358_v37, %v8356_v35  ;;  %402 = vmatpush.bf16.msrb.mxu1 %v385_v40  ;;  %v388_v39 = vmul.f32 %v365_v27, %v8356_v35 }
 0x179   :  { %416 = vmatpush.bf16.msra.mxu2 %v386_v41 }
 0x17a   :  { %6880 = vmatmul.msk.bf16.vlgmr.msrb.gmra.mxu1 %vm391_vm2, %v384_v44 }
 0x17c   :  { %6881 = vmatmul.msk.bf16.vlgmr.msra.gmra.mxu2 %vm391_vm2, %v384_v44 }
 0x17d   :  { %756 = vmatpush.bf16.msrb.mxu2 %v6923_v43 }
 0x181   :  { %757 = vmatpush.bf16.msrb.mxu2 %v6911_v49 }
 0x185   :  { %770 = vmatpush.bf16.msra.mxu2 %v6927_v51 }
 0x189   :  { %771 = vmatpush.bf16.msra.mxu2 %v6915_v55 }
 0x1f7   :  { %v404_v58 = vpop.f32.mrf.mxu1 }
 0x1f8   :  { %v405_v59 = vadd.f32 1e-06, %v404_v58 }
 0x1fa   :  { %7915 = vrcp.f32 %v405_v59  ;;  %v434_v14 = vand.u32 2147483648, %v405_v59  ;;  %vm428_vm4 = vweird.f32 %v405_v59  ;;  %v432_v16 = vand.u32 2147483647, %v405_v59 }
 0x1fc   :  { %v435_v28 = vor.u32 1.1754944e-38, %v434_v14  ;;  %vm433_vm7 = vcmp.eq.f32.partialorder %v432_v16, 8.507059e+37  ;;  %v6884_v16 = vld [vmem:[#allocation3] sm:$0xf] }
 0x1ff   :  { %v418_v60 = vpop.f32.mrf.mxu2  ;;  %v406_v62 = vpop.f32.mrf.mxu1 }
 0x200   :  { %v419_v61 = vadd.f32 1e-06, %v418_v60  ;;  %v7916_v1 = vpop.eup %7915  ;;  %v407_v2 = vadd.f32 1e-06, %v406_v62  ;;  %v367_v60 = vpop.f32.mrf.mxu3 }
 0x201   :  { %v424_v3 = vmul.f32 %v7916_v1, %v405_v59  ;;  %vm429_vm3 = vweird.f32 %v7916_v1 }
 0x202   :  { %7917 = vrcp.f32 %v419_v61  ;;  %vm8368_vm5 = vmor %vm428_vm4, %vm429_vm3  ;;  %v447_v19 = vand.u32 2147483647, %v419_v61  ;;  %v449_v22 = vand.u32 2147483648, %v419_v61  ;;  %vm443_vm8 = vweird.f32 %v419_v61 }
 0x203   :  { %7919 = vrcp.f32 %v407_v2  ;;  %v425_v4 = vsub.f32 1.0, %v424_v3  ;;  %vm458_vm12 = vweird.f32 %v407_v2  ;;  %v464_v46 = vand.u32 2147483648, %v407_v2 }
 0x204   :  { %vm448_vm10 = vcmp.eq.f32.partialorder %v447_v19, 8.507059e+37  ;;  %v450_v41 = vor.u32 1.1754944e-38, %v449_v22  ;;  %v462_v48 = vand.u32 2147483647, %v407_v2  ;;  %v6977_v22 = vld [vmem:[#allocation2 + $0x18] sm:$0xf] }
 0x205   :  { %v426_v5 = vmul.f32 %v7916_v1, %v425_v4  ;;  %v465_v58 = vor.u32 1.1754944e-38, %v464_v46 }
 0x206   :  { %vm463_vm15 = vcmp.eq.f32.partialorder %v462_v48, 8.507059e+37 }
 0x207   :  { %v420_v8 = vpop.f32.mrf.mxu2  ;;  %v427_v12 = vadd.f32 %v7916_v1, %v426_v5 }
 0x208   :  { %v7918_v9 = vpop.eup %7917  ;;  %v421_v10 = vadd.f32 1e-06, %v420_v8 }
 0x209   :  { %v7920_v11 = vpop.eup %7919  ;;  %v439_v13 = vmul.f32 %v7918_v9, %v419_v61  ;;  %v431_v25 = vsel %vm8368_vm5, %v7916_v1, %v427_v12  ;;  %vm444_vm6 = vweird.f32 %v7918_v9  ;;  %v389_v1 = vmul.f32 %v8366_v57, %v8354_v33  ;;  %v6886_v57 = vld [vmem:[#allocation3 + $0x8] sm:$0xf0] }
 0x20a   :  { %v454_v15 = vmul.f32 %v7920_v11, %v407_v2  ;;  %7921 = vrcp.f32 %v421_v10  ;;  %v436_v40 = vsel %vm433_vm7, %v435_v28, %v431_v25  ;;  %vm445_vm9 = vmor %vm443_vm8, %vm444_vm6  ;;  %vm459_vm11 = vweird.f32 %v7920_v11  ;;  %v7740_v25 = vld [vmem:[#allocation2 + $0x8] sm:$0xf0]  ;;  %v7724_v28 = vld [vmem:[#allocation3 + $0x14] sm:$0xf0] }
 0x20b   :  { %v440_v17 = vsub.f32 1.0, %v439_v13  ;;  %v8376_v32 = vmul.f32 %v436_v40, %v387_v30  ;;  %vm8380_vm13 = vmor %vm458_vm12, %vm459_vm11  ;;  %v477_v35 = vand.u32 2147483647, %v421_v10  ;;  %v479_v52 = vand.u32 2147483648, %v421_v10  ;;  %v6892_v30 = vld [vmem:[#allocation3 + $0x10] sm:$0xf] }
 0x20c   :  { %v455_v23 = vsub.f32 1.0, %v454_v15  ;;  %vm473_vm3 = vweird.f32 %v421_v10  ;;  %v390_v2 = vmul.f32 %v367_v60, %v8358_v37  ;;  %v7722_v37 = vld [vmem:[#allocation3 + $0x4] sm:$0xf0]  ;;  %v7743_v15 = vld [vmem:[#allocation2 + $0x20] sm:$0xf0] }
 0x20d   :  { %v441_v26 = vmul.f32 %v7918_v9, %v440_v17  ;;  %v480_v61 = vor.u32 1.1754944e-38, %v479_v52  ;;  %vm478_vm5 = vcmp.eq.f32.partialorder %v477_v35, 8.507059e+37  ;;  %v7721_v17 = vld [vmem:[#allocation3 + $0x4] sm:$0xf]  ;;  %v6885_v18 = vor.u32 %v7722_v37, %v6884_v16 }
 0x20e   :  { %v456_v29 = vmul.f32 %v7920_v11, %v455_v23  ;;  %v6889_v19 = vor.u32 %v7721_v17, %v6886_v57  ;;  %v6978_v23 = vor.u32 %v7743_v15, %v6977_v22 }
 0x20f   :  { %v442_v34 = vadd.f32 %v7918_v9, %v441_v26  ;;  %v6965_v26 = vld [vmem:[#allocation2] sm:$0xf] }
 0x210   :  { %v7922_v38 = vpop.eup %7921  ;;  %v457_v43 = vadd.f32 %v7920_v11, %v456_v29  ;;  %v6966_v27 = vor.u32 %v7740_v25, %v6965_v26  ;;  %v6894_v29 = vld [vmem:[#allocation3 + $0x18] sm:$0xf0] }
 0x211   :  { %v446_v42 = vsel %vm445_vm9, %v7918_v9, %v442_v34  ;;  %v469_v44 = vmul.f32 %v7922_v38, %v421_v10  ;;  %vm474_vm14 = vweird.f32 %v7922_v38  ;;  %v7723_v34 = vld [vmem:[#allocation3 + $0x14] sm:$0xf] }
 0x212   :  { %v451_v45 = vsel %vm448_vm10, %v450_v41, %v446_v42  ;;  %v461_v53 = vsel %vm8380_vm13, %v7920_v11, %v457_v43  ;;  %vm475_vm4 = vmor %vm473_vm3, %vm474_vm14 }
 0x213   :  { %v470_v49 = vsub.f32 1.0, %v469_v44  ;;  %v8378_v50 = vmul.f32 %v451_v45, %v388_v39  ;;  %v466_v62 = vsel %vm463_vm15, %v465_v58, %v461_v53  ;;  %v6897_v39 = vor.u32 %v7723_v34, %v6894_v29 }
 0x214   :  { %v8391_v5 = vmul.f32 %v466_v62, %v389_v1 }
 0x215   :  { %v471_v55 = vmul.f32 %v7922_v38, %v470_v49  ;;  %v483_v56 = vpack.c.bf16 %v8378_v50, %v8376_v32 }
 0x217   :  { %v472_v59 = vadd.f32 %v7922_v38, %v471_v55  ;;  %485 = vst [vmem:[#allocation3 + $0x20] sm:$0xff] %v483_v56  ;;  %v525_v10 = vunpack.c.l.b16 %v483_v56  ;;  %v526_v12 = vunpack.c.h.b16 %v483_v56 }
 0x219   :  { %v476_v3 = vsel %vm475_vm4, %v7922_v38, %v472_v59  ;;  %v6893_v38 = vor.u32 %v7724_v28, %v6892_v30 }
 0x21a   :  { %v481_v4 = vsel %vm478_vm5, %v480_v61, %v476_v3 }
 0x21b   :  { %v8393_v8 = vmul.f32 %v481_v4, %v390_v2 }
 0x21d   :  { %v484_v9 = vpack.c.bf16 %v8393_v8, %v8391_v5 }
 0x21e   :  { %v6900_v42 = vld [vmem:[#allocation3 + $0x20] sm:$0xf]  ;;  %v7725_v43 = vld [vmem:[#allocation3 + $0x24] sm:$0xf] }
 0x21f   :  { %486 = vst [vmem:[#allocation3 + $0x28] sm:$0xff] %v484_v9  ;;  %v527_v11 = vunpack.c.l.b16 %v484_v9  ;;  %v528_v13 = vunpack.c.h.b16 %v484_v9 }
 0x221   :  { %v8397_v14 = vpack.c.b16 %v527_v11, %v525_v10  ;;  %v530_v33 = vpack.c.b16 %v528_v13, %v526_v12 }
 0x223   :  { %540 = vmatpush.bf16.xpose.msra.mxu3 %v8397_v14  ;;  %564 = vmatpush.bf16.xpose.msra.mxu0 %v530_v33 }
 0x226   :  { %v7726_v40 = vld [vmem:[#allocation3 + $0x24] sm:$0xf0]  ;;  %v6902_v41 = vld [vmem:[#allocation3 + $0x28] sm:$0xf0] }
 0x227   :  { %v6901_v44 = vor.u32 %v7726_v40, %v6900_v42  ;;  %v6905_v45 = vor.u32 %v7725_v43, %v6902_v41 }
 0x22a   :  { %541 = vmatmul.bf16.vlgmr.msra.gmra.mxu3 %v6885_v18  ;;  %565 = vmatmul.bf16.vlgmr.msra.gmra.mxu0 %v6889_v19 }
 0x22b   :  { %821 = vmatpush.bf16.msrb.mxu3 %v530_v33 }
 0x22f   :  { %1161 = vmatpush.bf16.msra.mxu3 %v6978_v23 }
 0x233   :  { %1162 = vmatpush.bf16.msra.mxu3 %v6966_v27 }
 0x23a   :  { %546 = vmatmul.bf16.gmra.mxu3 %v6893_v38  ;;  %570 = vmatmul.bf16.gmra.mxu0 %v6897_v39 }
 0x24a   :  { %551 = vmatmul.bf16.gmra.mxu3 %v6901_v44  ;;  %575 = vmatmul.bf16.gmra.mxu0 %v6905_v45 }
 0x2a7   :  { %v566_v46 = vpop.f32.mrf.mxu0 }
 0x2ad   :  { %v542_v48 = vpop.f32.mrf.mxu3 }
 0x2ae   :  { %v567_v49 = vadd.f32 %v566_v46, %v542_v48 }
 0x2af   :  { %v568_v51 = vpop.f32.mrf.mxu0 }
 0x2b0   :  { %v582_v23 = vmul.f32 %v567_v49, %v8274_v6 }
 0x2b5   :  { %v544_v35 = vpop.f32.mrf.mxu3 }
 0x2b6   :  { %v569_v30 = vadd.f32 %v568_v51, %v544_v35 }
 0x2b7   :  { %v571_v52 = vpop.f32.mrf.mxu0 }
 0x2b8   :  { %v583_v45 = vmul.f32 %v569_v30, %v8279_v7  ;;  %v6979_v30 = vld [vmem:[#allocation2 + $0x24] sm:$0xf0] }
 0x2bd   :  { %v547_v53 = vpop.f32.mrf.mxu3 }
 0x2be   :  { %v8400_v55 = vadd.f32 %v571_v52, %v547_v53 }
 0x2bf   :  { %v8402_v56 = vpop.f32.mrf.mxu0 }
 0x2c5   :  { %v8404_v58 = vpop.f32.mrf.mxu3 }
 0x2c7   :  { %v576_v59 = vpop.f32.mrf.mxu0 }
 0x2cd   :  { %v552_v60 = vpop.f32.mrf.mxu3 }
 0x2ce   :  { %v577_v1 = vadd.f32 %v576_v59, %v552_v60 }
 0x2cf   :  { %v578_v61 = vpop.f32.mrf.mxu0 }
 0x2d5   :  { %v554_v62 = vpop.f32.mrf.mxu3 }
 0x2d6   :  { %v579_v2 = vadd.f32 %v578_v61, %v554_v62 }
 0x2d8   :  { %v581_v3 = vpack.c.bf16 %v579_v2, %v577_v1  ;;  %v584_v1 = vmul.f32 %v8400_v55, %v8292_v20 }
 0x2da   :  { %599 = vmatpush.bf16.msra.mxu1 %v581_v3 }
 0x2dd   :  { %6906 = vmatmul.msk.bf16.vlgmr.msra.gmra.mxu1 %vm391_vm2, %v8305_v24 }
 0x2ed   :  { %6907 = vmatmul.msk.bf16.gmra.mxu1 %vm391_vm2, %v8323_v31 }
 0x35a   :  { %v601_v4 = vpop.f32.mrf.mxu1 }
 0x35b   :  { %v602_v9 = vadd.f32 1e-06, %v601_v4 }
 0x35d   :  { %7923 = vrcp.f32 %v602_v9  ;;  %v622_v57 = vand.u32 2147483648, %v602_v9  ;;  %v620_v15 = vand.u32 2147483647, %v602_v9  ;;  %vm616_vm7 = vweird.f32 %v602_v9 }
 0x35f   :  { %v623_v31 = vor.u32 1.1754944e-38, %v622_v57  ;;  %vm621_vm9 = vcmp.eq.f32.partialorder %v620_v15, 8.507059e+37 }
 0x362   :  { %v603_v10 = vpop.f32.mrf.mxu1 }
 0x363   :  { %v7924_v11 = vpop.eup %7923  ;;  %v604_v12 = vadd.f32 1e-06, %v603_v10 }
 0x364   :  { %v612_v13 = vmul.f32 %v7924_v11, %v602_v9  ;;  %vm617_vm6 = vweird.f32 %v7924_v11 }
 0x365   :  { %7925 = vrcp.f32 %v604_v12  ;;  %vm618_vm8 = vmor %vm616_vm7, %vm617_vm6  ;;  %v637_v29 = vand.u32 2147483648, %v604_v12  ;;  %v635_v34 = vand.u32 2147483647, %v604_v12  ;;  %vm631_vm11 = vweird.f32 %v604_v12 }
 0x366   :  { %v613_v33 = vsub.f32 1.0, %v612_v13 }
 0x367   :  { %v638_v42 = vor.u32 1.1754944e-38, %v637_v29  ;;  %vm636_vm13 = vcmp.eq.f32.partialorder %v635_v34, 8.507059e+37 }
 0x368   :  { %v614_v37 = vmul.f32 %v7924_v11, %v613_v33 }
 0x36a   :  { %v615_v16 = vadd.f32 %v7924_v11, %v614_v37  ;;  %v606_v17 = vpop.f32.mrf.mxu1 }
 0x36b   :  { %v7926_v24 = vpop.eup %7925  ;;  %v607_v18 = vadd.f32 1e-06, %v606_v17 }
 0x36c   :  { %v627_v19 = vmul.f32 %v7926_v24, %v604_v12  ;;  %v619_v22 = vsel %vm618_vm8, %v7924_v11, %v615_v16  ;;  %vm632_vm10 = vweird.f32 %v7926_v24  ;;  %v574_v12 = vadd.f32 %v8402_v56, %v8404_v58 }
 0x36d   :  { %7927 = vrcp.f32 %v607_v18  ;;  %v624_v26 = vsel %vm621_vm9, %v623_v31, %v619_v22  ;;  %vm633_vm12 = vmor %vm631_vm11, %vm632_vm10  ;;  %v652_v49 = vand.u32 2147483648, %v607_v18  ;;  %v650_v52 = vand.u32 2147483647, %v607_v18 }
 0x36e   :  { %v628_v25 = vsub.f32 1.0, %v627_v19  ;;  %v8411_v27 = vmul.f32 %v624_v26, %v582_v23  ;;  %vm646_vm15 = vweird.f32 %v607_v18  ;;  %v585_v15 = vmul.f32 %v574_v12, %v8297_v21 }
 0x36f   :  { %v653_v61 = vor.u32 1.1754944e-38, %v652_v49  ;;  %vm651_vm4 = vcmp.eq.f32.partialorder %v650_v52, 8.507059e+37 }
 0x370   :  { %v629_v28 = vmul.f32 %v7926_v24, %v628_v25  ;;  %v671_v38 = vpack.c.bf16 %v8411_v27, %v8411_v27 }
 0x372   :  { %v608_v39 = vpop.f32.mrf.mxu1  ;;  %v630_v40 = vadd.f32 %v7926_v24, %v629_v28  ;;  %675 = vst.msk [vmem:[#allocation2 + $0x8] sm:$0xf] %vm297_vm0, %v671_v38  ;;  %v691_v7 = vunpack.c.l.b16 %v671_v38 }
 0x373   :  { %v7928_v41 = vpop.eup %7927  ;;  %v609_v6 = vadd.f32 1e-06, %v608_v39  ;;  %v7742_v39 = vld [vmem:[#allocation2 + $0x1c] sm:$0xf] }
 0x374   :  { %v642_v43 = vmul.f32 %v7928_v41, %v607_v18  ;;  %v634_v44 = vsel %vm633_vm12, %v7926_v24, %v630_v40  ;;  %vm647_vm14 = vweird.f32 %v7928_v41  ;;  %v6982_v40 = vor.u32 %v7742_v39, %v6979_v30 }
 0x375   :  { %7929 = vrcp.f32 %v609_v6  ;;  %v639_v48 = vsel %vm636_vm13, %v638_v42, %v634_v44  ;;  %vm648_vm3 = vmor %vm646_vm15, %vm647_vm14  ;;  %v667_v13 = vand.u32 2147483648, %v609_v6  ;;  %v665_v37 = vand.u32 2147483647, %v609_v6 }
 0x376   :  { %v643_v46 = vsub.f32 1.0, %v642_v43  ;;  %v8417_v51 = vmul.f32 %v639_v48, %v583_v45  ;;  %vm661_vm6 = vweird.f32 %v609_v6 }
 0x377   :  { %v668_v57 = vor.u32 1.1754944e-38, %v667_v13  ;;  %vm666_vm8 = vcmp.eq.f32.partialorder %v665_v37, 8.507059e+37 }
 0x378   :  { %v644_v35 = vmul.f32 %v7928_v41, %v643_v46  ;;  %v672_v53 = vpack.c.bf16 %v8417_v51, %v8417_v51 }
 0x379   :  { %v6918_v25 = vld [vmem:[#allocation2 + $0x8] sm:$0xf] }
 0x37a   :  { %v645_v59 = vadd.f32 %v7928_v41, %v644_v35  ;;  %676 = vst.msk [vmem:[#allocation2 + $0x14] sm:$0xf] %vm297_vm0, %v672_v53  ;;  %v692_v62 = vunpack.c.l.b16 %v672_v53 }
 0x37b   :  { %v7930_v60 = vpop.eup %7929 }
 0x37c   :  { %v649_v2 = vsel %vm648_vm3, %v7928_v41, %v645_v59  ;;  %v657_v3 = vmul.f32 %v7930_v60, %v609_v6  ;;  %v8424_v4 = vpack.c.b16 %v692_v62, %v691_v7  ;;  %vm662_vm5 = vweird.f32 %v7930_v60  ;;  %v6967_v41 = vld [vmem:[#allocation2 + $0xc] sm:$0xf0]  ;;  %v7739_v6 = vld [vmem:[#allocation2 + $0x4] sm:$0xf] }
 0x37d   :  { %v654_v9 = vsel %vm651_vm4, %v653_v61, %v649_v2  ;;  %vm663_vm7 = vmor %vm661_vm6, %vm662_vm5  ;;  %v6970_v42 = vor.u32 %v7739_v6, %v6967_v41 }
 0x37e   :  { %v658_v10 = vsub.f32 1.0, %v657_v3  ;;  %v8426_v11 = vmul.f32 %v654_v9, %v584_v1  ;;  %699 = vxpose.xlu0.c.b16.start [1/2] (short) (narrow) %v8424_v4, 16 }
 0x380   :  { %v659_v33 = vmul.f32 %v7930_v60, %v658_v10  ;;  %v673_v20 = vpack.c.bf16 %v8426_v11, %v8426_v11 }
 0x381   :  { %v7729_v21 = vld [vmem:[#allocation2 + $0x10] sm:$0xf0] }
 0x382   :  { %v660_v55 = vadd.f32 %v7930_v60, %v659_v33  ;;  %677 = vst.msk [vmem:[#allocation2 + $0x20] sm:$0xf] %vm297_vm0, %v673_v20  ;;  %v693_v24 = vunpack.c.l.b16 %v673_v20  ;;  %v6919_v26 = vor.u32 %v7729_v21, %v6918_v25 }
 0x384   :  { %v664_v16 = vsel %vm663_vm7, %v7930_v60, %v660_v55 }
 0x385   :  { %v669_v56 = vsel %vm666_vm8, %v668_v57, %v664_v16 }
 0x386   :  { %v8435_v58 = vmul.f32 %v669_v56, %v585_v15 }
 0x388   :  { %v674_v17 = vpack.c.bf16 %v8435_v58, %v8435_v58 }
 0x389   :  { %v6930_v19 = vld [vmem:[#allocation2 + $0x20] sm:$0xf] }
 0x38a   :  { %678 = vst.msk [vmem:[#allocation2 + $0x2c] sm:$0xf] %vm297_vm0, %v674_v17  ;;  %v694_v18 = vunpack.c.l.b16 %v674_v17 }
 0x38c   :  { %v8440_v31 = vpack.c.b16 %v694_v18, %v693_v24 }
 0x38e   :  { %700 = vxpose.xlu0.c.b16.end [2/2] (short) (narrow) %v8440_v31, 16 }
 0x391   :  { %v7732_v22 = vld [vmem:[#allocation2 + $0x28] sm:$0xf0] }
 0x392   :  { %v6931_v23 = vor.u32 %v7732_v22, %v6930_v19 }
 0x394   :  { %784 = vmatpush.bf16.msrb.mxu1 %v6931_v23 }
 0x398   :  { %785 = vmatpush.bf16.msrb.mxu1 %v6919_v26 }
 0x42a   :  { %v707_v28 = vpop.trf.xlu0 }
 0x42b   :  { %6932 = vmatmul.msk.bf16.vlgmr.msrb.gmra.mxu2 %vm99_vm1, %v707_v28  ;;  %6934 = vmatmul.msk.bf16.vlgmr.msrb.gmra.mxu1 %vm99_vm1, %v707_v28 }
 0x42c   :  { %807 = vmatpush.bf16.msrb.mxu2 %v8397_v14 }
 0x43b   :  { %6933 = vmatmul.msk.bf16.vlgmr.msra.gmra.mxu2 %vm99_vm1, %v707_v28 }
 0x4a8   :  { %v787_v29 = vpop.f32.mrf.mxu1 }
 0x4ae   :  { %v759_v43 = vpop.f32.mrf.mxu2 }
 0x4af   :  { %v793_v20 = vmul.f32 %v759_v43, %v8376_v32 }
 0x4b0   :  { %v789_v34 = vpop.f32.mrf.mxu1 }
 0x4b1   :  { %v792_v38 = vpack.c.bf16 %v789_v34, %v787_v29 }
 0x4b3   :  { %6935 = vmatmul.msk.bf16.vlgmr.msrb.gmra.mxu2 %vm391_vm2, %v792_v38  ;;  %6936 = vmatmul.msk.bf16.vlgmr.msrb.gmra.mxu3 %vm391_vm2, %v792_v38 }
 0x4b4   :  { %1175 = vmatpush.bf16.msrb.mxu3 %v6982_v40 }
 0x4b6   :  { %v8449_v44 = vpop.f32.mrf.mxu2 }
 0x4b8   :  { %1176 = vmatpush.bf16.msrb.mxu3 %v6970_v42 }
 0x4be   :  { %v773_v14 = vpop.f32.mrf.mxu2 }
 0x4bf   :  { %v794_v15 = vmul.f32 %v773_v14, %v8378_v50  ;;  %v795_v14 = vmul.f32 %v8449_v44, %v8391_v5 }
 0x4c6   :  { %v8451_v45 = vpop.f32.mrf.mxu2 }
 0x536   :  { %v809_v46 = vpop.f32.mrf.mxu2  ;;  %v823_v48 = vpop.f32.mrf.mxu3 }
 0x537   :  { %v810_v49 = vadd.f32 1e-06, %v809_v46  ;;  %v824_v35 = vadd.f32 1e-06, %v823_v48 }
 0x539   :  { %7931 = vrcp.f32 %v810_v49  ;;  %v839_v3 = vand.u32 2147483648, %v810_v49  ;;  %v837_v12 = vand.u32 2147483647, %v810_v49  ;;  %v854_v13 = vand.u32 2147483648, %v824_v35 }
 0x53a   :  { %7933 = vrcp.f32 %v824_v35  ;;  %v852_v37 = vand.u32 2147483647, %v824_v35  ;;  %vm833_vm11 = vweird.f32 %v810_v49  ;;  %vm848_vm13 = vweird.f32 %v824_v35 }
 0x53b   :  { %v840_v16 = vor.u32 1.1754944e-38, %v839_v3  ;;  %vm838_vm14 = vcmp.eq.f32.partialorder %v837_v12, 8.507059e+37  ;;  %v855_v18 = vor.u32 1.1754944e-38, %v854_v13  ;;  %v7755_v3 = vld [vmem:[#allocation2 + $0x20] sm:$0xf0] }
 0x53c   :  { %vm853_vm3 = vcmp.eq.f32.partialorder %v852_v37, 8.507059e+37 }
 0x53e   :  { %v811_v52 = vpop.f32.mrf.mxu2  ;;  %v825_v53 = vpop.f32.mrf.mxu3 }
 0x53f   :  { %v7932_v59 = vpop.eup %7931  ;;  %v812_v60 = vadd.f32 1e-06, %v811_v52  ;;  %v8453_v61 = vadd.f32 1e-06, %v825_v53 }
 0x540   :  { %v7934_v7 = vpop.eup %7933  ;;  %v829_v62 = vmul.f32 %v7932_v59, %v810_v49  ;;  %vm834_vm9 = vweird.f32 %v7932_v59  ;;  %v796_v49 = vmul.f32 %v8451_v45, %v8393_v8  ;;  %v7734_v8 = vld [vmem:[#allocation3 + $0x4] sm:$0xf0]  ;;  %v6941_v45 = vld [vmem:[#allocation3 + $0x8] sm:$0xf0] }
 0x541   :  { %v844_v1 = vmul.f32 %v7934_v7, %v824_v35  ;;  %7935 = vrcp.f32 %v812_v60  ;;  %vm849_vm10 = vweird.f32 %v7934_v7  ;;  %vm835_vm12 = vmor %vm833_vm11, %vm834_vm9  ;;  %v869_v50 = vand.u32 2147483648, %v812_v60 }
 0x542   :  { %v830_v2 = vsub.f32 1.0, %v829_v62  ;;  %7937 = vrcp.f32 %v8453_v61  ;;  %vm850_vm15 = vmor %vm848_vm13, %vm849_vm10  ;;  %v867_v34 = vand.u32 2147483647, %v812_v60  ;;  %v884_v38 = vand.u32 2147483648, %v8453_v61 }
 0x543   :  { %v845_v9 = vsub.f32 1.0, %v844_v1  ;;  %v882_v40 = vand.u32 2147483647, %v8453_v61  ;;  %vm863_vm6 = vweird.f32 %v812_v60  ;;  %v870_v42 = vor.u32 1.1754944e-38, %v869_v50 }
 0x544   :  { %v831_v10 = vmul.f32 %v7932_v59, %v830_v2  ;;  %vm878_vm8 = vweird.f32 %v8453_v61  ;;  %vm868_vm9 = vcmp.eq.f32.partialorder %v867_v34, 8.507059e+37  ;;  %v885_v48 = vor.u32 1.1754944e-38, %v884_v38 }
 0x545   :  { %v846_v33 = vmul.f32 %v7934_v7, %v845_v9  ;;  %vm883_vm11 = vcmp.eq.f32.partialorder %v882_v40, 8.507059e+37  ;;  %v6939_v9 = vld [vmem:[#allocation3] sm:$0xf] }
 0x546   :  { %v832_v55 = vadd.f32 %v7932_v59, %v831_v10  ;;  %v7733_v10 = vld [vmem:[#allocation3 + $0x4] sm:$0xf]  ;;  %v6940_v12 = vor.u32 %v7734_v8, %v6939_v9 }
 0x547   :  { %v7936_v57 = vpop.eup %7935  ;;  %v847_v56 = vadd.f32 %v7934_v7, %v846_v33  ;;  %v6944_v13 = vor.u32 %v7733_v10, %v6941_v45  ;;  %v7032_v33 = vld [vmem:[#allocation2 + $0x18] sm:$0xf] }
 0x548   :  { %v7938_v17 = vpop.eup %7937  ;;  %v836_v24 = vsel %vm835_vm12, %v7932_v59, %v832_v55  ;;  %v859_v19 = vmul.f32 %v7936_v57, %v812_v60  ;;  %vm864_vm4 = vweird.f32 %v7936_v57  ;;  %v7033_v37 = vor.u32 %v7755_v3, %v7032_v33  ;;  %v7020_v55 = vld [vmem:[#allocation2] sm:$0xf] }
 0x549   :  { %v841_v22 = vsel %vm838_vm14, %v840_v16, %v836_v24  ;;  %v851_v23 = vsel %vm850_vm15, %v7934_v7, %v847_v56  ;;  %v874_v32 = vmul.f32 %v7938_v17, %v8453_v61  ;;  %vm879_vm5 = vweird.f32 %v7938_v17  ;;  %vm865_vm7 = vmor %vm863_vm6, %vm864_vm4  ;;  %v6949_v16 = vld [vmem:[#allocation3 + $0x18] sm:$0xf0]  ;;  %v6947_v56 = vld [vmem:[#allocation3 + $0x10] sm:$0xf] }
 0x54a   :  { %v856_v21 = vsel %vm853_vm3, %v855_v18, %v851_v23  ;;  %v860_v25 = vsub.f32 1.0, %v859_v19  ;;  %v8459_v26 = vmul.f32 %v841_v22, %v793_v20  ;;  %vm880_vm10 = vmor %vm878_vm8, %vm879_vm5  ;;  %v7752_v20 = vld [vmem:[#allocation2 + $0x8] sm:$0xf0] }
 0x54b   :  { %v875_v28 = vsub.f32 1.0, %v874_v32  ;;  %v8461_v29 = vmul.f32 %v856_v21, %v794_v15  ;;  %v7736_v15 = vld [vmem:[#allocation3 + $0x14] sm:$0xf0] }
 0x54c   :  { %v861_v30 = vmul.f32 %v7936_v57, %v860_v25  ;;  %v6948_v24 = vor.u32 %v7736_v15, %v6947_v56 }
 0x54d   :  { %v876_v39 = vmul.f32 %v7938_v17, %v875_v28  ;;  %v888_v41 = vpack.c.bf16 %v8461_v29, %v8459_v26 }
 0x54e   :  { %v862_v6 = vadd.f32 %v7936_v57, %v861_v30 }
 0x54f   :  { %v877_v43 = vadd.f32 %v7938_v17, %v876_v39  ;;  %890 = vst [vmem:[#allocation3 + $0x20] sm:$0xff] %v888_v41  ;;  %v930_v5 = vunpack.c.l.b16 %v888_v41  ;;  %v931_v7 = vunpack.c.h.b16 %v888_v41 }
 0x550   :  { %v866_v46 = vsel %vm865_vm7, %v7936_v57, %v862_v6  ;;  %v7021_v57 = vor.u32 %v7752_v20, %v7020_v55 }
 0x551   :  { %v881_v35 = vsel %vm880_vm10, %v7938_v17, %v877_v43  ;;  %v871_v52 = vsel %vm868_vm9, %v870_v42, %v866_v46  ;;  %v7735_v17 = vld [vmem:[#allocation3 + $0x14] sm:$0xf] }
 0x552   :  { %v8472_v53 = vmul.f32 %v871_v52, %v795_v14  ;;  %v886_v59 = vsel %vm883_vm11, %v885_v48, %v881_v35  ;;  %v6952_v18 = vor.u32 %v7735_v17, %v6949_v16 }
 0x553   :  { %v8474_v60 = vmul.f32 %v886_v59, %v796_v49 }
 0x555   :  { %v889_v61 = vpack.c.bf16 %v8474_v60, %v8472_v53 }
 0x556   :  { %v6955_v23 = vld [vmem:[#allocation3 + $0x20] sm:$0xf]  ;;  %v7737_v32 = vld [vmem:[#allocation3 + $0x24] sm:$0xf] }
 0x557   :  { %891 = vst [vmem:[#allocation3 + $0x28] sm:$0xff] %v889_v61  ;;  %v932_v44 = vunpack.c.l.b16 %v889_v61  ;;  %v933_v62 = vunpack.c.h.b16 %v889_v61 }
 0x559   :  { %v8478_v1 = vpack.c.b16 %v932_v44, %v930_v5  ;;  %v935_v2 = vpack.c.b16 %v933_v62, %v931_v7 }
 0x55b   :  { %945 = vmatpush.bf16.xpose.msrb.mxu0 %v8478_v1  ;;  %969 = vmatpush.bf16.xpose.msra.mxu1 %v935_v2 }
 0x55e   :  { %v7738_v19 = vld [vmem:[#allocation3 + $0x24] sm:$0xf0]  ;;  %v6957_v22 = vld [vmem:[#allocation3 + $0x28] sm:$0xf0] }
 0x55f   :  { %v6956_v21 = vor.u32 %v7738_v19, %v6955_v23  ;;  %v6960_v25 = vor.u32 %v7737_v32, %v6957_v22 }
 0x562   :  { %946 = vmatmul.bf16.vlgmr.msrb.gmra.mxu0 %v6940_v12  ;;  %970 = vmatmul.bf16.vlgmr.msra.gmra.mxu1 %v6944_v13 }
 0x563   :  { %1226 = vmatpush.bf16.msra.mxu0 %v935_v2 }
 0x567   :  { %1566 = vmatpush.bf16.msrb.mxu0 %v7033_v37 }
 0x56b   :  { %1567 = vmatpush.bf16.msrb.mxu0 %v7021_v57 }
 0x572   :  { %951 = vmatmul.bf16.gmra.mxu0 %v6948_v24  ;;  %975 = vmatmul.bf16.gmra.mxu1 %v6952_v18 }
 0x582   :  { %956 = vmatmul.bf16.gmra.mxu0 %v6956_v21  ;;  %980 = vmatmul.bf16.gmra.mxu1 %v6960_v25 }
 0x5df   :  { %v947_v50 = vpop.f32.mrf.mxu0  ;;  %v971_v28 = vpop.f32.mrf.mxu1 }
 0x5e0   :  { %v972_v30 = vadd.f32 %v971_v28, %v947_v50 }
 0x5e2   :  { %v987_v37 = vmul.f32 %v972_v30, %v8411_v27 }
 0x5e7   :  { %v949_v34 = vpop.f32.mrf.mxu0  ;;  %v973_v38 = vpop.f32.mrf.mxu1 }
 0x5e8   :  { %v974_v56 = vadd.f32 %v973_v38, %v949_v34 }
 0x5ea   :  { %v988_v25 = vmul.f32 %v974_v56, %v8417_v51  ;;  %v7034_v56 = vld [vmem:[#allocation2 + $0x24] sm:$0xf0] }
 0x5ef   :  { %v952_v39 = vpop.f32.mrf.mxu0  ;;  %v976_v40 = vpop.f32.mrf.mxu1 }
 0x5f0   :  { %v8481_v41 = vadd.f32 %v976_v40, %v952_v39 }
 0x5f7   :  { %v8483_v6 = vpop.f32.mrf.mxu0  ;;  %v8485_v42 = vpop.f32.mrf.mxu1 }
 0x5ff   :  { %v957_v43 = vpop.f32.mrf.mxu0  ;;  %v981_v14 = vpop.f32.mrf.mxu1 }
 0x600   :  { %v982_v49 = vadd.f32 %v981_v14, %v957_v43 }
 0x607   :  { %v959_v46 = vpop.f32.mrf.mxu0  ;;  %v983_v48 = vpop.f32.mrf.mxu1 }
 0x608   :  { %v984_v35 = vadd.f32 %v983_v48, %v959_v46 }
 0x60a   :  { %v986_v52 = vpack.c.bf16 %v984_v35, %v982_v49  ;;  %v989_v49 = vmul.f32 %v8481_v41, %v8426_v11 }
 0x60c   :  { %1004 = vmatpush.bf16.msra.mxu2 %v986_v52 }
 0x60f   :  { %6961 = vmatmul.msk.bf16.vlgmr.msra.gmra.mxu2 %vm391_vm2, %v8424_v4 }
 0x61f   :  { %6962 = vmatmul.msk.bf16.gmra.mxu2 %vm391_vm2, %v8440_v31 }
 0x692   :  { %v1006_v59 = vpop.f32.mrf.mxu2 }
 0x693   :  { %v1007_v61 = vadd.f32 1e-06, %v1006_v59 }
 0x695   :  { %7939 = vrcp.f32 %v1007_v61  ;;  %v1027_v45 = vand.u32 2147483648, %v1007_v61  ;;  %v1025_v3 = vand.u32 2147483647, %v1007_v61  ;;  %vm1021_vm13 = vweird.f32 %v1007_v61 }
 0x697   :  { %v1028_v31 = vor.u32 1.1754944e-38, %v1027_v45  ;;  %vm1026_vm15 = vcmp.eq.f32.partialorder %v1025_v3, 8.507059e+37 }
 0x69a   :  { %v1008_v5 = vpop.f32.mrf.mxu2 }
 0x69b   :  { %v7940_v44 = vpop.eup %7939  ;;  %v1009_v7 = vadd.f32 1e-06, %v1008_v5 }
 0x69c   :  { %v1017_v62 = vmul.f32 %v7940_v44, %v1007_v61  ;;  %vm1022_vm12 = vweird.f32 %v7940_v44 }
 0x69d   :  { %7941 = vrcp.f32 %v1009_v7  ;;  %vm1023_vm14 = vmor %vm1021_vm13, %vm1022_vm12  ;;  %v1042_v16 = vand.u32 2147483648, %v1009_v7  ;;  %v1040_v17 = vand.u32 2147483647, %v1009_v7  ;;  %vm1036_vm4 = vweird.f32 %v1009_v7 }
 0x69e   :  { %v1018_v2 = vsub.f32 1.0, %v1017_v62 }
 0x69f   :  { %v1043_v23 = vor.u32 1.1754944e-38, %v1042_v16  ;;  %vm1041_vm6 = vcmp.eq.f32.partialorder %v1040_v17, 8.507059e+37 }
 0x6a0   :  { %v1019_v8 = vmul.f32 %v7940_v44, %v1018_v2 }
 0x6a2   :  { %v1020_v9 = vadd.f32 %v7940_v44, %v1019_v8  ;;  %v1011_v10 = vpop.f32.mrf.mxu2 }
 0x6a3   :  { %v7942_v4 = vpop.eup %7941  ;;  %v1012_v12 = vadd.f32 1e-06, %v1011_v10 }
 0x6a4   :  { %v1032_v13 = vmul.f32 %v7942_v4, %v1009_v7  ;;  %v1024_v33 = vsel %vm1023_vm14, %v7940_v44, %v1020_v9  ;;  %vm1037_vm3 = vweird.f32 %v7942_v4  ;;  %v979_v7 = vadd.f32 %v8485_v42, %v8483_v6 }
 0x6a5   :  { %7943 = vrcp.f32 %v1012_v12  ;;  %v1029_v55 = vsel %vm1026_vm15, %v1028_v31, %v1024_v33  ;;  %vm1038_vm5 = vmor %vm1036_vm4, %vm1037_vm3  ;;  %v1057_v30 = vand.u32 2147483648, %v1012_v12  ;;  %v1055_v39 = vand.u32 2147483647, %v1012_v12 }
 0x6a6   :  { %v1033_v20 = vsub.f32 1.0, %v1032_v13  ;;  %v8492_v57 = vmul.f32 %v1029_v55, %v987_v37  ;;  %vm1051_vm8 = vweird.f32 %v1012_v12  ;;  %v990_v3 = vmul.f32 %v979_v7, %v8435_v58 }
 0x6a7   :  { %v1058_v46 = vor.u32 1.1754944e-38, %v1057_v30  ;;  %vm1056_vm10 = vcmp.eq.f32.partialorder %v1055_v39, 8.507059e+37 }
 0x6a8   :  { %v1034_v15 = vmul.f32 %v7942_v4, %v1033_v20  ;;  %v1076_v24 = vpack.c.bf16 %v8492_v57, %v8492_v57 }
 0x6aa   :  { %v1013_v18 = vpop.f32.mrf.mxu2  ;;  %v1035_v19 = vadd.f32 %v7942_v4, %v1034_v15  ;;  %1080 = vst.msk [vmem:[#allocation2 + $0x8] sm:$0xf] %vm297_vm0, %v1076_v24  ;;  %v1096_v51 = vunpack.c.l.b16 %v1076_v24 }
 0x6ab   :  { %v7944_v22 = vpop.eup %7943  ;;  %v1014_v27 = vadd.f32 1e-06, %v1013_v18  ;;  %v7754_v18 = vld [vmem:[#allocation2 + $0x1c] sm:$0xf] }
 0x6ac   :  { %v1047_v32 = vmul.f32 %v7944_v22, %v1012_v12  ;;  %v1039_v21 = vsel %vm1038_vm5, %v7942_v4, %v1035_v19  ;;  %vm1052_vm7 = vweird.f32 %v7944_v22  ;;  %v7037_v19 = vor.u32 %v7754_v18, %v7034_v56 }
 0x6ad   :  { %7945 = vrcp.f32 %v1014_v27  ;;  %v1044_v28 = vsel %vm1041_vm6, %v1043_v23, %v1039_v21  ;;  %vm1053_vm9 = vmor %vm1051_vm8, %vm1052_vm7  ;;  %v1072_v62 = vand.u32 2147483648, %v1014_v27  ;;  %v1070_v8 = vand.u32 2147483647, %v1014_v27 }
 0x6ae   :  { %v1048_v50 = vsub.f32 1.0, %v1047_v32  ;;  %v8498_v34 = vmul.f32 %v1044_v28, %v988_v25  ;;  %vm1066_vm12 = vweird.f32 %v1014_v27 }
 0x6af   :  { %v1073_v45 = vor.u32 1.1754944e-38, %v1072_v62  ;;  %vm1071_vm14 = vcmp.eq.f32.partialorder %v1070_v8, 8.507059e+37  ;;  %v7087_v8 = vld [vmem:[#allocation2 + $0x18] sm:$0xf] }
 0x6b0   :  { %v1049_v38 = vmul.f32 %v7944_v22, %v1048_v50  ;;  %v1077_v40 = vpack.c.bf16 %v8498_v34, %v8498_v34 }
 0x6b1   :  { %v6973_v20 = vld [vmem:[#allocation2 + $0x8] sm:$0xf] }
 0x6b2   :  { %v1050_v43 = vadd.f32 %v7944_v22, %v1049_v38  ;;  %1081 = vst.msk [vmem:[#allocation2 + $0x14] sm:$0xf] %vm297_vm0, %v1077_v40  ;;  %v1097_v48 = vunpack.c.l.b16 %v1077_v40 }
 0x6b3   :  { %v7946_v14 = vpop.eup %7945 }
 0x6b4   :  { %v1054_v35 = vsel %vm1053_vm9, %v7944_v22, %v1050_v43  ;;  %v1062_v52 = vmul.f32 %v7946_v14, %v1014_v27  ;;  %v8505_v59 = vpack.c.b16 %v1097_v48, %v1096_v51  ;;  %vm1067_vm11 = vweird.f32 %v7946_v14  ;;  %v7022_v22 = vld [vmem:[#allocation2 + $0xc] sm:$0xf0]  ;;  %v7751_v27 = vld [vmem:[#allocation2 + $0x4] sm:$0xf] }
 0x6b5   :  { %v1059_v61 = vsel %vm1056_vm10, %v1058_v46, %v1054_v35  ;;  %vm1068_vm13 = vmor %vm1066_vm12, %vm1067_vm11  ;;  %v7025_v23 = vor.u32 %v7751_v27, %v7022_v22 }
 0x6b6   :  { %v1063_v5 = vsub.f32 1.0, %v1062_v52  ;;  %v8507_v44 = vmul.f32 %v1059_v61, %v989_v49  ;;  %1104 = vxpose.xlu1.c.b16.start [1/2] (short) (narrow) %v8505_v59, 16 }
 0x6b8   :  { %v1064_v2 = vmul.f32 %v7946_v14, %v1063_v5  ;;  %v1078_v11 = vpack.c.bf16 %v8507_v44, %v8507_v44 }
 0x6b9   :  { %v7741_v58 = vld [vmem:[#allocation2 + $0x10] sm:$0xf0] }
 0x6ba   :  { %v1065_v41 = vadd.f32 %v7946_v14, %v1064_v2  ;;  %1082 = vst.msk [vmem:[#allocation2 + $0x20] sm:$0xf] %vm297_vm0, %v1078_v11  ;;  %v1098_v4 = vunpack.c.l.b16 %v1078_v11  ;;  %v6974_v55 = vor.u32 %v7741_v58, %v6973_v20 }
 0x6bc   :  { %v1069_v9 = vsel %vm1068_vm13, %v7946_v14, %v1065_v41 }
 0x6bd   :  { %v1074_v6 = vsel %vm1071_vm14, %v1073_v45, %v1069_v9 }
 0x6be   :  { %v8516_v42 = vmul.f32 %v1074_v6, %v990_v3 }
 0x6c0   :  { %v1079_v10 = vpack.c.bf16 %v8516_v42, %v8516_v42 }
 0x6c1   :  { %v6985_v13 = vld [vmem:[#allocation2 + $0x20] sm:$0xf] }
 0x6c2   :  { %1083 = vst.msk [vmem:[#allocation2 + $0x2c] sm:$0xf] %vm297_vm0, %v1079_v10  ;;  %v1099_v12 = vunpack.c.l.b16 %v1079_v10 }
 0x6c4   :  { %v8521_v31 = vpack.c.b16 %v1099_v12, %v1098_v4 }
 0x6c6   :  { %1105 = vxpose.xlu1.c.b16.end [2/2] (short) (narrow) %v8521_v31, 16 }
 0x6c9   :  { %v7744_v33 = vld [vmem:[#allocation2 + $0x28] sm:$0xf0] }
 0x6ca   :  { %v6986_v37 = vor.u32 %v7744_v33, %v6985_v13 }
 0x6cc   :  { %1189 = vmatpush.bf16.msrb.mxu2 %v6986_v37 }
 0x6d0   :  { %1190 = vmatpush.bf16.msrb.mxu2 %v6974_v55 }
 0x762   :  { %v1112_v15 = vpop.trf.xlu1 }
 0x763   :  { %6987 = vmatmul.msk.bf16.vlgmr.msra.gmra.mxu3 %vm99_vm1, %v1112_v15  ;;  %6989 = vmatmul.msk.bf16.vlgmr.msrb.gmra.mxu2 %vm99_vm1, %v1112_v15 }
 0x764   :  { %1212 = vmatpush.bf16.msra.mxu3 %v8478_v1 }
 0x773   :  { %6988 = vmatmul.msk.bf16.vlgmr.msrb.gmra.mxu3 %vm99_vm1, %v1112_v15 }
 0x7e6   :  { %v1192_v16 = vpop.f32.mrf.mxu2  ;;  %v1164_v32 = vpop.f32.mrf.mxu3 }
 0x7e7   :  { %v1198_v4 = vmul.f32 %v1164_v32, %v8459_v26 }
 0x7ee   :  { %v1194_v17 = vpop.f32.mrf.mxu2  ;;  %v8530_v21 = vpop.f32.mrf.mxu3 }
 0x7ef   :  { %v1197_v24 = vpack.c.bf16 %v1194_v17, %v1192_v16 }
 0x7f1   :  { %6990 = vmatmul.msk.bf16.vlgmr.msra.gmra.mxu3 %vm391_vm2, %v1197_v24  ;;  %6991 = vmatmul.msk.bf16.vlgmr.msra.gmra.mxu0 %vm391_vm2, %v1197_v24 }
 0x7f2   :  { %1580 = vmatpush.bf16.msra.mxu0 %v7037_v19 }
 0x7f6   :  { %1581 = vmatpush.bf16.msra.mxu0 %v7025_v23  ;;  %v1178_v1 = vpop.f32.mrf.mxu3 }
 0x7f7   :  { %v1199_v33 = vmul.f32 %v1178_v1, %v8461_v29 }
 0x7fe   :  { %v8532_v25 = vpop.f32.mrf.mxu3 }
 0x86e   :  { %v1228_v50 = vpop.f32.mrf.mxu0 }
 0x86f   :  { %v1229_v28 = vadd.f32 1e-06, %v1228_v50 }
 0x871   :  { %7947 = vrcp.f32 %v1229_v28  ;;  %v1259_v5 = vand.u32 2147483648, %v1229_v28  ;;  %vm1253_vm3 = vweird.f32 %v1229_v28  ;;  %v1257_v62 = vand.u32 2147483647, %v1229_v28 }
 0x873   :  { %v1260_v6 = vor.u32 1.1754944e-38, %v1259_v5  ;;  %vm1258_vm6 = vcmp.eq.f32.partialorder %v1257_v62, 8.507059e+37  ;;  %v6994_v5 = vld [vmem:[#allocation3] sm:$0xf] }
 0x874   :  { %v1214_v30 = vpop.f32.mrf.mxu3 }
 0x875   :  { %v1215_v38 = vadd.f32 1e-06, %v1214_v30 }
 0x876   :  { %v1230_v39 = vpop.f32.mrf.mxu0 }
 0x877   :  { %v7948_v40 = vpop.eup %7947  ;;  %7949 = vrcp.f32 %v1215_v38  ;;  %v1231_v14 = vadd.f32 1e-06, %v1230_v39  ;;  %v1244_v11 = vand.u32 2147483648, %v1215_v38  ;;  %v1242_v9 = vand.u32 2147483647, %v1215_v38 }
 0x878   :  { %v1249_v43 = vmul.f32 %v7948_v40, %v1229_v28  ;;  %vm1254_vm15 = vweird.f32 %v7948_v40  ;;  %vm1238_vm7 = vweird.f32 %v1215_v38  ;;  %v1201_v39 = vmul.f32 %v8532_v25, %v8474_v60  ;;  %v7746_v60 = vld [vmem:[#allocation3 + $0x4] sm:$0xf0]  ;;  %v7767_v25 = vld [vmem:[#allocation2 + $0x20] sm:$0xf0] }
 0x879   :  { %7951 = vrcp.f32 %v1231_v14  ;;  %vm8534_vm4 = vmor %vm1253_vm3, %vm1254_vm15  ;;  %v1245_v58 = vor.u32 1.1754944e-38, %v1244_v11  ;;  %vm1243_vm9 = vcmp.eq.f32.partialorder %v1242_v9, 8.507059e+37  ;;  %vm1283_vm11 = vweird.f32 %v1231_v14  ;;  %v7748_v9 = vld [vmem:[#allocation3 + $0x14] sm:$0xf0] }
 0x87a   :  { %v1250_v46 = vsub.f32 1.0, %v1249_v43  ;;  %v1289_v17 = vand.u32 2147483648, %v1231_v14  ;;  %v1287_v24 = vand.u32 2147483647, %v1231_v14  ;;  %v6995_v62 = vor.u32 %v7746_v60, %v6994_v5 }
 0x87b   :  { %v7088_v11 = vor.u32 %v7767_v25, %v7087_v8 }
 0x87c   :  { %v1251_v51 = vmul.f32 %v7948_v40, %v1250_v46  ;;  %v1216_v48 = vpop.f32.mrf.mxu3  ;;  %v1290_v1 = vor.u32 1.1754944e-38, %v1289_v17  ;;  %vm1288_vm14 = vcmp.eq.f32.partialorder %v1287_v24, 8.507059e+37 }
 0x87d   :  { %v7950_v49 = vpop.eup %7949  ;;  %v1217_v35 = vadd.f32 1e-06, %v1216_v48 }
 0x87e   :  { %v1252_v52 = vadd.f32 %v7948_v40, %v1251_v51  ;;  %v1234_v61 = vmul.f32 %v7950_v49, %v1215_v38  ;;  %vm1239_vm5 = vweird.f32 %v7950_v49  ;;  %v1200_v38 = vmul.f32 %v8530_v21, %v8472_v53  ;;  %v6996_v21 = vld [vmem:[#allocation3 + $0x8] sm:$0xf0] }
 0x87f   :  { %7953 = vrcp.f32 %v1217_v35  ;;  %v7952_v7 = vpop.eup %7951  ;;  %vm1240_vm8 = vmor %vm1238_vm7, %vm1239_vm5  ;;  %v1272_v29 = vand.u32 2147483647, %v1217_v35  ;;  %v1274_v22 = vand.u32 2147483648, %v1217_v35  ;;  %vm1268_vm15 = vweird.f32 %v1217_v35 }
 0x880   :  { %v1235_v2 = vsub.f32 1.0, %v1234_v61  ;;  %v1279_v41 = vmul.f32 %v7952_v7, %v1231_v14  ;;  %v1256_v45 = vsel %vm8534_vm4, %v7948_v40, %v1252_v52  ;;  %vm1284_vm10 = vweird.f32 %v7952_v7 }
 0x881   :  { %v1261_v37 = vsel %vm1258_vm6, %v1260_v6, %v1256_v45  ;;  %vm1285_vm12 = vmor %vm1283_vm11, %vm1284_vm10  ;;  %v1275_v28 = vor.u32 1.1754944e-38, %v1274_v22  ;;  %vm1273_vm4 = vcmp.eq.f32.partialorder %v1272_v29, 8.507059e+37  ;;  %v7075_v45 = vld [vmem:[#allocation2] sm:$0xf]  ;;  %v7004_v6 = vld [vmem:[#allocation3 + $0x18] sm:$0xf0] }
 0x882   :  { %v1236_v3 = vmul.f32 %v7950_v49, %v1235_v2  ;;  %v1280_v10 = vsub.f32 1.0, %v1279_v41  ;;  %v8544_v19 = vmul.f32 %v1261_v37, %v1199_v33  ;;  %v7764_v41 = vld [vmem:[#allocation2 + $0x8] sm:$0xf0] }
 0x884   :  { %v1237_v12 = vadd.f32 %v7950_v49, %v1236_v3  ;;  %v1281_v20 = vmul.f32 %v7952_v7, %v1280_v10  ;;  %v7076_v3 = vor.u32 %v7764_v41, %v7075_v45  ;;  %v7002_v10 = vld [vmem:[#allocation3 + $0x10] sm:$0xf] }
 0x885   :  { %v7954_v13 = vpop.eup %7953 }
 0x886   :  { %v1241_v55 = vsel %vm1240_vm8, %v7950_v49, %v1237_v12  ;;  %v1264_v15 = vmul.f32 %v7954_v13, %v1217_v35  ;;  %v1282_v56 = vadd.f32 %v7952_v7, %v1281_v20  ;;  %vm1269_vm13 = vweird.f32 %v7954_v13 }
 0x887   :  { %v1246_v16 = vsel %vm1243_vm9, %v1245_v58, %v1241_v55  ;;  %vm1270_vm3 = vmor %vm1268_vm15, %vm1269_vm13  ;;  %v7003_v12 = vor.u32 %v7748_v9, %v7002_v10 }
 0x888   :  { %v1265_v26 = vsub.f32 1.0, %v1264_v15  ;;  %v8542_v18 = vmul.f32 %v1246_v16, %v1198_v4  ;;  %v1286_v27 = vsel %vm1285_vm12, %v7952_v7, %v1282_v56  ;;  %v7745_v7 = vld [vmem:[#allocation3 + $0x4] sm:$0xf]  ;;  %v7747_v4 = vld [vmem:[#allocation3 + $0x14] sm:$0xf] }
 0x889   :  { %v1291_v30 = vsel %vm1288_vm14, %v1290_v1, %v1286_v27  ;;  %v6999_v2 = vor.u32 %v7745_v7, %v6996_v21 }
 0x88a   :  { %v1266_v23 = vmul.f32 %v7954_v13, %v1265_v26  ;;  %v1293_v32 = vpack.c.bf16 %v8544_v19, %v8542_v18  ;;  %v8554_v46 = vmul.f32 %v1291_v30, %v1201_v39 }
 0x88c   :  { %v1267_v50 = vadd.f32 %v7954_v13, %v1266_v23  ;;  %1295 = vst [vmem:[#allocation3 + $0x20] sm:$0xff] %v1293_v32  ;;  %v1335_v48 = vunpack.c.l.b16 %v1293_v32  ;;  %v1336_v35 = vunpack.c.h.b16 %v1293_v32 }
 0x88e   :  { %v1271_v40 = vsel %vm1270_vm3, %v7954_v13, %v1267_v50  ;;  %v7007_v13 = vor.u32 %v7747_v4, %v7004_v6 }
 0x88f   :  { %v1276_v43 = vsel %vm1273_vm4, %v1275_v28, %v1271_v40 }
 0x890   :  { %v8552_v14 = vmul.f32 %v1276_v43, %v1200_v38 }
 0x892   :  { %v1294_v51 = vpack.c.bf16 %v8554_v46, %v8552_v14 }
 0x893   :  { %v7010_v58 = vld [vmem:[#allocation3 + $0x20] sm:$0xf]  ;;  %v7749_v20 = vld [vmem:[#allocation3 + $0x24] sm:$0xf] }
 0x894   :  { %1296 = vst [vmem:[#allocation3 + $0x28] sm:$0xff] %v1294_v51  ;;  %v1337_v49 = vunpack.c.l.b16 %v1294_v51  ;;  %v1338_v52 = vunpack.c.h.b16 %v1294_v51 }
 0x896   :  { %v8558_v61 = vpack.c.b16 %v1337_v49, %v1335_v48  ;;  %v1340_v53 = vpack.c.b16 %v1338_v52, %v1336_v35 }
 0x898   :  { %1350 = vmatpush.bf16.xpose.msrb.mxu1 %v8558_v61  ;;  %1374 = vmatpush.bf16.xpose.msra.mxu2 %v1340_v53 }
 0x89b   :  { %v7750_v33 = vld [vmem:[#allocation3 + $0x24] sm:$0xf0]  ;;  %v7012_v37 = vld [vmem:[#allocation3 + $0x28] sm:$0xf0] }
 0x89c   :  { %v7011_v55 = vor.u32 %v7750_v33, %v7010_v58  ;;  %v7015_v15 = vor.u32 %v7749_v20, %v7012_v37 }
 0x89f   :  { %1351 = vmatmul.bf16.vlgmr.msrb.gmra.mxu1 %v6995_v62  ;;  %1375 = vmatmul.bf16.vlgmr.msra.gmra.mxu2 %v6999_v2 }
 0x8a0   :  { %1631 = vmatpush.bf16.msra.mxu1 %v1340_v53 }
 0x8a4   :  { %1971 = vmatpush.bf16.msrb.mxu1 %v7088_v11 }
 0x8a8   :  { %1972 = vmatpush.bf16.msrb.mxu1 %v7076_v3 }
 0x8af   :  { %1356 = vmatmul.bf16.gmra.mxu1 %v7003_v12  ;;  %1380 = vmatmul.bf16.gmra.mxu2 %v7007_v13 }
 0x8bf   :  { %1361 = vmatmul.bf16.gmra.mxu1 %v7011_v55  ;;  %1385 = vmatmul.bf16.gmra.mxu2 %v7015_v15 }
 0x91c   :  { %v1352_v16 = vpop.f32.mrf.mxu1 }
 0x922   :  { %v1376_v56 = vpop.f32.mrf.mxu2 }
 0x923   :  { %v1377_v17 = vadd.f32 %v1376_v56, %v1352_v16 }
 0x924   :  { %v1354_v24 = vpop.f32.mrf.mxu1 }
 0x925   :  { %v1392_v11 = vmul.f32 %v1377_v17, %v8492_v57 }
 0x92a   :  { %v1378_v26 = vpop.f32.mrf.mxu2 }
 0x92b   :  { %v1379_v6 = vadd.f32 %v1378_v26, %v1354_v24 }
 0x92c   :  { %v1357_v29 = vpop.f32.mrf.mxu1 }
 0x92d   :  { %v1393_v20 = vmul.f32 %v1379_v6, %v8498_v34 }
 0x932   :  { %v1381_v22 = vpop.f32.mrf.mxu2 }
 0x933   :  { %v8561_v27 = vadd.f32 %v1381_v22, %v1357_v29 }
 0x934   :  { %v8563_v23 = vpop.f32.mrf.mxu1 }
 0x93a   :  { %v8565_v32 = vpop.f32.mrf.mxu2 }
 0x93c   :  { %v1362_v1 = vpop.f32.mrf.mxu1 }
 0x942   :  { %v1386_v50 = vpop.f32.mrf.mxu2 }
 0x943   :  { %v1387_v38 = vadd.f32 %v1386_v50, %v1362_v1 }
 0x944   :  { %v1364_v28 = vpop.f32.mrf.mxu1 }
 0x94a   :  { %v1388_v30 = vpop.f32.mrf.mxu2 }
 0x94b   :  { %v1389_v39 = vadd.f32 %v1388_v30, %v1364_v28  ;;  %v1394_v30 = vmul.f32 %v8561_v27, %v8507_v44 }
 0x94d   :  { %v1391_v40 = vpack.c.bf16 %v1389_v39, %v1387_v38 }
 0x94f   :  { %1409 = vmatpush.bf16.msrb.mxu3 %v1391_v40 }
 0x952   :  { %7016 = vmatmul.msk.bf16.vlgmr.msrb.gmra.mxu3 %vm391_vm2, %v8505_v59 }
 0x962   :  { %7017 = vmatmul.msk.bf16.gmra.mxu3 %vm391_vm2, %v8521_v31 }
 0x9d5   :  { %v1411_v43 = vpop.f32.mrf.mxu3 }
 0x9d6   :  { %v1412_v51 = vadd.f32 1e-06, %v1411_v43 }
 0x9d8   :  { %7955 = vrcp.f32 %v1412_v51  ;;  %v1432_v21 = vand.u32 2147483648, %v1412_v51  ;;  %v1430_v25 = vand.u32 2147483647, %v1412_v51  ;;  %vm1426_vm6 = vweird.f32 %v1412_v51 }
 0x9da   :  { %v1433_v8 = vor.u32 1.1754944e-38, %v1432_v21  ;;  %vm1431_vm8 = vcmp.eq.f32.partialorder %v1430_v25, 8.507059e+37 }
 0x9dd   :  { %v1413_v48 = vpop.f32.mrf.mxu3 }
 0x9de   :  { %v7956_v49 = vpop.eup %7955  ;;  %v1414_v35 = vadd.f32 1e-06, %v1413_v48 }
 0x9df   :  { %v1422_v52 = vmul.f32 %v7956_v49, %v1412_v51  ;;  %vm1427_vm5 = vweird.f32 %v7956_v49 }
 0x9e0   :  { %7957 = vrcp.f32 %v1414_v35  ;;  %vm1428_vm7 = vmor %vm1426_vm6, %vm1427_vm5  ;;  %v1447_v9 = vand.u32 2147483648, %v1414_v35  ;;  %v1445_v4 = vand.u32 2147483647, %v1414_v35  ;;  %vm1441_vm10 = vweird.f32 %v1414_v35 }
 0x9e1   :  { %v1423_v53 = vsub.f32 1.0, %v1422_v52 }
 0x9e2   :  { %v1448_v57 = vor.u32 1.1754944e-38, %v1447_v9  ;;  %vm1446_vm12 = vcmp.eq.f32.partialorder %v1445_v4, 8.507059e+37 }
 0x9e3   :  { %v1424_v60 = vmul.f32 %v7956_v49, %v1423_v53 }
 0x9e5   :  { %v1416_v5 = vpop.f32.mrf.mxu3  ;;  %v1425_v7 = vadd.f32 %v7956_v49, %v1424_v60 }
 0x9e6   :  { %v7958_v59 = vpop.eup %7957  ;;  %v1417_v62 = vadd.f32 1e-06, %v1416_v5 }
 0x9e7   :  { %v1437_v31 = vmul.f32 %v7958_v59, %v1414_v35  ;;  %v1429_v2 = vsel %vm1428_vm7, %v7956_v49, %v1425_v7  ;;  %vm1442_vm9 = vweird.f32 %v7958_v59  ;;  %v1384_v35 = vadd.f32 %v8565_v32, %v8563_v23 }
 0x9e8   :  { %7959 = vrcp.f32 %v1417_v62  ;;  %v1434_v45 = vsel %vm1431_vm8, %v1433_v8, %v1429_v2  ;;  %vm1443_vm11 = vmor %vm1441_vm10, %vm1442_vm9  ;;  %v1462_v24 = vand.u32 2147483648, %v1417_v62  ;;  %v1460_v29 = vand.u32 2147483647, %v1417_v62 }
 0x9e9   :  { %v1438_v41 = vsub.f32 1.0, %v1437_v31  ;;  %v8572_v3 = vmul.f32 %v1434_v45, %v1392_v11  ;;  %vm1456_vm14 = vweird.f32 %v1417_v62  ;;  %v1395_v25 = vmul.f32 %v1384_v35, %v8516_v42 }
 0x9ea   :  { %v1463_v38 = vor.u32 1.1754944e-38, %v1462_v24  ;;  %vm1461_vm3 = vcmp.eq.f32.partialorder %v1460_v29, 8.507059e+37 }
 0x9eb   :  { %v1439_v10 = vmul.f32 %v7958_v59, %v1438_v41  ;;  %v1481_v12 = vpack.c.bf16 %v8572_v3, %v8572_v3 }
 0x9ed   :  { %v1418_v13 = vpop.f32.mrf.mxu3  ;;  %v1440_v33 = vadd.f32 %v7958_v59, %v1439_v10  ;;  %1485 = vst.msk [vmem:[#allocation2 + $0x8] sm:$0xf] %vm297_vm0, %v1481_v12  ;;  %v1501_v34 = vunpack.c.l.b16 %v1481_v12  ;;  %v7089_v10 = vld [vmem:[#allocation2 + $0x24] sm:$0xf0] }
 0x9ee   :  { %v7960_v37 = vpop.eup %7959  ;;  %v1419_v58 = vadd.f32 1e-06, %v1418_v13  ;;  %v7766_v13 = vld [vmem:[#allocation2 + $0x1c] sm:$0xf] }
 0x9ef   :  { %v1452_v55 = vmul.f32 %v7960_v37, %v1417_v62  ;;  %v1444_v15 = vsel %vm1443_vm11, %v7958_v59, %v1440_v33  ;;  %vm1457_vm13 = vweird.f32 %v7960_v37  ;;  %v7092_v33 = vor.u32 %v7766_v13, %v7089_v10 }
 0x9f0   :  { %7961 = vrcp.f32 %v1419_v58  ;;  %v1449_v16 = vsel %vm1446_vm12, %v1448_v57, %v1444_v15  ;;  %vm1458_vm15 = vmor %vm1456_vm14, %vm1457_vm13  ;;  %v1477_v52 = vand.u32 2147483648, %v1419_v58  ;;  %v1475_v44 = vand.u32 2147483647, %v1419_v58 }
 0x9f1   :  { %v1453_v56 = vsub.f32 1.0, %v1452_v55  ;;  %v8578_v17 = vmul.f32 %v1449_v16, %v1393_v20  ;;  %vm1471_vm5 = vweird.f32 %v1419_v58 }
 0x9f2   :  { %v1478_v21 = vor.u32 1.1754944e-38, %v1477_v52  ;;  %vm1476_vm7 = vcmp.eq.f32.partialorder %v1475_v44, 8.507059e+37 }
 0x9f3   :  { %v1454_v26 = vmul.f32 %v7960_v37, %v1453_v56  ;;  %v1482_v22 = vpack.c.bf16 %v8578_v17, %v8578_v17 }
 0x9f4   :  { %v7028_v41 = vld [vmem:[#allocation2 + $0x8] sm:$0xf] }
 0x9f5   :  { %v1455_v1 = vadd.f32 %v7960_v37, %v1454_v26  ;;  %1486 = vst.msk [vmem:[#allocation2 + $0x14] sm:$0xf] %vm297_vm0, %v1482_v22  ;;  %v1502_v50 = vunpack.c.l.b16 %v1482_v22 }
 0x9f6   :  { %v7962_v28 = vpop.eup %7961 }
 0x9f7   :  { %v1467_v39 = vmul.f32 %v7962_v28, %v1419_v58  ;;  %v8585_v40 = vpack.c.b16 %v1502_v50, %v1501_v34  ;;  %v1459_v43 = vsel %vm1458_vm15, %v7960_v37, %v1455_v1  ;;  %vm1472_vm4 = vweird.f32 %v7962_v28  ;;  %v7077_v37 = vld [vmem:[#allocation2 + $0xc] sm:$0xf0]  ;;  %v7763_v58 = vld [vmem:[#allocation2 + $0x4] sm:$0xf] }
 0x9f8   :  { %v1464_v51 = vsel %vm1461_vm3, %v1463_v38, %v1459_v43  ;;  %vm1473_vm6 = vmor %vm1471_vm5, %vm1472_vm4  ;;  %v7080_v57 = vor.u32 %v7763_v58, %v7077_v37 }
 0x9f9   :  { %v1468_v48 = vsub.f32 1.0, %v1467_v39  ;;  %1509 = vxpose.xlu2.c.b16.start [1/2] (short) (narrow) %v8585_v40, 16  ;;  %v8588_v49 = vmul.f32 %v1464_v51, %v1394_v30 }
 0x9fb   :  { %v1469_v53 = vmul.f32 %v7962_v28, %v1468_v48  ;;  %v1483_v27 = vpack.c.bf16 %v8588_v49, %v8588_v49 }
 0x9fc   :  { %v7753_v42 = vld [vmem:[#allocation2 + $0x10] sm:$0xf0] }
 0x9fd   :  { %v1470_v60 = vadd.f32 %v7962_v28, %v1469_v53  ;;  %1487 = vst.msk [vmem:[#allocation2 + $0x20] sm:$0xf] %vm297_vm0, %v1483_v27  ;;  %v1503_v32 = vunpack.c.l.b16 %v1483_v27  ;;  %v7029_v45 = vor.u32 %v7753_v42, %v7028_v41 }
 0x9ff   :  { %v1474_v5 = vsel %vm1473_vm6, %v7962_v28, %v1470_v60 }
 0xa00   :  { %v1479_v7 = vsel %vm1476_vm7, %v1478_v21, %v1474_v5 }
 0xa01   :  { %v8596_v59 = vmul.f32 %v1479_v7, %v1395_v25 }
 0xa03   :  { %v1484_v23 = vpack.c.bf16 %v8596_v59, %v8596_v59 }
 0xa04   :  { %v7040_v2 = vld [vmem:[#allocation2 + $0x20] sm:$0xf] }
 0xa05   :  { %1488 = vst.msk [vmem:[#allocation2 + $0x2c] sm:$0xf] %vm297_vm0, %v1484_v23  ;;  %v1504_v62 = vunpack.c.l.b16 %v1484_v23 }
 0xa07   :  { %v8601_v31 = vpack.c.b16 %v1504_v62, %v1503_v32 }
 0xa09   :  { %1510 = vxpose.xlu2.c.b16.end [2/2] (short) (narrow) %v8601_v31, 16 }
 0xa0c   :  { %v7756_v8 = vld [vmem:[#allocation2 + $0x28] sm:$0xf0] }
 0xa0d   :  { %v7041_v11 = vor.u32 %v7756_v8, %v7040_v2 }
 0xa0f   :  { %1594 = vmatpush.bf16.msra.mxu3 %v7041_v11 }
 0xa13   :  { %1595 = vmatpush.bf16.msra.mxu3 %v7029_v45 }
 0xa9a   :  { %v1517_v9 = vpop.trf.xlu2 }
 0xa9b   :  { %7042 = vmatmul.msk.bf16.vlgmr.msrb.gmra.mxu0 %vm99_vm1, %v1517_v9  ;;  %7044 = vmatmul.msk.bf16.vlgmr.msra.gmra.mxu3 %vm99_vm1, %v1517_v9 }
 0xa9c   :  { %1617 = vmatpush.bf16.msrb.mxu0 %v8558_v61 }
 0xaab   :  { %7043 = vmatmul.msk.bf16.vlgmr.msra.gmra.mxu0 %vm99_vm1, %v1517_v9 }
 0xb18   :  { %v1569_v20 = vpop.f32.mrf.mxu0 }
 0xb19   :  { %v1603_v27 = vmul.f32 %v1569_v20, %v8542_v18 }
 0xb1e   :  { %v1597_v6 = vpop.f32.mrf.mxu3 }
 0xb20   :  { %v8610_v55 = vpop.f32.mrf.mxu0 }
 0xb26   :  { %v1599_v4 = vpop.f32.mrf.mxu3 }
 0xb27   :  { %v1602_v12 = vpack.c.bf16 %v1599_v4, %v1597_v6 }
 0xb28   :  { %v1583_v61 = vpop.f32.mrf.mxu0 }
 0xb29   :  { %7045 = vmatmul.msk.bf16.vlgmr.msrb.gmra.mxu0 %vm391_vm2, %v1602_v12  ;;  %7046 = vmatmul.msk.bf16.vlgmr.msra.gmra.mxu1 %vm391_vm2, %v1602_v12  ;;  %v1604_v25 = vmul.f32 %v1583_v61, %v8544_v19  ;;  %v1605_v61 = vmul.f32 %v8610_v55, %v8552_v14 }
 0xb2a   :  { %1985 = vmatpush.bf16.msra.mxu1 %v7092_v33 }
 0xb2e   :  { %1986 = vmatpush.bf16.msra.mxu1 %v7080_v57 }
 0xb30   :  { %v8612_v15 = vpop.f32.mrf.mxu0 }
 0xba6   :  { %v1619_v16 = vpop.f32.mrf.mxu0  ;;  %v1633_v56 = vpop.f32.mrf.mxu1 }
 0xba7   :  { %v1620_v24 = vadd.f32 1e-06, %v1619_v16  ;;  %v1634_v26 = vadd.f32 1e-06, %v1633_v56 }
 0xba9   :  { %7963 = vrcp.f32 %v1620_v24  ;;  %v1649_v43 = vand.u32 2147483648, %v1620_v24  ;;  %v1647_v35 = vand.u32 2147483647, %v1620_v24  ;;  %v1664_v52 = vand.u32 2147483648, %v1634_v26 }
 0xbaa   :  { %7965 = vrcp.f32 %v1634_v26  ;;  %v1662_v44 = vand.u32 2147483647, %v1634_v26  ;;  %vm1643_vm10 = vweird.f32 %v1620_v24  ;;  %vm1658_vm12 = vweird.f32 %v1634_v26 }
 0xbab   :  { %v1650_v5 = vor.u32 1.1754944e-38, %v1649_v43  ;;  %vm1648_vm13 = vcmp.eq.f32.partialorder %v1647_v35, 8.507059e+37  ;;  %v1665_v62 = vor.u32 1.1754944e-38, %v1664_v52  ;;  %v7779_v43 = vld [vmem:[#allocation2 + $0x20] sm:$0xf0] }
 0xbac   :  { %vm1663_vm15 = vcmp.eq.f32.partialorder %v1662_v44, 8.507059e+37 }
 0xbae   :  { %v1621_v29 = vpop.f32.mrf.mxu0  ;;  %v1635_v22 = vpop.f32.mrf.mxu1 }
 0xbaf   :  { %v7964_v1 = vpop.eup %7963  ;;  %v1622_v34 = vadd.f32 1e-06, %v1621_v29  ;;  %v8614_v50 = vadd.f32 1e-06, %v1635_v22 }
 0xbb0   :  { %v7966_v28 = vpop.eup %7965  ;;  %v1639_v30 = vmul.f32 %v7964_v1, %v1620_v24  ;;  %vm1644_vm8 = vweird.f32 %v7964_v1  ;;  %v1606_v24 = vmul.f32 %v8612_v15, %v8554_v46  ;;  %v7758_v46 = vld [vmem:[#allocation3 + $0x4] sm:$0xf0]  ;;  %v7051_v15 = vld [vmem:[#allocation3 + $0x8] sm:$0xf0] }
 0xbb1   :  { %v1654_v38 = vmul.f32 %v7966_v28, %v1634_v26  ;;  %7967 = vrcp.f32 %v1622_v34  ;;  %vm1659_vm9 = vweird.f32 %v7966_v28  ;;  %vm1645_vm11 = vmor %vm1643_vm10, %vm1644_vm8  ;;  %v1679_v19 = vand.u32 2147483648, %v1622_v34 }
 0xbb2   :  { %v1640_v39 = vsub.f32 1.0, %v1639_v30  ;;  %7969 = vrcp.f32 %v8614_v50  ;;  %vm1660_vm14 = vmor %vm1658_vm12, %vm1659_vm9  ;;  %v1677_v4 = vand.u32 2147483647, %v1622_v34  ;;  %v1694_v12 = vand.u32 2147483648, %v8614_v50 }
 0xbb3   :  { %v1655_v51 = vsub.f32 1.0, %v1654_v38  ;;  %v1692_v33 = vand.u32 2147483647, %v8614_v50  ;;  %vm1673_vm5 = vweird.f32 %v1622_v34  ;;  %v1680_v57 = vor.u32 1.1754944e-38, %v1679_v19 }
 0xbb4   :  { %v1641_v48 = vmul.f32 %v7964_v1, %v1640_v39  ;;  %vm1688_vm7 = vweird.f32 %v8614_v50  ;;  %vm1678_vm8 = vcmp.eq.f32.partialorder %v1677_v4, 8.507059e+37  ;;  %v1695_v56 = vor.u32 1.1754944e-38, %v1694_v12 }
 0xbb5   :  { %v1656_v53 = vmul.f32 %v7966_v28, %v1655_v51  ;;  %vm1693_vm10 = vcmp.eq.f32.partialorder %v1692_v33, 8.507059e+37  ;;  %v7049_v51 = vld [vmem:[#allocation3] sm:$0xf] }
 0xbb6   :  { %v1642_v60 = vadd.f32 %v7964_v1, %v1641_v48  ;;  %v7757_v48 = vld [vmem:[#allocation3 + $0x4] sm:$0xf]  ;;  %v7050_v35 = vor.u32 %v7758_v46, %v7049_v51 }
 0xbb7   :  { %v7968_v21 = vpop.eup %7967  ;;  %v1657_v7 = vadd.f32 %v7966_v28, %v1656_v53  ;;  %v7054_v52 = vor.u32 %v7757_v48, %v7051_v15  ;;  %v7142_v53 = vld [vmem:[#allocation2 + $0x18] sm:$0xf] }
 0xbb8   :  { %v7970_v23 = vpop.eup %7969  ;;  %v1646_v32 = vsel %vm1645_vm11, %v7964_v1, %v1642_v60  ;;  %v1669_v2 = vmul.f32 %v7968_v21, %v1622_v34  ;;  %vm1674_vm3 = vweird.f32 %v7968_v21  ;;  %v7143_v44 = vor.u32 %v7779_v43, %v7142_v53  ;;  %v7130_v60 = vld [vmem:[#allocation2] sm:$0xf] }
 0xbb9   :  { %v1651_v8 = vsel %vm1648_vm13, %v1650_v5, %v1646_v32  ;;  %v1661_v11 = vsel %vm1660_vm14, %v7966_v28, %v1657_v7  ;;  %v1684_v18 = vmul.f32 %v7970_v23, %v8614_v50  ;;  %vm1689_vm4 = vweird.f32 %v7970_v23  ;;  %vm1675_vm6 = vmor %vm1673_vm5, %vm1674_vm3  ;;  %v7059_v5 = vld [vmem:[#allocation3 + $0x18] sm:$0xf0]  ;;  %v7057_v7 = vld [vmem:[#allocation3 + $0x10] sm:$0xf] }
 0xbba   :  { %v1666_v42 = vsel %vm1663_vm15, %v1665_v62, %v1661_v11  ;;  %v1670_v41 = vsub.f32 1.0, %v1669_v2  ;;  %v8620_v45 = vmul.f32 %v1651_v8, %v1603_v27  ;;  %vm1690_vm9 = vmor %vm1688_vm7, %vm1689_vm4  ;;  %v7776_v27 = vld [vmem:[#allocation2 + $0x8] sm:$0xf0] }
 0xbbb   :  { %v1685_v9 = vsub.f32 1.0, %v1684_v18  ;;  %v8622_v6 = vmul.f32 %v1666_v42, %v1604_v25  ;;  %v7760_v25 = vld [vmem:[#allocation3 + $0x14] sm:$0xf0] }
 0xbbc   :  { %v1671_v10 = vmul.f32 %v7968_v21, %v1670_v41  ;;  %v7058_v32 = vor.u32 %v7760_v25, %v7057_v7 }
 0xbbd   :  { %v1686_v13 = vmul.f32 %v7970_v23, %v1685_v9  ;;  %v1698_v37 = vpack.c.bf16 %v8622_v6, %v8620_v45 }
 0xbbe   :  { %v1672_v58 = vadd.f32 %v7968_v21, %v1671_v10 }
 0xbbf   :  { %v1687_v20 = vadd.f32 %v7970_v23, %v1686_v13  ;;  %1700 = vst [vmem:[#allocation3 + $0x20] sm:$0xff] %v1698_v37  ;;  %v1740_v28 = vunpack.c.l.b16 %v1698_v37  ;;  %v1741_v55 = vunpack.c.h.b16 %v1698_v37 }
 0xbc0   :  { %v1676_v16 = vsel %vm1675_vm6, %v7968_v21, %v1672_v58  ;;  %v7131_v21 = vor.u32 %v7776_v27, %v7130_v60 }
 0xbc1   :  { %v1691_v26 = vsel %vm1690_vm9, %v7970_v23, %v1687_v20  ;;  %v1681_v29 = vsel %vm1678_vm8, %v1680_v57, %v1676_v16  ;;  %v7759_v23 = vld [vmem:[#allocation3 + $0x14] sm:$0xf] }
 0xbc2   :  { %v8633_v22 = vmul.f32 %v1681_v29, %v1605_v61  ;;  %v1696_v1 = vsel %vm1693_vm10, %v1695_v56, %v1691_v26  ;;  %v7062_v62 = vor.u32 %v7759_v23, %v7059_v5 }
 0xbc3   :  { %v8635_v34 = vmul.f32 %v1696_v1, %v1606_v24 }
 0xbc5   :  { %v1699_v50 = vpack.c.bf16 %v8635_v34, %v8633_v22 }
 0xbc6   :  { %v7065_v11 = vld [vmem:[#allocation3 + $0x20] sm:$0xf]  ;;  %v7761_v18 = vld [vmem:[#allocation3 + $0x24] sm:$0xf] }
 0xbc7   :  { %v1742_v14 = vunpack.c.l.b16 %v1699_v50  ;;  %1701 = vst [vmem:[#allocation3 + $0x28] sm:$0xff] %v1699_v50  ;;  %v1743_v30 = vunpack.c.h.b16 %v1699_v50 }
 0xbc9   :  { %v8639_v38 = vpack.c.b16 %v1742_v14, %v1740_v28  ;;  %v1745_v39 = vpack.c.b16 %v1743_v30, %v1741_v55 }
 0xbcb   :  { %1755 = vmatpush.bf16.xpose.msrb.mxu2 %v8639_v38  ;;  %1779 = vmatpush.bf16.xpose.msrb.mxu3 %v1745_v39 }
 0xbce   :  { %v7762_v2 = vld [vmem:[#allocation3 + $0x24] sm:$0xf0]  ;;  %v7067_v8 = vld [vmem:[#allocation3 + $0x28] sm:$0xf0] }
 0xbcf   :  { %v7066_v42 = vor.u32 %v7762_v2, %v7065_v11  ;;  %v7070_v41 = vor.u32 %v7761_v18, %v7067_v8 }
 0xbd2   :  { %1756 = vmatmul.bf16.vlgmr.msrb.gmra.mxu2 %v7050_v35  ;;  %1780 = vmatmul.bf16.vlgmr.msrb.gmra.mxu3 %v7054_v52 }
 0xbd3   :  { %2036 = vmatpush.bf16.msra.mxu2 %v1745_v39 }
 0xbd7   :  { %2376 = vmatpush.bf16.msrb.mxu2 %v7143_v44 }
 0xbdb   :  { %2377 = vmatpush.bf16.msrb.mxu2 %v7131_v21 }
 0xbe2   :  { %1761 = vmatmul.bf16.gmra.mxu2 %v7058_v32  ;;  %1785 = vmatmul.bf16.gmra.mxu3 %v7062_v62 }
 0xbf2   :  { %1766 = vmatmul.bf16.gmra.mxu2 %v7066_v42  ;;  %1790 = vmatmul.bf16.gmra.mxu3 %v7070_v41 }
 0xc55   :  { %v1757_v19 = vpop.f32.mrf.mxu2  ;;  %v1781_v9 = vpop.f32.mrf.mxu3 }
 0xc56   :  { %v1782_v10 = vadd.f32 %v1781_v9, %v1757_v19 }
 0xc58   :  { %v1797_v44 = vmul.f32 %v1782_v10, %v8572_v3 }
 0xc5d   :  { %v1759_v4 = vpop.f32.mrf.mxu2  ;;  %v1783_v12 = vpop.f32.mrf.mxu3 }
 0xc5e   :  { %v1784_v5 = vadd.f32 %v1783_v12, %v1759_v4 }
 0xc60   :  { %v1798_v18 = vmul.f32 %v1784_v5, %v8578_v17 }
 0xc65   :  { %v1762_v13 = vpop.f32.mrf.mxu2  ;;  %v1786_v33 = vpop.f32.mrf.mxu3 }
 0xc66   :  { %v8642_v37 = vadd.f32 %v1786_v33, %v1762_v13 }
 0xc6d   :  { %v8644_v58 = vpop.f32.mrf.mxu2  ;;  %v8646_v57 = vpop.f32.mrf.mxu3 }
 0xc75   :  { %v1767_v20 = vpop.f32.mrf.mxu2  ;;  %v1791_v61 = vpop.f32.mrf.mxu3 }
 0xc76   :  { %v1792_v24 = vadd.f32 %v1791_v61, %v1767_v20 }
 0xc7d   :  { %v1769_v16 = vpop.f32.mrf.mxu2  ;;  %v1793_v56 = vpop.f32.mrf.mxu3 }
 0xc7e   :  { %v1794_v26 = vadd.f32 %v1793_v56, %v1769_v16  ;;  %v1799_v56 = vmul.f32 %v8642_v37, %v8588_v49 }
 0xc80   :  { %v1796_v29 = vpack.c.bf16 %v1794_v26, %v1792_v24 }
 0xc82   :  { %1814 = vmatpush.bf16.msra.mxu0 %v1796_v29 }
 0xc85   :  { %7071 = vmatmul.msk.bf16.vlgmr.msra.gmra.mxu0 %vm391_vm2, %v8585_v40 }
 0xc95   :  { %7072 = vmatmul.msk.bf16.gmra.mxu0 %vm391_vm2, %v8601_v31 }
 0xd02   :  { %v1816_v1 = vpop.f32.mrf.mxu0 }
 0xd03   :  { %v1817_v50 = vadd.f32 1e-06, %v1816_v1 }
 0xd05   :  { %7971 = vrcp.f32 %v1817_v50  ;;  %v1837_v15 = vand.u32 2147483648, %v1817_v50  ;;  %v1835_v43 = vand.u32 2147483647, %v1817_v50  ;;  %vm1831_vm12 = vweird.f32 %v1817_v50 }
 0xd07   :  { %v1838_v53 = vor.u32 1.1754944e-38, %v1837_v15  ;;  %vm1836_vm14 = vcmp.eq.f32.partialorder %v1835_v43, 8.507059e+37 }
 0xd0a   :  { %v1818_v28 = vpop.f32.mrf.mxu0 }
 0xd0b   :  { %v7972_v14 = vpop.eup %7971  ;;  %v1819_v55 = vadd.f32 1e-06, %v1818_v28 }
 0xd0c   :  { %v1827_v30 = vmul.f32 %v7972_v14, %v1817_v50  ;;  %vm1832_vm11 = vweird.f32 %v7972_v14 }
 0xd0d   :  { %7973 = vrcp.f32 %v1819_v55  ;;  %vm1833_vm13 = vmor %vm1831_vm12, %vm1832_vm11  ;;  %v1852_v25 = vand.u32 2147483648, %v1819_v55  ;;  %v1850_v23 = vand.u32 2147483647, %v1819_v55  ;;  %vm1846_vm3 = vweird.f32 %v1819_v55 }
 0xd0e   :  { %v1828_v39 = vsub.f32 1.0, %v1827_v30 }
 0xd0f   :  { %v1853_v3 = vor.u32 1.1754944e-38, %v1852_v25  ;;  %vm1851_vm5 = vcmp.eq.f32.partialorder %v1850_v23, 8.507059e+37 }
 0xd10   :  { %v1829_v46 = vmul.f32 %v7972_v14, %v1828_v39 }
 0xd12   :  { %v1821_v51 = vpop.f32.mrf.mxu0  ;;  %v1830_v48 = vadd.f32 %v7972_v14, %v1829_v46 }
 0xd13   :  { %v7974_v40 = vpop.eup %7973  ;;  %v1822_v35 = vadd.f32 1e-06, %v1821_v51 }
 0xd14   :  { %v1842_v31 = vmul.f32 %v7974_v40, %v1819_v55  ;;  %v1834_v52 = vsel %vm1833_vm13, %v7972_v14, %v1830_v48  ;;  %vm1847_vm15 = vweird.f32 %v7974_v40  ;;  %v1789_v55 = vadd.f32 %v8646_v57, %v8644_v58 }
 0xd15   :  { %7975 = vrcp.f32 %v1822_v35  ;;  %v1839_v60 = vsel %vm1836_vm14, %v1838_v53, %v1834_v52  ;;  %vm1848_vm4 = vmor %vm1846_vm3, %vm1847_vm15  ;;  %v1867_v4 = vand.u32 2147483648, %v1822_v35  ;;  %v1865_v13 = vand.u32 2147483647, %v1822_v35 }
 0xd16   :  { %v1843_v27 = vsub.f32 1.0, %v1842_v31  ;;  %v8653_v21 = vmul.f32 %v1839_v60, %v1797_v44  ;;  %vm1861_vm7 = vweird.f32 %v1822_v35  ;;  %v1800_v43 = vmul.f32 %v1789_v55, %v8596_v59 }
 0xd17   :  { %v1868_v24 = vor.u32 1.1754944e-38, %v1867_v4  ;;  %vm1866_vm9 = vcmp.eq.f32.partialorder %v1865_v13, 8.507059e+37 }
 0xd18   :  { %v1844_v7 = vmul.f32 %v7974_v40, %v1843_v27  ;;  %v1886_v32 = vpack.c.bf16 %v8653_v21, %v8653_v21 }
 0xd1a   :  { %v1823_v62 = vpop.f32.mrf.mxu0  ;;  %v1845_v2 = vadd.f32 %v7974_v40, %v1844_v7  ;;  %1890 = vst.msk [vmem:[#allocation2 + $0x8] sm:$0xf] %vm297_vm0, %v1886_v32  ;;  %v1906_v17 = vunpack.c.l.b16 %v1886_v32  ;;  %v7144_v7 = vld [vmem:[#allocation2 + $0x24] sm:$0xf0] }
 0xd1b   :  { %v7976_v8 = vpop.eup %7975  ;;  %v1824_v11 = vadd.f32 1e-06, %v1823_v62  ;;  %v7778_v62 = vld [vmem:[#allocation2 + $0x1c] sm:$0xf] }
 0xd1c   :  { %v1857_v42 = vmul.f32 %v7976_v8, %v1822_v35  ;;  %v1849_v41 = vsel %vm1848_vm4, %v7974_v40, %v1845_v2  ;;  %vm1862_vm6 = vweird.f32 %v7976_v8  ;;  %v7147_v2 = vor.u32 %v7778_v62, %v7144_v7 }
 0xd1d   :  { %7977 = vrcp.f32 %v1824_v11  ;;  %v1854_v19 = vsel %vm1851_vm5, %v1853_v3, %v1849_v41  ;;  %vm1863_vm8 = vmor %vm1861_vm7, %vm1862_vm6  ;;  %v1882_v30 = vand.u32 2147483648, %v1824_v11  ;;  %v1880_v49 = vand.u32 2147483647, %v1824_v11 }
 0xd1e   :  { %v1858_v9 = vsub.f32 1.0, %v1857_v42  ;;  %v8659_v10 = vmul.f32 %v1854_v19, %v1798_v18  ;;  %vm1876_vm11 = vweird.f32 %v1824_v11 }
 0xd1f   :  { %v1883_v15 = vor.u32 1.1754944e-38, %v1882_v30  ;;  %vm1881_vm13 = vcmp.eq.f32.partialorder %v1880_v49, 8.507059e+37  ;;  %v7197_v49 = vld [vmem:[#allocation2 + $0x18] sm:$0xf] }
 0xd20   :  { %v1859_v12 = vmul.f32 %v7976_v8, %v1858_v9  ;;  %v1887_v33 = vpack.c.bf16 %v8659_v10, %v8659_v10 }
 0xd21   :  { %v7083_v27 = vld [vmem:[#allocation2 + $0x8] sm:$0xf] }
 0xd22   :  { %v1860_v20 = vadd.f32 %v7976_v8, %v1859_v12  ;;  %1891 = vst.msk [vmem:[#allocation2 + $0x14] sm:$0xf] %vm297_vm0, %v1887_v33  ;;  %v1907_v61 = vunpack.c.l.b16 %v1887_v33 }
 0xd23   :  { %v7978_v16 = vpop.eup %7977 }
 0xd24   :  { %v1872_v26 = vmul.f32 %v7978_v16, %v1824_v11  ;;  %v8666_v29 = vpack.c.b16 %v1907_v61, %v1906_v17  ;;  %v1864_v1 = vsel %vm1863_vm8, %v7976_v8, %v1860_v20  ;;  %vm1877_vm10 = vweird.f32 %v7978_v16  ;;  %v7132_v8 = vld [vmem:[#allocation2 + $0xc] sm:$0xf0]  ;;  %v7775_v11 = vld [vmem:[#allocation2 + $0x4] sm:$0xf] }
 0xd25   :  { %v1869_v50 = vsel %vm1866_vm9, %v1868_v24, %v1864_v1  ;;  %vm1878_vm12 = vmor %vm1876_vm11, %vm1877_vm10  ;;  %v7135_v3 = vor.u32 %v7775_v11, %v7132_v8 }
 0xd26   :  { %v1873_v28 = vsub.f32 1.0, %v1872_v26  ;;  %1914 = vxpose.xlu2.c.b16.start [1/2] (short) (narrow) %v8666_v29, 16  ;;  %v8669_v14 = vmul.f32 %v1869_v50, %v1799_v56 }
 0xd28   :  { %v1874_v39 = vmul.f32 %v7978_v16, %v1873_v28  ;;  %v1888_v37 = vpack.c.bf16 %v8669_v14, %v8669_v14 }
 0xd29   :  { %v7765_v59 = vld [vmem:[#allocation2 + $0x10] sm:$0xf0] }
 0xd2a   :  { %v1875_v46 = vadd.f32 %v7978_v16, %v1874_v39  ;;  %1892 = vst.msk [vmem:[#allocation2 + $0x20] sm:$0xf] %vm297_vm0, %v1888_v37  ;;  %v1908_v57 = vunpack.c.l.b16 %v1888_v37  ;;  %v7084_v60 = vor.u32 %v7765_v59, %v7083_v27 }
 0xd2c   :  { %v1879_v51 = vsel %vm1878_vm12, %v7978_v16, %v1875_v46 }
 0xd2d   :  { %v1884_v48 = vsel %vm1881_vm13, %v1883_v15, %v1879_v51 }
 0xd2e   :  { %v8677_v40 = vmul.f32 %v1884_v48, %v1800_v43 }
 0xd30   :  { %v1889_v58 = vpack.c.bf16 %v8677_v40, %v8677_v40 }
 0xd31   :  { %v7095_v52 = vld [vmem:[#allocation2 + $0x20] sm:$0xf] }
 0xd32   :  { %1893 = vst.msk [vmem:[#allocation2 + $0x2c] sm:$0xf] %vm297_vm0, %v1889_v58  ;;  %v1909_v35 = vunpack.c.l.b16 %v1889_v58 }
 0xd34   :  { %v8682_v31 = vpack.c.b16 %v1909_v35, %v1908_v57 }
 0xd36   :  { %1915 = vxpose.xlu2.c.b16.end [2/2] (short) (narrow) %v8682_v31, 16 }
 0xd39   :  { %v7768_v53 = vld [vmem:[#allocation2 + $0x28] sm:$0xf0] }
 0xd3a   :  { %v7096_v44 = vor.u32 %v7768_v53, %v7095_v52 }
 0xd3c   :  { %1999 = vmatpush.bf16.msrb.mxu0 %v7096_v44 }
 0xd40   :  { %2000 = vmatpush.bf16.msrb.mxu0 %v7084_v60 }
 0xdc7   :  { %v1922_v25 = vpop.trf.xlu2 }
 0xdc8   :  { %7097 = vmatmul.msk.bf16.vlgmr.msrb.gmra.mxu1 %vm99_vm1, %v1922_v25  ;;  %7099 = vmatmul.msk.bf16.vlgmr.msrb.gmra.mxu0 %vm99_vm1, %v1922_v25 }
 0xdc9   :  { %2022 = vmatpush.bf16.msrb.mxu1 %v8639_v38 }
 0xdd8   :  { %7098 = vmatmul.msk.bf16.vlgmr.msra.gmra.mxu1 %vm99_vm1, %v1922_v25 }
 0xe45   :  { %v2002_v5 = vpop.f32.mrf.mxu0  ;;  %v1974_v18 = vpop.f32.mrf.mxu1 }
 0xe46   :  { %v2008_v57 = vmul.f32 %v1974_v18, %v8620_v45 }
 0xe4d   :  { %v2004_v23 = vpop.f32.mrf.mxu0  ;;  %v8691_v42 = vpop.f32.mrf.mxu1 }
 0xe4e   :  { %v2007_v32 = vpack.c.bf16 %v2004_v23, %v2002_v5 }
 0xe50   :  { %7100 = vmatmul.msk.bf16.vlgmr.msrb.gmra.mxu1 %vm391_vm2, %v2007_v32  ;;  %7101 = vmatmul.msk.bf16.vlgmr.msra.gmra.mxu2 %vm391_vm2, %v2007_v32 }
 0xe51   :  { %2390 = vmatpush.bf16.msra.mxu2 %v7147_v2 }
 0xe55   :  { %2391 = vmatpush.bf16.msra.mxu2 %v7135_v3  ;;  %v1988_v38 = vpop.f32.mrf.mxu1 }
 0xe56   :  { %v2009_v53 = vmul.f32 %v1988_v38, %v8622_v6 }
 0xe5d   :  { %v8693_v41 = vpop.f32.mrf.mxu1 }
 0xecd   :  { %v2024_v19 = vpop.f32.mrf.mxu1 }
 0xece   :  { %v2025_v9 = vadd.f32 1e-06, %v2024_v19 }
 0xed0   :  { %7979 = vrcp.f32 %v2025_v9  ;;  %v2054_v28 = vand.u32 2147483648, %v2025_v9  ;;  %vm2048_vm15 = vweird.f32 %v2025_v9  ;;  %v2052_v30 = vand.u32 2147483647, %v2025_v9 }
 0xed2   :  { %v2055_v48 = vor.u32 1.1754944e-38, %v2054_v28  ;;  %vm2053_vm5 = vcmp.eq.f32.partialorder %v2052_v30, 8.507059e+37  ;;  %v7104_v28 = vld [vmem:[#allocation3] sm:$0xf] }
 0xed3   :  { %v2038_v4 = vpop.f32.mrf.mxu2 }
 0xed4   :  { %v2039_v12 = vadd.f32 1e-06, %v2038_v4 }
 0xed5   :  { %v2026_v13 = vpop.f32.mrf.mxu1 }
 0xed6   :  { %v7980_v33 = vpop.eup %7979  ;;  %7981 = vrcp.f32 %v2039_v12  ;;  %v2027_v17 = vadd.f32 1e-06, %v2026_v13  ;;  %v2069_v37 = vand.u32 2147483648, %v2039_v12  ;;  %v2067_v51 = vand.u32 2147483647, %v2039_v12 }
 0xed7   :  { %v2044_v20 = vmul.f32 %v7980_v33, %v2025_v9  ;;  %vm2049_vm14 = vweird.f32 %v7980_v33  ;;  %vm2063_vm6 = vweird.f32 %v2039_v12  ;;  %v2011_v13 = vmul.f32 %v8693_v41, %v8635_v34  ;;  %v7770_v34 = vld [vmem:[#allocation3 + $0x4] sm:$0xf0]  ;;  %v7791_v41 = vld [vmem:[#allocation2 + $0x20] sm:$0xf0] }
 0xed8   :  { %7983 = vrcp.f32 %v2027_v17  ;;  %vm8695_vm3 = vmor %vm2048_vm15, %vm2049_vm14  ;;  %v2070_v59 = vor.u32 1.1754944e-38, %v2069_v37  ;;  %vm2068_vm8 = vcmp.eq.f32.partialorder %v2067_v51, 8.507059e+37  ;;  %vm2078_vm10 = vweird.f32 %v2027_v17  ;;  %v7772_v51 = vld [vmem:[#allocation3 + $0x14] sm:$0xf0] }
 0xed9   :  { %v2045_v61 = vsub.f32 1.0, %v2044_v20  ;;  %v2084_v23 = vand.u32 2147483648, %v2027_v17  ;;  %v2082_v32 = vand.u32 2147483647, %v2027_v17  ;;  %v7105_v30 = vor.u32 %v7770_v34, %v7104_v28 }
 0xeda   :  { %v7198_v37 = vor.u32 %v7791_v41, %v7197_v49 }
 0xedb   :  { %v2046_v16 = vmul.f32 %v7980_v33, %v2045_v61  ;;  %v2040_v56 = vpop.f32.mrf.mxu2  ;;  %v2085_v38 = vor.u32 1.1754944e-38, %v2084_v23  ;;  %vm2083_vm13 = vcmp.eq.f32.partialorder %v2082_v32, 8.507059e+37 }
 0xedc   :  { %v7982_v24 = vpop.eup %7981  ;;  %v2041_v26 = vadd.f32 1e-06, %v2040_v56 }
 0xedd   :  { %v2047_v1 = vadd.f32 %v7980_v33, %v2046_v16  ;;  %v2059_v50 = vmul.f32 %v7982_v24, %v2039_v12  ;;  %vm2064_vm4 = vweird.f32 %v7982_v24  ;;  %v2010_v12 = vmul.f32 %v8691_v42, %v8633_v22  ;;  %v7106_v42 = vld [vmem:[#allocation3 + $0x8] sm:$0xf0] }
 0xede   :  { %7985 = vrcp.f32 %v2041_v26  ;;  %v7984_v55 = vpop.eup %7983  ;;  %vm2065_vm7 = vmor %vm2063_vm6, %vm2064_vm4  ;;  %v2097_v6 = vand.u32 2147483647, %v2041_v26  ;;  %v2099_v8 = vand.u32 2147483648, %v2041_v26  ;;  %vm2093_vm14 = vweird.f32 %v2041_v26 }
 0xedf   :  { %v2060_v39 = vsub.f32 1.0, %v2059_v50  ;;  %v2074_v46 = vmul.f32 %v7984_v55, %v2027_v17  ;;  %v2051_v15 = vsel %vm8695_vm3, %v7980_v33, %v2047_v1  ;;  %vm2079_vm9 = vweird.f32 %v7984_v55 }
 0xee0   :  { %v2056_v44 = vsel %vm2053_vm5, %v2055_v48, %v2051_v15  ;;  %vm2080_vm11 = vmor %vm2078_vm10, %vm2079_vm9  ;;  %v2100_v9 = vor.u32 1.1754944e-38, %v2099_v8  ;;  %vm2098_vm3 = vcmp.eq.f32.partialorder %v2097_v6, 8.507059e+37  ;;  %v7185_v15 = vld [vmem:[#allocation2] sm:$0xf]  ;;  %v7114_v48 = vld [vmem:[#allocation3 + $0x18] sm:$0xf0] }
 0xee1   :  { %v2061_v43 = vmul.f32 %v7982_v24, %v2060_v39  ;;  %v2075_v58 = vsub.f32 1.0, %v2074_v46  ;;  %v8703_v62 = vmul.f32 %v2056_v44, %v2008_v57  ;;  %v7788_v46 = vld [vmem:[#allocation2 + $0x8] sm:$0xf0]  ;;  %v7771_v57 = vld [vmem:[#allocation3 + $0x14] sm:$0xf] }
 0xee3   :  { %v2062_v35 = vadd.f32 %v7982_v24, %v2061_v43  ;;  %v2076_v27 = vmul.f32 %v7984_v55, %v2075_v58  ;;  %v7186_v43 = vor.u32 %v7788_v46, %v7185_v15  ;;  %v7112_v58 = vld [vmem:[#allocation3 + $0x10] sm:$0xf] }
 0xee4   :  { %v7986_v52 = vpop.eup %7985 }
 0xee5   :  { %v2066_v60 = vsel %vm2065_vm7, %v7982_v24, %v2062_v35  ;;  %v2089_v25 = vmul.f32 %v7986_v52, %v2041_v26  ;;  %v2077_v7 = vadd.f32 %v7984_v55, %v2076_v27  ;;  %vm2094_vm12 = vweird.f32 %v7986_v52 }
 0xee6   :  { %v2071_v5 = vsel %vm2068_vm8, %v2070_v59, %v2066_v60  ;;  %vm2095_vm15 = vmor %vm2093_vm14, %vm2094_vm12  ;;  %v7113_v35 = vor.u32 %v7772_v51, %v7112_v58 }
 0xee7   :  { %v2090_v45 = vsub.f32 1.0, %v2089_v25  ;;  %v8705_v2 = vmul.f32 %v2071_v5, %v2009_v53  ;;  %v2081_v11 = vsel %vm2080_vm11, %v7984_v55, %v2077_v7  ;;  %v7769_v55 = vld [vmem:[#allocation3 + $0x4] sm:$0xf] }
 0xee8   :  { %v2086_v4 = vsel %vm2083_vm13, %v2085_v38, %v2081_v11  ;;  %v7109_v39 = vor.u32 %v7769_v55, %v7106_v42 }
 0xee9   :  { %v2091_v3 = vmul.f32 %v7986_v52, %v2090_v45  ;;  %v2103_v18 = vpack.c.bf16 %v8705_v2, %v8703_v62  ;;  %v8713_v17 = vmul.f32 %v2086_v4, %v2010_v12 }
 0xeeb   :  { %v2092_v19 = vadd.f32 %v7986_v52, %v2091_v3  ;;  %2105 = vst [vmem:[#allocation3 + $0x20] sm:$0xff] %v2103_v18  ;;  %v2145_v56 = vunpack.c.l.b16 %v2103_v18  ;;  %v2146_v26 = vunpack.c.h.b16 %v2103_v18 }
 0xeed   :  { %v2096_v33 = vsel %vm2095_vm15, %v7986_v52, %v2092_v19  ;;  %v7117_v52 = vor.u32 %v7771_v57, %v7114_v48 }
 0xeee   :  { %v2101_v20 = vsel %vm2098_vm3, %v2100_v9, %v2096_v33 }
 0xeef   :  { %v8715_v61 = vmul.f32 %v2101_v20, %v2011_v13 }
 0xef1   :  { %v2104_v16 = vpack.c.bf16 %v8715_v61, %v8713_v17 }
 0xef2   :  { %v7120_v59 = vld [vmem:[#allocation3 + $0x20] sm:$0xf]  ;;  %v7773_v27 = vld [vmem:[#allocation3 + $0x24] sm:$0xf] }
 0xef3   :  { %v2147_v24 = vunpack.c.l.b16 %v2104_v16  ;;  %2106 = vst [vmem:[#allocation3 + $0x28] sm:$0xff] %v2104_v16  ;;  %v2148_v1 = vunpack.c.h.b16 %v2104_v16 }
 0xef5   :  { %v8719_v50 = vpack.c.b16 %v2147_v24, %v2145_v56  ;;  %v2150_v22 = vpack.c.b16 %v2148_v1, %v2146_v26 }
 0xef7   :  { %2160 = vmatpush.bf16.xpose.msra.mxu3 %v8719_v50  ;;  %2184 = vmatpush.bf16.xpose.msra.mxu0 %v2150_v22 }
 0xefa   :  { %v7774_v53 = vld [vmem:[#allocation3 + $0x24] sm:$0xf0]  ;;  %v7122_v44 = vld [vmem:[#allocation3 + $0x28] sm:$0xf0] }
 0xefb   :  { %v7121_v60 = vor.u32 %v7774_v53, %v7120_v59  ;;  %v7125_v25 = vor.u32 %v7773_v27, %v7122_v44 }
 0xefe   :  { %2161 = vmatmul.bf16.vlgmr.msra.gmra.mxu3 %v7105_v30  ;;  %2185 = vmatmul.bf16.vlgmr.msra.gmra.mxu0 %v7109_v39 }
 0xeff   :  { %2441 = vmatpush.bf16.msrb.mxu3 %v2150_v22 }
 0xf03   :  { %2781 = vmatpush.bf16.msra.mxu3 %v7198_v37 }
 0xf07   :  { %2782 = vmatpush.bf16.msra.mxu3 %v7186_v43 }
 0xf0e   :  { %2166 = vmatmul.bf16.gmra.mxu3 %v7113_v35  ;;  %2190 = vmatmul.bf16.gmra.mxu0 %v7117_v52 }
 0xf1e   :  { %2171 = vmatmul.bf16.gmra.mxu3 %v7121_v60  ;;  %2195 = vmatmul.bf16.gmra.mxu0 %v7125_v25 }
 0xf7b   :  { %v2186_v5 = vpop.f32.mrf.mxu0 }
 0xf81   :  { %v2162_v7 = vpop.f32.mrf.mxu3 }
 0xf82   :  { %v2187_v23 = vadd.f32 %v2186_v5, %v2162_v7 }
 0xf83   :  { %v2188_v32 = vpop.f32.mrf.mxu0 }
 0xf84   :  { %v2202_v37 = vmul.f32 %v2187_v23, %v8653_v21 }
 0xf89   :  { %v2164_v45 = vpop.f32.mrf.mxu3 }
 0xf8a   :  { %v2189_v58 = vadd.f32 %v2188_v32, %v2164_v45 }
 0xf8b   :  { %v2191_v6 = vpop.f32.mrf.mxu0 }
 0xf8c   :  { %v2203_v25 = vmul.f32 %v2189_v58, %v8659_v10  ;;  %v7199_v58 = vld [vmem:[#allocation2 + $0x24] sm:$0xf0] }
 0xf91   :  { %v2167_v8 = vpop.f32.mrf.mxu3 }
 0xf92   :  { %v8722_v11 = vadd.f32 %v2191_v6, %v2167_v8 }
 0xf93   :  { %v8724_v3 = vpop.f32.mrf.mxu0 }
 0xf99   :  { %v8726_v18 = vpop.f32.mrf.mxu3 }
 0xf9b   :  { %v2196_v38 = vpop.f32.mrf.mxu0 }
 0xfa1   :  { %v2172_v19 = vpop.f32.mrf.mxu3 }
 0xfa2   :  { %v2197_v12 = vadd.f32 %v2196_v38, %v2172_v19 }
 0xfa3   :  { %v2198_v9 = vpop.f32.mrf.mxu0 }
 0xfa9   :  { %v2174_v4 = vpop.f32.mrf.mxu3 }
 0xfaa   :  { %v2199_v13 = vadd.f32 %v2198_v9, %v2174_v4 }
 0xfac   :  { %v2201_v33 = vpack.c.bf16 %v2199_v13, %v2197_v12  ;;  %v2204_v12 = vmul.f32 %v8722_v11, %v8669_v14 }
 0xfae   :  { %2219 = vmatpush.bf16.msra.mxu1 %v2201_v33 }
 0xfb1   :  { %7126 = vmatmul.msk.bf16.vlgmr.msra.gmra.mxu1 %vm391_vm2, %v8666_v29 }
 0xfc1   :  { %7127 = vmatmul.msk.bf16.gmra.mxu1 %vm391_vm2, %v8682_v31 }
0x102e   :  { %v2221_v20 = vpop.f32.mrf.mxu1 }
0x102f   :  { %v2222_v16 = vadd.f32 1e-06, %v2221_v20 }
0x1031   :  { %7987 = vrcp.f32 %v2222_v16  ;;  %v2242_v42 = vand.u32 2147483648, %v2222_v16  ;;  %v2240_v41 = vand.u32 2147483647, %v2222_v16  ;;  %vm2236_vm5 = vweird.f32 %v2222_v16 }
0x1033   :  { %v2243_v31 = vor.u32 1.1754944e-38, %v2242_v42  ;;  %vm2241_vm7 = vcmp.eq.f32.partialorder %v2240_v41, 8.507059e+37 }
0x1036   :  { %v2223_v56 = vpop.f32.mrf.mxu1 }
0x1037   :  { %v7988_v24 = vpop.eup %7987  ;;  %v2224_v26 = vadd.f32 1e-06, %v2223_v56 }
0x1038   :  { %v2232_v1 = vmul.f32 %v7988_v24, %v2222_v16  ;;  %vm2237_vm4 = vweird.f32 %v7988_v24 }
0x1039   :  { %7989 = vrcp.f32 %v2224_v26  ;;  %vm2238_vm6 = vmor %vm2236_vm5, %vm2237_vm4  ;;  %v2257_v48 = vand.u32 2147483648, %v2224_v26  ;;  %v2255_v57 = vand.u32 2147483647, %v2224_v26  ;;  %vm2251_vm9 = vweird.f32 %v2224_v26 }
0x103a   :  { %v2233_v22 = vsub.f32 1.0, %v2232_v1 }
0x103b   :  { %v2258_v59 = vor.u32 1.1754944e-38, %v2257_v48  ;;  %vm2256_vm11 = vcmp.eq.f32.partialorder %v2255_v57, 8.507059e+37 }
0x103c   :  { %v2234_v34 = vmul.f32 %v7988_v24, %v2233_v22 }
0x103e   :  { %v2235_v28 = vadd.f32 %v7988_v24, %v2234_v34  ;;  %v2226_v55 = vpop.f32.mrf.mxu1 }
0x103f   :  { %v7990_v29 = vpop.eup %7989  ;;  %v2227_v30 = vadd.f32 1e-06, %v2226_v55 }
0x1040   :  { %v2247_v39 = vmul.f32 %v7990_v29, %v2224_v26  ;;  %v2239_v49 = vsel %vm2238_vm6, %v7988_v24, %v2235_v28  ;;  %vm2252_vm8 = vweird.f32 %v7990_v29  ;;  %v2194_v26 = vadd.f32 %v8724_v3, %v8726_v18 }
0x1041   :  { %7991 = vrcp.f32 %v2227_v30  ;;  %v2244_v15 = vsel %vm2241_vm7, %v2243_v31, %v2239_v49  ;;  %vm2253_vm10 = vmor %vm2251_vm9, %vm2252_vm8  ;;  %v2272_v23 = vand.u32 2147483648, %v2227_v30  ;;  %v2270_v6 = vand.u32 2147483647, %v2227_v30 }
0x1042   :  { %v2248_v46 = vsub.f32 1.0, %v2247_v39  ;;  %v8733_v43 = vmul.f32 %v2244_v15, %v2202_v37  ;;  %vm2266_vm13 = vweird.f32 %v2227_v30  ;;  %v2205_v41 = vmul.f32 %v2194_v26, %v8677_v40 }
0x1043   :  { %v2273_v9 = vor.u32 1.1754944e-38, %v2272_v23  ;;  %vm2271_vm15 = vcmp.eq.f32.partialorder %v2270_v6, 8.507059e+37 }
0x1044   :  { %v2249_v51 = vmul.f32 %v7990_v29, %v2248_v46  ;;  %v2291_v35 = vpack.c.bf16 %v8733_v43, %v8733_v43 }
0x1046   :  { %v2228_v52 = vpop.f32.mrf.mxu1  ;;  %v2250_v53 = vadd.f32 %v7990_v29, %v2249_v51  ;;  %2295 = vst.msk [vmem:[#allocation2 + $0x8] sm:$0xf] %vm297_vm0, %v2291_v35  ;;  %v2311_v4 = vunpack.c.l.b16 %v2291_v35 }
0x1047   :  { %v7992_v44 = vpop.eup %7991  ;;  %v2229_v21 = vadd.f32 1e-06, %v2228_v52  ;;  %v7790_v52 = vld [vmem:[#allocation2 + $0x1c] sm:$0xf] }
0x1048   :  { %v2262_v27 = vmul.f32 %v7992_v44, %v2227_v30  ;;  %v2254_v60 = vsel %vm2253_vm10, %v7990_v29, %v2250_v53  ;;  %vm2267_vm12 = vweird.f32 %v7992_v44  ;;  %v7202_v53 = vor.u32 %v7790_v52, %v7199_v58 }
0x1049   :  { %7993 = vrcp.f32 %v2229_v21  ;;  %v2259_v7 = vsel %vm2256_vm11, %v2258_v59, %v2254_v60  ;;  %vm2268_vm14 = vmor %vm2266_vm13, %vm2267_vm12  ;;  %v2287_v1 = vand.u32 2147483648, %v2229_v21  ;;  %v2285_v34 = vand.u32 2147483647, %v2229_v21 }
0x104a   :  { %v2263_v5 = vsub.f32 1.0, %v2262_v27  ;;  %v8739_v32 = vmul.f32 %v2259_v7, %v2203_v25  ;;  %vm2281_vm4 = vweird.f32 %v2229_v21 }
0x104b   :  { %v2288_v42 = vor.u32 1.1754944e-38, %v2287_v1  ;;  %vm2286_vm6 = vcmp.eq.f32.partialorder %v2285_v34, 8.507059e+37 }
0x104c   :  { %v2264_v45 = vmul.f32 %v7992_v44, %v2263_v5  ;;  %v2292_v8 = vpack.c.bf16 %v8739_v32, %v8739_v32 }
0x104d   :  { %v7138_v46 = vld [vmem:[#allocation2 + $0x8] sm:$0xf] }
0x104e   :  { %v2265_v38 = vadd.f32 %v7992_v44, %v2264_v45  ;;  %v2312_v10 = vunpack.c.l.b16 %v2292_v8  ;;  %2296 = vst.msk [vmem:[#allocation2 + $0x14] sm:$0xf] %vm297_vm0, %v2292_v8 }
0x104f   :  { %v7994_v19 = vpop.eup %7993 }
0x1050   :  { %v2269_v13 = vsel %vm2268_vm14, %v7992_v44, %v2265_v38  ;;  %v2277_v33 = vmul.f32 %v7994_v19, %v2229_v21  ;;  %v8746_v20 = vpack.c.b16 %v2312_v10, %v2311_v4  ;;  %vm2282_vm3 = vweird.f32 %v7994_v19  ;;  %v7187_v44 = vld [vmem:[#allocation2 + $0xc] sm:$0xf0]  ;;  %v7787_v21 = vld [vmem:[#allocation2 + $0x4] sm:$0xf] }
0x1051   :  { %v2274_v16 = vsel %vm2271_vm15, %v2273_v9, %v2269_v13  ;;  %vm2283_vm5 = vmor %vm2281_vm4, %vm2282_vm3  ;;  %v7190_v59 = vor.u32 %v7787_v21, %v7187_v44 }
0x1052   :  { %v2278_v56 = vsub.f32 1.0, %v2277_v33  ;;  %v8748_v24 = vmul.f32 %v2274_v16, %v2204_v12  ;;  %2319 = vxpose.xlu0.c.b16.start [1/2] (short) (narrow) %v8746_v20, 16 }
0x1054   :  { %v2279_v22 = vmul.f32 %v7994_v19, %v2278_v56  ;;  %v2293_v14 = vpack.c.bf16 %v8748_v24, %v8748_v24 }
0x1055   :  { %v7777_v40 = vld [vmem:[#allocation2 + $0x10] sm:$0xf0] }
0x1056   :  { %v2280_v11 = vadd.f32 %v7994_v19, %v2279_v22  ;;  %2297 = vst.msk [vmem:[#allocation2 + $0x20] sm:$0xf] %vm297_vm0, %v2293_v14  ;;  %v2313_v29 = vunpack.c.l.b16 %v2293_v14  ;;  %v7139_v15 = vor.u32 %v7777_v40, %v7138_v46 }
0x1058   :  { %v2284_v28 = vsel %vm2283_vm5, %v7994_v19, %v2280_v11 }
0x1059   :  { %v2289_v3 = vsel %vm2286_vm6, %v2288_v42, %v2284_v28 }
0x105a   :  { %v8757_v18 = vmul.f32 %v2289_v3, %v2205_v41 }
0x105c   :  { %v2294_v55 = vpack.c.bf16 %v8757_v18, %v8757_v18 }
0x105d   :  { %v7150_v39 = vld [vmem:[#allocation2 + $0x20] sm:$0xf] }
0x105e   :  { %v2314_v30 = vunpack.c.l.b16 %v2294_v55  ;;  %2298 = vst.msk [vmem:[#allocation2 + $0x2c] sm:$0xf] %vm297_vm0, %v2294_v55 }
0x1060   :  { %v8762_v31 = vpack.c.b16 %v2314_v30, %v2313_v29 }
0x1062   :  { %2320 = vxpose.xlu0.c.b16.end [2/2] (short) (narrow) %v8762_v31, 16 }
0x1065   :  { %v7780_v49 = vld [vmem:[#allocation2 + $0x28] sm:$0xf0] }
0x1066   :  { %v7151_v37 = vor.u32 %v7780_v49, %v7150_v39 }
0x1068   :  { %2404 = vmatpush.bf16.msrb.mxu1 %v7151_v37 }
0x106c   :  { %2405 = vmatpush.bf16.msrb.mxu1 %v7139_v15 }
0x10fe   :  { %v2327_v51 = vpop.trf.xlu0 }
0x10ff   :  { %7152 = vmatmul.msk.bf16.vlgmr.msrb.gmra.mxu2 %vm99_vm1, %v2327_v51  ;;  %7154 = vmatmul.msk.bf16.vlgmr.msrb.gmra.mxu1 %vm99_vm1, %v2327_v51 }
0x1100   :  { %2427 = vmatpush.bf16.msrb.mxu2 %v8719_v50 }
0x110f   :  { %7153 = vmatmul.msk.bf16.vlgmr.msra.gmra.mxu2 %vm99_vm1, %v2327_v51 }
0x117c   :  { %v2407_v48 = vpop.f32.mrf.mxu1 }
0x1182   :  { %v2379_v27 = vpop.f32.mrf.mxu2 }
0x1183   :  { %v2413_v14 = vmul.f32 %v2379_v27, %v8703_v62 }
0x1184   :  { %v2409_v57 = vpop.f32.mrf.mxu1 }
0x1185   :  { %v2412_v35 = vpack.c.bf16 %v2409_v57, %v2407_v48 }
0x1187   :  { %7155 = vmatmul.msk.bf16.vlgmr.msrb.gmra.mxu2 %vm391_vm2, %v2412_v35  ;;  %7156 = vmatmul.msk.bf16.vlgmr.msrb.gmra.mxu3 %vm391_vm2, %v2412_v35 }
0x1188   :  { %2795 = vmatpush.bf16.msrb.mxu3 %v7202_v53 }
0x118a   :  { %v8771_v60 = vpop.f32.mrf.mxu2 }
0x118c   :  { %2796 = vmatpush.bf16.msrb.mxu3 %v7190_v59 }
0x1192   :  { %v2393_v50 = vpop.f32.mrf.mxu2 }
0x1193   :  { %v2414_v41 = vmul.f32 %v2393_v50, %v8705_v2  ;;  %v2415_v50 = vmul.f32 %v8771_v60, %v8713_v17 }
0x119a   :  { %v8773_v25 = vpop.f32.mrf.mxu2 }
0x120a   :  { %v2429_v5 = vpop.f32.mrf.mxu2  ;;  %v2443_v7 = vpop.f32.mrf.mxu3 }
0x120b   :  { %v2430_v23 = vadd.f32 1e-06, %v2429_v5  ;;  %v2444_v45 = vadd.f32 1e-06, %v2443_v7 }
0x120d   :  { %7995 = vrcp.f32 %v2430_v23  ;;  %v2459_v33 = vand.u32 2147483648, %v2430_v23  ;;  %v2457_v26 = vand.u32 2147483647, %v2430_v23  ;;  %v2474_v1 = vand.u32 2147483648, %v2444_v45 }
0x120e   :  { %7997 = vrcp.f32 %v2444_v45  ;;  %v2472_v34 = vand.u32 2147483647, %v2444_v45  ;;  %vm2453_vm9 = vweird.f32 %v2430_v23  ;;  %vm2468_vm11 = vweird.f32 %v2444_v45 }
0x120f   :  { %v2460_v28 = vor.u32 1.1754944e-38, %v2459_v33  ;;  %vm2458_vm12 = vcmp.eq.f32.partialorder %v2457_v26, 8.507059e+37  ;;  %v2475_v30 = vor.u32 1.1754944e-38, %v2474_v1  ;;  %v7803_v33 = vld [vmem:[#allocation2 + $0x20] sm:$0xf0] }
0x1210   :  { %vm2473_vm14 = vcmp.eq.f32.partialorder %v2472_v34, 8.507059e+37 }
0x1212   :  { %v2431_v6 = vpop.f32.mrf.mxu2  ;;  %v2445_v8 = vpop.f32.mrf.mxu3 }
0x1213   :  { %v7996_v38 = vpop.eup %7995  ;;  %v2432_v19 = vadd.f32 1e-06, %v2431_v6  ;;  %v8775_v9 = vadd.f32 1e-06, %v2445_v8 }
0x1214   :  { %v7998_v4 = vpop.eup %7997  ;;  %v2449_v10 = vmul.f32 %v7996_v38, %v2430_v23  ;;  %vm2454_vm7 = vweird.f32 %v7996_v38  ;;  %v2416_v23 = vmul.f32 %v8773_v25, %v8715_v61  ;;  %v7782_v61 = vld [vmem:[#allocation3 + $0x4] sm:$0xf0]  ;;  %v7161_v25 = vld [vmem:[#allocation3 + $0x8] sm:$0xf0] }
0x1215   :  { %v2464_v12 = vmul.f32 %v7998_v4, %v2444_v45  ;;  %7999 = vrcp.f32 %v2432_v19  ;;  %vm2469_vm8 = vweird.f32 %v7998_v4  ;;  %vm2455_vm10 = vmor %vm2453_vm9, %vm2454_vm7  ;;  %v2489_v2 = vand.u32 2147483648, %v2432_v19 }
0x1216   :  { %v2450_v13 = vsub.f32 1.0, %v2449_v10  ;;  %8001 = vrcp.f32 %v8775_v9  ;;  %vm2470_vm13 = vmor %vm2468_vm11, %vm2469_vm8  ;;  %v2487_v57 = vand.u32 2147483647, %v2432_v19  ;;  %v2504_v35 = vand.u32 2147483648, %v8775_v9 }
0x1217   :  { %v2465_v16 = vsub.f32 1.0, %v2464_v12  ;;  %v2502_v53 = vand.u32 2147483647, %v8775_v9  ;;  %vm2483_vm4 = vweird.f32 %v2432_v19  ;;  %v2490_v59 = vor.u32 1.1754944e-38, %v2489_v2 }
0x1218   :  { %v2451_v56 = vmul.f32 %v7996_v38, %v2450_v13  ;;  %vm2498_vm6 = vweird.f32 %v8775_v9  ;;  %vm2488_vm7 = vcmp.eq.f32.partialorder %v2487_v57, 8.507059e+37  ;;  %v2505_v7 = vor.u32 1.1754944e-38, %v2504_v35 }
0x1219   :  { %v2466_v22 = vmul.f32 %v7998_v4, %v2465_v16  ;;  %vm2503_vm9 = vcmp.eq.f32.partialorder %v2502_v53, 8.507059e+37  ;;  %v7159_v16 = vld [vmem:[#allocation3] sm:$0xf] }
0x121a   :  { %v2452_v11 = vadd.f32 %v7996_v38, %v2451_v56  ;;  %v7781_v56 = vld [vmem:[#allocation3 + $0x4] sm:$0xf]  ;;  %v7160_v26 = vor.u32 %v7782_v61, %v7159_v16 }
0x121b   :  { %v8000_v42 = vpop.eup %7999  ;;  %v2467_v3 = vadd.f32 %v7998_v4, %v2466_v22  ;;  %v7164_v1 = vor.u32 %v7781_v56, %v7161_v25  ;;  %v7252_v22 = vld [vmem:[#allocation2 + $0x18] sm:$0xf] }
0x121c   :  { %v8002_v55 = vpop.eup %8001  ;;  %v2456_v29 = vsel %vm2455_vm10, %v7996_v38, %v2452_v11  ;;  %v2479_v39 = vmul.f32 %v8000_v42, %v2432_v19  ;;  %vm2484_vm15 = vweird.f32 %v8000_v42  ;;  %v7253_v34 = vor.u32 %v7803_v33, %v7252_v22  ;;  %v7240_v11 = vld [vmem:[#allocation2] sm:$0xf] }
0x121d   :  { %v2461_v49 = vsel %vm2458_vm12, %v2460_v28, %v2456_v29  ;;  %v2471_v37 = vsel %vm2470_vm13, %v7998_v4, %v2467_v3  ;;  %v2494_v62 = vmul.f32 %v8002_v55, %v8775_v9  ;;  %vm2499_vm3 = vweird.f32 %v8002_v55  ;;  %vm2485_vm5 = vmor %vm2483_vm4, %vm2484_vm15  ;;  %v7169_v28 = vld [vmem:[#allocation3 + $0x18] sm:$0xf0]  ;;  %v7167_v3 = vld [vmem:[#allocation3 + $0x10] sm:$0xf] }
0x121e   :  { %v2476_v40 = vsel %vm2473_vm14, %v2475_v30, %v2471_v37  ;;  %v2480_v46 = vsub.f32 1.0, %v2479_v39  ;;  %v8781_v15 = vmul.f32 %v2461_v49, %v2413_v14  ;;  %vm2500_vm8 = vmor %vm2498_vm6, %vm2499_vm3  ;;  %v7800_v14 = vld [vmem:[#allocation2 + $0x8] sm:$0xf0] }
0x121f   :  { %v2495_v51 = vsub.f32 1.0, %v2494_v62  ;;  %v8783_v48 = vmul.f32 %v2476_v40, %v2414_v41  ;;  %v7784_v41 = vld [vmem:[#allocation3 + $0x14] sm:$0xf0] }
0x1220   :  { %v2481_v58 = vmul.f32 %v8000_v42, %v2480_v46  ;;  %v7168_v29 = vor.u32 %v7784_v41, %v7167_v3 }
0x1221   :  { %v2496_v52 = vmul.f32 %v8002_v55, %v2495_v51  ;;  %v2508_v44 = vpack.c.bf16 %v8783_v48, %v8781_v15 }
0x1222   :  { %v2482_v21 = vadd.f32 %v8000_v42, %v2481_v58 }
0x1223   :  { %v2497_v27 = vadd.f32 %v8002_v55, %v2496_v52  ;;  %2510 = vst [vmem:[#allocation3 + $0x20] sm:$0xff] %v2508_v44  ;;  %v2550_v4 = vunpack.c.l.b16 %v2508_v44  ;;  %v2551_v60 = vunpack.c.h.b16 %v2508_v44 }
0x1224   :  { %v2486_v5 = vsel %vm2485_vm5, %v8000_v42, %v2482_v21  ;;  %v7241_v42 = vor.u32 %v7800_v14, %v7240_v11 }
0x1225   :  { %v2501_v45 = vsel %vm2500_vm8, %v8002_v55, %v2497_v27  ;;  %v2491_v6 = vsel %vm2488_vm7, %v2490_v59, %v2486_v5  ;;  %v7783_v55 = vld [vmem:[#allocation3 + $0x14] sm:$0xf] }
0x1226   :  { %v8794_v8 = vmul.f32 %v2491_v6, %v2415_v50  ;;  %v2506_v38 = vsel %vm2503_vm9, %v2505_v7, %v2501_v45  ;;  %v7172_v30 = vor.u32 %v7783_v55, %v7169_v28 }
0x1227   :  { %v8796_v19 = vmul.f32 %v2506_v38, %v2416_v23 }
0x1229   :  { %v2509_v9 = vpack.c.bf16 %v8796_v19, %v8794_v8 }
0x122a   :  { %v7175_v37 = vld [vmem:[#allocation3 + $0x20] sm:$0xf]  ;;  %v7785_v62 = vld [vmem:[#allocation3 + $0x24] sm:$0xf] }
0x122b   :  { %v2552_v17 = vunpack.c.l.b16 %v2509_v9  ;;  %2511 = vst [vmem:[#allocation3 + $0x28] sm:$0xff] %v2509_v9  ;;  %v2553_v10 = vunpack.c.h.b16 %v2509_v9 }
0x122d   :  { %v8800_v12 = vpack.c.b16 %v2552_v17, %v2550_v4  ;;  %v2555_v13 = vpack.c.b16 %v2553_v10, %v2551_v60 }
0x122f   :  { %2565 = vmatpush.bf16.xpose.msrb.mxu0 %v8800_v12  ;;  %2589 = vmatpush.bf16.xpose.msra.mxu1 %v2555_v13 }
0x1232   :  { %v7786_v39 = vld [vmem:[#allocation3 + $0x24] sm:$0xf0]  ;;  %v7177_v49 = vld [vmem:[#allocation3 + $0x28] sm:$0xf0] }
0x1233   :  { %v7176_v40 = vor.u32 %v7786_v39, %v7175_v37  ;;  %v7180_v46 = vor.u32 %v7785_v62, %v7177_v49 }
0x1236   :  { %2566 = vmatmul.bf16.vlgmr.msrb.gmra.mxu0 %v7160_v26  ;;  %2590 = vmatmul.bf16.vlgmr.msra.gmra.mxu1 %v7164_v1 }
0x1237   :  { %2846 = vmatpush.bf16.msra.mxu0 %v2555_v13 }
0x123b   :  { %3186 = vmatpush.bf16.msrb.mxu0 %v7253_v34 }
0x123f   :  { %3187 = vmatpush.bf16.msrb.mxu0 %v7241_v42 }
0x1246   :  { %2571 = vmatmul.bf16.gmra.mxu0 %v7168_v29  ;;  %2595 = vmatmul.bf16.gmra.mxu1 %v7172_v30 }
0x1256   :  { %2576 = vmatmul.bf16.gmra.mxu0 %v7176_v40  ;;  %2600 = vmatmul.bf16.gmra.mxu1 %v7180_v46 }
0x12b3   :  { %v2567_v2 = vpop.f32.mrf.mxu0  ;;  %v2591_v51 = vpop.f32.mrf.mxu1 }
0x12b4   :  { %v2592_v58 = vadd.f32 %v2591_v51, %v2567_v2 }
0x12b6   :  { %v2607_v34 = vmul.f32 %v2592_v58, %v8733_v43 }
0x12bb   :  { %v2569_v57 = vpop.f32.mrf.mxu0  ;;  %v2593_v35 = vpop.f32.mrf.mxu1 }
0x12bc   :  { %v2594_v3 = vadd.f32 %v2593_v35, %v2569_v57 }
0x12be   :  { %v2608_v46 = vmul.f32 %v2594_v3, %v8739_v32  ;;  %v7254_v3 = vld [vmem:[#allocation2 + $0x24] sm:$0xf0] }
0x12c3   :  { %v2572_v52 = vpop.f32.mrf.mxu0  ;;  %v2596_v53 = vpop.f32.mrf.mxu1 }
0x12c4   :  { %v8803_v44 = vadd.f32 %v2596_v53, %v2572_v52 }
0x12cb   :  { %v8805_v21 = vpop.f32.mrf.mxu0  ;;  %v8807_v59 = vpop.f32.mrf.mxu1 }
0x12d3   :  { %v2577_v27 = vpop.f32.mrf.mxu0  ;;  %v2601_v50 = vpop.f32.mrf.mxu1 }
0x12d4   :  { %v2602_v23 = vadd.f32 %v2601_v50, %v2577_v27 }
0x12db   :  { %v2579_v5 = vpop.f32.mrf.mxu0  ;;  %v2603_v7 = vpop.f32.mrf.mxu1 }
0x12dc   :  { %v2604_v45 = vadd.f32 %v2603_v7, %v2579_v5 }
0x12de   :  { %v2606_v6 = vpack.c.bf16 %v2604_v45, %v2602_v23  ;;  %v2609_v23 = vmul.f32 %v8803_v44, %v8748_v24 }
0x12e0   :  { %2624 = vmatpush.bf16.msra.mxu2 %v2606_v6 }
0x12e3   :  { %7181 = vmatmul.msk.bf16.vlgmr.msra.gmra.mxu2 %vm391_vm2, %v8746_v20 }
0x12f3   :  { %7182 = vmatmul.msk.bf16.gmra.mxu2 %vm391_vm2, %v8762_v31 }
0x1366   :  { %v2626_v38 = vpop.f32.mrf.mxu2 }
0x1367   :  { %v2627_v9 = vadd.f32 1e-06, %v2626_v38 }
0x1369   :  { %8003 = vrcp.f32 %v2627_v9  ;;  %v2647_v25 = vand.u32 2147483648, %v2627_v9  ;;  %v2645_v33 = vand.u32 2147483647, %v2627_v9  ;;  %vm2641_vm11 = vweird.f32 %v2627_v9 }
0x136b   :  { %v2648_v31 = vor.u32 1.1754944e-38, %v2647_v25  ;;  %vm2646_vm13 = vcmp.eq.f32.partialorder %v2645_v33, 8.507059e+37 }
0x136e   :  { %v2628_v4 = vpop.f32.mrf.mxu2 }
0x136f   :  { %v8004_v17 = vpop.eup %8003  ;;  %v2629_v60 = vadd.f32 1e-06, %v2628_v4 }
0x1370   :  { %v2637_v10 = vmul.f32 %v8004_v17, %v2627_v9  ;;  %vm2642_vm10 = vweird.f32 %v8004_v17 }
0x1371   :  { %8005 = vrcp.f32 %v2629_v60  ;;  %vm2643_vm12 = vmor %vm2641_vm11, %vm2642_vm10  ;;  %v2662_v28 = vand.u32 2147483648, %v2629_v60  ;;  %v2660_v55 = vand.u32 2147483647, %v2629_v60  ;;  %vm2656_vm15 = vweird.f32 %v2629_v60 }
0x1372   :  { %v2638_v13 = vsub.f32 1.0, %v2637_v10 }
0x1373   :  { %v2663_v37 = vor.u32 1.1754944e-38, %v2662_v28  ;;  %vm2661_vm4 = vcmp.eq.f32.partialorder %v2660_v55, 8.507059e+37 }
0x1374   :  { %v2639_v61 = vmul.f32 %v8004_v17, %v2638_v13 }
0x1376   :  { %v2640_v16 = vadd.f32 %v8004_v17, %v2639_v61  ;;  %v2631_v56 = vpop.f32.mrf.mxu2 }
0x1377   :  { %v8006_v20 = vpop.eup %8005  ;;  %v2632_v26 = vadd.f32 1e-06, %v2631_v56 }
0x1378   :  { %v2652_v1 = vmul.f32 %v8006_v20, %v2629_v60  ;;  %v2644_v22 = vsel %vm2643_vm12, %v8004_v17, %v2640_v16  ;;  %vm2657_vm14 = vweird.f32 %v8006_v20  ;;  %v2599_v60 = vadd.f32 %v8807_v59, %v8805_v21 }
0x1379   :  { %8007 = vrcp.f32 %v2632_v26  ;;  %v2649_v11 = vsel %vm2646_vm13, %v2648_v31, %v2644_v22  ;;  %vm2658_vm3 = vmor %vm2656_vm15, %vm2657_vm14  ;;  %v2677_v58 = vand.u32 2147483648, %v2632_v26  ;;  %v2675_v52 = vand.u32 2147483647, %v2632_v26 }
0x137a   :  { %v2653_v14 = vsub.f32 1.0, %v2652_v1  ;;  %v8814_v42 = vmul.f32 %v2649_v11, %v2607_v34  ;;  %vm2671_vm6 = vweird.f32 %v2632_v26  ;;  %v2610_v33 = vmul.f32 %v2599_v60, %v8757_v18 }
0x137b   :  { %v2678_v5 = vor.u32 1.1754944e-38, %v2677_v58  ;;  %vm2676_vm8 = vcmp.eq.f32.partialorder %v2675_v52, 8.507059e+37 }
0x137c   :  { %v2654_v41 = vmul.f32 %v8006_v20, %v2653_v14  ;;  %v2696_v29 = vpack.c.bf16 %v8814_v42, %v8814_v42 }
0x137e   :  { %v2633_v30 = vpop.f32.mrf.mxu2  ;;  %v2655_v39 = vadd.f32 %v8006_v20, %v2654_v41  ;;  %2700 = vst.msk [vmem:[#allocation2 + $0x8] sm:$0xf] %vm297_vm0, %v2696_v29  ;;  %v2716_v7 = vunpack.c.l.b16 %v2696_v29 }
0x137f   :  { %v8008_v49 = vpop.eup %8007  ;;  %v2634_v43 = vadd.f32 1e-06, %v2633_v30  ;;  %v7802_v30 = vld [vmem:[#allocation2 + $0x1c] sm:$0xf] }
0x1380   :  { %v2667_v62 = vmul.f32 %v8008_v49, %v2632_v26  ;;  %v2659_v40 = vsel %vm2658_vm3, %v8006_v20, %v2655_v39  ;;  %vm2672_vm5 = vweird.f32 %v8008_v49  ;;  %v7257_v39 = vor.u32 %v7802_v30, %v7254_v3 }
0x1381   :  { %8009 = vrcp.f32 %v2634_v43  ;;  %v2664_v51 = vsel %vm2661_vm4, %v2663_v37, %v2659_v40  ;;  %vm2673_vm7 = vmor %vm2671_vm6, %vm2672_vm5  ;;  %v2692_v10 = vand.u32 2147483648, %v2634_v43  ;;  %v2690_v61 = vand.u32 2147483647, %v2634_v43 }
0x1382   :  { %v2668_v2 = vsub.f32 1.0, %v2667_v62  ;;  %v8820_v57 = vmul.f32 %v2664_v51, %v2608_v46  ;;  %vm2686_vm10 = vweird.f32 %v2634_v43 }
0x1383   :  { %v2693_v25 = vor.u32 1.1754944e-38, %v2692_v10  ;;  %vm2691_vm12 = vcmp.eq.f32.partialorder %v2690_v61, 8.507059e+37  ;;  %v7224_v61 = vld [vmem:[#allocation3 + $0x18] sm:$0xf0] }
0x1384   :  { %v2669_v35 = vmul.f32 %v8008_v49, %v2668_v2  ;;  %v2697_v53 = vpack.c.bf16 %v8820_v57, %v8820_v57 }
0x1385   :  { %v7193_v14 = vld [vmem:[#allocation2 + $0x8] sm:$0xf] }
0x1386   :  { %v2670_v27 = vadd.f32 %v8008_v49, %v2669_v35  ;;  %v2717_v32 = vunpack.c.l.b16 %v2697_v53  ;;  %2701 = vst.msk [vmem:[#allocation2 + $0x14] sm:$0xf] %vm297_vm0, %v2697_v53 }
0x1387   :  { %v8010_v50 = vpop.eup %8009 }
0x1388   :  { %v2674_v45 = vsel %vm2673_vm7, %v8008_v49, %v2670_v27  ;;  %v2682_v6 = vmul.f32 %v8010_v50, %v2634_v43  ;;  %v8827_v38 = vpack.c.b16 %v2717_v32, %v2716_v7  ;;  %vm2687_vm9 = vweird.f32 %v8010_v50  ;;  %v7242_v49 = vld [vmem:[#allocation2 + $0xc] sm:$0xf0]  ;;  %v7799_v43 = vld [vmem:[#allocation2 + $0x4] sm:$0xf] }
0x1389   :  { %v2679_v9 = vsel %vm2676_vm8, %v2678_v5, %v2674_v45  ;;  %vm2688_vm11 = vmor %vm2686_vm10, %vm2687_vm9  ;;  %v7245_v37 = vor.u32 %v7799_v43, %v7242_v49 }
0x138a   :  { %v2683_v4 = vsub.f32 1.0, %v2682_v6  ;;  %v8829_v17 = vmul.f32 %v2679_v9, %v2609_v23  ;;  %2724 = vxpose.xlu1.c.b16.start [1/2] (short) (narrow) %v8827_v38, 16 }
0x138c   :  { %v2684_v13 = vmul.f32 %v8010_v50, %v2683_v4  ;;  %v2698_v24 = vpack.c.bf16 %v8829_v17, %v8829_v17 }
0x138d   :  { %v7789_v18 = vld [vmem:[#allocation2 + $0x10] sm:$0xf0] }
0x138e   :  { %v2685_v44 = vadd.f32 %v8010_v50, %v2684_v13  ;;  %2702 = vst.msk [vmem:[#allocation2 + $0x20] sm:$0xf] %vm297_vm0, %v2698_v24  ;;  %v2718_v20 = vunpack.c.l.b16 %v2698_v24  ;;  %v7194_v11 = vor.u32 %v7789_v18, %v7193_v14 }
0x1390   :  { %v2689_v16 = vsel %vm2688_vm11, %v8010_v50, %v2685_v44 }
0x1391   :  { %v2694_v21 = vsel %vm2691_vm12, %v2693_v25, %v2689_v16 }
0x1392   :  { %v8838_v59 = vmul.f32 %v2694_v21, %v2610_v33 }
0x1394   :  { %v2699_v56 = vpack.c.bf16 %v8838_v59, %v8838_v59 }
0x1395   :  { %v7205_v1 = vld [vmem:[#allocation2 + $0x20] sm:$0xf] }
0x1396   :  { %v2719_v26 = vunpack.c.l.b16 %v2699_v56  ;;  %2703 = vst.msk [vmem:[#allocation2 + $0x2c] sm:$0xf] %vm297_vm0, %v2699_v56 }
0x1398   :  { %v8843_v31 = vpack.c.b16 %v2719_v26, %v2718_v20 }
0x139a   :  { %2725 = vxpose.xlu1.c.b16.end [2/2] (short) (narrow) %v8843_v31, 16 }
0x139d   :  { %v7792_v22 = vld [vmem:[#allocation2 + $0x28] sm:$0xf0] }
0x139e   :  { %v7206_v34 = vor.u32 %v7792_v22, %v7205_v1 }
0x13a0   :  { %2809 = vmatpush.bf16.msrb.mxu2 %v7206_v34 }
0x13a4   :  { %2810 = vmatpush.bf16.msrb.mxu2 %v7194_v11 }
0x1436   :  { %v2732_v41 = vpop.trf.xlu1 }
0x1437   :  { %7207 = vmatmul.msk.bf16.vlgmr.msra.gmra.mxu3 %vm99_vm1, %v2732_v41  ;;  %7209 = vmatmul.msk.bf16.vlgmr.msrb.gmra.mxu2 %vm99_vm1, %v2732_v41 }
0x1438   :  { %2832 = vmatpush.bf16.msra.mxu3 %v8800_v12 }
0x1447   :  { %7208 = vmatmul.msk.bf16.vlgmr.msrb.gmra.mxu3 %vm99_vm1, %v2732_v41 }
0x14ba   :  { %v2812_v28 = vpop.f32.mrf.mxu2  ;;  %v2784_v62 = vpop.f32.mrf.mxu3 }
0x14bb   :  { %v2818_v20 = vmul.f32 %v2784_v62, %v8781_v15 }
0x14c2   :  { %v2814_v55 = vpop.f32.mrf.mxu2  ;;  %v8852_v40 = vpop.f32.mrf.mxu3 }
0x14c3   :  { %v2817_v29 = vpack.c.bf16 %v2814_v55, %v2812_v28 }
0x14c5   :  { %7210 = vmatmul.msk.bf16.vlgmr.msra.gmra.mxu3 %vm391_vm2, %v2817_v29  ;;  %7211 = vmatmul.msk.bf16.vlgmr.msra.gmra.mxu0 %vm391_vm2, %v2817_v29 }
0x14c6   :  { %3200 = vmatpush.bf16.msra.mxu0 %v7257_v39 }
0x14ca   :  { %3201 = vmatpush.bf16.msra.mxu0 %v7245_v37  ;;  %v2798_v12 = vpop.f32.mrf.mxu3 }
0x14cb   :  { %v2819_v22 = vmul.f32 %v2798_v12, %v8783_v48 }
0x14d2   :  { %v8854_v46 = vpop.f32.mrf.mxu3 }
0x1542   :  { %v2848_v2 = vpop.f32.mrf.mxu0 }
0x1543   :  { %v2849_v51 = vadd.f32 1e-06, %v2848_v2 }
0x1545   :  { %8011 = vrcp.f32 %v2849_v51  ;;  %v2879_v4 = vand.u32 2147483648, %v2849_v51  ;;  %vm2873_vm14 = vweird.f32 %v2849_v51  ;;  %v2877_v10 = vand.u32 2147483647, %v2849_v51 }
0x1547   :  { %v2880_v21 = vor.u32 1.1754944e-38, %v2879_v4  ;;  %vm2878_vm4 = vcmp.eq.f32.partialorder %v2877_v10, 8.507059e+37  ;;  %v7793_v4 = vld [vmem:[#allocation3 + $0x4] sm:$0xf] }
0x1548   :  { %v2834_v58 = vpop.f32.mrf.mxu3 }
0x1549   :  { %v2835_v35 = vadd.f32 1e-06, %v2834_v58 }
0x154a   :  { %v2850_v52 = vpop.f32.mrf.mxu0 }
0x154b   :  { %v8012_v53 = vpop.eup %8011  ;;  %8013 = vrcp.f32 %v2835_v35  ;;  %v2851_v50 = vadd.f32 1e-06, %v2850_v52  ;;  %v2864_v24 = vand.u32 2147483648, %v2835_v35  ;;  %v2862_v16 = vand.u32 2147483647, %v2835_v35 }
0x154c   :  { %v2869_v27 = vmul.f32 %v8012_v53, %v2849_v51  ;;  %vm2874_vm13 = vweird.f32 %v8012_v53  ;;  %vm2858_vm5 = vweird.f32 %v2835_v35  ;;  %v2821_v52 = vmul.f32 %v8854_v46, %v8796_v19  ;;  %v7794_v19 = vld [vmem:[#allocation3 + $0x4] sm:$0xf0]  ;;  %v7214_v46 = vld [vmem:[#allocation3] sm:$0xf] }
0x154d   :  { %8015 = vrcp.f32 %v2851_v50  ;;  %vm8856_vm15 = vmor %vm2873_vm14, %vm2874_vm13  ;;  %v2865_v18 = vor.u32 1.1754944e-38, %v2864_v24  ;;  %vm2863_vm7 = vcmp.eq.f32.partialorder %v2862_v16, 8.507059e+37  ;;  %vm2903_vm9 = vweird.f32 %v2851_v50  ;;  %v7222_v24 = vld [vmem:[#allocation3 + $0x10] sm:$0xf] }
0x154e   :  { %v2870_v5 = vsub.f32 1.0, %v2869_v27  ;;  %v2909_v55 = vand.u32 2147483648, %v2851_v50  ;;  %v2907_v29 = vand.u32 2147483647, %v2851_v50 }
0x1550   :  { %v2871_v7 = vmul.f32 %v8012_v53, %v2870_v5  ;;  %v2836_v32 = vpop.f32.mrf.mxu3  ;;  %v2910_v12 = vor.u32 1.1754944e-38, %v2909_v55  ;;  %vm2908_vm12 = vcmp.eq.f32.partialorder %v2907_v29, 8.507059e+37 }
0x1551   :  { %v8014_v23 = vpop.eup %8013  ;;  %v2837_v45 = vadd.f32 1e-06, %v2836_v32 }
0x1552   :  { %v2872_v6 = vadd.f32 %v8012_v53, %v2871_v7  ;;  %v2854_v9 = vmul.f32 %v8014_v23, %v2835_v35  ;;  %vm2859_vm3 = vweird.f32 %v8014_v23  ;;  %v2820_v35 = vmul.f32 %v8852_v40, %v8794_v8  ;;  %v7216_v40 = vld [vmem:[#allocation3 + $0x8] sm:$0xf0] }
0x1553   :  { %8017 = vrcp.f32 %v2837_v45  ;;  %v8016_v60 = vpop.eup %8015  ;;  %vm2860_vm6 = vmor %vm2858_vm5, %vm2859_vm3  ;;  %v2892_v48 = vand.u32 2147483647, %v2837_v45  ;;  %v2894_v49 = vand.u32 2147483648, %v2837_v45  ;;  %vm2888_vm13 = vweird.f32 %v2837_v45 }
0x1554   :  { %v2855_v13 = vsub.f32 1.0, %v2854_v9  ;;  %v2899_v44 = vmul.f32 %v8016_v60, %v2851_v50  ;;  %v2876_v25 = vsel %vm8856_vm15, %v8012_v53, %v2872_v6  ;;  %vm2904_vm8 = vweird.f32 %v8016_v60 }
0x1555   :  { %v2881_v34 = vsel %vm2878_vm4, %v2880_v21, %v2876_v25  ;;  %vm2905_vm10 = vmor %vm2903_vm9, %vm2904_vm8  ;;  %v2895_v51 = vor.u32 1.1754944e-38, %v2894_v49  ;;  %vm2893_vm15 = vcmp.eq.f32.partialorder %v2892_v48, 8.507059e+37  ;;  %v7219_v10 = vor.u32 %v7793_v4, %v7216_v40 }
0x1556   :  { %v2856_v33 = vmul.f32 %v8014_v23, %v2855_v13  ;;  %v2900_v56 = vsub.f32 1.0, %v2899_v44  ;;  %v8866_v39 = vmul.f32 %v2881_v34, %v2819_v22  ;;  %v7796_v13 = vld [vmem:[#allocation3 + $0x14] sm:$0xf0]  ;;  %v7795_v44 = vld [vmem:[#allocation3 + $0x14] sm:$0xf] }
0x1557   :  { %v7223_v25 = vor.u32 %v7796_v13, %v7222_v24 }
0x1558   :  { %v2857_v26 = vadd.f32 %v8014_v23, %v2856_v33  ;;  %v2901_v14 = vmul.f32 %v8016_v60, %v2900_v56  ;;  %v7227_v33 = vor.u32 %v7795_v44, %v7224_v61 }
0x1559   :  { %v8018_v1 = vpop.eup %8017 }
0x155a   :  { %v2861_v11 = vsel %vm2860_vm6, %v8014_v23, %v2857_v26  ;;  %v2884_v41 = vmul.f32 %v8018_v1, %v2837_v45  ;;  %v2902_v3 = vadd.f32 %v8016_v60, %v2901_v14  ;;  %vm2889_vm11 = vweird.f32 %v8018_v1 }
0x155b   :  { %v2866_v28 = vsel %vm2863_vm7, %v2865_v18, %v2861_v11  ;;  %vm2890_vm14 = vmor %vm2888_vm13, %vm2889_vm11 }
0x155c   :  { %v2885_v15 = vsub.f32 1.0, %v2884_v41  ;;  %v8864_v30 = vmul.f32 %v2866_v28, %v2818_v20  ;;  %v2906_v43 = vsel %vm2905_vm10, %v8016_v60, %v2902_v3  ;;  %v7215_v60 = vor.u32 %v7794_v19, %v7214_v46 }
0x155d   :  { %v2911_v58 = vsel %vm2908_vm12, %v2910_v12, %v2906_v43 }
0x155e   :  { %v2886_v37 = vmul.f32 %v8018_v1, %v2885_v15  ;;  %v2913_v62 = vpack.c.bf16 %v8866_v39, %v8864_v30  ;;  %v8876_v5 = vmul.f32 %v2911_v58, %v2821_v52 }
0x1560   :  { %v2887_v2 = vadd.f32 %v8018_v1, %v2886_v37  ;;  %2915 = vst [vmem:[#allocation3 + $0x20] sm:$0xff] %v2913_v62  ;;  %v2955_v32 = vunpack.c.l.b16 %v2913_v62  ;;  %v2956_v45 = vunpack.c.h.b16 %v2913_v62 }
0x1562   :  { %v2891_v53 = vsel %vm2890_vm14, %v8018_v1, %v2887_v2 }
0x1563   :  { %v2896_v27 = vsel %vm2893_vm15, %v2895_v51, %v2891_v53 }
0x1564   :  { %v8874_v50 = vmul.f32 %v2896_v27, %v2820_v35 }
0x1566   :  { %v2914_v7 = vpack.c.bf16 %v8876_v5, %v8874_v50 }
0x1567   :  { %v7230_v56 = vld [vmem:[#allocation3 + $0x20] sm:$0xf]  ;;  %v7797_v20 = vld [vmem:[#allocation3 + $0x24] sm:$0xf] }
0x1568   :  { %v2957_v23 = vunpack.c.l.b16 %v2914_v7  ;;  %2916 = vst [vmem:[#allocation3 + $0x28] sm:$0xff] %v2914_v7  ;;  %v2958_v6 = vunpack.c.h.b16 %v2914_v7 }
0x156a   :  { %v8880_v9 = vpack.c.b16 %v2957_v23, %v2955_v32  ;;  %v2960_v8 = vpack.c.b16 %v2958_v6, %v2956_v45 }
0x156c   :  { %2970 = vmatpush.bf16.xpose.msrb.mxu1 %v8880_v9  ;;  %2994 = vmatpush.bf16.xpose.msra.mxu2 %v2960_v8 }
0x156f   :  { %v7798_v16 = vld [vmem:[#allocation3 + $0x24] sm:$0xf0]  ;;  %v7232_v21 = vld [vmem:[#allocation3 + $0x28] sm:$0xf0] }
0x1570   :  { %v7231_v26 = vor.u32 %v7798_v16, %v7230_v56  ;;  %v7235_v1 = vor.u32 %v7797_v20, %v7232_v21 }
0x1573   :  { %2971 = vmatmul.bf16.vlgmr.msrb.gmra.mxu1 %v7215_v60  ;;  %2995 = vmatmul.bf16.vlgmr.msra.gmra.mxu2 %v7219_v10 }
0x1574   :  { %3251 = vmatpush.bf16.msra.mxu1 %v2960_v8 }
0x1583   :  { %2976 = vmatmul.bf16.gmra.mxu1 %v7223_v25  ;;  %3000 = vmatmul.bf16.gmra.mxu2 %v7227_v33 }
0x1593   :  { %2981 = vmatmul.bf16.gmra.mxu1 %v7231_v26  ;;  %3005 = vmatmul.bf16.gmra.mxu2 %v7235_v1 }
0x15f0   :  { %v2972_v22 = vpop.f32.mrf.mxu1 }
0x15f6   :  { %v2996_v34 = vpop.f32.mrf.mxu2 }
0x15f7   :  { %v2997_v18 = vadd.f32 %v2996_v34, %v2972_v22 }
0x15f8   :  { %v2974_v14 = vpop.f32.mrf.mxu1 }
0x15fe   :  { %v2998_v11 = vpop.f32.mrf.mxu2 }
0x15ff   :  { %v2999_v13 = vadd.f32 %v2998_v11, %v2974_v14 }
0x1600   :  { %v2977_v41 = vpop.f32.mrf.mxu1 }
0x1601   :  { %v3013_v20 = vmul.f32 %v2999_v13, %v8820_v57 }
0x1606   :  { %v3001_v28 = vpop.f32.mrf.mxu2 }
0x1607   :  { %v8883_v3 = vadd.f32 %v3001_v28, %v2977_v41 }
0x1608   :  { %v8885_v55 = vpop.f32.mrf.mxu1 }
0x1609   :  { %v3014_v57 = vmul.f32 %v8883_v3, %v8829_v17 }
0x160e   :  { %v8887_v29 = vpop.f32.mrf.mxu2 }
0x1610   :  { %v2982_v15 = vpop.f32.mrf.mxu1 }
0x1616   :  { %v3006_v48 = vpop.f32.mrf.mxu2 }
0x1617   :  { %v3007_v37 = vadd.f32 %v3006_v48, %v2982_v15 }
0x1618   :  { %v2984_v49 = vpop.f32.mrf.mxu1 }
0x161e   :  { %v3008_v43 = vpop.f32.mrf.mxu2 }
0x161f   :  { %v3009_v62 = vadd.f32 %v3008_v43, %v2984_v49 }
0x1621   :  { %v3011_v12 = vpack.c.bf16 %v3009_v62, %v3007_v37 }
0x1623   :  { %3029 = vmatpush.bf16.msrb.mxu3 %v3011_v12 }
0x1626   :  { %7236 = vmatmul.msk.bf16.vlgmr.msrb.gmra.mxu3 %vm391_vm2, %v8827_v38 }
0x1636   :  { %7237 = vmatmul.msk.bf16.gmra.mxu3 %vm391_vm2, %v8843_v31  ;;  %v3012_v31 = vmul.f32 %v2997_v18, %v8814_v42 }
0x16a9   :  { %v3031_v2 = vpop.f32.mrf.mxu3 }
0x16aa   :  { %v3032_v51 = vadd.f32 1e-06, %v3031_v2 }
0x16ac   :  { %8019 = vrcp.f32 %v3032_v51  ;;  %v3052_v7 = vand.u32 2147483648, %v3032_v51  ;;  %v3050_v23 = vand.u32 2147483647, %v3032_v51  ;;  %vm3046_vm4 = vweird.f32 %v3032_v51 }
0x16ae   :  { %v3053_v8 = vor.u32 1.1754944e-38, %v3052_v7  ;;  %vm3051_vm6 = vcmp.eq.f32.partialorder %v3050_v23, 8.507059e+37 }
0x16b1   :  { %v3033_v58 = vpop.f32.mrf.mxu3 }
0x16b2   :  { %v8020_v35 = vpop.eup %8019  ;;  %v3034_v52 = vadd.f32 1e-06, %v3033_v58 }
0x16b3   :  { %v3042_v53 = vmul.f32 %v8020_v35, %v3032_v51  ;;  %vm3047_vm3 = vweird.f32 %v8020_v35 }
0x16b4   :  { %8021 = vrcp.f32 %v3034_v52  ;;  %vm3048_vm5 = vmor %vm3046_vm4, %vm3047_vm3  ;;  %v3067_v61 = vand.u32 2147483648, %v3034_v52  ;;  %v3065_v44 = vand.u32 2147483647, %v3034_v52  ;;  %vm3061_vm8 = vweird.f32 %v3034_v52 }
0x16b5   :  { %v3043_v27 = vsub.f32 1.0, %v3042_v53 }
0x16b6   :  { %v3068_v56 = vor.u32 1.1754944e-38, %v3067_v61  ;;  %vm3066_vm10 = vcmp.eq.f32.partialorder %v3065_v44, 8.507059e+37 }
0x16b7   :  { %v3044_v32 = vmul.f32 %v8020_v35, %v3043_v27 }
0x16b9   :  { %v3036_v45 = vpop.f32.mrf.mxu3  ;;  %v3045_v6 = vadd.f32 %v8020_v35, %v3044_v32 }
0x16ba   :  { %v8022_v38 = vpop.eup %8021  ;;  %v3037_v19 = vadd.f32 1e-06, %v3036_v45 }
0x16bb   :  { %v3057_v40 = vmul.f32 %v8022_v38, %v3034_v52  ;;  %v3049_v46 = vsel %vm3048_vm5, %v8020_v35, %v3045_v6  ;;  %vm3062_vm7 = vweird.f32 %v8022_v38  ;;  %v3004_v52 = vadd.f32 %v8887_v29, %v8885_v55 }
0x16bc   :  { %8023 = vrcp.f32 %v3037_v19  ;;  %v3054_v4 = vsel %vm3051_vm6, %v3053_v8, %v3049_v46  ;;  %vm3063_vm9 = vmor %vm3061_vm8, %vm3062_vm7  ;;  %v3082_v14 = vand.u32 2147483648, %v3037_v19  ;;  %v3080_v28 = vand.u32 2147483647, %v3037_v19 }
0x16bd   :  { %v3058_v60 = vsub.f32 1.0, %v3057_v40  ;;  %v3055_v10 = vmul.f32 %v3054_v4, %v3012_v31  ;;  %vm3076_vm12 = vweird.f32 %v3037_v19  ;;  %v3015_v23 = vmul.f32 %v3004_v52, %v8838_v59 }
0x16be   :  { %v3083_v37 = vor.u32 1.1754944e-38, %v3082_v14  ;;  %vm3081_vm14 = vcmp.eq.f32.partialorder %v3080_v28, 8.507059e+37 }
0x16bf   :  { %v3059_v24 = vmul.f32 %v8022_v38, %v3058_v60  ;;  %v3101_v25 = vpack.c.bf16 %v3055_v10, %v3055_v10 }
0x16c1   :  { %v3038_v33 = vpop.f32.mrf.mxu3  ;;  %v3060_v16 = vadd.f32 %v8022_v38, %v3059_v24  ;;  %3105 = vst.msk [vmem:[#allocation2 + $0x8] sm:$0xf] %vm297_vm0, %v3101_v25  ;;  %v3121_v15 = vunpack.c.l.b16 %v3101_v25 }
0x16c2   :  { %v8024_v21 = vpop.eup %8023  ;;  %v3039_v42 = vadd.f32 1e-06, %v3038_v33 }
0x16c3   :  { %v3072_v26 = vmul.f32 %v8024_v21, %v3037_v19  ;;  %v3064_v1 = vsel %vm3063_vm9, %v8022_v38, %v3060_v16  ;;  %vm3077_vm11 = vweird.f32 %v8024_v21 }
0x16c4   :  { %8025 = vrcp.f32 %v3039_v42  ;;  %v3069_v22 = vsel %vm3066_vm10, %v3068_v56, %v3064_v1  ;;  %vm3078_vm13 = vmor %vm3076_vm12, %vm3077_vm11  ;;  %v3097_v53 = vand.u32 2147483648, %v3039_v42  ;;  %v3095_v7 = vand.u32 2147483647, %v3039_v42 }
0x16c5   :  { %v3073_v34 = vsub.f32 1.0, %v3072_v26  ;;  %v3070_v18 = vmul.f32 %v3069_v22, %v3013_v20  ;;  %vm3091_vm3 = vweird.f32 %v3039_v42 }
0x16c6   :  { %v3098_v32 = vor.u32 1.1754944e-38, %v3097_v53  ;;  %vm3096_vm5 = vcmp.eq.f32.partialorder %v3095_v7, 8.507059e+37 }
0x16c7   :  { %v3074_v11 = vmul.f32 %v8024_v21, %v3073_v34  ;;  %v3102_v41 = vpack.c.bf16 %v3070_v18, %v3070_v18 }
0x16c8   :  { %v7248_v60 = vld [vmem:[#allocation2 + $0x8] sm:$0xf] }
0x16c9   :  { %v3122_v48 = vunpack.c.l.b16 %v3102_v41  ;;  %3106 = vst.msk [vmem:[#allocation2 + $0x14] sm:$0xf] %vm297_vm0, %v3102_v41  ;;  %v3075_v49 = vadd.f32 %v8024_v21, %v3074_v11 }
0x16ca   :  { %v8026_v43 = vpop.eup %8025 }
0x16cb   :  { %v3087_v62 = vmul.f32 %v8026_v43, %v3039_v42  ;;  %v8899_v12 = vpack.c.b16 %v3122_v48, %v3121_v15  ;;  %v3079_v2 = vsel %vm3078_vm13, %v8024_v21, %v3075_v49  ;;  %vm3092_vm15 = vweird.f32 %v8026_v43 }
0x16cc   :  { %v3084_v51 = vsel %vm3081_vm14, %v3083_v37, %v3079_v2  ;;  %vm3093_vm4 = vmor %vm3091_vm3, %vm3092_vm15 }
0x16cd   :  { %v3088_v58 = vsub.f32 1.0, %v3087_v62  ;;  %3129 = vxpose.xlu2.c.b16.start [1/2] (short) (narrow) %v8899_v12, 16  ;;  %v3085_v35 = vmul.f32 %v3084_v51, %v3014_v57 }
0x16cf   :  { %v3089_v27 = vmul.f32 %v8026_v43, %v3088_v58  ;;  %v3103_v17 = vpack.c.bf16 %v3085_v35, %v3085_v35 }
0x16d0   :  { %v7801_v4 = vld [vmem:[#allocation2 + $0x10] sm:$0xf0] }
0x16d1   :  { %v3090_v3 = vadd.f32 %v8026_v43, %v3089_v27  ;;  %3107 = vst.msk [vmem:[#allocation2 + $0x20] sm:$0xf] %vm297_vm0, %v3103_v17  ;;  %v3123_v19 = vunpack.c.l.b16 %v3103_v17  ;;  %v7249_v59 = vor.u32 %v7801_v4, %v7248_v60 }
0x16d3   :  { %v3094_v45 = vsel %vm3093_vm4, %v8026_v43, %v3090_v3 }
0x16d4   :  { %v3099_v6 = vsel %vm3096_vm5, %v3098_v32, %v3094_v45 }
0x16d5   :  { %v3100_v38 = vmul.f32 %v3099_v6, %v3015_v23  ;;  %v8951_v6 = vld [vmem:[%s9717_s3] sm:$0xff] }
0x16d7   :  { %v3104_v8 = vpack.c.bf16 %v3100_v38, %v3100_v38  ;;  %v8956_v38 = vld [vmem:[%s9717_s3 + $0x8] sm:$0xff] }
0x16d8   :  { %v7260_v31 = vld [vmem:[#allocation2 + $0x20] sm:$0xf] }
0x16d9   :  { %v3124_v55 = vunpack.c.l.b16 %v3104_v8  ;;  %3108 = vst.msk [vmem:[#allocation2 + $0x2c] sm:$0xf] %vm297_vm0, %v3104_v8 }
0x16db   :  { %v8907_v29 = vpack.c.b16 %v3124_v55, %v3123_v19 }
0x16dd   :  { %3130 = vxpose.xlu2.c.b16.end [2/2] (short) (narrow) %v8907_v29, 16 }
0x16e0   :  { %v7804_v40 = vld [vmem:[#allocation2 + $0x28] sm:$0xf0] }
0x16e1   :  { %v7261_v46 = vor.u32 %v7804_v40, %v7260_v31  ;;  %v3551_v31 = vpack.c.bf16 %v8951_v6, %v8951_v6  ;;  %v3552_v40 = vpack.c.bf16 %v8956_v38, %v8956_v38 }
0x16e3   :  { %3214 = vmatpush.bf16.msra.mxu3 %v7261_v46  ;;  %3680 = vst.msk [vmem:[#allocation2 + $0x38] sm:$0xf] %vm297_vm0, %v3551_v31 }
0x16e4   :  { %3681 = vst.msk [vmem:[#allocation2 + $0x44] sm:$0xf] %vm297_vm0, %v3552_v40 }
0x16e7   :  { %3215 = vmatpush.bf16.msra.mxu3 %v7249_v59 }
0x176e   :  { %v3137_v10 = vpop.trf.xlu2 }
0x176f   :  { %7262 = vmatmul.msk.bf16.vlgmr.msrb.gmra.mxu0 %vm99_vm1, %v3137_v10  ;;  %7264 = vmatmul.msk.bf16.vlgmr.msra.gmra.mxu3 %vm99_vm1, %v3137_v10 }
0x1770   :  { %3237 = vmatpush.bf16.msrb.mxu0 %v8880_v9 }
0x177f   :  { %7263 = vmatmul.msk.bf16.vlgmr.msra.gmra.mxu0 %vm99_vm1, %v3137_v10  ;;  %v3559_v10 = vunpack.c.l.b16 %v3551_v31 }
0x17ec   :  { %v3189_v44 = vpop.f32.mrf.mxu0 }
0x17ed   :  { %v3223_v37 = vmul.f32 %v3189_v44, %v8864_v30 }
0x17f2   :  { %v3217_v13 = vpop.f32.mrf.mxu3 }
0x17f4   :  { %v3191_v25 = vpop.f32.mrf.mxu0 }
0x17f5   :  { %v3225_v62 = vmul.f32 %v3191_v25, %v8874_v50 }
0x17fa   :  { %v3219_v61 = vpop.f32.mrf.mxu3 }
0x17fb   :  { %v3222_v24 = vpack.c.bf16 %v3219_v61, %v3217_v13  ;;  %v3560_v13 = vunpack.c.l.b16 %v3552_v40 }
0x17fc   :  { %v3203_v33 = vpop.f32.mrf.mxu0 }
0x17fd   :  { %7265 = vmatmul.msk.bf16.vlgmr.msrb.gmra.mxu0 %vm391_vm2, %v3222_v24  ;;  %7266 = vmatmul.msk.bf16.vlgmr.msra.gmra.mxu1 %vm391_vm2, %v3222_v24  ;;  %v8931_v2 = vmul.f32 %v3203_v33, %v8866_v39  ;;  %v8980_v33 = vpack.c.b16 %v3560_v13, %v3559_v10 }
0x17ff   :  { %3567 = vxpose.xlu0.c.b16.start [1/2] (short) (narrow) %v8980_v33, 16 }
0x1804   :  { %v8916_v16 = vpop.f32.mrf.mxu0 }
0x187a   :  { %v3239_v21 = vpop.f32.mrf.mxu0  ;;  %v3253_v42 = vpop.f32.mrf.mxu1 }
0x187b   :  { %v3240_v56 = vadd.f32 1e-06, %v3239_v21  ;;  %v3254_v20 = vadd.f32 1e-06, %v3253_v42 }
0x187d   :  { %8027 = vrcp.f32 %v3240_v56  ;;  %v3269_v28 = vand.u32 2147483648, %v3240_v56  ;;  %v3267_v49 = vand.u32 2147483647, %v3240_v56  ;;  %v3284_v57 = vand.u32 2147483648, %v3254_v20 }
0x187e   :  { %8029 = vrcp.f32 %v3254_v20  ;;  %vm3263_vm6 = vweird.f32 %v3240_v56  ;;  %v3282_v35 = vand.u32 2147483647, %v3254_v20  ;;  %vm3278_vm11 = vweird.f32 %v3254_v20 }
0x187f   :  { %v3270_v58 = vor.u32 1.1754944e-38, %v3269_v28  ;;  %v3285_v17 = vor.u32 1.1754944e-38, %v3284_v57  ;;  %vm8938_vm9 = vcmp.eq.f32.partialorder %v3267_v49, 8.507059e+37  ;;  %v3475_v57 = vld [vmem:[#allocation4 + $0x40] sm:$0xff] }
0x1880   :  { %vm3283_vm4 = vcmp.eq.f32.partialorder %v3282_v35, 8.507059e+37 }
0x1882   :  { %v3241_v9 = vpop.f32.mrf.mxu0  ;;  %v3255_v26 = vpop.f32.mrf.mxu1 }
0x1883   :  { %v8028_v1 = vpop.eup %8027  ;;  %v8918_v22 = vadd.f32 1e-06, %v3241_v9  ;;  %v8920_v34 = vadd.f32 1e-06, %v3255_v26  ;;  %v3481_v9 = vld [vmem:[#allocation4 + $0x70] sm:$0xff]  ;;  %v3226_v26 = vmul.f32 %v8916_v16, %v8876_v5  ;;  %v3476_v5 = vld [vmem:[#allocation4 + $0x48] sm:$0xff] }
0x1884   :  { %v8922_v18 = vpop.eup %8029  ;;  %v3259_v14 = vmul.f32 %v8028_v1, %v3240_v56  ;;  %vm3264_vm7 = vweird.f32 %v8028_v1  ;;  %v3478_v16 = vld [vmem:[#allocation4 + $0x58] sm:$0xff] }
0x1885   :  { %v3274_v11 = vmul.f32 %v8922_v18, %v3254_v20  ;;  %8031 = vrcp.f32 %v8918_v22  ;;  %vm3279_vm8 = vweird.f32 %v8922_v18  ;;  %v3299_v30 = vand.u32 2147483648, %v8918_v22  ;;  %vm8942_vm10 = vmor %vm3263_vm6, %vm3264_vm7  ;;  %v3479_v20 = vld [vmem:[#allocation4 + $0x60] sm:$0xff] }
0x1886   :  { %v3260_v41 = vsub.f32 1.0, %v3259_v14  ;;  %8033 = vrcp.f32 %v8920_v34  ;;  %v3314_v23 = vand.u32 2147483648, %v8920_v34  ;;  %v3297_v45 = vand.u32 2147483647, %v8918_v22  ;;  %vm8960_vm12 = vmor %vm3278_vm11, %vm3279_vm8 }
0x1887   :  { %v3275_v15 = vsub.f32 1.0, %v3274_v11  ;;  %v3312_v55 = vand.u32 2147483647, %v8920_v34  ;;  %vm3293_vm15 = vweird.f32 %v8918_v22  ;;  %vm3308_vm3 = vweird.f32 %v8920_v34 }
0x1888   :  { %v3261_v48 = vmul.f32 %v8028_v1, %v3260_v41  ;;  %v3300_v24 = vor.u32 1.1754944e-38, %v3299_v30  ;;  %v3315_v21 = vor.u32 1.1754944e-38, %v3314_v23  ;;  %vm3298_vm6 = vcmp.eq.f32.partialorder %v3297_v45, 8.507059e+37  ;;  %v8168_v30 = vld [vmem:[%s9715_s1 + $0x8] sm:$0xff] }
0x1889   :  { %v3276_v43 = vmul.f32 %v8922_v18, %v3275_v15  ;;  %vm3313_vm8 = vcmp.eq.f32.partialorder %v3312_v55, 8.507059e+37 }
0x188a   :  { %v3262_v27 = vadd.f32 %v8028_v1, %v3261_v48  ;;  %v3485_v48 = vpack.c.bf16 %v3481_v9, %v3479_v20 }
0x188b   :  { %v8032_v51 = vpop.eup %8031  ;;  %v3277_v7 = vadd.f32 %v8922_v18, %v3276_v43 }
0x188c   :  { %v8034_v52 = vpop.eup %8033  ;;  %v3289_v53 = vmul.f32 %v8032_v51, %v8918_v22  ;;  %v3266_v4 = vsel %vm8942_vm10, %v8028_v1, %v3262_v27  ;;  %vm3294_vm13 = vweird.f32 %v8032_v51 }
0x188d   :  { %v3304_v50 = vmul.f32 %v8034_v52, %v8920_v34  ;;  %v3281_v60 = vsel %vm8960_vm12, %v8922_v18, %v3277_v7  ;;  %vm3309_vm14 = vweird.f32 %v8034_v52  ;;  %v3271_v44 = vsel %vm8938_vm9, %v3270_v58, %v3266_v4  ;;  %vm3295_vm5 = vmor %vm3293_vm15, %vm3294_vm13  ;;  %v3480_v34 = vld [vmem:[#allocation4 + $0x68] sm:$0xff]  ;;  %v3482_v18 = vld [vmem:[#allocation4 + $0x78] sm:$0xff] }
0x188e   :  { %v3290_v32 = vsub.f32 1.0, %v3289_v53  ;;  %v3286_v56 = vsel %vm3283_vm4, %v3285_v17, %v3281_v60  ;;  %vm3310_vm7 = vmor %vm3308_vm3, %vm3309_vm14  ;;  %v3272_v14 = vmul.f32 %v3271_v44, %v3223_v37  ;;  %v3486_v43 = vpack.c.bf16 %v3482_v18, %v3480_v34  ;;  %v8994_v37 = vld [vmem:[%s9717_s3 + $0x10] sm:$0xff]  ;;  %v8167_v17 = vld [vmem:[%s9715_s1] sm:$0xff] }
0x188f   :  { %v3305_v19 = vsub.f32 1.0, %v3304_v50  ;;  %v3287_v28 = vmul.f32 %v3286_v56, %v8931_v2  ;;  %v3553_v2 = vpack.c.bf16 %v8994_v37, %v8994_v37 }
0x1890   :  { %v3291_v46 = vmul.f32 %v8032_v51, %v3290_v32 }
0x1891   :  { %v3306_v59 = vmul.f32 %v8034_v52, %v3305_v19  ;;  %v3561_v27 = vunpack.c.l.b16 %v3553_v2  ;;  %3682 = vst.msk [vmem:[#allocation2 + $0x50] sm:$0xf] %vm297_vm0, %v3553_v2 }
0x1892   :  { %v3292_v61 = vadd.f32 %v8032_v51, %v3291_v46  ;;  %v7713_v46 = vld [vmem:[%s9718_s4] sm:$0xff] }
0x1893   :  { %v3307_v25 = vadd.f32 %v8034_v52, %v3306_v59 }
0x1894   :  { %v3296_v42 = vsel %vm3295_vm5, %v8032_v51, %v3292_v61  ;;  %v3477_v51 = vld [vmem:[#allocation4 + $0x50] sm:$0xff]  ;;  %v7299_v61 = vld [vmem:[#allocation2 + $0x38] sm:$0xf] }
0x1895   :  { %v3301_v1 = vsel %vm3298_vm6, %v3300_v24, %v3296_v42  ;;  %v3311_v22 = vsel %vm3310_vm7, %v8034_v52, %v3307_v25  ;;  %v3483_v35 = vpack.c.bf16 %v3477_v51, %v3475_v57  ;;  %v3484_v52 = vpack.c.bf16 %v3478_v16, %v3476_v5  ;;  %v7807_v25 = vld [vmem:[#allocation2 + $0x40] sm:$0xf0] }
0x1896   :  { %v3302_v11 = vmul.f32 %v3301_v1, %v3225_v62  ;;  %v3316_v41 = vsel %vm3313_vm8, %v3315_v21, %v3311_v22  ;;  %v8999_v62 = vld [vmem:[%s9717_s3 + $0x18] sm:$0xff]  ;;  %v7300_v56 = vor.u32 %v7807_v25, %v7299_v61 }
0x1897   :  { %v3317_v15 = vmul.f32 %v3316_v41, %v3226_v26  ;;  %v3554_v53 = vpack.c.bf16 %v8999_v62, %v8999_v62 }
0x1898   :  { %v3318_v49 = vpack.c.bf16 %v3302_v11, %v3272_v14  ;;  %v7311_v10 = vld [vmem:[#allocation2 + $0x50] sm:$0xf]  ;;  %v7714_v11 = vld [vmem:[%s9718_s4 + $0x8] sm:$0xff] }
0x1899   :  { %v3319_v58 = vpack.c.bf16 %v3317_v15, %v3287_v28  ;;  %3683 = vst.msk [vmem:[#allocation2 + $0x5c] sm:$0xf] %vm297_vm0, %v3554_v53 }
0x189a   :  { %3333 = vmatpush.bf16.msrb.mxu2 %v3318_v49 }
0x189b   :  { %3352 = vmatpush.bf16.msrb.mxu3 %v3319_v58 }
0x189d   :  { %7267 = vmatmul.msk.bf16.vlgmr.msrb.gmra.mxu2 %vm391_vm2, %v8899_v12 }
0x189e   :  { %3493 = vmatpush.bf16.msra.mxu2 %v3485_v48  ;;  %7269 = vmatmul.msk.bf16.vlgmr.msrb.gmra.mxu3 %vm391_vm2, %v8899_v12  ;;  %v3562_v12 = vunpack.c.l.b16 %v3554_v53 }
0x189f   :  { %3512 = vmatpush.bf16.msra.mxu3 %v3486_v43 }
0x18a0   :  { %v9007_v7 = vpack.c.b16 %v3562_v12, %v3561_v27  ;;  %v7810_v13 = vld [vmem:[#allocation2 + $0x58] sm:$0xf0] }
0x18a1   :  { %v7312_v44 = vor.u32 %v7810_v13, %v7311_v10 }
0x18a2   :  { %3494 = vmatpush.bf16.msra.mxu2 %v3483_v35  ;;  %3568 = vxpose.xlu0.c.b16.end [2/2] (short) (narrow) %v9007_v7, 16 }
0x18a3   :  { %3513 = vmatpush.bf16.msra.mxu3 %v3484_v52 }
0x18a6   :  { %3758 = vmatpush.bf16.msrb.mxu2 %v7312_v44 }
0x18aa   :  { %3759 = vmatpush.bf16.msrb.mxu2 %v7300_v56 }
0x18ad   :  { %7268 = vmatmul.msk.bf16.gmra.mxu2 %vm391_vm2, %v8907_v29 }
0x18ae   :  { %7270 = vmatmul.msk.bf16.gmra.mxu3 %vm391_vm2, %v8907_v29 }
0x18bd   :  { %7283 = vmatmul.msk.bf16.vlgmr.msra.gmra.mxu2 %vm99_vm1, %v8167_v17 }
0x18be   :  { %7285 = vmatmul.msk.bf16.vlgmr.msra.gmra.mxu3 %vm99_vm1, %v8167_v17 }
0x18cd   :  { %7284 = vmatmul.msk.bf16.gmra.mxu2 %vm99_vm1, %v8168_v30 }
0x18ce   :  { %7286 = vmatmul.msk.bf16.gmra.mxu3 %vm99_vm1, %v8168_v30 }
0x1920   :  { %v3335_v50 = vpop.f32.mrf.mxu2 }
0x1921   :  { %v3354_v39 = vpop.f32.mrf.mxu3 }
0x1928   :  { %v3337_v3 = vpop.f32.mrf.mxu2 }
0x1929   :  { %v3356_v29 = vpop.f32.mrf.mxu3  ;;  %v3364_v31 = vpack.c.bf16 %v3337_v3, %v3335_v50 }
0x192a   :  { %v3365_v40 = vpack.c.bf16 %v3356_v29, %v3354_v39 }
0x1930   :  { %v3340_v32 = vpop.f32.mrf.mxu2 }
0x1931   :  { %v3359_v23 = vpop.f32.mrf.mxu3 }
0x1938   :  { %v3342_v45 = vpop.f32.mrf.mxu2 }
0x1939   :  { %v3366_v8 = vpack.c.bf16 %v3342_v45, %v3340_v32  ;;  %v3361_v19 = vpop.f32.mrf.mxu3 }
0x193a   :  { %v3367_v55 = vpack.c.bf16 %v3361_v19, %v3359_v23 }
0x193b   :  { %3410 = vmatpush.bf16.msra.mxu0 %v3366_v8 }
0x193c   :  { %3429 = vmatpush.bf16.msrb.mxu1 %v3367_v55 }
0x193e   :  { %v9031_v26 = vpop.trf.xlu0 }
0x193f   :  { %3411 = vmatpush.bf16.msra.mxu0 %v3364_v31  ;;  %7315 = vmatmul.msk.bf16.vlgmr.msrb.gmra.mxu2 %vm99_vm1, %v9031_v26 }
0x1940   :  { %3430 = vmatpush.bf16.msrb.mxu1 %v3365_v40  ;;  %v3496_v4 = vpop.f32.mrf.mxu2 }
0x1941   :  { %v3497_v60 = vadd.f32 %v3496_v4, %v8331_v36  ;;  %v3515_v59 = vpop.f32.mrf.mxu3 }
0x1942   :  { %v3516_v24 = vadd.f32 %v3515_v59, %v8331_v36  ;;  %7279 = vmatmul.msk.bf16.vlgmr.msra.gmra.mxu0 %vm99_vm1, %v7713_v46 }
0x1943   :  { %v3525_v21 = vmax.f32 %v3497_v60, 0.0  ;;  %7281 = vmatmul.msk.bf16.vlgmr.msrb.gmra.mxu1 %vm99_vm1, %v7713_v46 }
0x1944   :  { %v3526_v42 = vmax.f32 %v3516_v24, 0.0 }
0x1946   :  { %v3533_v20 = vpack.c.bf16 %v3526_v42, %v3525_v21 }
0x1948   :  { %3538 = vst [vmem:[#allocation2 + $0x30] sm:$0xff] %v3533_v20  ;;  %v3498_v9 = vpop.f32.mrf.mxu2  ;;  %v3587_v39 = vunpack.c.l.b16 %v3533_v20  ;;  %v3588_v3 = vunpack.c.h.b16 %v3533_v20 }
0x1949   :  { %3543 = vst [vmem:[#allocation3 + $0x30] sm:$0xff] %v3533_v20  ;;  %v3499_v1 = vadd.f32 %v3498_v9, %v8335_v47  ;;  %v3517_v36 = vpop.f32.mrf.mxu3 }
0x194a   :  { %v3518_v22 = vadd.f32 %v3517_v36, %v8335_v47 }
0x194b   :  { %v3527_v34 = vmax.f32 %v3499_v1, 0.0 }
0x194c   :  { %v3528_v18 = vmax.f32 %v3518_v22, 0.0 }
0x194e   :  { %v3534_v14 = vpack.c.bf16 %v3528_v18, %v3527_v34 }
0x194f   :  { %v7291_v46 = vld [vmem:[#allocation2 + $0x30] sm:$0xf]  ;;  %v7805_v4 = vld [vmem:[#allocation2 + $0x34] sm:$0xf] }
0x1950   :  { %3539 = vst [vmem:[#allocation2 + $0x3c] sm:$0xff] %v3534_v14  ;;  %v3501_v41 = vpop.f32.mrf.mxu2  ;;  %v3589_v30 = vunpack.c.l.b16 %v3534_v14  ;;  %v3590_v50 = vunpack.c.h.b16 %v3534_v14 }
0x1951   :  { %3544 = vst [vmem:[#allocation3 + $0x38] sm:$0xff] %v3534_v14  ;;  %v3502_v28 = vadd.f32 %v3501_v41, %v8339_v54  ;;  %v3520_v15 = vpop.f32.mrf.mxu3 }
0x1952   :  { %v3521_v48 = vadd.f32 %v3520_v15, %v8339_v54  ;;  %7280 = vmatmul.msk.bf16.gmra.mxu0 %vm99_vm1, %v7714_v11  ;;  %v3595_v29 = vpack.c.b16 %v3589_v30, %v3587_v39  ;;  %v3596_v32 = vpack.c.b16 %v3590_v50, %v3588_v3 }
0x1953   :  { %v3529_v47 = vmax.f32 %v3502_v28, 0.0  ;;  %7282 = vmatmul.msk.bf16.gmra.mxu1 %vm99_vm1, %v7714_v11 }
0x1954   :  { %v3530_v49 = vmax.f32 %v3521_v48, 0.0 }
0x1956   :  { %v3535_v43 = vpack.c.bf16 %v3530_v49, %v3529_v47 }
0x1957   :  { %v7806_v31 = vld [vmem:[#allocation2 + $0x38] sm:$0xf0]  ;;  %v7293_v40 = vld [vmem:[#allocation2 + $0x3c] sm:$0xf0] }
0x1958   :  { %3540 = vst [vmem:[#allocation2 + $0x48] sm:$0xff] %v3535_v43  ;;  %v3503_v57 = vpop.f32.mrf.mxu2  ;;  %v3591_v54 = vunpack.c.l.b16 %v3535_v43  ;;  %v3592_v53 = vunpack.c.h.b16 %v3535_v43  ;;  %v7292_v60 = vor.u32 %v7806_v31, %v7291_v46  ;;  %v7296_v59 = vor.u32 %v7805_v4, %v7293_v40 }
0x1959   :  { %3545 = vst [vmem:[#allocation3 + $0x40] sm:$0xff] %v3535_v43  ;;  %v3504_v51 = vadd.f32 %v3503_v57, %v8343_v63  ;;  %v3522_v58 = vpop.f32.mrf.mxu3 }
0x195a   :  { %v3523_v5 = vadd.f32 %v3522_v58, %v8343_v63 }
0x195b   :  { %v3531_v16 = vmax.f32 %v3504_v51, 0.0 }
0x195c   :  { %v3532_v35 = vmax.f32 %v3523_v5, 0.0 }
0x195e   :  { %v3536_v52 = vpack.c.bf16 %v3532_v35, %v3531_v16 }
0x195f   :  { %v7303_v63 = vld [vmem:[#allocation2 + $0x48] sm:$0xf]  ;;  %v7808_v45 = vld [vmem:[#allocation2 + $0x4c] sm:$0xf] }
0x1960   :  { %3541 = vst [vmem:[#allocation2 + $0x54] sm:$0xff] %v3536_v52  ;;  %v3593_v2 = vunpack.c.l.b16 %v3536_v52  ;;  %v3594_v27 = vunpack.c.h.b16 %v3536_v52 }
0x1961   :  { %3546 = vst [vmem:[#allocation3 + $0x48] sm:$0xff] %v3536_v52 }
0x1962   :  { %v3597_v12 = vpack.c.b16 %v3593_v2, %v3591_v54  ;;  %v3598_v17 = vpack.c.b16 %v3594_v27, %v3592_v53 }
0x1964   :  { %3612 = vmatpush.bf16.msrb.mxu0 %v3597_v12  ;;  %3626 = vmatpush.bf16.msra.mxu1 %v3598_v17 }
0x1967   :  { %v7809_v23 = vld [vmem:[#allocation2 + $0x50] sm:$0xf0]  ;;  %v7305_v8 = vld [vmem:[#allocation2 + $0x54] sm:$0xf0] }
0x1968   :  { %3613 = vmatpush.bf16.msrb.mxu0 %v3595_v29  ;;  %3627 = vmatpush.bf16.msra.mxu1 %v3596_v32  ;;  %v7304_v19 = vor.u32 %v7809_v23, %v7303_v63  ;;  %v7308_v55 = vor.u32 %v7808_v45, %v7305_v8 }
0x196b   :  { %7287 = vmatmul.msk.bf16.vlgmr.msrb.gmra.mxu0 %vm99_vm1, %v9031_v26  ;;  %7288 = vmatmul.msk.bf16.vlgmr.msra.gmra.mxu1 %vm99_vm1, %v9031_v26 }
0x196c   :  { %3730 = vmatpush.bf16.msra.mxu0 %v7304_v19  ;;  %3744 = vmatpush.bf16.msrb.mxu1 %v7308_v55 }
0x1970   :  { %3731 = vmatpush.bf16.msra.mxu0 %v7292_v60  ;;  %3745 = vmatpush.bf16.msrb.mxu1 %v7296_v59 }
0x197b   :  { %7313 = vmatmul.msk.bf16.vlgmr.msra.gmra.mxu0 %vm99_vm1, %v9031_v26  ;;  %7314 = vmatmul.msk.bf16.vlgmr.msrb.gmra.mxu1 %vm99_vm1, %v9031_v26 }
0x19bf   :  { %v9054_v10 = vpop.f32.mrf.mxu0 }
0x19c0   :  { %v9056_v13 = vpop.f32.mrf.mxu1 }
0x19c2   :  { %v3761_v31 = vpop.f32.mrf.mxu2 }
0x19c7   :  { %v9058_v61 = vpop.f32.mrf.mxu0 }
0x19c8   :  { %v9060_v24 = vpop.f32.mrf.mxu1 }
0x19cf   :  { %v9062_v44 = vpop.f32.mrf.mxu0 }
0x19d0   :  { %v9064_v25 = vpop.f32.mrf.mxu1 }
0x19d7   :  { %v9066_v21 = vpop.f32.mrf.mxu0 }
0x19d8   :  { %v9068_v42 = vpop.f32.mrf.mxu1 }
0x19e8   :  { %v3615_v56 = vpop.f32.mrf.mxu0  ;;  %v3629_v20 = vpop.f32.mrf.mxu1 }
0x19f0   :  { %v3617_v9 = vpop.f32.mrf.mxu0  ;;  %v3631_v26 = vpop.f32.mrf.mxu1 }
0x19f1   :  { %v3634_v1 = vmax.f32 %v3615_v56, %v3617_v9  ;;  %v3641_v36 = vmax.f32 %v3629_v20, %v3631_v26 }
0x19f3   :  { %v3635_v22 = vrot.slane %v3634_v1, 4  ;;  %v3642_v34 = vrot.slane %v3641_v36, 4 }
0x19f5   :  { %v3636_v18 = vmax.f32 %v3634_v1, %v3635_v22  ;;  %v3643_v14 = vmax.f32 %v3641_v36, %v3642_v34  ;;  %v7821_v1 = vld [vmem:[#allocation2 + $0x50] sm:$0xf0]  ;;  %v7358_v34 = vld [vmem:[#allocation2 + $0x48] sm:$0xf] }
0x19f7   :  { %v3637_v11 = vrot.slane %v3636_v18, 2  ;;  %v3644_v41 = vrot.slane %v3643_v14, 2 }
0x19f9   :  { %v3638_v28 = vmax.f32 %v3636_v18, %v3637_v11  ;;  %v3645_v15 = vmax.f32 %v3643_v14, %v3644_v41  ;;  %v7359_v18 = vor.u32 %v7821_v1, %v7358_v34  ;;  %v7818_v14 = vld [vmem:[#allocation2 + $0x38] sm:$0xf0]  ;;  %v7360_v11 = vld [vmem:[#allocation2 + $0x54] sm:$0xf0]  ;;  %v7346_v41 = vld [vmem:[#allocation2 + $0x30] sm:$0xf] }
0x19fb   :  { %v3639_v48 = vrot.slane %v3638_v28, 1  ;;  %v3646_v47 = vrot.slane %v3645_v15, 1 }
0x19fd   :  { %v3640_v49 = vmax.f32 %v3638_v28, %v3639_v48  ;;  %v3647_v43 = vmax.f32 %v3645_v15, %v3646_v47  ;;  %v7347_v28 = vor.u32 %v7818_v14, %v7346_v41  ;;  %v7820_v15 = vld [vmem:[#allocation2 + $0x4c] sm:$0xf]  ;;  %v7348_v47 = vld [vmem:[#allocation2 + $0x3c] sm:$0xf0] }
0x19fe   :  { %v7363_v48 = vor.u32 %v7820_v15, %v7360_v11 }
0x19ff   :  { %v3648_v57 = vsub.f32 %v3615_v56, %v3640_v49  ;;  %v3650_v51 = vsub.f32 %v3617_v9, %v3640_v49  ;;  %v3649_v58 = vsub.f32 %v3629_v20, %v3647_v43  ;;  %v3651_v5 = vsub.f32 %v3631_v26, %v3647_v43  ;;  %v3763_v56 = vpop.f32.mrf.mxu2  ;;  %v7817_v49 = vld [vmem:[#allocation2 + $0x34] sm:$0xf] }
0x1a00   :  { %v3766_v36 = vpack.c.bf16 %v3763_v56, %v3761_v31  ;;  %v7351_v43 = vor.u32 %v7817_v49, %v7348_v47 }
0x1a01   :  { %v3652_v16 = vmul.f32 1.442695, %v3648_v57  ;;  %v3656_v35 = vmul.f32 1.442695, %v3650_v51  ;;  %v3654_v52 = vmul.f32 1.442695, %v3649_v58  ;;  %v3733_v57 = vpop.f32.mrf.mxu0 }
0x1a02   :  { %v3658_v54 = vmul.f32 1.442695, %v3651_v5 }
0x1a03   :  { %8035 = vpow2.f32 %v3652_v16 }
0x1a04   :  { %8037 = vpow2.f32 %v3656_v35 }
0x1a05   :  { %8039 = vpow2.f32 %v3654_v52 }
0x1a06   :  { %8041 = vpow2.f32 %v3658_v54 }
0x1a09   :  { %v8036_v2 = vpop.eup %8035  ;;  %v9084_v51 = vpop.f32.mrf.mxu0 }
0x1a0a   :  { %v8038_v53 = vpop.eup %8037 }
0x1a0b   :  { %v8040_v27 = vpop.eup %8039  ;;  %v3660_v12 = vadd.f32 %v8038_v53, %v8036_v2 }
0x1a0c   :  { %v8042_v17 = vpop.eup %8041 }
0x1a0d   :  { %v3661_v30 = vrot.slane %v3660_v12, 4  ;;  %v3667_v50 = vadd.f32 %v8042_v17, %v8040_v27 }
0x1a0f   :  { %v3662_v39 = vadd.f32 %v3661_v30, %v3660_v12  ;;  %v3668_v3 = vrot.slane %v3667_v50, 4 }
0x1a11   :  { %v3669_v29 = vadd.f32 %v3668_v3, %v3667_v50  ;;  %v3663_v32 = vrot.slane %v3662_v39, 2 }
0x1a13   :  { %v3664_v63 = vadd.f32 %v3663_v32, %v3662_v39  ;;  %v3670_v23 = vrot.slane %v3669_v29, 2 }
0x1a15   :  { %v3665_v45 = vrot.slane %v3664_v63, 1  ;;  %v3671_v8 = vadd.f32 %v3670_v23, %v3669_v29 }
0x1a17   :  { %v3666_v19 = vadd.f32 %v3665_v45, %v3664_v63  ;;  %v3672_v55 = vrot.slane %v3671_v8, 1 }
0x1a19   :  { %8043 = vrcp.f32 %v3666_v19  ;;  %v3673_v40 = vadd.f32 %v3672_v55, %v3671_v8  ;;  %v3747_v55 = vpop.f32.mrf.mxu1 }
0x1a1b   :  { %8045 = vrcp.f32 %v3673_v40 }
0x1a1f   :  { %v8044_v46 = vpop.eup %8043 }
0x1a20   :  { %v9070_v4 = vmul.f32 %v8044_v46, %v8036_v2  ;;  %v9072_v60 = vmul.f32 %v8044_v46, %v8038_v53 }
0x1a21   :  { %v8046_v59 = vpop.eup %8045 }
0x1a22   :  { %v9074_v20 = vmul.f32 %v8046_v59, %v8040_v27  ;;  %v3767_v9 = vpack.c.bf16 %v9072_v60, %v9070_v4  ;;  %v9078_v26 = vmul.f32 %v8046_v59, %v8042_v17 }
0x1a24   :  { %3783 = vmatpush.bf16.msrb.mxu3 %v3767_v9  ;;  %v3768_v22 = vpack.c.bf16 %v9078_v26, %v9074_v20  ;;  %v3769_v9 = vmul.f32 %v3733_v57, %v9070_v4  ;;  %v3770_v34 = vmul.f32 %v3747_v55, %v9074_v20 }
0x1a26   :  { %3797 = vmatpush.bf16.msrb.mxu0 %v3768_v22 }
0x1a27   :  { %7316 = vmatmul.msk.bf16.vlgmr.msrb.gmra.mxu3 %vm391_vm2, %v3766_v36 }
0x1a29   :  { %7317 = vmatmul.msk.bf16.vlgmr.msrb.gmra.mxu0 %vm391_vm2, %v3766_v36 }
0x1a2a   :  { %4137 = vmatpush.bf16.msra.mxu0 %v7359_v18 }
0x1a2e   :  { %4138 = vmatpush.bf16.msra.mxu0 %v7347_v28 }
0x1a32   :  { %4151 = vmatpush.bf16.msrb.mxu0 %v7363_v48 }
0x1a36   :  { %4152 = vmatpush.bf16.msrb.mxu0 %v7351_v43 }
0x1aa6   :  { %v3799_v58 = vpop.f32.mrf.mxu0 }
0x1aa7   :  { %v3800_v5 = vadd.f32 1e-06, %v3799_v58 }
0x1aa9   :  { %8047 = vrcp.f32 %v3800_v5  ;;  %v3830_v3 = vand.u32 2147483648, %v3800_v5  ;;  %v3828_v29 = vand.u32 2147483647, %v3800_v5  ;;  %vm3824_vm10 = vweird.f32 %v3800_v5 }
0x1aaa   :  { %v3785_v16 = vpop.f32.mrf.mxu3 }
0x1aab   :  { %v3786_v35 = vadd.f32 1e-06, %v3785_v16  ;;  %v3831_v40 = vor.u32 1.1754944e-38, %v3830_v3  ;;  %vm3829_vm13 = vcmp.eq.f32.partialorder %v3828_v29, 8.507059e+37 }
0x1aad   :  { %8049 = vrcp.f32 %v3786_v35  ;;  %v3815_v23 = vand.u32 2147483648, %v3786_v35  ;;  %v3813_v19 = vand.u32 2147483647, %v3786_v35  ;;  %vm3809_vm14 = vweird.f32 %v3786_v35 }
0x1aae   :  { %v3801_v52 = vpop.f32.mrf.mxu0 }
0x1aaf   :  { %v8048_v54 = vpop.eup %8047  ;;  %v3802_v2 = vadd.f32 1e-06, %v3801_v52  ;;  %v3816_v36 = vor.u32 1.1754944e-38, %v3815_v23  ;;  %vm3814_vm3 = vcmp.eq.f32.partialorder %v3813_v19, 8.507059e+37  ;;  %v3749_v52 = vpop.f32.mrf.mxu1  ;;  %v7811_v19 = vld [vmem:[#allocation3 + $0x34] sm:$0xf] }
0x1ab0   :  { %v3820_v53 = vmul.f32 %v8048_v54, %v3800_v5  ;;  %vm3825_vm9 = vweird.f32 %v8048_v54 }
0x1ab1   :  { %8051 = vrcp.f32 %v3802_v2  ;;  %vm3826_vm11 = vmor %vm3824_vm10, %vm3825_vm9  ;;  %v3860_v28 = vand.u32 2147483648, %v3802_v2  ;;  %v3858_v15 = vand.u32 2147483647, %v3802_v2  ;;  %vm3854_vm5 = vweird.f32 %v3802_v2 }
0x1ab2   :  { %v3787_v27 = vpop.f32.mrf.mxu3  ;;  %v3821_v17 = vsub.f32 1.0, %v3820_v53  ;;  %v3771_v53 = vmul.f32 %v9084_v51, %v9072_v60  ;;  %v7322_v51 = vld [vmem:[#allocation3 + $0x38] sm:$0xf0] }
0x1ab3   :  { %v8050_v12 = vpop.eup %8049  ;;  %v9086_v30 = vadd.f32 1e-06, %v3787_v27  ;;  %v3861_v16 = vor.u32 1.1754944e-38, %v3860_v28  ;;  %vm3859_vm8 = vcmp.eq.f32.partialorder %v3858_v15, 8.507059e+37  ;;  %v3772_v27 = vmul.f32 %v3749_v52, %v9078_v26  ;;  %v7812_v26 = vld [vmem:[#allocation3 + $0x34] sm:$0xf0] }
0x1ab4   :  { %v3805_v50 = vmul.f32 %v8050_v12, %v3786_v35  ;;  %v3822_v39 = vmul.f32 %v8048_v54, %v3821_v17  ;;  %vm3810_vm12 = vweird.f32 %v8050_v12 }
0x1ab5   :  { %8053 = vrcp.f32 %v9086_v30  ;;  %vm3811_vm15 = vmor %vm3809_vm14, %vm3810_vm12  ;;  %v3845_v43 = vand.u32 2147483648, %v9086_v30  ;;  %v3843_v57 = vand.u32 2147483647, %v9086_v30  ;;  %vm3839_vm9 = vweird.f32 %v9086_v30 }
0x1ab6   :  { %v3806_v32 = vsub.f32 1.0, %v3805_v50  ;;  %v3823_v63 = vadd.f32 %v8048_v54, %v3822_v39 }
0x1ab7   :  { %v8052_v45 = vpop.eup %8051 }
0x1ab8   :  { %v3807_v8 = vmul.f32 %v8050_v12, %v3806_v32  ;;  %v3827_v31 = vsel %vm3826_vm11, %v8048_v54, %v3823_v63  ;;  %v3850_v46 = vmul.f32 %v8052_v45, %v3802_v2  ;;  %vm3855_vm4 = vweird.f32 %v8052_v45 }
0x1ab9   :  { %v3832_v1 = vsel %vm3829_vm13, %v3831_v40, %v3827_v31  ;;  %vm3856_vm6 = vmor %vm3854_vm5, %vm3855_vm4  ;;  %v3846_v54 = vor.u32 1.1754944e-38, %v3845_v43  ;;  %vm3844_vm11 = vcmp.eq.f32.partialorder %v3843_v57, 8.507059e+37  ;;  %v7325_v31 = vor.u32 %v7811_v19, %v7322_v51  ;;  %v7413_v40 = vld [vmem:[#allocation2 + $0x48] sm:$0xf] }
0x1aba   :  { %v3808_v59 = vadd.f32 %v8050_v12, %v3807_v8  ;;  %v3851_v22 = vsub.f32 1.0, %v3850_v46  ;;  %v9094_v49 = vmul.f32 %v3832_v1, %v3770_v34  ;;  %v7320_v8 = vld [vmem:[#allocation3 + $0x30] sm:$0xf]  ;;  %v7814_v1 = vld [vmem:[#allocation3 + $0x44] sm:$0xf0] }
0x1abb   :  { %v8054_v56 = vpop.eup %8053  ;;  %v7321_v55 = vor.u32 %v7812_v26, %v7320_v8  ;;  %v7813_v34 = vld [vmem:[#allocation3 + $0x44] sm:$0xf] }
0x1abc   :  { %v3812_v18 = vsel %vm3811_vm15, %v8050_v12, %v3808_v59  ;;  %v3835_v14 = vmul.f32 %v8054_v56, %v9086_v30  ;;  %v3852_v41 = vmul.f32 %v8052_v45, %v3851_v22  ;;  %vm3840_vm7 = vweird.f32 %v8054_v56  ;;  %v7830_v59 = vld [vmem:[#allocation2 + $0x38] sm:$0xf0]  ;;  %v7328_v22 = vld [vmem:[#allocation3 + $0x40] sm:$0xf] }
0x1abd   :  { %v3817_v11 = vsel %vm3814_vm3, %v3816_v36, %v3812_v18  ;;  %vm3841_vm10 = vmor %vm3839_vm9, %vm3840_vm7  ;;  %v7330_v36 = vld [vmem:[#allocation3 + $0x48] sm:$0xf0]  ;;  %v7329_v18 = vor.u32 %v7814_v1, %v7328_v22 }
0x1abe   :  { %v3836_v48 = vsub.f32 1.0, %v3835_v14  ;;  %v9092_v47 = vmul.f32 %v3817_v11, %v3769_v9  ;;  %v3853_v4 = vadd.f32 %v8052_v45, %v3852_v41  ;;  %v7333_v14 = vor.u32 %v7813_v34, %v7330_v36 }
0x1ac0   :  { %v3837_v20 = vmul.f32 %v8054_v56, %v3836_v48  ;;  %v3864_v58 = vpack.c.bf16 %v9094_v49, %v9092_v47  ;;  %v3857_v5 = vsel %vm3856_vm6, %v8052_v45, %v3853_v4  ;;  %v7833_v45 = vld [vmem:[#allocation2 + $0x50] sm:$0xf0] }
0x1ac1   :  { %v3862_v2 = vsel %vm3859_vm8, %v3861_v16, %v3857_v5  ;;  %v7414_v46 = vor.u32 %v7833_v45, %v7413_v40 }
0x1ac2   :  { %v3838_v35 = vadd.f32 %v8054_v56, %v3837_v20  ;;  %3866 = vst [vmem:[#allocation3 + $0x50] sm:$0xff] %v3864_v58  ;;  %v9106_v39 = vmul.f32 %v3862_v2, %v3772_v27  ;;  %v3906_v3 = vunpack.c.l.b16 %v3864_v58  ;;  %v3907_v32 = vunpack.c.h.b16 %v3864_v58 }
0x1ac4   :  { %v3842_v12 = vsel %vm3841_vm10, %v8054_v56, %v3838_v35  ;;  %v7401_v56 = vld [vmem:[#allocation2 + $0x30] sm:$0xf] }
0x1ac5   :  { %v3847_v17 = vsel %vm3844_vm11, %v3846_v54, %v3842_v12  ;;  %v7402_v9 = vor.u32 %v7830_v59, %v7401_v56 }
0x1ac6   :  { %v9104_v50 = vmul.f32 %v3847_v17, %v3771_v53 }
0x1ac8   :  { %v3865_v30 = vpack.c.bf16 %v9106_v39, %v9104_v50 }
0x1ac9   :  { %v7336_v28 = vld [vmem:[#allocation3 + $0x50] sm:$0xf]  ;;  %v7815_v15 = vld [vmem:[#allocation3 + $0x54] sm:$0xf] }
0x1aca   :  { %3867 = vst [vmem:[#allocation3 + $0x58] sm:$0xff] %v3865_v30  ;;  %v3908_v29 = vunpack.c.l.b16 %v3865_v30  ;;  %v3909_v63 = vunpack.c.h.b16 %v3865_v30 }
0x1acc   :  { %v9110_v23 = vpack.c.b16 %v3908_v29, %v3906_v3  ;;  %v3911_v60 = vpack.c.b16 %v3909_v63, %v3907_v32 }
0x1ace   :  { %3921 = vmatpush.bf16.xpose.msra.mxu1 %v9110_v23  ;;  %3945 = vmatpush.bf16.xpose.msra.mxu2 %v3911_v60 }
0x1ad1   :  { %v7816_v11 = vld [vmem:[#allocation3 + $0x54] sm:$0xf0]  ;;  %v7338_v41 = vld [vmem:[#allocation3 + $0x58] sm:$0xf0] }
0x1ad2   :  { %v7337_v48 = vor.u32 %v7816_v11, %v7336_v28  ;;  %v7341_v4 = vor.u32 %v7815_v15, %v7338_v41 }
0x1ad5   :  { %3922 = vmatmul.bf16.vlgmr.msra.gmra.mxu1 %v7321_v55  ;;  %3946 = vmatmul.bf16.vlgmr.msra.gmra.mxu2 %v7325_v31 }
0x1ad6   :  { %4202 = vmatpush.bf16.msrb.mxu1 %v3911_v60 }
0x1ada   :  { %4542 = vmatpush.bf16.msra.mxu1 %v7414_v46 }
0x1ade   :  { %4543 = vmatpush.bf16.msra.mxu1 %v7402_v9 }
0x1ae5   :  { %3927 = vmatmul.bf16.gmra.mxu1 %v7329_v18  ;;  %3951 = vmatmul.bf16.gmra.mxu2 %v7333_v14 }
0x1af5   :  { %3932 = vmatmul.bf16.gmra.mxu1 %v7337_v48  ;;  %3956 = vmatmul.bf16.gmra.mxu2 %v7341_v4 }
0x1b52   :  { %v3923_v43 = vpop.f32.mrf.mxu1 }
0x1b58   :  { %v3947_v20 = vpop.f32.mrf.mxu2 }
0x1b59   :  { %v3948_v57 = vadd.f32 %v3947_v20, %v3923_v43 }
0x1b5a   :  { %v3925_v58 = vpop.f32.mrf.mxu1 }
0x1b5b   :  { %v3963_v1 = vmul.f32 %v3948_v57, %v8951_v6 }
0x1b60   :  { %v3949_v5 = vpop.f32.mrf.mxu2 }
0x1b61   :  { %v3950_v11 = vadd.f32 %v3949_v5, %v3925_v58 }
0x1b62   :  { %v3928_v16 = vpop.f32.mrf.mxu1 }
0x1b68   :  { %v3952_v35 = vpop.f32.mrf.mxu2 }
0x1b69   :  { %v9113_v52 = vadd.f32 %v3952_v35, %v3928_v16  ;;  %v3964_v16 = vmul.f32 %v3950_v11, %v8956_v38 }
0x1b6a   :  { %v9115_v54 = vpop.f32.mrf.mxu1 }
0x1b70   :  { %v9117_v2 = vpop.f32.mrf.mxu2 }
0x1b72   :  { %v3933_v53 = vpop.f32.mrf.mxu1 }
0x1b78   :  { %v3957_v27 = vpop.f32.mrf.mxu2 }
0x1b79   :  { %v3958_v30 = vadd.f32 %v3957_v27, %v3933_v53 }
0x1b7a   :  { %v3935_v12 = vpop.f32.mrf.mxu1 }
0x1b80   :  { %v3959_v17 = vpop.f32.mrf.mxu2 }
0x1b81   :  { %v3960_v3 = vadd.f32 %v3959_v17, %v3935_v12 }
0x1b83   :  { %v3962_v29 = vpack.c.bf16 %v3960_v3, %v3958_v30 }
0x1b85   :  { %3980 = vmatpush.bf16.msra.mxu3 %v3962_v29 }
0x1b88   :  { %7342 = vmatmul.msk.bf16.vlgmr.msra.gmra.mxu3 %vm391_vm2, %v8980_v33 }
0x1b98   :  { %7343 = vmatmul.msk.bf16.gmra.mxu3 %vm391_vm2, %v9007_v7 }
0x1c0b   :  { %v3982_v32 = vpop.f32.mrf.mxu3 }
0x1c0c   :  { %v3983_v63 = vadd.f32 1e-06, %v3982_v32 }
0x1c0e   :  { %8055 = vrcp.f32 %v3983_v63  ;;  %v4003_v55 = vand.u32 2147483648, %v3983_v63  ;;  %v4001_v31 = vand.u32 2147483647, %v3983_v63  ;;  %vm3997_vm13 = vweird.f32 %v3983_v63 }
0x1c10   :  { %v4004_v7 = vor.u32 1.1754944e-38, %v4003_v55  ;;  %vm4002_vm15 = vcmp.eq.f32.partialorder %v4001_v31, 8.507059e+37  ;;  %v3955_v55 = vadd.f32 %v9117_v2, %v9115_v54 }
0x1c13   :  { %v3984_v60 = vpop.f32.mrf.mxu3 }
0x1c14   :  { %v8056_v26 = vpop.eup %8055  ;;  %v3985_v51 = vadd.f32 1e-06, %v3984_v60 }
0x1c15   :  { %v3993_v45 = vmul.f32 %v8056_v26, %v3983_v63  ;;  %vm3998_vm12 = vweird.f32 %v8056_v26  ;;  %v3965_v63 = vmul.f32 %v9113_v52, %v8994_v37 }
0x1c16   :  { %8057 = vrcp.f32 %v3985_v51  ;;  %vm3999_vm14 = vmor %vm3997_vm13, %vm3998_vm12  ;;  %v4018_v14 = vand.u32 2147483648, %v3985_v51  ;;  %v4016_v41 = vand.u32 2147483647, %v3985_v51  ;;  %vm4012_vm4 = vweird.f32 %v3985_v51 }
0x1c17   :  { %v3994_v8 = vsub.f32 1.0, %v3993_v45 }
0x1c18   :  { %v4019_v43 = vor.u32 1.1754944e-38, %v4018_v14  ;;  %vm4017_vm6 = vcmp.eq.f32.partialorder %v4016_v41, 8.507059e+37 }
0x1c19   :  { %v3995_v19 = vmul.f32 %v8056_v26, %v3994_v8 }
0x1c1b   :  { %v3996_v40 = vadd.f32 %v8056_v26, %v3995_v19  ;;  %v3987_v46 = vpop.f32.mrf.mxu3 }
0x1c1c   :  { %v8058_v33 = vpop.eup %8057  ;;  %v3988_v59 = vadd.f32 1e-06, %v3987_v46 }
0x1c1d   :  { %v4008_v56 = vmul.f32 %v8058_v33, %v3985_v51  ;;  %v4000_v9 = vsel %vm3999_vm14, %v8056_v26, %v3996_v40  ;;  %vm4013_vm3 = vweird.f32 %v8058_v33 }
0x1c1e   :  { %8059 = vrcp.f32 %v3988_v59  ;;  %v4005_v22 = vsel %vm4002_vm15, %v4004_v7, %v4000_v9  ;;  %vm4014_vm5 = vmor %vm4012_vm4, %vm4013_vm3  ;;  %v4033_v35 = vand.u32 2147483648, %v3988_v59  ;;  %v4031_v12 = vand.u32 2147483647, %v3988_v59 }
0x1c1f   :  { %v4009_v36 = vsub.f32 1.0, %v4008_v56  ;;  %v9124_v34 = vmul.f32 %v4005_v22, %v3963_v1  ;;  %vm4027_vm8 = vweird.f32 %v3988_v59 }
0x1c20   :  { %v4034_v29 = vor.u32 1.1754944e-38, %v4033_v35  ;;  %vm4032_vm10 = vcmp.eq.f32.partialorder %v4031_v12, 8.507059e+37 }
0x1c21   :  { %v4010_v18 = vmul.f32 %v8058_v33, %v4009_v36  ;;  %v4052_v28 = vpack.c.bf16 %v9124_v34, %v9124_v34 }
0x1c23   :  { %v3989_v15 = vpop.f32.mrf.mxu3  ;;  %v4011_v48 = vadd.f32 %v8058_v33, %v4010_v18  ;;  %4056 = vst.msk [vmem:[#allocation2 + $0x38] sm:$0xf] %vm297_vm0, %v4052_v28  ;;  %v4072_v38 = vunpack.c.l.b16 %v4052_v28 }
0x1c24   :  { %v8060_v4 = vpop.eup %8059  ;;  %v3990_v6 = vadd.f32 1e-06, %v3989_v15 }
0x1c25   :  { %v4023_v20 = vmul.f32 %v8060_v4, %v3988_v59  ;;  %v4015_v57 = vsel %vm4014_vm5, %v8058_v33, %v4011_v48  ;;  %vm4028_vm7 = vweird.f32 %v8060_v4  ;;  %v3966_v59 = vmul.f32 %v3955_v55, %v8999_v62  ;;  %v7415_v48 = vld [vmem:[#allocation2 + $0x54] sm:$0xf0] }
0x1c26   :  { %8061 = vrcp.f32 %v3990_v6  ;;  %v4020_v5 = vsel %vm4017_vm6, %v4019_v43, %v4015_v57  ;;  %vm4029_vm9 = vmor %vm4027_vm8, %vm4028_vm7  ;;  %v4048_v31 = vand.u32 2147483648, %v3990_v6  ;;  %v4046_v46 = vand.u32 2147483647, %v3990_v6  ;;  %v7832_v43 = vld [vmem:[#allocation2 + $0x4c] sm:$0xf] }
0x1c27   :  { %v4024_v58 = vsub.f32 1.0, %v4023_v20  ;;  %v9130_v53 = vmul.f32 %v4020_v5, %v3964_v16  ;;  %vm4042_vm12 = vweird.f32 %v3990_v6  ;;  %v7418_v20 = vor.u32 %v7832_v43, %v7415_v48  ;;  %v7403_v57 = vld [vmem:[#allocation2 + $0x3c] sm:$0xf0]  ;;  %v7829_v16 = vld [vmem:[#allocation2 + $0x34] sm:$0xf] }
0x1c28   :  { %v4049_v33 = vor.u32 1.1754944e-38, %v4048_v31  ;;  %vm4047_vm14 = vcmp.eq.f32.partialorder %v4046_v46, 8.507059e+37 }
0x1c29   :  { %v4025_v27 = vmul.f32 %v8060_v4, %v4024_v58  ;;  %v4053_v17 = vpack.c.bf16 %v9130_v53, %v9130_v53  ;;  %v7406_v58 = vor.u32 %v7829_v16, %v7403_v57 }
0x1c2a   :  { %v7354_v11 = vld [vmem:[#allocation2 + $0x38] sm:$0xf] }
0x1c2b   :  { %v4026_v30 = vadd.f32 %v8060_v4, %v4025_v27  ;;  %4057 = vst.msk [vmem:[#allocation2 + $0x44] sm:$0xf] %vm297_vm0, %v4053_v17  ;;  %v4073_v32 = vunpack.c.l.b16 %v4053_v17 }
0x1c2c   :  { %v8062_v3 = vpop.eup %8061 }
0x1c2d   :  { %v4030_v60 = vsel %vm4029_vm9, %v8060_v4, %v4026_v30  ;;  %v4038_v26 = vmul.f32 %v8062_v3, %v3990_v6  ;;  %v9137_v51 = vpack.c.b16 %v4073_v32, %v4072_v38  ;;  %vm4043_vm11 = vweird.f32 %v8062_v3 }
0x1c2e   :  { %v4035_v45 = vsel %vm4032_vm10, %v4034_v29, %v4030_v60  ;;  %vm4044_vm13 = vmor %vm4042_vm12, %vm4043_vm11 }
0x1c2f   :  { %v4039_v8 = vsub.f32 1.0, %v4038_v26  ;;  %v9139_v19 = vmul.f32 %v4035_v45, %v3965_v63  ;;  %4080 = vxpose.xlu1.c.b16.start [1/2] (short) (narrow) %v9137_v51, 16 }
0x1c31   :  { %v4040_v40 = vmul.f32 %v8062_v3, %v4039_v8  ;;  %v4054_v37 = vpack.c.bf16 %v9139_v19, %v9139_v19 }
0x1c32   :  { %v7819_v62 = vld [vmem:[#allocation2 + $0x40] sm:$0xf0] }
0x1c33   :  { %v4041_v52 = vadd.f32 %v8062_v3, %v4040_v40  ;;  %4058 = vst.msk [vmem:[#allocation2 + $0x50] sm:$0xf] %vm297_vm0, %v4054_v37  ;;  %v4074_v9 = vunpack.c.l.b16 %v4054_v37  ;;  %v7355_v41 = vor.u32 %v7819_v62, %v7354_v11 }
0x1c35   :  { %v4045_v7 = vsel %vm4044_vm13, %v8062_v3, %v4041_v52 }
0x1c36   :  { %v4050_v54 = vsel %vm4047_vm14, %v4049_v33, %v4045_v7 }
0x1c37   :  { %v9148_v2 = vmul.f32 %v4050_v54, %v3966_v59 }
0x1c39   :  { %v4055_v56 = vpack.c.bf16 %v9148_v2, %v9148_v2 }
0x1c3a   :  { %v7366_v22 = vld [vmem:[#allocation2 + $0x50] sm:$0xf] }
0x1c3b   :  { %4059 = vst.msk [vmem:[#allocation2 + $0x5c] sm:$0xf] %vm297_vm0, %v4055_v56  ;;  %v4075_v1 = vunpack.c.l.b16 %v4055_v56 }
0x1c3d   :  { %v9153_v36 = vpack.c.b16 %v4075_v1, %v4074_v9 }
0x1c3f   :  { %4081 = vxpose.xlu1.c.b16.end [2/2] (short) (narrow) %v9153_v36, 16 }
0x1c42   :  { %v7822_v18 = vld [vmem:[#allocation2 + $0x58] sm:$0xf0] }
0x1c43   :  { %v7367_v14 = vor.u32 %v7822_v18, %v7366_v22 }
0x1c45   :  { %4165 = vmatpush.bf16.msrb.mxu3 %v7367_v14 }
0x1c49   :  { %4166 = vmatpush.bf16.msrb.mxu3 %v7355_v41 }
0x1cdb   :  { %v4088_v28 = vpop.trf.xlu1 }
0x1cdc   :  { %7368 = vmatmul.msk.bf16.vlgmr.msra.gmra.mxu0 %vm99_vm1, %v4088_v28  ;;  %7370 = vmatmul.msk.bf16.vlgmr.msrb.gmra.mxu3 %vm99_vm1, %v4088_v28 }
0x1cdd   :  { %4188 = vmatpush.bf16.msra.mxu0 %v9110_v23 }
0x1cec   :  { %7369 = vmatmul.msk.bf16.vlgmr.msrb.gmra.mxu0 %vm99_vm1, %v4088_v28 }
0x1d59   :  { %v4140_v5 = vpop.f32.mrf.mxu0 }
0x1d5a   :  { %v4174_v7 = vmul.f32 %v4140_v5, %v9092_v47 }
0x1d5f   :  { %v4168_v15 = vpop.f32.mrf.mxu3 }
0x1d61   :  { %v9162_v35 = vpop.f32.mrf.mxu0 }
0x1d67   :  { %v4170_v4 = vpop.f32.mrf.mxu3 }
0x1d68   :  { %v4173_v6 = vpack.c.bf16 %v4170_v4, %v4168_v15 }
0x1d69   :  { %v4154_v23 = vpop.f32.mrf.mxu0 }
0x1d6a   :  { %7371 = vmatmul.msk.bf16.vlgmr.msra.gmra.mxu0 %vm391_vm2, %v4173_v6  ;;  %7372 = vmatmul.msk.bf16.vlgmr.msrb.gmra.mxu1 %vm391_vm2, %v4173_v6  ;;  %v4175_v9 = vmul.f32 %v4154_v23, %v9094_v49 }
0x1d6b   :  { %4556 = vmatpush.bf16.msrb.mxu1 %v7418_v20 }
0x1d6f   :  { %4557 = vmatpush.bf16.msrb.mxu1 %v7406_v58 }
0x1d71   :  { %v9164_v27 = vpop.f32.mrf.mxu0 }
0x1de7   :  { %v4190_v12 = vpop.f32.mrf.mxu0  ;;  %v4204_v17 = vpop.f32.mrf.mxu1 }
0x1de8   :  { %v4191_v30 = vadd.f32 1e-06, %v4190_v12  ;;  %v4205_v3 = vadd.f32 1e-06, %v4204_v17 }
0x1dea   :  { %8063 = vrcp.f32 %v4191_v30  ;;  %v4220_v31 = vand.u32 2147483648, %v4191_v30  ;;  %v4218_v37 = vand.u32 2147483647, %v4191_v30  ;;  %v4235_v52 = vand.u32 2147483648, %v4205_v3 }
0x1deb   :  { %8065 = vrcp.f32 %v4205_v3  ;;  %v4233_v59 = vand.u32 2147483647, %v4205_v3  ;;  %vm4214_vm4 = vweird.f32 %v4191_v30  ;;  %vm4229_vm6 = vweird.f32 %v4205_v3 }
0x1dec   :  { %v4221_v1 = vor.u32 1.1754944e-38, %v4220_v31  ;;  %vm4219_vm7 = vcmp.eq.f32.partialorder %v4218_v37, 8.507059e+37  ;;  %v4236_v62 = vor.u32 1.1754944e-38, %v4235_v52  ;;  %v7845_v52 = vld [vmem:[#allocation2 + $0x50] sm:$0xf0] }
0x1ded   :  { %vm4234_vm9 = vcmp.eq.f32.partialorder %v4233_v59, 8.507059e+37  ;;  %v7823_v59 = vld [vmem:[#allocation3 + $0x34] sm:$0xf] }
0x1def   :  { %v4192_v29 = vpop.f32.mrf.mxu0  ;;  %v4206_v38 = vpop.f32.mrf.mxu1 }
0x1df0   :  { %v8064_v32 = vpop.eup %8063  ;;  %v4193_v63 = vadd.f32 1e-06, %v4192_v29  ;;  %v9166_v60 = vadd.f32 1e-06, %v4206_v38 }
0x1df1   :  { %v8066_v26 = vpop.eup %8065  ;;  %v4210_v45 = vmul.f32 %v8064_v32, %v4191_v30  ;;  %vm4215_vm15 = vweird.f32 %v8064_v32 }
0x1df2   :  { %v4225_v8 = vmul.f32 %v8066_v26, %v4205_v3  ;;  %8067 = vrcp.f32 %v4193_v63  ;;  %vm4230_vm3 = vweird.f32 %v8066_v26  ;;  %vm4216_vm5 = vmor %vm4214_vm4, %vm4215_vm15  ;;  %v4250_v49 = vand.u32 2147483648, %v4193_v63 }
0x1df3   :  { %v4211_v55 = vsub.f32 1.0, %v4210_v45  ;;  %8069 = vrcp.f32 %v9166_v60  ;;  %vm4231_vm8 = vmor %vm4229_vm6, %vm4230_vm3  ;;  %v4248_v57 = vand.u32 2147483647, %v4193_v63  ;;  %v4265_v16 = vand.u32 2147483648, %v9166_v60 }
0x1df4   :  { %v4226_v40 = vsub.f32 1.0, %v4225_v8  ;;  %v4263_v5 = vand.u32 2147483647, %v9166_v60  ;;  %vm4244_vm12 = vweird.f32 %v4193_v63  ;;  %v4251_v17 = vor.u32 1.1754944e-38, %v4250_v49 }
0x1df5   :  { %v4212_v46 = vmul.f32 %v8064_v32, %v4211_v55  ;;  %vm4259_vm14 = vweird.f32 %v9166_v60  ;;  %v4176_v3 = vmul.f32 %v9162_v35, %v9104_v50  ;;  %vm4249_vm15 = vcmp.eq.f32.partialorder %v4248_v57, 8.507059e+37 }
0x1df6   :  { %v4227_v33 = vmul.f32 %v8066_v26, %v4226_v40  ;;  %v4266_v38 = vor.u32 1.1754944e-38, %v4265_v16  ;;  %vm4264_vm4 = vcmp.eq.f32.partialorder %v4263_v5, 8.507059e+37 }
0x1df7   :  { %v4213_v54 = vadd.f32 %v8064_v32, %v4212_v46 }
0x1df8   :  { %v8068_v56 = vpop.eup %8067  ;;  %v4228_v22 = vadd.f32 %v8066_v26, %v4227_v33  ;;  %v7375_v33 = vld [vmem:[#allocation3 + $0x30] sm:$0xf] }
0x1df9   :  { %v8070_v18 = vpop.eup %8069  ;;  %v4217_v14 = vsel %vm4216_vm5, %v8064_v32, %v4213_v54  ;;  %v4240_v11 = vmul.f32 %v8068_v56, %v4193_v63  ;;  %vm4245_vm10 = vweird.f32 %v8068_v56  ;;  %v4177_v32 = vmul.f32 %v9164_v27, %v9106_v39  ;;  %v7824_v39 = vld [vmem:[#allocation3 + $0x34] sm:$0xf0]  ;;  %v7377_v27 = vld [vmem:[#allocation3 + $0x38] sm:$0xf0] }
0x1dfa   :  { %v4222_v41 = vsel %vm4219_vm7, %v4221_v1, %v4217_v14  ;;  %v4232_v28 = vsel %vm4231_vm8, %v8066_v26, %v4228_v22  ;;  %v4255_v47 = vmul.f32 %v8070_v18, %v9166_v60  ;;  %vm4260_vm11 = vweird.f32 %v8070_v18  ;;  %vm4246_vm13 = vmor %vm4244_vm12, %vm4245_vm10  ;;  %v7842_v1 = vld [vmem:[#allocation2 + $0x38] sm:$0xf0]  ;;  %v7456_v22 = vld [vmem:[#allocation2 + $0x30] sm:$0xf] }
0x1dfb   :  { %v4237_v15 = vsel %vm4234_vm9, %v4236_v62, %v4232_v28  ;;  %v4241_v48 = vsub.f32 1.0, %v4240_v11  ;;  %v9172_v4 = vmul.f32 %v4222_v41, %v4174_v7  ;;  %vm4261_vm3 = vmor %vm4259_vm14, %vm4260_vm11  ;;  %v7376_v7 = vor.u32 %v7824_v39, %v7375_v33  ;;  %v7826_v14 = vld [vmem:[#allocation3 + $0x44] sm:$0xf0]  ;;  %v7385_v62 = vld [vmem:[#allocation3 + $0x48] sm:$0xf0] }
0x1dfc   :  { %v4256_v6 = vsub.f32 1.0, %v4255_v47  ;;  %v9174_v43 = vmul.f32 %v4237_v15, %v4175_v9  ;;  %v7380_v54 = vor.u32 %v7823_v59, %v7377_v27  ;;  %v7383_v11 = vld [vmem:[#allocation3 + $0x40] sm:$0xf]  ;;  %v7825_v41 = vld [vmem:[#allocation3 + $0x44] sm:$0xf] }
0x1dfd   :  { %v4242_v20 = vmul.f32 %v8068_v56, %v4241_v48  ;;  %v7384_v28 = vor.u32 %v7826_v14, %v7383_v11  ;;  %v7388_v47 = vor.u32 %v7825_v41, %v7385_v62 }
0x1dfe   :  { %v4257_v58 = vmul.f32 %v8070_v18, %v4256_v6  ;;  %v4269_v23 = vpack.c.bf16 %v9174_v43, %v9172_v4 }
0x1dff   :  { %v4243_v12 = vadd.f32 %v8068_v56, %v4242_v20 }
0x1e00   :  { %v4258_v30 = vadd.f32 %v8070_v18, %v4257_v58  ;;  %4271 = vst [vmem:[#allocation3 + $0x50] sm:$0xff] %v4269_v23  ;;  %v4311_v50 = vunpack.c.l.b16 %v4269_v23  ;;  %v4312_v31 = vunpack.c.h.b16 %v4269_v23 }
0x1e01   :  { %v4247_v29 = vsel %vm4246_vm13, %v8068_v56, %v4243_v12  ;;  %v7468_v56 = vld [vmem:[#allocation2 + $0x48] sm:$0xf] }
0x1e02   :  { %v4262_v26 = vsel %vm4261_vm3, %v8070_v18, %v4258_v30  ;;  %v4252_v45 = vsel %vm4249_vm15, %v4251_v17, %v4247_v29  ;;  %v7469_v9 = vor.u32 %v7845_v52, %v7468_v56  ;;  %v7457_v18 = vor.u32 %v7842_v1, %v7456_v22 }
0x1e03   :  { %v9185_v63 = vmul.f32 %v4252_v45, %v4176_v3  ;;  %v4267_v8 = vsel %vm4264_vm4, %v4266_v38, %v4262_v26 }
0x1e04   :  { %v9187_v55 = vmul.f32 %v4267_v8, %v4177_v32 }
0x1e06   :  { %v4270_v60 = vpack.c.bf16 %v9187_v55, %v9185_v63 }
0x1e07   :  { %v7391_v49 = vld [vmem:[#allocation3 + $0x50] sm:$0xf]  ;;  %v7827_v6 = vld [vmem:[#allocation3 + $0x54] sm:$0xf] }
0x1e08   :  { %4272 = vst [vmem:[#allocation3 + $0x58] sm:$0xff] %v4270_v60  ;;  %v4313_v35 = vunpack.c.l.b16 %v4270_v60  ;;  %v4314_v40 = vunpack.c.h.b16 %v4270_v60 }
0x1e0a   :  { %v9191_v46 = vpack.c.b16 %v4313_v35, %v4311_v50  ;;  %v4316_v37 = vpack.c.b16 %v4314_v40, %v4312_v31 }
0x1e0c   :  { %4326 = vmatpush.bf16.xpose.msrb.mxu2 %v9191_v46  ;;  %4350 = vmatpush.bf16.xpose.msra.mxu3 %v4316_v37 }
0x1e0f   :  { %v7828_v15 = vld [vmem:[#allocation3 + $0x54] sm:$0xf0]  ;;  %v7393_v48 = vld [vmem:[#allocation3 + $0x58] sm:$0xf0] }
0x1e10   :  { %v7392_v20 = vor.u32 %v7828_v15, %v7391_v49  ;;  %v7396_v57 = vor.u32 %v7827_v6, %v7393_v48 }
0x1e13   :  { %4327 = vmatmul.bf16.vlgmr.msrb.gmra.mxu2 %v7376_v7  ;;  %4351 = vmatmul.bf16.vlgmr.msra.gmra.mxu3 %v7380_v54 }
0x1e14   :  { %4607 = vmatpush.bf16.msra.mxu2 %v4316_v37 }
0x1e18   :  { %4947 = vmatpush.bf16.msrb.mxu2 %v7469_v9 }
0x1e1c   :  { %4948 = vmatpush.bf16.msrb.mxu2 %v7457_v18 }
0x1e23   :  { %4332 = vmatmul.bf16.gmra.mxu2 %v7384_v28  ;;  %4356 = vmatmul.bf16.gmra.mxu3 %v7388_v47 }
0x1e33   :  { %4337 = vmatmul.bf16.gmra.mxu2 %v7392_v20  ;;  %4361 = vmatmul.bf16.gmra.mxu3 %v7396_v57 }
0x1e96   :  { %v4328_v16 = vpop.f32.mrf.mxu2  ;;  %v4352_v58 = vpop.f32.mrf.mxu3 }
0x1e97   :  { %v4353_v5 = vadd.f32 %v4352_v58, %v4328_v16 }
0x1e99   :  { %v4368_v14 = vmul.f32 %v4353_v5, %v9124_v34 }
0x1e9e   :  { %v4330_v23 = vpop.f32.mrf.mxu2  ;;  %v4354_v12 = vpop.f32.mrf.mxu3 }
0x1e9f   :  { %v4355_v47 = vadd.f32 %v4354_v12, %v4330_v23 }
0x1ea1   :  { %v4369_v58 = vmul.f32 %v4355_v47, %v9130_v53 }
0x1ea6   :  { %v4333_v17 = vpop.f32.mrf.mxu2  ;;  %v4357_v30 = vpop.f32.mrf.mxu3 }
0x1ea7   :  { %v9194_v3 = vadd.f32 %v4357_v30, %v4333_v17 }
0x1eae   :  { %v9196_v29 = vpop.f32.mrf.mxu2  ;;  %v9198_v38 = vpop.f32.mrf.mxu3 }
0x1eb6   :  { %v4338_v32 = vpop.f32.mrf.mxu2  ;;  %v4362_v26 = vpop.f32.mrf.mxu3 }
0x1eb7   :  { %v4363_v60 = vadd.f32 %v4362_v26, %v4338_v32 }
0x1ebe   :  { %v4340_v45 = vpop.f32.mrf.mxu2  ;;  %v4364_v8 = vpop.f32.mrf.mxu3 }
0x1ebf   :  { %v4365_v50 = vadd.f32 %v4364_v8, %v4340_v45 }
0x1ec1   :  { %v4367_v35 = vpack.c.bf16 %v4365_v50, %v4363_v60 }
0x1ec3   :  { %4385 = vmatpush.bf16.msrb.mxu0 %v4367_v35 }
0x1ec6   :  { %7397 = vmatmul.msk.bf16.vlgmr.msrb.gmra.mxu0 %vm391_vm2, %v9137_v51 }
0x1ed6   :  { %7398 = vmatmul.msk.bf16.gmra.mxu0 %vm391_vm2, %v9153_v36 }
0x1f43   :  { %v4387_v31 = vpop.f32.mrf.mxu0 }
0x1f44   :  { %v4388_v40 = vadd.f32 1e-06, %v4387_v31  ;;  %v4370_v31 = vmul.f32 %v9194_v3, %v9139_v19 }
0x1f46   :  { %8071 = vrcp.f32 %v4388_v40  ;;  %v4408_v7 = vand.u32 2147483648, %v4388_v40  ;;  %v4406_v54 = vand.u32 2147483647, %v4388_v40  ;;  %vm4402_vm6 = vweird.f32 %v4388_v40 }
0x1f48   :  { %v4409_v18 = vor.u32 1.1754944e-38, %v4408_v7  ;;  %vm4407_vm8 = vcmp.eq.f32.partialorder %v4406_v54, 8.507059e+37  ;;  %v4360_v7 = vadd.f32 %v9198_v38, %v9196_v29 }
0x1f4b   :  { %v4389_v37 = vpop.f32.mrf.mxu0 }
0x1f4c   :  { %v8072_v39 = vpop.eup %8071  ;;  %v4390_v27 = vadd.f32 1e-06, %v4389_v37 }
0x1f4d   :  { %v4398_v52 = vmul.f32 %v8072_v39, %v4388_v40  ;;  %vm4403_vm5 = vweird.f32 %v8072_v39 }
0x1f4e   :  { %8073 = vrcp.f32 %v4390_v27  ;;  %vm4404_vm7 = vmor %vm4402_vm6, %vm4403_vm5  ;;  %v4423_v28 = vand.u32 2147483648, %v4390_v27  ;;  %v4421_v48 = vand.u32 2147483647, %v4390_v27  ;;  %vm4417_vm10 = vweird.f32 %v4390_v27 }
0x1f4f   :  { %v4399_v33 = vsub.f32 1.0, %v4398_v52 }
0x1f50   :  { %v4424_v34 = vor.u32 1.1754944e-38, %v4423_v28  ;;  %vm4422_vm12 = vcmp.eq.f32.partialorder %v4421_v48, 8.507059e+37 }
0x1f51   :  { %v4400_v59 = vmul.f32 %v8072_v39, %v4399_v33 }
0x1f53   :  { %v4392_v56 = vpop.f32.mrf.mxu0  ;;  %v4401_v9 = vadd.f32 %v8072_v39, %v4400_v59 }
0x1f54   :  { %v8074_v51 = vpop.eup %8073  ;;  %v4393_v1 = vadd.f32 1e-06, %v4392_v56 }
0x1f55   :  { %v4413_v36 = vmul.f32 %v8074_v51, %v4390_v27  ;;  %v4405_v22 = vsel %vm4404_vm7, %v8072_v39, %v4401_v9  ;;  %vm4418_vm9 = vweird.f32 %v8074_v51 }
0x1f56   :  { %8075 = vrcp.f32 %v4393_v1  ;;  %v4410_v11 = vsel %vm4407_vm8, %v4409_v18, %v4405_v22  ;;  %vm4419_vm11 = vmor %vm4417_vm10, %vm4418_vm9  ;;  %v4438_v32 = vand.u32 2147483648, %v4393_v1  ;;  %v4436_v45 = vand.u32 2147483647, %v4393_v1 }
0x1f57   :  { %v4414_v62 = vsub.f32 1.0, %v4413_v36  ;;  %v9205_v41 = vmul.f32 %v4410_v11, %v4368_v14  ;;  %vm4432_vm14 = vweird.f32 %v4393_v1 }
0x1f58   :  { %v4439_v40 = vor.u32 1.1754944e-38, %v4438_v32  ;;  %vm4437_vm3 = vcmp.eq.f32.partialorder %v4436_v45, 8.507059e+37 }
0x1f59   :  { %v4415_v15 = vmul.f32 %v8074_v51, %v4414_v62  ;;  %v4457_v49 = vpack.c.bf16 %v9205_v41, %v9205_v41 }
0x1f5b   :  { %v4394_v6 = vpop.f32.mrf.mxu0  ;;  %v4416_v20 = vadd.f32 %v8074_v51, %v4415_v15  ;;  %4461 = vst.msk [vmem:[#allocation2 + $0x38] sm:$0xf] %vm297_vm0, %v4457_v49  ;;  %v4477_v53 = vunpack.c.l.b16 %v4457_v49 }
0x1f5c   :  { %v8076_v57 = vpop.eup %8075  ;;  %v4395_v16 = vadd.f32 1e-06, %v4394_v6 }
0x1f5d   :  { %v4428_v5 = vmul.f32 %v8076_v57, %v4393_v1  ;;  %v4420_v17 = vsel %vm4419_vm11, %v8074_v51, %v4416_v20  ;;  %vm4433_vm13 = vweird.f32 %v8076_v57  ;;  %v4371_v1 = vmul.f32 %v4360_v7, %v9148_v2  ;;  %v7470_v20 = vld [vmem:[#allocation2 + $0x54] sm:$0xf0] }
0x1f5e   :  { %8077 = vrcp.f32 %v4395_v16  ;;  %v4425_v23 = vsel %vm4422_vm12, %v4424_v34, %v4420_v17  ;;  %vm4434_vm15 = vmor %vm4432_vm14, %vm4433_vm13  ;;  %v4453_v54 = vand.u32 2147483648, %v4395_v16  ;;  %v4451_v19 = vand.u32 2147483647, %v4395_v16  ;;  %v7844_v34 = vld [vmem:[#allocation2 + $0x4c] sm:$0xf] }
0x1f5f   :  { %v4429_v12 = vsub.f32 1.0, %v4428_v5  ;;  %v9211_v30 = vmul.f32 %v4425_v23, %v4369_v58  ;;  %vm4447_vm5 = vweird.f32 %v4395_v16  ;;  %v7473_v58 = vor.u32 %v7844_v34, %v7470_v20  ;;  %v7458_v5 = vld [vmem:[#allocation2 + $0x3c] sm:$0xf0]  ;;  %v7841_v17 = vld [vmem:[#allocation2 + $0x34] sm:$0xf] }
0x1f60   :  { %v4454_v51 = vor.u32 1.1754944e-38, %v4453_v54  ;;  %vm4452_vm7 = vcmp.eq.f32.partialorder %v4451_v19, 8.507059e+37  ;;  %v7461_v23 = vor.u32 %v7841_v17, %v7458_v5 }
0x1f61   :  { %v4430_v26 = vmul.f32 %v8076_v57, %v4429_v12  ;;  %v4458_v8 = vpack.c.bf16 %v9211_v30, %v9211_v30 }
0x1f62   :  { %v7409_v15 = vld [vmem:[#allocation2 + $0x38] sm:$0xf] }
0x1f63   :  { %v4431_v60 = vadd.f32 %v8076_v57, %v4430_v26  ;;  %4462 = vst.msk [vmem:[#allocation2 + $0x44] sm:$0xf] %vm297_vm0, %v4458_v8  ;;  %v4478_v50 = vunpack.c.l.b16 %v4458_v8 }
0x1f64   :  { %v8078_v35 = vpop.eup %8077 }
0x1f65   :  { %v4443_v37 = vmul.f32 %v8078_v35, %v4395_v16  ;;  %v9218_v39 = vpack.c.b16 %v4478_v50, %v4477_v53  ;;  %v4435_v27 = vsel %vm4434_vm15, %v8076_v57, %v4431_v60  ;;  %vm4448_vm4 = vweird.f32 %v8078_v35 }
0x1f66   :  { %v4440_v52 = vsel %vm4437_vm3, %v4439_v40, %v4435_v27  ;;  %vm4449_vm6 = vmor %vm4447_vm5, %vm4448_vm4 }
0x1f67   :  { %v4444_v33 = vsub.f32 1.0, %v4443_v37  ;;  %4485 = vxpose.xlu2.c.b16.start [1/2] (short) (narrow) %v9218_v39, 16  ;;  %v9221_v59 = vmul.f32 %v4440_v52, %v4370_v31 }
0x1f69   :  { %v4445_v56 = vmul.f32 %v8078_v35, %v4444_v33  ;;  %v4459_v3 = vpack.c.bf16 %v9221_v59, %v9221_v59 }
0x1f6a   :  { %v7831_v2 = vld [vmem:[#allocation2 + $0x40] sm:$0xf0] }
0x1f6b   :  { %v4446_v9 = vadd.f32 %v8078_v35, %v4445_v56  ;;  %4463 = vst.msk [vmem:[#allocation2 + $0x50] sm:$0xf] %vm297_vm0, %v4459_v3  ;;  %v4479_v38 = vunpack.c.l.b16 %v4459_v3  ;;  %v7410_v48 = vor.u32 %v7831_v2, %v7409_v15 }
0x1f6d   :  { %v4450_v36 = vsel %vm4449_vm6, %v8078_v35, %v4446_v9 }
0x1f6e   :  { %v4455_v22 = vsel %vm4452_vm7, %v4454_v51, %v4450_v36 }
0x1f6f   :  { %v9229_v18 = vmul.f32 %v4455_v22, %v4371_v1  ;;  %v7430_v1 = vld [vmem:[#allocation3 + $0x30] sm:$0xf] }
0x1f71   :  { %v4460_v29 = vpack.c.bf16 %v9229_v18, %v9229_v18 }
0x1f72   :  { %v7421_v11 = vld [vmem:[#allocation2 + $0x50] sm:$0xf] }
0x1f73   :  { %4464 = vst.msk [vmem:[#allocation2 + $0x5c] sm:$0xf] %vm297_vm0, %v4460_v29  ;;  %v4480_v14 = vunpack.c.l.b16 %v4460_v29 }
0x1f75   :  { %v9234_v62 = vpack.c.b16 %v4480_v14, %v4479_v38 }
0x1f77   :  { %4486 = vxpose.xlu2.c.b16.end [2/2] (short) (narrow) %v9234_v62, 16 }
0x1f7a   :  { %v7834_v28 = vld [vmem:[#allocation2 + $0x58] sm:$0xf0] }
0x1f7b   :  { %v7422_v47 = vor.u32 %v7834_v28, %v7421_v11 }
0x1f7d   :  { %4570 = vmatpush.bf16.msra.mxu0 %v7422_v47 }
0x1f81   :  { %4571 = vmatpush.bf16.msra.mxu0 %v7410_v48 }
0x2008   :  { %v4493_v49 = vpop.trf.xlu2 }
0x2009   :  { %7423 = vmatmul.msk.bf16.vlgmr.msra.gmra.mxu1 %vm99_vm1, %v4493_v49  ;;  %7425 = vmatmul.msk.bf16.vlgmr.msra.gmra.mxu0 %vm99_vm1, %v4493_v49 }
0x200a   :  { %4593 = vmatpush.bf16.msra.mxu1 %v9191_v46 }
0x2019   :  { %7424 = vmatmul.msk.bf16.vlgmr.msrb.gmra.mxu1 %vm99_vm1, %v4493_v49 }
0x2086   :  { %v4573_v6 = vpop.f32.mrf.mxu0  ;;  %v4545_v12 = vpop.f32.mrf.mxu1 }
0x2087   :  { %v4579_v47 = vmul.f32 %v4545_v12, %v9172_v4 }
0x208e   :  { %v4575_v57 = vpop.f32.mrf.mxu0  ;;  %v9243_v32 = vpop.f32.mrf.mxu1 }
0x208f   :  { %v4578_v16 = vpack.c.bf16 %v4575_v57, %v4573_v6 }
0x2091   :  { %7426 = vmatmul.msk.bf16.vlgmr.msra.gmra.mxu1 %vm391_vm2, %v4578_v16  ;;  %7427 = vmatmul.msk.bf16.vlgmr.msra.gmra.mxu2 %vm391_vm2, %v4578_v16 }
0x2092   :  { %4961 = vmatpush.bf16.msra.mxu2 %v7473_v58 }
0x2096   :  { %4962 = vmatpush.bf16.msra.mxu2 %v7461_v23  ;;  %v4559_v46 = vpop.f32.mrf.mxu1 }
0x2097   :  { %v4580_v48 = vmul.f32 %v4559_v46, %v9174_v43 }
0x209e   :  { %v9245_v26 = vpop.f32.mrf.mxu1 }
0x210e   :  { %v4595_v45 = vpop.f32.mrf.mxu1 }
0x210f   :  { %v4596_v8 = vadd.f32 1e-06, %v4595_v45 }
0x2111   :  { %8079 = vrcp.f32 %v4596_v8  ;;  %v4625_v19 = vand.u32 2147483648, %v4596_v8  ;;  %vm4619_vm9 = vweird.f32 %v4596_v8  ;;  %v4623_v9 = vand.u32 2147483647, %v4596_v8 }
0x2113   :  { %v4626_v11 = vor.u32 1.1754944e-38, %v4625_v19  ;;  %vm4624_vm12 = vcmp.eq.f32.partialorder %v4623_v9, 8.507059e+37 }
0x2114   :  { %v4609_v60 = vpop.f32.mrf.mxu2 }
0x2115   :  { %v4610_v53 = vadd.f32 1e-06, %v4609_v60 }
0x2116   :  { %v4597_v50 = vpop.f32.mrf.mxu1 }
0x2117   :  { %v8080_v35 = vpop.eup %8079  ;;  %8081 = vrcp.f32 %v4610_v53  ;;  %v4598_v40 = vadd.f32 1e-06, %v4597_v50  ;;  %v4640_v36 = vand.u32 2147483648, %v4610_v53  ;;  %v4638_v14 = vand.u32 2147483647, %v4610_v53 }
0x2118   :  { %v4615_v31 = vmul.f32 %v8080_v35, %v4596_v8  ;;  %vm4620_vm8 = vweird.f32 %v8080_v35  ;;  %vm4634_vm13 = vweird.f32 %v4610_v53 }
0x2119   :  { %8083 = vrcp.f32 %v4598_v40  ;;  %vm9247_vm10 = vmor %vm4619_vm9, %vm4620_vm8  ;;  %v4641_v6 = vor.u32 1.1754944e-38, %v4640_v36  ;;  %vm4639_vm15 = vcmp.eq.f32.partialorder %v4638_v14, 8.507059e+37  ;;  %vm4649_vm4 = vweird.f32 %v4598_v40  ;;  %v7835_v36 = vld [vmem:[#allocation3 + $0x34] sm:$0xf] }
0x211a   :  { %v4616_v37 = vsub.f32 1.0, %v4615_v31  ;;  %v4655_v5 = vand.u32 2147483648, %v4598_v40  ;;  %v4653_v17 = vand.u32 2147483647, %v4598_v40 }
0x211c   :  { %v4617_v27 = vmul.f32 %v8080_v35, %v4616_v37  ;;  %v4611_v52 = vpop.f32.mrf.mxu2  ;;  %vm4654_vm7 = vcmp.eq.f32.partialorder %v4653_v17, 8.507059e+37  ;;  %v4582_v37 = vmul.f32 %v9245_v26, %v9187_v55  ;;  %v7836_v55 = vld [vmem:[#allocation3 + $0x34] sm:$0xf0]  ;;  %v7857_v26 = vld [vmem:[#allocation2 + $0x50] sm:$0xf0] }
0x211d   :  { %v8082_v33 = vpop.eup %8081  ;;  %v4612_v7 = vadd.f32 1e-06, %v4611_v52 }
0x211e   :  { %v4618_v54 = vadd.f32 %v8080_v35, %v4617_v27  ;;  %v4630_v56 = vmul.f32 %v8082_v33, %v4610_v53  ;;  %vm4635_vm11 = vweird.f32 %v8082_v33  ;;  %v4656_v53 = vor.u32 1.1754944e-38, %v4655_v5 }
0x211f   :  { %8085 = vrcp.f32 %v4612_v7  ;;  %v8084_v3 = vpop.eup %8083  ;;  %vm4636_vm14 = vmor %vm4634_vm13, %vm4635_vm11  ;;  %v4668_v43 = vand.u32 2147483647, %v4612_v7  ;;  %v4670_v46 = vand.u32 2147483648, %v4612_v7  ;;  %vm4664_vm8 = vweird.f32 %v4612_v7 }
0x2120   :  { %v4631_v51 = vsub.f32 1.0, %v4630_v56  ;;  %v4645_v22 = vmul.f32 %v8084_v3, %v4598_v40  ;;  %v4622_v29 = vsel %vm9247_vm10, %v8080_v35, %v4618_v54  ;;  %vm4650_vm3 = vweird.f32 %v8084_v3 }
0x2121   :  { %v4627_v49 = vsel %vm4624_vm12, %v4626_v11, %v4622_v29  ;;  %vm4651_vm5 = vmor %vm4649_vm4, %vm4650_vm3  ;;  %v4671_v35 = vor.u32 1.1754944e-38, %v4670_v46  ;;  %v4581_v40 = vmul.f32 %v9243_v32, %v9185_v63  ;;  %vm4669_vm10 = vcmp.eq.f32.partialorder %v4668_v43, 8.507059e+37  ;;  %v7432_v32 = vld [vmem:[#allocation3 + $0x38] sm:$0xf0] }
0x2122   :  { %v4632_v38 = vmul.f32 %v8082_v33, %v4631_v51  ;;  %v4646_v28 = vsub.f32 1.0, %v4645_v22  ;;  %v9255_v23 = vmul.f32 %v4627_v49, %v4579_v47  ;;  %v7431_v22 = vor.u32 %v7836_v55, %v7430_v1  ;;  %v7854_v11 = vld [vmem:[#allocation2 + $0x38] sm:$0xf0]  ;;  %v7837_v49 = vld [vmem:[#allocation3 + $0x44] sm:$0xf] }
0x2123   :  { %v7435_v29 = vor.u32 %v7835_v36, %v7432_v32 }
0x2124   :  { %v4633_v2 = vadd.f32 %v8082_v33, %v4632_v38  ;;  %v4647_v20 = vmul.f32 %v8084_v3, %v4646_v28  ;;  %v7523_v38 = vld [vmem:[#allocation2 + $0x48] sm:$0xf]  ;;  %v7511_v28 = vld [vmem:[#allocation2 + $0x30] sm:$0xf] }
0x2125   :  { %v8086_v15 = vpop.eup %8085  ;;  %v7524_v14 = vor.u32 %v7857_v26, %v7523_v38  ;;  %v7512_v47 = vor.u32 %v7854_v11, %v7511_v28 }
0x2126   :  { %v4637_v57 = vsel %vm4636_vm14, %v8082_v33, %v4633_v2  ;;  %v4660_v16 = vmul.f32 %v8086_v15, %v4612_v7  ;;  %v4648_v58 = vadd.f32 %v8084_v3, %v4647_v20  ;;  %vm4665_vm6 = vweird.f32 %v8086_v15  ;;  %v7838_v2 = vld [vmem:[#allocation3 + $0x44] sm:$0xf0] }
0x2127   :  { %v4642_v34 = vsel %vm4639_vm15, %v4641_v6, %v4637_v57  ;;  %vm4666_vm9 = vmor %vm4664_vm8, %vm4665_vm6 }
0x2128   :  { %v4661_v4 = vsub.f32 1.0, %v4660_v16  ;;  %v9257_v12 = vmul.f32 %v4642_v34, %v4580_v48  ;;  %v4652_v45 = vsel %vm4651_vm5, %v8084_v3, %v4648_v58  ;;  %v7438_v48 = vld [vmem:[#allocation3 + $0x40] sm:$0xf] }
0x2129   :  { %v4657_v31 = vsel %vm4654_vm7, %v4656_v53, %v4652_v45  ;;  %v7439_v6 = vor.u32 %v7838_v2, %v7438_v48 }
0x212a   :  { %v4662_v8 = vmul.f32 %v8086_v15, %v4661_v4  ;;  %v4674_v60 = vpack.c.bf16 %v9257_v12, %v9255_v23  ;;  %v9265_v33 = vmul.f32 %v4657_v31, %v4581_v40 }
0x212c   :  { %v4663_v50 = vadd.f32 %v8086_v15, %v4662_v8  ;;  %4676 = vst [vmem:[#allocation3 + $0x50] sm:$0xff] %v4674_v60  ;;  %v4716_v56 = vunpack.c.l.b16 %v4674_v60  ;;  %v4717_v3 = vunpack.c.h.b16 %v4674_v60 }
0x212e   :  { %v4667_v27 = vsel %vm4666_vm9, %v8086_v15, %v4663_v50  ;;  %v7440_v15 = vld [vmem:[#allocation3 + $0x48] sm:$0xf0] }
0x212f   :  { %v4672_v52 = vsel %vm4669_vm10, %v4671_v35, %v4667_v27  ;;  %v7443_v20 = vor.u32 %v7837_v49, %v7440_v15 }
0x2130   :  { %v9267_v54 = vmul.f32 %v4672_v52, %v4582_v37 }
0x2132   :  { %v4675_v7 = vpack.c.bf16 %v9267_v54, %v9265_v33 }
0x2133   :  { %v7446_v34 = vld [vmem:[#allocation3 + $0x50] sm:$0xf]  ;;  %v7839_v58 = vld [vmem:[#allocation3 + $0x54] sm:$0xf] }
0x2134   :  { %4677 = vst [vmem:[#allocation3 + $0x58] sm:$0xff] %v4675_v7  ;;  %v4718_v19 = vunpack.c.l.b16 %v4675_v7  ;;  %v4719_v9 = vunpack.c.h.b16 %v4675_v7 }
0x2136   :  { %v9271_v51 = vpack.c.b16 %v4718_v19, %v4716_v56  ;;  %v4721_v63 = vpack.c.b16 %v4719_v9, %v4717_v3 }
0x2138   :  { %4731 = vmatpush.bf16.xpose.msrb.mxu3 %v9271_v51  ;;  %4755 = vmatpush.bf16.xpose.msrb.mxu0 %v4721_v63 }
0x213b   :  { %v7840_v57 = vld [vmem:[#allocation3 + $0x54] sm:$0xf0]  ;;  %v7448_v16 = vld [vmem:[#allocation3 + $0x58] sm:$0xf0] }
0x213c   :  { %v7447_v5 = vor.u32 %v7840_v57, %v7446_v34  ;;  %v7451_v17 = vor.u32 %v7839_v58, %v7448_v16 }
0x213f   :  { %4732 = vmatmul.bf16.vlgmr.msrb.gmra.mxu3 %v7431_v22  ;;  %4756 = vmatmul.bf16.vlgmr.msrb.gmra.mxu0 %v7435_v29 }
0x2140   :  { %5012 = vmatpush.bf16.msra.mxu3 %v4721_v63 }
0x2144   :  { %5352 = vmatpush.bf16.msrb.mxu3 %v7524_v14 }
0x2148   :  { %5353 = vmatpush.bf16.msrb.mxu3 %v7512_v47 }
0x214f   :  { %4737 = vmatmul.bf16.gmra.mxu3 %v7439_v6  ;;  %4761 = vmatmul.bf16.gmra.mxu0 %v7443_v20 }
0x215f   :  { %4742 = vmatmul.bf16.gmra.mxu3 %v7447_v5  ;;  %4766 = vmatmul.bf16.gmra.mxu0 %v7451_v17 }
0x21bc   :  { %v4757_v4 = vpop.f32.mrf.mxu0 }
0x21c2   :  { %v4733_v43 = vpop.f32.mrf.mxu3 }
0x21c3   :  { %v4758_v46 = vadd.f32 %v4757_v4, %v4733_v43 }
0x21c4   :  { %v4759_v45 = vpop.f32.mrf.mxu0 }
0x21c5   :  { %v4773_v2 = vmul.f32 %v4758_v46, %v9205_v41 }
0x21ca   :  { %v4735_v8 = vpop.f32.mrf.mxu3 }
0x21cb   :  { %v4760_v57 = vadd.f32 %v4759_v45, %v4735_v8 }
0x21cc   :  { %v4762_v60 = vpop.f32.mrf.mxu0 }
0x21d2   :  { %v4738_v53 = vpop.f32.mrf.mxu3 }
0x21d3   :  { %v9274_v50 = vadd.f32 %v4762_v60, %v4738_v53  ;;  %v4774_v60 = vmul.f32 %v4760_v57, %v9211_v30 }
0x21d4   :  { %v9276_v35 = vpop.f32.mrf.mxu0 }
0x21da   :  { %v9278_v31 = vpop.f32.mrf.mxu3 }
0x21dc   :  { %v4767_v40 = vpop.f32.mrf.mxu0 }
0x21e2   :  { %v4743_v37 = vpop.f32.mrf.mxu3 }
0x21e3   :  { %v4768_v7 = vadd.f32 %v4767_v40, %v4743_v37 }
0x21e4   :  { %v4769_v27 = vpop.f32.mrf.mxu0 }
0x21ea   :  { %v4745_v52 = vpop.f32.mrf.mxu3 }
0x21eb   :  { %v4770_v56 = vadd.f32 %v4769_v27, %v4745_v52 }
0x21ed   :  { %v4772_v19 = vpack.c.bf16 %v4770_v56, %v4768_v7 }
0x21ef   :  { %4790 = vmatpush.bf16.msrb.mxu1 %v4772_v19 }
0x21f2   :  { %7452 = vmatmul.msk.bf16.vlgmr.msrb.gmra.mxu1 %vm391_vm2, %v9218_v39 }
0x2202   :  { %7453 = vmatmul.msk.bf16.gmra.mxu1 %vm391_vm2, %v9234_v62 }
0x226f   :  { %v4792_v3 = vpop.f32.mrf.mxu1 }
0x2270   :  { %v4793_v9 = vadd.f32 1e-06, %v4792_v3 }
0x2272   :  { %8087 = vrcp.f32 %v4793_v9  ;;  %v4813_v22 = vand.u32 2147483648, %v4793_v9  ;;  %v4811_v29 = vand.u32 2147483647, %v4793_v9  ;;  %vm4807_vm12 = vweird.f32 %v4793_v9 }
0x2274   :  { %v4814_v62 = vor.u32 1.1754944e-38, %v4813_v22  ;;  %vm4812_vm14 = vcmp.eq.f32.partialorder %v4811_v29, 8.507059e+37  ;;  %v4765_v22 = vadd.f32 %v9276_v35, %v9278_v31 }
0x2277   :  { %v4794_v63 = vpop.f32.mrf.mxu1 }
0x2278   :  { %v8088_v55 = vpop.eup %8087  ;;  %v4795_v32 = vadd.f32 1e-06, %v4794_v63 }
0x2279   :  { %v4803_v26 = vmul.f32 %v8088_v55, %v4793_v9  ;;  %vm4808_vm11 = vweird.f32 %v8088_v55  ;;  %v4775_v9 = vmul.f32 %v9274_v50, %v9221_v59 }
0x227a   :  { %8089 = vrcp.f32 %v4795_v32  ;;  %vm4809_vm13 = vmor %vm4807_vm12, %vm4808_vm11  ;;  %v4828_v20 = vand.u32 2147483648, %v4795_v32  ;;  %v4826_v16 = vand.u32 2147483647, %v4795_v32  ;;  %vm4822_vm3 = vweird.f32 %v4795_v32 }
0x227b   :  { %v4804_v1 = vsub.f32 1.0, %v4803_v26 }
0x227c   :  { %v4829_v4 = vor.u32 1.1754944e-38, %v4828_v20  ;;  %vm4827_vm5 = vcmp.eq.f32.partialorder %v4826_v16, 8.507059e+37 }
0x227d   :  { %v4805_v36 = vmul.f32 %v8088_v55, %v4804_v1 }
0x227f   :  { %v4806_v38 = vadd.f32 %v8088_v55, %v4805_v36  ;;  %v4797_v14 = vpop.f32.mrf.mxu1 }
0x2280   :  { %v8090_v39 = vpop.eup %8089  ;;  %v4798_v11 = vadd.f32 1e-06, %v4797_v14 }
0x2281   :  { %v4818_v28 = vmul.f32 %v8090_v39, %v4795_v32  ;;  %v4810_v47 = vsel %vm4809_vm13, %v8088_v55, %v4806_v38  ;;  %vm4823_vm15 = vweird.f32 %v8090_v39 }
0x2282   :  { %8091 = vrcp.f32 %v4798_v11  ;;  %v4815_v48 = vsel %vm4812_vm14, %v4814_v62, %v4810_v47  ;;  %vm4824_vm4 = vmor %vm4822_vm3, %vm4823_vm15  ;;  %v4843_v53 = vand.u32 2147483648, %v4798_v11  ;;  %v4841_v27 = vand.u32 2147483647, %v4798_v11 }
0x2283   :  { %v4819_v15 = vsub.f32 1.0, %v4818_v28  ;;  %v9285_v49 = vmul.f32 %v4815_v48, %v4773_v2  ;;  %vm4837_vm7 = vweird.f32 %v4798_v11 }
0x2284   :  { %v4844_v19 = vor.u32 1.1754944e-38, %v4843_v53  ;;  %vm4842_vm9 = vcmp.eq.f32.partialorder %v4841_v27, 8.507059e+37 }
0x2285   :  { %v4820_v6 = vmul.f32 %v8090_v39, %v4819_v15  ;;  %v4862_v34 = vpack.c.bf16 %v9285_v49, %v9285_v49 }
0x2287   :  { %v4799_v58 = vpop.f32.mrf.mxu1  ;;  %v4821_v5 = vadd.f32 %v8090_v39, %v4820_v6  ;;  %4866 = vst.msk [vmem:[#allocation2 + $0x38] sm:$0xf] %vm297_vm0, %v4862_v34  ;;  %v4882_v30 = vunpack.c.l.b16 %v4862_v34 }
0x2288   :  { %v8092_v17 = vpop.eup %8091  ;;  %v4800_v41 = vadd.f32 1e-06, %v4799_v58 }
0x2289   :  { %v4833_v43 = vmul.f32 %v8092_v17, %v4798_v11  ;;  %v4825_v46 = vsel %vm4824_vm4, %v8090_v39, %v4821_v5  ;;  %vm4838_vm6 = vweird.f32 %v8092_v17  ;;  %v4776_v11 = vmul.f32 %v4765_v22, %v9229_v18  ;;  %v7525_v5 = vld [vmem:[#allocation2 + $0x54] sm:$0xf0] }
0x228a   :  { %8093 = vrcp.f32 %v4800_v41  ;;  %v4830_v8 = vsel %vm4827_vm5, %v4829_v4, %v4825_v46  ;;  %vm4839_vm8 = vmor %vm4837_vm7, %vm4838_vm6  ;;  %v4858_v29 = vand.u32 2147483648, %v4800_v41  ;;  %v4856_v14 = vand.u32 2147483647, %v4800_v41  ;;  %v7856_v4 = vld [vmem:[#allocation2 + $0x4c] sm:$0xf] }
0x228b   :  { %v4834_v45 = vsub.f32 1.0, %v4833_v43  ;;  %v9291_v40 = vmul.f32 %v4830_v8, %v4774_v60  ;;  %vm4852_vm11 = vweird.f32 %v4800_v41  ;;  %v7528_v43 = vor.u32 %v7856_v4, %v7525_v5  ;;  %v7513_v46 = vld [vmem:[#allocation2 + $0x3c] sm:$0xf0]  ;;  %v7853_v60 = vld [vmem:[#allocation2 + $0x34] sm:$0xf] }
0x228c   :  { %v4859_v39 = vor.u32 1.1754944e-38, %v4858_v29  ;;  %vm4857_vm13 = vcmp.eq.f32.partialorder %v4856_v14, 8.507059e+37 }
0x228d   :  { %v4835_v37 = vmul.f32 %v8092_v17, %v4834_v45  ;;  %v4863_v52 = vpack.c.bf16 %v9291_v40, %v9291_v40  ;;  %v7516_v45 = vor.u32 %v7853_v60, %v7513_v46 }
0x228e   :  { %v7464_v57 = vld [vmem:[#allocation2 + $0x38] sm:$0xf] }
0x228f   :  { %v4836_v7 = vadd.f32 %v8092_v17, %v4835_v37  ;;  %4867 = vst.msk [vmem:[#allocation2 + $0x44] sm:$0xf] %vm297_vm0, %v4863_v52  ;;  %v4883_v3 = vunpack.c.l.b16 %v4863_v52 }
0x2290   :  { %v8094_v56 = vpop.eup %8093 }
0x2291   :  { %v4840_v63 = vsel %vm4839_vm8, %v8092_v17, %v4836_v7  ;;  %v4848_v55 = vmul.f32 %v8094_v56, %v4800_v41  ;;  %v9298_v32 = vpack.c.b16 %v4883_v3, %v4882_v30  ;;  %vm4853_vm10 = vweird.f32 %v8094_v56 }
0x2292   :  { %v4845_v26 = vsel %vm4842_vm9, %v4844_v19, %v4840_v63  ;;  %vm4854_vm12 = vmor %vm4852_vm11, %vm4853_vm10 }
0x2293   :  { %v4849_v1 = vsub.f32 1.0, %v4848_v55  ;;  %v9300_v36 = vmul.f32 %v4845_v26, %v4775_v9  ;;  %4890 = vxpose.xlu0.c.b16.start [1/2] (short) (narrow) %v9298_v32, 16 }
0x2295   :  { %v4850_v38 = vmul.f32 %v8094_v56, %v4849_v1  ;;  %v4864_v59 = vpack.c.bf16 %v9300_v36, %v9300_v36 }
0x2296   :  { %v7843_v18 = vld [vmem:[#allocation2 + $0x40] sm:$0xf0] }
0x2297   :  { %v4851_v50 = vadd.f32 %v8094_v56, %v4850_v38  ;;  %4868 = vst.msk [vmem:[#allocation2 + $0x50] sm:$0xf] %vm297_vm0, %v4864_v59  ;;  %v4884_v47 = vunpack.c.l.b16 %v4864_v59  ;;  %v7465_v16 = vor.u32 %v7843_v18, %v7464_v57 }
0x2299   :  { %v4855_v62 = vsel %vm4854_vm12, %v8094_v56, %v4851_v50 }
0x229a   :  { %v4860_v35 = vsel %vm4857_vm13, %v4859_v39, %v4855_v62 }
0x229b   :  { %v9309_v31 = vmul.f32 %v4860_v35, %v4776_v11 }
0x229d   :  { %v4865_v28 = vpack.c.bf16 %v9309_v31, %v9309_v31 }
0x229e   :  { %v7476_v48 = vld [vmem:[#allocation2 + $0x50] sm:$0xf] }
0x229f   :  { %4869 = vst.msk [vmem:[#allocation2 + $0x5c] sm:$0xf] %vm297_vm0, %v4865_v28  ;;  %v4885_v2 = vunpack.c.l.b16 %v4865_v28 }
0x22a1   :  { %v9314_v15 = vpack.c.b16 %v4885_v2, %v4884_v47 }
0x22a3   :  { %4891 = vxpose.xlu0.c.b16.end [2/2] (short) (narrow) %v9314_v15, 16 }
0x22a6   :  { %v7846_v6 = vld [vmem:[#allocation2 + $0x58] sm:$0xf0] }
0x22a7   :  { %v7477_v20 = vor.u32 %v7846_v6, %v7476_v48 }
0x22a9   :  { %4975 = vmatpush.bf16.msra.mxu1 %v7477_v20 }
0x22ad   :  { %4976 = vmatpush.bf16.msra.mxu1 %v7465_v16 }
0x233f   :  { %v4898_v34 = vpop.trf.xlu0 }
0x2340   :  { %7478 = vmatmul.msk.bf16.vlgmr.msrb.gmra.mxu2 %vm99_vm1, %v4898_v34  ;;  %7480 = vmatmul.msk.bf16.vlgmr.msra.gmra.mxu1 %vm99_vm1, %v4898_v34 }
0x2341   :  { %4998 = vmatpush.bf16.msrb.mxu2 %v9271_v51 }
0x2350   :  { %7479 = vmatmul.msk.bf16.vlgmr.msra.gmra.mxu2 %vm99_vm1, %v4898_v34 }
0x23bd   :  { %v4978_v58 = vpop.f32.mrf.mxu1 }
0x23c3   :  { %v4950_v8 = vpop.f32.mrf.mxu2 }
0x23c4   :  { %v4984_v62 = vmul.f32 %v4950_v8, %v9255_v23 }
0x23c5   :  { %v4980_v17 = vpop.f32.mrf.mxu1 }
0x23c6   :  { %v4983_v41 = vpack.c.bf16 %v4980_v17, %v4978_v58 }
0x23c8   :  { %7481 = vmatmul.msk.bf16.vlgmr.msrb.gmra.mxu2 %vm391_vm2, %v4983_v41  ;;  %7482 = vmatmul.msk.bf16.vlgmr.msra.gmra.mxu3 %vm391_vm2, %v4983_v41 }
0x23c9   :  { %5366 = vmatpush.bf16.msra.mxu3 %v7528_v43 }
0x23cb   :  { %v9323_v53 = vpop.f32.mrf.mxu2 }
0x23cd   :  { %5367 = vmatpush.bf16.msra.mxu3 %v7516_v45 }
0x23d3   :  { %v4964_v51 = vpop.f32.mrf.mxu2 }
0x23d4   :  { %v4985_v47 = vmul.f32 %v4964_v51, %v9257_v12 }
0x23db   :  { %v9325_v37 = vpop.f32.mrf.mxu2 }
0x244b   :  { %v5000_v27 = vpop.f32.mrf.mxu2  ;;  %v5014_v52 = vpop.f32.mrf.mxu3 }
0x244c   :  { %v5001_v7 = vadd.f32 1e-06, %v5000_v27  ;;  %v5015_v56 = vadd.f32 1e-06, %v5014_v52 }
0x244e   :  { %8095 = vrcp.f32 %v5001_v7  ;;  %v5030_v29 = vand.u32 2147483648, %v5001_v7  ;;  %v5028_v59 = vand.u32 2147483647, %v5001_v7  ;;  %v5045_v50 = vand.u32 2147483648, %v5015_v56 }
0x244f   :  { %8097 = vrcp.f32 %v5015_v56  ;;  %v5043_v11 = vand.u32 2147483647, %v5015_v56  ;;  %vm5024_vm3 = vweird.f32 %v5001_v7  ;;  %vm5039_vm5 = vweird.f32 %v5015_v56 }
0x2450   :  { %v5031_v2 = vor.u32 1.1754944e-38, %v5030_v29  ;;  %vm5029_vm6 = vcmp.eq.f32.partialorder %v5028_v59, 8.507059e+37  ;;  %v5046_v18 = vor.u32 1.1754944e-38, %v5045_v50  ;;  %v7869_v50 = vld [vmem:[#allocation2 + $0x50] sm:$0xf0] }
0x2451   :  { %vm5044_vm8 = vcmp.eq.f32.partialorder %v5043_v11, 8.507059e+37  ;;  %v7847_v11 = vld [vmem:[#allocation3 + $0x34] sm:$0xf] }
0x2453   :  { %v5002_v19 = vpop.f32.mrf.mxu2  ;;  %v5016_v30 = vpop.f32.mrf.mxu3 }
0x2454   :  { %v8096_v3 = vpop.eup %8095  ;;  %v5003_v9 = vadd.f32 1e-06, %v5002_v19  ;;  %v9327_v63 = vadd.f32 1e-06, %v5016_v30 }
0x2455   :  { %v8098_v55 = vpop.eup %8097  ;;  %v5020_v26 = vmul.f32 %v8096_v3, %v5001_v7  ;;  %vm5025_vm14 = vweird.f32 %v8096_v3 }
0x2456   :  { %v5035_v1 = vmul.f32 %v8098_v55, %v5015_v56  ;;  %8099 = vrcp.f32 %v5003_v9  ;;  %vm5040_vm15 = vweird.f32 %v8098_v55  ;;  %vm5026_vm4 = vmor %vm5024_vm3, %vm5025_vm14  ;;  %v5060_v12 = vand.u32 2147483648, %v5003_v9 }
0x2457   :  { %v5021_v22 = vsub.f32 1.0, %v5020_v26  ;;  %8101 = vrcp.f32 %v9327_v63  ;;  %vm5041_vm7 = vmor %vm5039_vm5, %vm5040_vm15  ;;  %v5058_v46 = vand.u32 2147483647, %v5003_v9  ;;  %v5075_v60 = vand.u32 2147483648, %v9327_v63 }
0x2458   :  { %v5036_v38 = vsub.f32 1.0, %v5035_v1  ;;  %v5073_v8 = vand.u32 2147483647, %v9327_v63  ;;  %vm5054_vm11 = vweird.f32 %v5003_v9  ;;  %v5061_v52 = vor.u32 1.1754944e-38, %v5060_v12 }
0x2459   :  { %v5022_v14 = vmul.f32 %v8096_v3, %v5021_v22  ;;  %vm5069_vm13 = vweird.f32 %v9327_v63  ;;  %v4986_v56 = vmul.f32 %v9323_v53, %v9265_v33  ;;  %vm5059_vm14 = vcmp.eq.f32.partialorder %v5058_v46, 8.507059e+37 }
0x245a   :  { %v5037_v39 = vmul.f32 %v8098_v55, %v5036_v38  ;;  %v5076_v30 = vor.u32 1.1754944e-38, %v5075_v60  ;;  %vm5074_vm3 = vcmp.eq.f32.partialorder %v5073_v8, 8.507059e+37 }
0x245b   :  { %v5023_v35 = vadd.f32 %v8096_v3, %v5022_v14 }
0x245c   :  { %v8100_v28 = vpop.eup %8099  ;;  %v5038_v48 = vadd.f32 %v8098_v55, %v5037_v39  ;;  %v7485_v39 = vld [vmem:[#allocation3 + $0x30] sm:$0xf] }
0x245d   :  { %v8102_v6 = vpop.eup %8101  ;;  %v5027_v20 = vsel %vm5026_vm4, %v8096_v3, %v5023_v35  ;;  %v5050_v57 = vmul.f32 %v8100_v28, %v5003_v9  ;;  %vm5055_vm9 = vweird.f32 %v8100_v28  ;;  %v4987_v3 = vmul.f32 %v9325_v37, %v9267_v54  ;;  %v7848_v54 = vld [vmem:[#allocation3 + $0x34] sm:$0xf0]  ;;  %v7487_v37 = vld [vmem:[#allocation3 + $0x38] sm:$0xf0] }
0x245e   :  { %v5032_v16 = vsel %vm5029_vm6, %v5031_v2, %v5027_v20  ;;  %v5042_v34 = vsel %vm5041_vm7, %v8098_v55, %v5038_v48  ;;  %v5065_v23 = vmul.f32 %v8102_v6, %v9327_v63  ;;  %vm5070_vm10 = vweird.f32 %v8102_v6  ;;  %vm5056_vm12 = vmor %vm5054_vm11, %vm5055_vm9  ;;  %v7866_v2 = vld [vmem:[#allocation2 + $0x38] sm:$0xf0]  ;;  %v7566_v48 = vld [vmem:[#allocation2 + $0x30] sm:$0xf] }
0x245f   :  { %v5047_v58 = vsel %vm5044_vm8, %v5046_v18, %v5042_v34  ;;  %v5051_v5 = vsub.f32 1.0, %v5050_v57  ;;  %v9333_v17 = vmul.f32 %v5032_v16, %v4984_v62  ;;  %vm5071_vm15 = vmor %vm5069_vm13, %vm5070_vm10  ;;  %v7486_v62 = vor.u32 %v7848_v54, %v7485_v39  ;;  %v7850_v20 = vld [vmem:[#allocation3 + $0x44] sm:$0xf0]  ;;  %v7495_v18 = vld [vmem:[#allocation3 + $0x48] sm:$0xf0] }
0x2460   :  { %v5066_v41 = vsub.f32 1.0, %v5065_v23  ;;  %v9335_v4 = vmul.f32 %v5047_v58, %v4985_v47  ;;  %v7490_v35 = vor.u32 %v7847_v11, %v7487_v37  ;;  %v7493_v57 = vld [vmem:[#allocation3 + $0x40] sm:$0xf]  ;;  %v7849_v16 = vld [vmem:[#allocation3 + $0x44] sm:$0xf] }
0x2461   :  { %v5052_v43 = vmul.f32 %v8100_v28, %v5051_v5  ;;  %v7494_v34 = vor.u32 %v7850_v20, %v7493_v57  ;;  %v7498_v23 = vor.u32 %v7849_v16, %v7495_v18 }
0x2462   :  { %v5067_v45 = vmul.f32 %v8102_v6, %v5066_v41  ;;  %v5079_v51 = vpack.c.bf16 %v9335_v4, %v9333_v17 }
0x2463   :  { %v5053_v27 = vadd.f32 %v8100_v28, %v5052_v43 }
0x2464   :  { %v5068_v7 = vadd.f32 %v8102_v6, %v5067_v45  ;;  %5081 = vst [vmem:[#allocation3 + $0x50] sm:$0xff] %v5079_v51  ;;  %v5121_v29 = vunpack.c.l.b16 %v5079_v51  ;;  %v5122_v53 = vunpack.c.h.b16 %v5079_v51 }
0x2465   :  { %v5057_v19 = vsel %vm5056_vm12, %v8100_v28, %v5053_v27  ;;  %v7578_v28 = vld [vmem:[#allocation2 + $0x48] sm:$0xf] }
0x2466   :  { %v5072_v55 = vsel %vm5071_vm15, %v8102_v6, %v5068_v7  ;;  %v5062_v26 = vsel %vm5059_vm14, %v5061_v52, %v5057_v19  ;;  %v7579_v47 = vor.u32 %v7869_v50, %v7578_v28  ;;  %v7567_v6 = vor.u32 %v7866_v2, %v7566_v48 }
0x2467   :  { %v9346_v9 = vmul.f32 %v5062_v26, %v4986_v56  ;;  %v5077_v1 = vsel %vm5074_vm3, %v5076_v30, %v5072_v55 }
0x2468   :  { %v9348_v22 = vmul.f32 %v5077_v1, %v4987_v3 }
0x246a   :  { %v5080_v63 = vpack.c.bf16 %v9348_v22, %v9346_v9 }
0x246b   :  { %v7501_v12 = vld [vmem:[#allocation3 + $0x50] sm:$0xf]  ;;  %v7851_v41 = vld [vmem:[#allocation3 + $0x54] sm:$0xf] }
0x246c   :  { %v5123_v33 = vunpack.c.l.b16 %v5080_v63  ;;  %5082 = vst [vmem:[#allocation3 + $0x58] sm:$0xff] %v5080_v63  ;;  %v5124_v38 = vunpack.c.h.b16 %v5080_v63 }
0x246e   :  { %v9352_v14 = vpack.c.b16 %v5123_v33, %v5121_v29  ;;  %v5126_v59 = vpack.c.b16 %v5124_v38, %v5122_v53 }
0x2470   :  { %5136 = vmatpush.bf16.xpose.msra.mxu0 %v9352_v14  ;;  %5160 = vmatpush.bf16.xpose.msrb.mxu1 %v5126_v59 }
0x2473   :  { %v7852_v58 = vld [vmem:[#allocation3 + $0x54] sm:$0xf0]  ;;  %v7503_v5 = vld [vmem:[#allocation3 + $0x58] sm:$0xf0] }
0x2474   :  { %v7502_v43 = vor.u32 %v7852_v58, %v7501_v12  ;;  %v7506_v46 = vor.u32 %v7851_v41, %v7503_v5 }
0x2477   :  { %5137 = vmatmul.bf16.vlgmr.msra.gmra.mxu0 %v7486_v62  ;;  %5161 = vmatmul.bf16.vlgmr.msrb.gmra.mxu1 %v7490_v35 }
0x2478   :  { %5417 = vmatpush.bf16.msrb.mxu0 %v5126_v59 }
0x247c   :  { %5757 = vmatpush.bf16.msra.mxu0 %v7579_v47 }
0x2480   :  { %5758 = vmatpush.bf16.msra.mxu0 %v7567_v6 }
0x2487   :  { %5142 = vmatmul.bf16.gmra.mxu0 %v7494_v34  ;;  %5166 = vmatmul.bf16.gmra.mxu1 %v7498_v23 }
0x2497   :  { %5147 = vmatmul.bf16.gmra.mxu0 %v7502_v43  ;;  %5171 = vmatmul.bf16.gmra.mxu1 %v7506_v46 }
0x24f4   :  { %v5138_v60 = vpop.f32.mrf.mxu0  ;;  %v5162_v45 = vpop.f32.mrf.mxu1 }
0x24f5   :  { %v5163_v8 = vadd.f32 %v5162_v45, %v5138_v60 }
0x24f7   :  { %v5178_v20 = vmul.f32 %v5163_v8, %v9285_v49 }
0x24fc   :  { %v5140_v51 = vpop.f32.mrf.mxu0  ;;  %v5164_v27 = vpop.f32.mrf.mxu1 }
0x24fd   :  { %v5165_v58 = vadd.f32 %v5164_v27, %v5140_v51 }
0x2504   :  { %v5143_v52 = vpop.f32.mrf.mxu0  ;;  %v5167_v7 = vpop.f32.mrf.mxu1 }
0x2505   :  { %v9355_v56 = vadd.f32 %v5167_v7, %v5143_v52  ;;  %v5179_v52 = vmul.f32 %v5165_v58, %v9291_v40 }
0x250c   :  { %v9357_v19 = vpop.f32.mrf.mxu0  ;;  %v9359_v30 = vpop.f32.mrf.mxu1 }
0x2514   :  { %v5148_v3 = vpop.f32.mrf.mxu0  ;;  %v5172_v55 = vpop.f32.mrf.mxu1 }
0x2515   :  { %v5173_v63 = vadd.f32 %v5172_v55, %v5148_v3 }
0x251c   :  { %v5150_v26 = vpop.f32.mrf.mxu0  ;;  %v5174_v1 = vpop.f32.mrf.mxu1 }
0x251d   :  { %v5175_v29 = vadd.f32 %v5174_v1, %v5150_v26 }
0x251f   :  { %v5177_v33 = vpack.c.bf16 %v5175_v29, %v5173_v63 }
0x2521   :  { %5195 = vmatpush.bf16.msra.mxu2 %v5177_v33 }
0x2524   :  { %7507 = vmatmul.msk.bf16.vlgmr.msra.gmra.mxu2 %vm391_vm2, %v9298_v32 }
0x2534   :  { %7508 = vmatmul.msk.bf16.gmra.mxu2 %vm391_vm2, %v9314_v15 }
0x25a7   :  { %v5197_v53 = vpop.f32.mrf.mxu2 }
0x25a8   :  { %v5198_v38 = vadd.f32 1e-06, %v5197_v53 }
0x25aa   :  { %8103 = vrcp.f32 %v5198_v38  ;;  %v5218_v62 = vand.u32 2147483648, %v5198_v38  ;;  %v5216_v35 = vand.u32 2147483647, %v5198_v38  ;;  %vm5212_vm5 = vweird.f32 %v5198_v38 }
0x25ac   :  { %v5219_v15 = vor.u32 1.1754944e-38, %v5218_v62  ;;  %vm5217_vm7 = vcmp.eq.f32.partialorder %v5216_v35, 8.507059e+37  ;;  %v5170_v62 = vadd.f32 %v9359_v30, %v9357_v19 }
0x25af   :  { %v5199_v59 = vpop.f32.mrf.mxu2 }
0x25b0   :  { %v8104_v54 = vpop.eup %8103  ;;  %v5200_v37 = vadd.f32 1e-06, %v5199_v59 }
0x25b1   :  { %v5208_v50 = vmul.f32 %v8104_v54, %v5198_v38  ;;  %vm5213_vm4 = vweird.f32 %v8104_v54  ;;  %v5180_v38 = vmul.f32 %v9355_v56, %v9300_v36 }
0x25b2   :  { %8105 = vrcp.f32 %v5200_v37  ;;  %vm5214_vm6 = vmor %vm5212_vm5, %vm5213_vm4  ;;  %v5233_v23 = vand.u32 2147483648, %v5200_v37  ;;  %v5231_v5 = vand.u32 2147483647, %v5200_v37  ;;  %vm5227_vm9 = vweird.f32 %v5200_v37 }
0x25b3   :  { %v5209_v39 = vsub.f32 1.0, %v5208_v50 }
0x25b4   :  { %v5234_v60 = vor.u32 1.1754944e-38, %v5233_v23  ;;  %vm5232_vm11 = vcmp.eq.f32.partialorder %v5231_v5, 8.507059e+37 }
0x25b5   :  { %v5210_v11 = vmul.f32 %v8104_v54, %v5209_v39 }
0x25b7   :  { %v5211_v28 = vadd.f32 %v8104_v54, %v5210_v11  ;;  %v5202_v47 = vpop.f32.mrf.mxu2 }
0x25b8   :  { %v8106_v32 = vpop.eup %8105  ;;  %v5203_v2 = vadd.f32 1e-06, %v5202_v47 }
0x25b9   :  { %v5223_v48 = vmul.f32 %v8106_v32, %v5200_v37  ;;  %v5215_v6 = vsel %vm5214_vm6, %v8104_v54, %v5211_v28  ;;  %vm5228_vm8 = vweird.f32 %v8106_v32 }
0x25ba   :  { %8107 = vrcp.f32 %v5203_v2  ;;  %v5220_v57 = vsel %vm5217_vm7, %v5219_v15, %v5215_v6  ;;  %vm5229_vm10 = vmor %vm5227_vm9, %vm5228_vm8  ;;  %v5248_v7 = vand.u32 2147483648, %v5203_v2  ;;  %v5246_v26 = vand.u32 2147483647, %v5203_v2 }
0x25bb   :  { %v5224_v18 = vsub.f32 1.0, %v5223_v48  ;;  %v9366_v16 = vmul.f32 %v5220_v57, %v5178_v20  ;;  %vm5242_vm13 = vweird.f32 %v5203_v2 }
0x25bc   :  { %v5249_v33 = vor.u32 1.1754944e-38, %v5248_v7  ;;  %vm5247_vm15 = vcmp.eq.f32.partialorder %v5246_v26, 8.507059e+37 }
0x25bd   :  { %v5225_v34 = vmul.f32 %v8106_v32, %v5224_v18  ;;  %v5267_v12 = vpack.c.bf16 %v9366_v16, %v9366_v16 }
0x25bf   :  { %v5204_v41 = vpop.f32.mrf.mxu2  ;;  %v5226_v43 = vadd.f32 %v8106_v32, %v5225_v34  ;;  %5271 = vst.msk [vmem:[#allocation2 + $0x38] sm:$0xf] %vm297_vm0, %v5267_v12  ;;  %v5287_v53 = vunpack.c.l.b16 %v5267_v12 }
0x25c0   :  { %v8108_v46 = vpop.eup %8107  ;;  %v5205_v49 = vadd.f32 1e-06, %v5204_v41 }
0x25c1   :  { %v5238_v45 = vmul.f32 %v8108_v46, %v5203_v2  ;;  %v5230_v8 = vsel %vm5229_vm10, %v8106_v32, %v5226_v43  ;;  %vm5243_vm12 = vweird.f32 %v8108_v46  ;;  %v5181_v2 = vmul.f32 %v5170_v62, %v9309_v31  ;;  %v7580_v43 = vld [vmem:[#allocation2 + $0x54] sm:$0xf0] }
0x25c2   :  { %8109 = vrcp.f32 %v5205_v49  ;;  %v5235_v27 = vsel %vm5232_vm11, %v5234_v60, %v5230_v8  ;;  %vm5244_vm14 = vmor %vm5242_vm13, %vm5243_vm12  ;;  %v5263_v35 = vand.u32 2147483648, %v5205_v49  ;;  %v5261_v47 = vand.u32 2147483647, %v5205_v49  ;;  %v7868_v60 = vld [vmem:[#allocation2 + $0x4c] sm:$0xf] }
0x25c3   :  { %v5239_v51 = vsub.f32 1.0, %v5238_v45  ;;  %v9372_v3 = vmul.f32 %v5235_v27, %v5179_v52  ;;  %vm5257_vm4 = vweird.f32 %v5205_v49  ;;  %v7583_v45 = vor.u32 %v7868_v60, %v7580_v43  ;;  %v7568_v8 = vld [vmem:[#allocation2 + $0x3c] sm:$0xf0]  ;;  %v7865_v52 = vld [vmem:[#allocation2 + $0x34] sm:$0xf] }
0x25c4   :  { %v5264_v32 = vor.u32 1.1754944e-38, %v5263_v35  ;;  %vm5262_vm6 = vcmp.eq.f32.partialorder %v5261_v47, 8.507059e+37 }
0x25c5   :  { %v5240_v55 = vmul.f32 %v8108_v46, %v5239_v51  ;;  %v5268_v1 = vpack.c.bf16 %v9372_v3, %v9372_v3  ;;  %v7571_v51 = vor.u32 %v7865_v52, %v7568_v8 }
0x25c6   :  { %v7519_v58 = vld [vmem:[#allocation2 + $0x38] sm:$0xf] }
0x25c7   :  { %v5241_v63 = vadd.f32 %v8108_v46, %v5240_v55  ;;  %v5288_v40 = vunpack.c.l.b16 %v5268_v1  ;;  %5272 = vst.msk [vmem:[#allocation2 + $0x44] sm:$0xf] %vm297_vm0, %v5268_v1 }
0x25c8   :  { %v8110_v29 = vpop.eup %8109 }
0x25c9   :  { %v5245_v59 = vsel %vm5244_vm14, %v8108_v46, %v5241_v63  ;;  %v5253_v54 = vmul.f32 %v8110_v29, %v5205_v49  ;;  %v9379_v37 = vpack.c.b16 %v5288_v40, %v5287_v53  ;;  %vm5258_vm3 = vweird.f32 %v8110_v29 }
0x25ca   :  { %v5250_v50 = vsel %vm5247_vm15, %v5249_v33, %v5245_v59  ;;  %vm5259_vm5 = vmor %vm5257_vm4, %vm5258_vm3 }
0x25cb   :  { %v5254_v39 = vsub.f32 1.0, %v5253_v54  ;;  %v9381_v11 = vmul.f32 %v5250_v50, %v5180_v38  ;;  %5295 = vxpose.xlu1.c.b16.start [1/2] (short) (narrow) %v9379_v37, 16 }
0x25cd   :  { %v5255_v28 = vmul.f32 %v8110_v29, %v5254_v39  ;;  %v5269_v36 = vpack.c.bf16 %v9381_v11, %v9381_v11 }
0x25ce   :  { %v7855_v31 = vld [vmem:[#allocation2 + $0x40] sm:$0xf0] }
0x25cf   :  { %v5256_v56 = vadd.f32 %v8110_v29, %v5255_v28  ;;  %5273 = vst.msk [vmem:[#allocation2 + $0x50] sm:$0xf] %vm297_vm0, %v5269_v36  ;;  %v5289_v6 = vunpack.c.l.b16 %v5269_v36  ;;  %v7520_v5 = vor.u32 %v7855_v31, %v7519_v58 }
0x25d1   :  { %v5260_v15 = vsel %vm5259_vm5, %v8110_v29, %v5256_v56 }
0x25d2   :  { %v5265_v19 = vsel %vm5262_vm6, %v5264_v32, %v5260_v15 }
0x25d3   :  { %v9390_v30 = vmul.f32 %v5265_v19, %v5181_v2  ;;  %v7540_v2 = vld [vmem:[#allocation3 + $0x30] sm:$0xf] }
0x25d5   :  { %v5270_v48 = vpack.c.bf16 %v9390_v30, %v9390_v30 }
0x25d6   :  { %v7531_v57 = vld [vmem:[#allocation2 + $0x50] sm:$0xf] }
0x25d7   :  { %v5290_v20 = vunpack.c.l.b16 %v5270_v48  ;;  %5274 = vst.msk [vmem:[#allocation2 + $0x5c] sm:$0xf] %vm297_vm0, %v5270_v48 }
0x25d9   :  { %v9395_v18 = vpack.c.b16 %v5290_v20, %v5289_v6 }
0x25db   :  { %5296 = vxpose.xlu1.c.b16.end [2/2] (short) (narrow) %v9395_v18, 16 }
0x25de   :  { %v7858_v34 = vld [vmem:[#allocation2 + $0x58] sm:$0xf0] }
0x25df   :  { %v7532_v23 = vor.u32 %v7858_v34, %v7531_v57 }
0x25e1   :  { %5380 = vmatpush.bf16.msrb.mxu2 %v7532_v23 }
0x25e5   :  { %5381 = vmatpush.bf16.msrb.mxu2 %v7520_v5 }
0x2677   :  { %v5303_v12 = vpop.trf.xlu1 }
0x2678   :  { %7533 = vmatmul.msk.bf16.vlgmr.msrb.gmra.mxu3 %vm99_vm1, %v5303_v12  ;;  %7535 = vmatmul.msk.bf16.vlgmr.msrb.gmra.mxu2 %vm99_vm1, %v5303_v12 }
0x2679   :  { %5403 = vmatpush.bf16.msrb.mxu3 %v9352_v14 }
0x2688   :  { %7534 = vmatmul.msk.bf16.vlgmr.msra.gmra.mxu3 %vm99_vm1, %v5303_v12 }
0x26fb   :  { %v5383_v41 = vpop.f32.mrf.mxu2  ;;  %v5355_v27 = vpop.f32.mrf.mxu3 }
0x26fc   :  { %v5389_v23 = vmul.f32 %v5355_v27, %v9333_v17 }
0x2703   :  { %v5385_v46 = vpop.f32.mrf.mxu2  ;;  %v9404_v7 = vpop.f32.mrf.mxu3 }
0x2704   :  { %v5388_v49 = vpack.c.bf16 %v5385_v46, %v5383_v41 }
0x2706   :  { %7536 = vmatmul.msk.bf16.vlgmr.msrb.gmra.mxu3 %vm391_vm2, %v5388_v49  ;;  %7537 = vmatmul.msk.bf16.vlgmr.msrb.gmra.mxu0 %vm391_vm2, %v5388_v49 }
0x2707   :  { %5771 = vmatpush.bf16.msrb.mxu0 %v7583_v45 }
0x270b   :  { %5772 = vmatpush.bf16.msrb.mxu0 %v7571_v51  ;;  %v5369_v14 = vpop.f32.mrf.mxu3 }
0x270c   :  { %v5390_v5 = vmul.f32 %v5369_v14, %v9335_v4 }
0x2713   :  { %v9406_v55 = vpop.f32.mrf.mxu3 }
0x2783   :  { %v5419_v26 = vpop.f32.mrf.mxu0 }
0x2784   :  { %v5420_v1 = vadd.f32 1e-06, %v5419_v26 }
0x2786   :  { %8111 = vrcp.f32 %v5420_v1  ;;  %v5450_v47 = vand.u32 2147483648, %v5420_v1  ;;  %vm5444_vm8 = vweird.f32 %v5420_v1  ;;  %v5448_v56 = vand.u32 2147483647, %v5420_v1 }
0x2788   :  { %v5451_v57 = vor.u32 1.1754944e-38, %v5450_v47  ;;  %vm5449_vm11 = vcmp.eq.f32.partialorder %v5448_v56, 8.507059e+37 }
0x2789   :  { %v5405_v63 = vpop.f32.mrf.mxu3 }
0x278a   :  { %v5406_v29 = vadd.f32 1e-06, %v5405_v63 }
0x278b   :  { %v5421_v33 = vpop.f32.mrf.mxu0 }
0x278c   :  { %v8112_v53 = vpop.eup %8111  ;;  %8113 = vrcp.f32 %v5406_v29  ;;  %v5422_v38 = vadd.f32 1e-06, %v5421_v33  ;;  %v5435_v15 = vand.u32 2147483648, %v5406_v29  ;;  %v5433_v20 = vand.u32 2147483647, %v5406_v29 }
0x278d   :  { %v5440_v40 = vmul.f32 %v8112_v53, %v5420_v1  ;;  %vm5445_vm7 = vweird.f32 %v8112_v53  ;;  %vm5429_vm12 = vweird.f32 %v5406_v29 }
0x278e   :  { %8115 = vrcp.f32 %v5422_v38  ;;  %vm9408_vm9 = vmor %vm5444_vm8, %vm5445_vm7  ;;  %v5436_v41 = vor.u32 1.1754944e-38, %v5435_v15  ;;  %vm5434_vm14 = vcmp.eq.f32.partialorder %v5433_v20, 8.507059e+37  ;;  %vm5474_vm3 = vweird.f32 %v5422_v38  ;;  %v7859_v15 = vld [vmem:[#allocation3 + $0x34] sm:$0xf] }
0x278f   :  { %v5441_v59 = vsub.f32 1.0, %v5440_v40  ;;  %v5480_v8 = vand.u32 2147483648, %v5422_v38  ;;  %v5478_v52 = vand.u32 2147483647, %v5422_v38 }
0x2791   :  { %v5442_v54 = vmul.f32 %v8112_v53, %v5441_v59  ;;  %v5407_v50 = vpop.f32.mrf.mxu3  ;;  %vm5479_vm6 = vcmp.eq.f32.partialorder %v5478_v52, 8.507059e+37  ;;  %v5392_v59 = vmul.f32 %v9406_v55, %v9348_v22  ;;  %v7860_v22 = vld [vmem:[#allocation3 + $0x34] sm:$0xf0]  ;;  %v7881_v55 = vld [vmem:[#allocation2 + $0x50] sm:$0xf0] }
0x2792   :  { %v8114_v39 = vpop.eup %8113  ;;  %v5408_v62 = vadd.f32 1e-06, %v5407_v50 }
0x2793   :  { %v5443_v35 = vadd.f32 %v8112_v53, %v5442_v54  ;;  %v5425_v28 = vmul.f32 %v8114_v39, %v5406_v29  ;;  %vm5430_vm10 = vweird.f32 %v8114_v39  ;;  %v5481_v29 = vor.u32 1.1754944e-38, %v5480_v8 }
0x2794   :  { %8117 = vrcp.f32 %v5408_v62  ;;  %v8116_v36 = vpop.eup %8115  ;;  %vm5431_vm13 = vmor %vm5429_vm12, %vm5430_vm10  ;;  %v5463_v4 = vand.u32 2147483647, %v5408_v62  ;;  %v5465_v14 = vand.u32 2147483648, %v5408_v62  ;;  %vm5459_vm7 = vweird.f32 %v5408_v62 }
0x2795   :  { %v5426_v32 = vsub.f32 1.0, %v5425_v28  ;;  %v5470_v19 = vmul.f32 %v8116_v36, %v5422_v38  ;;  %v5447_v48 = vsel %vm9408_vm9, %v8112_v53, %v5443_v35  ;;  %vm5475_vm15 = vweird.f32 %v8116_v36 }
0x2796   :  { %v5452_v12 = vsel %vm5449_vm11, %v5451_v57, %v5447_v48  ;;  %vm5476_vm4 = vmor %vm5474_vm3, %vm5475_vm15  ;;  %v5466_v40 = vor.u32 1.1754944e-38, %v5465_v14  ;;  %v5391_v38 = vmul.f32 %v9404_v7, %v9346_v9  ;;  %vm5464_vm9 = vcmp.eq.f32.partialorder %v5463_v4, 8.507059e+37  ;;  %v7542_v7 = vld [vmem:[#allocation3 + $0x38] sm:$0xf0] }
0x2797   :  { %v5427_v6 = vmul.f32 %v8114_v39, %v5426_v32  ;;  %v5471_v34 = vsub.f32 1.0, %v5470_v19  ;;  %v9418_v27 = vmul.f32 %v5452_v12, %v5390_v5  ;;  %v7541_v19 = vor.u32 %v7860_v22, %v7540_v2  ;;  %v7878_v57 = vld [vmem:[#allocation2 + $0x38] sm:$0xf0]  ;;  %v7548_v5 = vld [vmem:[#allocation3 + $0x40] sm:$0xf] }
0x2798   :  { %v7545_v48 = vor.u32 %v7859_v15, %v7542_v7  ;;  %v7861_v12 = vld [vmem:[#allocation3 + $0x44] sm:$0xf] }
0x2799   :  { %v5428_v31 = vadd.f32 %v8114_v39, %v5427_v6  ;;  %v5472_v43 = vmul.f32 %v8116_v36, %v5471_v34  ;;  %v7633_v6 = vld [vmem:[#allocation2 + $0x48] sm:$0xf]  ;;  %v7621_v34 = vld [vmem:[#allocation2 + $0x30] sm:$0xf] }
0x279a   :  { %v8118_v58 = vpop.eup %8117  ;;  %v7634_v20 = vor.u32 %v7881_v55, %v7633_v6 }
0x279b   :  { %v5432_v46 = vsel %vm5431_vm13, %v8114_v39, %v5428_v31  ;;  %v5455_v49 = vmul.f32 %v8118_v58, %v5408_v62  ;;  %v5473_v45 = vadd.f32 %v8116_v36, %v5472_v43  ;;  %vm5460_vm5 = vweird.f32 %v8118_v58  ;;  %v7862_v31 = vld [vmem:[#allocation3 + $0x44] sm:$0xf0] }
0x279c   :  { %v5437_v60 = vsel %vm5434_vm14, %v5436_v41, %v5432_v46  ;;  %vm5461_vm8 = vmor %vm5459_vm7, %vm5460_vm5  ;;  %v7549_v41 = vor.u32 %v7862_v31, %v7548_v5 }
0x279d   :  { %v5456_v17 = vsub.f32 1.0, %v5455_v49  ;;  %v9416_v51 = vmul.f32 %v5437_v60, %v5389_v23  ;;  %v5477_v26 = vsel %vm5476_vm4, %v8116_v36, %v5473_v45  ;;  %v7622_v23 = vor.u32 %v7878_v57, %v7621_v34 }
0x279e   :  { %v5482_v53 = vsel %vm5479_vm6, %v5481_v29, %v5477_v26 }
0x279f   :  { %v5457_v1 = vmul.f32 %v8118_v58, %v5456_v17  ;;  %v5484_v63 = vpack.c.bf16 %v9418_v27, %v9416_v51  ;;  %v9428_v35 = vmul.f32 %v5482_v53, %v5392_v59 }
0x27a1   :  { %v5458_v33 = vadd.f32 %v8118_v58, %v5457_v1  ;;  %5486 = vst [vmem:[#allocation3 + $0x50] sm:$0xff] %v5484_v63  ;;  %v5526_v28 = vunpack.c.l.b16 %v5484_v63  ;;  %v5527_v36 = vunpack.c.h.b16 %v5484_v63 }
0x27a3   :  { %v5462_v54 = vsel %vm5461_vm8, %v8118_v58, %v5458_v33  ;;  %v7550_v58 = vld [vmem:[#allocation3 + $0x48] sm:$0xf0] }
0x27a4   :  { %v5467_v50 = vsel %vm5464_vm9, %v5466_v40, %v5462_v54  ;;  %v7553_v43 = vor.u32 %v7861_v12, %v7550_v58 }
0x27a5   :  { %v9426_v39 = vmul.f32 %v5467_v50, %v5391_v38 }
0x27a7   :  { %v5485_v62 = vpack.c.bf16 %v9428_v35, %v9426_v39 }
0x27a8   :  { %v7556_v60 = vld [vmem:[#allocation3 + $0x50] sm:$0xf]  ;;  %v7863_v45 = vld [vmem:[#allocation3 + $0x54] sm:$0xf] }
0x27a9   :  { %v5528_v47 = vunpack.c.l.b16 %v5485_v62  ;;  %5487 = vst [vmem:[#allocation3 + $0x58] sm:$0xff] %v5485_v62  ;;  %v5529_v56 = vunpack.c.h.b16 %v5485_v62 }
0x27ab   :  { %v9432_v32 = vpack.c.b16 %v5528_v47, %v5526_v28  ;;  %v5531_v9 = vpack.c.b16 %v5529_v56, %v5527_v36 }
0x27ad   :  { %5541 = vmatpush.bf16.xpose.msra.mxu1 %v9432_v32  ;;  %5565 = vmatpush.bf16.xpose.msra.mxu2 %v5531_v9 }
0x27b0   :  { %v7864_v46 = vld [vmem:[#allocation3 + $0x54] sm:$0xf0]  ;;  %v7558_v49 = vld [vmem:[#allocation3 + $0x58] sm:$0xf0] }
0x27b1   :  { %v7557_v8 = vor.u32 %v7864_v46, %v7556_v60  ;;  %v7561_v52 = vor.u32 %v7863_v45, %v7558_v49 }
0x27b4   :  { %5542 = vmatmul.bf16.vlgmr.msra.gmra.mxu1 %v7541_v19  ;;  %5566 = vmatmul.bf16.vlgmr.msra.gmra.mxu2 %v7545_v48 }
0x27b5   :  { %5822 = vmatpush.bf16.msrb.mxu1 %v5531_v9 }
0x27b9   :  { %6162 = vmatpush.bf16.msra.mxu1 %v7634_v20 }
0x27bd   :  { %6163 = vmatpush.bf16.msra.mxu1 %v7622_v23 }
0x27c4   :  { %5547 = vmatmul.bf16.gmra.mxu1 %v7549_v41  ;;  %5571 = vmatmul.bf16.gmra.mxu2 %v7553_v43 }
0x27d4   :  { %5552 = vmatmul.bf16.gmra.mxu1 %v7557_v8  ;;  %5576 = vmatmul.bf16.gmra.mxu2 %v7561_v52 }
0x2831   :  { %v5543_v17 = vpop.f32.mrf.mxu1 }
0x2837   :  { %v5567_v4 = vpop.f32.mrf.mxu2 }
0x2838   :  { %v5568_v14 = vadd.f32 %v5567_v4, %v5543_v17 }
0x2839   :  { %v5545_v26 = vpop.f32.mrf.mxu1 }
0x283a   :  { %v5583_v5 = vmul.f32 %v5568_v14, %v9366_v16 }
0x283f   :  { %v5569_v1 = vpop.f32.mrf.mxu2 }
0x2840   :  { %v5570_v63 = vadd.f32 %v5569_v1, %v5545_v26 }
0x2841   :  { %v5548_v29 = vpop.f32.mrf.mxu1 }
0x2842   :  { %v5584_v1 = vmul.f32 %v5570_v63, %v9372_v3 }
0x2847   :  { %v5572_v33 = vpop.f32.mrf.mxu2 }
0x2848   :  { %v9435_v53 = vadd.f32 %v5572_v33, %v5548_v29 }
0x2849   :  { %v5550_v40 = vpop.f32.mrf.mxu1 }
0x284a   :  { %v5585_v63 = vmul.f32 %v9435_v53, %v9381_v11 }
0x284f   :  { %v5574_v38 = vpop.f32.mrf.mxu2 }
0x2850   :  { %v9437_v59 = vadd.f32 %v5574_v38, %v5550_v40 }
0x2851   :  { %v5553_v54 = vpop.f32.mrf.mxu1 }
0x2852   :  { %v5586_v53 = vmul.f32 %v9437_v59, %v9390_v30 }
0x2857   :  { %v5577_v50 = vpop.f32.mrf.mxu2 }
0x2858   :  { %v5578_v47 = vadd.f32 %v5577_v50, %v5553_v54 }
0x2859   :  { %v5555_v62 = vpop.f32.mrf.mxu1 }
0x285f   :  { %v5579_v28 = vpop.f32.mrf.mxu2 }
0x2860   :  { %v5580_v36 = vadd.f32 %v5579_v28, %v5555_v62 }
0x2862   :  { %v5582_v56 = vpack.c.bf16 %v5580_v36, %v5578_v47 }
0x2864   :  { %5600 = vmatpush.bf16.msra.mxu3 %v5582_v56 }
0x2867   :  { %7562 = vmatmul.msk.bf16.vlgmr.msra.gmra.mxu3 %vm391_vm2, %v9379_v37 }
0x2877   :  { %7563 = vmatmul.msk.bf16.gmra.mxu3 %vm391_vm2, %v9395_v18 }
0x28ea   :  { %v5602_v9 = vpop.f32.mrf.mxu3 }
0x28eb   :  { %v5603_v22 = vadd.f32 1e-06, %v5602_v9 }
0x28ed   :  { %8119 = vrcp.f32 %v5603_v22  ;;  %v5623_v6 = vand.u32 2147483648, %v5603_v22  ;;  %v5621_v20 = vand.u32 2147483647, %v5603_v22  ;;  %vm5617_vm11 = vweird.f32 %v5603_v22 }
0x28ef   :  { %v5624_v58 = vor.u32 1.1754944e-38, %v5623_v6  ;;  %vm5622_vm13 = vcmp.eq.f32.partialorder %v5621_v20, 8.507059e+37 }
0x28f2   :  { %v5604_v7 = vpop.f32.mrf.mxu3 }
0x28f3   :  { %v8120_v55 = vpop.eup %8119  ;;  %v5605_v2 = vadd.f32 1e-06, %v5604_v7 }
0x28f4   :  { %v5613_v15 = vmul.f32 %v8120_v55, %v5603_v22  ;;  %vm5618_vm10 = vweird.f32 %v8120_v55 }
0x28f5   :  { %8121 = vrcp.f32 %v5605_v2  ;;  %vm5619_vm12 = vmor %vm5617_vm11, %vm5618_vm10  ;;  %v5638_v49 = vand.u32 2147483648, %v5605_v2  ;;  %v5636_v60 = vand.u32 2147483647, %v5605_v2  ;;  %vm5632_vm15 = vweird.f32 %v5605_v2 }
0x28f6   :  { %v5614_v19 = vsub.f32 1.0, %v5613_v15 }
0x28f7   :  { %v5639_v26 = vor.u32 1.1754944e-38, %v5638_v49  ;;  %vm5637_vm4 = vcmp.eq.f32.partialorder %v5636_v60, 8.507059e+37  ;;  %v53_v60 = vld [vmem:[%s9719_s5] sm:$0xff] }
0x28f8   :  { %v5615_v48 = vmul.f32 %v8120_v55, %v5614_v19 }
0x28fa   :  { %v5607_v57 = vpop.f32.mrf.mxu3  ;;  %v5616_v34 = vadd.f32 %v8120_v55, %v5615_v48 }
0x28fb   :  { %v8122_v37 = vpop.eup %8121  ;;  %v5608_v23 = vadd.f32 1e-06, %v5607_v57 }
0x28fc   :  { %v5628_v18 = vmul.f32 %v8122_v37, %v5605_v2  ;;  %v5620_v31 = vsel %vm5619_vm12, %v8120_v55, %v5616_v34  ;;  %vm5633_vm14 = vweird.f32 %v8122_v37 }
0x28fd   :  { %8123 = vrcp.f32 %v5608_v23  ;;  %v5625_v41 = vsel %vm5622_vm13, %v5624_v58, %v5620_v31  ;;  %vm5634_vm3 = vmor %vm5632_vm15, %vm5633_vm14  ;;  %v5653_v40 = vand.u32 2147483648, %v5608_v23  ;;  %v5651_v50 = vand.u32 2147483647, %v5608_v23 }
0x28fe   :  { %v5629_v12 = vsub.f32 1.0, %v5628_v18  ;;  %v9444_v43 = vmul.f32 %v5625_v41, %v5583_v5  ;;  %vm5647_vm6 = vweird.f32 %v5608_v23 }
0x28ff   :  { %v5654_v36 = vor.u32 1.1754944e-38, %v5653_v40  ;;  %vm5652_vm8 = vcmp.eq.f32.partialorder %v5651_v50, 8.507059e+37 }
0x2900   :  { %v5630_v46 = vmul.f32 %v8122_v37, %v5629_v12  ;;  %v5672_v45 = vpack.c.bf16 %v9444_v43, %v9444_v43 }
0x2902   :  { %v5609_v8 = vpop.f32.mrf.mxu3  ;;  %v5631_v52 = vadd.f32 %v8122_v37, %v5630_v46  ;;  %5676 = vst.msk [vmem:[#allocation2 + $0x38] sm:$0xf] %vm297_vm0, %v5672_v45  ;;  %v5692_v56 = vunpack.c.l.b16 %v5672_v45  ;;  %v56_v45 = vld [vmem:[%s9719_s5 + $0x18] sm:$0xff] }
0x2903   :  { %v8124_v17 = vpop.eup %8123  ;;  %v5610_v4 = vadd.f32 1e-06, %v5609_v8 }
0x2904   :  { %v5643_v16 = vmul.f32 %v8124_v17, %v5608_v23  ;;  %v5635_v14 = vsel %vm5634_vm3, %v8122_v37, %v5631_v52  ;;  %vm5648_vm5 = vweird.f32 %v8124_v17  ;;  %v3443_v52 = vld [vmem:[#allocation4 + $0x8] sm:$0xff] }
0x2905   :  { %8125 = vrcp.f32 %v5610_v4  ;;  %v5640_v33 = vsel %vm5637_vm4, %v5639_v26, %v5635_v14  ;;  %vm5649_vm7 = vmor %vm5647_vm6, %vm5648_vm5  ;;  %v5668_v19 = vand.u32 2147483648, %v5610_v4  ;;  %v5666_v6 = vand.u32 2147483647, %v5610_v4 }
0x2906   :  { %v5644_v29 = vsub.f32 1.0, %v5643_v16  ;;  %v9450_v38 = vmul.f32 %v5640_v33, %v5584_v1  ;;  %vm5662_vm10 = vweird.f32 %v5610_v4  ;;  %v3448_v33 = vld [vmem:[#allocation4 + $0x30] sm:$0xff] }
0x2907   :  { %v5669_v11 = vor.u32 1.1754944e-38, %v5668_v19  ;;  %vm5667_vm12 = vcmp.eq.f32.partialorder %v5666_v6, 8.507059e+37 }
0x2908   :  { %v5645_v54 = vmul.f32 %v8124_v17, %v5644_v29  ;;  %v5673_v62 = vpack.c.bf16 %v9450_v38, %v9450_v38 }
0x2909   :  { %v7574_v59 = vld [vmem:[#allocation2 + $0x38] sm:$0xf] }
0x290a   :  { %v5646_v28 = vadd.f32 %v8124_v17, %v5645_v54  ;;  %v5693_v3 = vunpack.c.l.b16 %v5673_v62  ;;  %5677 = vst.msk [vmem:[#allocation2 + $0x44] sm:$0xf] %vm297_vm0, %v5673_v62 }
0x290b   :  { %v8126_v47 = vpop.eup %8125 }
0x290c   :  { %v5658_v9 = vmul.f32 %v8126_v47, %v5610_v4  ;;  %v5650_v22 = vsel %vm5649_vm7, %v8124_v17, %v5646_v28  ;;  %v9457_v7 = vpack.c.b16 %v5693_v3, %v5692_v56  ;;  %vm5663_vm9 = vweird.f32 %v8126_v47 }
0x290d   :  { %v5655_v55 = vsel %vm5652_vm8, %v5654_v36, %v5650_v22  ;;  %vm5664_vm11 = vmor %vm5662_vm10, %vm5663_vm9  ;;  %v7635_v36 = vld [vmem:[#allocation2 + $0x54] sm:$0xf0]  ;;  %v7877_v22 = vld [vmem:[#allocation2 + $0x34] sm:$0xf] }
0x290e   :  { %v5659_v2 = vsub.f32 1.0, %v5658_v9  ;;  %v9459_v15 = vmul.f32 %v5655_v55, %v5585_v63  ;;  %5700 = vxpose.xlu2.c.b16.start [1/2] (short) (narrow) %v9457_v7, 16  ;;  %v7880_v63 = vld [vmem:[#allocation2 + $0x4c] sm:$0xf] }
0x290f   :  { %v7638_v9 = vor.u32 %v7880_v63, %v7635_v36 }
0x2910   :  { %v5660_v48 = vmul.f32 %v8126_v47, %v5659_v2  ;;  %v5674_v20 = vpack.c.bf16 %v9459_v15, %v9459_v15 }
0x2911   :  { %v7867_v30 = vld [vmem:[#allocation2 + $0x40] sm:$0xf0] }
0x2912   :  { %v5661_v57 = vadd.f32 %v8126_v47, %v5660_v48  ;;  %5678 = vst.msk [vmem:[#allocation2 + $0x50] sm:$0xf] %vm297_vm0, %v5674_v20  ;;  %v5694_v31 = vunpack.c.l.b16 %v5674_v20  ;;  %v7575_v49 = vor.u32 %v7867_v30, %v7574_v59 }
0x2914   :  { %v5665_v34 = vsel %vm5664_vm11, %v8126_v47, %v5661_v57 }
0x2915   :  { %v5670_v37 = vsel %vm5667_vm12, %v5669_v11, %v5665_v34 }
0x2916   :  { %v9467_v23 = vmul.f32 %v5670_v37, %v5586_v53 }
0x2918   :  { %v5675_v18 = vpack.c.bf16 %v9467_v23, %v9467_v23 }
0x2919   :  { %v7586_v12 = vld [vmem:[#allocation2 + $0x50] sm:$0xf] }
0x291a   :  { %v5695_v58 = vunpack.c.l.b16 %v5675_v18  ;;  %5679 = vst.msk [vmem:[#allocation2 + $0x5c] sm:$0xf] %vm297_vm0, %v5675_v18 }
0x291c   :  { %v9472_v5 = vpack.c.b16 %v5695_v58, %v5694_v31 }
0x291e   :  { %5701 = vxpose.xlu2.c.b16.end [2/2] (short) (narrow) %v9472_v5, 16 }
0x2921   :  { %v7870_v41 = vld [vmem:[#allocation2 + $0x58] sm:$0xf0] }
0x2922   :  { %v7587_v46 = vor.u32 %v7870_v41, %v7586_v12 }
0x2924   :  { %5785 = vmatpush.bf16.msrb.mxu3 %v7587_v46 }
0x2928   :  { %5786 = vmatpush.bf16.msrb.mxu3 %v7575_v49 }
0x2980   :  { %7902 = vset.pattern.permute.xlu2 %v8226_v0  ;;  %v3442_v0 = vld [vmem:[#allocation4] sm:$0xff] }
0x2987   :  { %3370 = vperm.xlu2 %7902, %v53_v60  }
0x298f   :  { %3385 = vperm.xlu2 %7902, %v56_v45  }
0x29af   :  { %v5708_v8 = vpop.trf.xlu2 }
0x29b0   :  { %7588 = vmatmul.msk.bf16.vlgmr.msra.gmra.mxu0 %vm99_vm1, %v5708_v8  ;;  %7590 = vmatmul.msk.bf16.vlgmr.msrb.gmra.mxu3 %vm99_vm1, %v5708_v8 }
0x29b1   :  { %5808 = vmatpush.bf16.msra.mxu0 %v9432_v32  ;;  %v3449_v32 = vld [vmem:[#allocation4 + $0x38] sm:$0xff] }
0x29c0   :  { %7589 = vmatmul.msk.bf16.vlgmr.msrb.gmra.mxu0 %vm99_vm1, %v5708_v8 }
0x29e1   :  { %v9486_v17 = vpop.permute.xlu2 %3370 }
0x29e2   :  { %v3414_v4 = vadd.f32 %v9054_v10, %v9486_v17  ;;  %v3433_v16 = vadd.f32 %v9056_v13, %v9486_v17 }
0x29e4   :  { %v3450_v14 = vadd.f32 %v3442_v0, %v3414_v4  ;;  %v3451_v26 = vadd.f32 %v3443_v52, %v3433_v16 }
0x29e6   :  { %v3458_v1 = vmax.f32 %v3450_v14, 0.0  ;;  %v3459_v29 = vmax.f32 %v3451_v26, 0.0 }
0x29e8   :  { %3466 = vst [vmem:[#allocation7] sm:$0xff] %v3458_v1 }
0x29e9   :  { %3467 = vst [vmem:[#allocation7 + $0x8] sm:$0xff] %v3459_v29  ;;  %v9492_v40 = vpop.permute.xlu2 %3385 }
0x29ea   :  { %v3421_v54 = vadd.f32 %v9066_v21, %v9492_v40  ;;  %v3440_v50 = vadd.f32 %v9068_v42, %v9492_v40  ;;  %v7623_v21 = vld [vmem:[#allocation2 + $0x3c] sm:$0xf0] }
0x29eb   :  { %v7626_v42 = vor.u32 %v7877_v22, %v7623_v21 }
0x29ec   :  { %v3456_v10 = vadd.f32 %v3448_v33, %v3421_v54  ;;  %v3457_v62 = vadd.f32 %v3449_v32, %v3440_v50 }
0x29ee   :  { %v3464_v28 = vmax.f32 %v3456_v10, 0.0  ;;  %v3465_v13 = vmax.f32 %v3457_v62, 0.0 }
0x29f0   :  { %3472 = vst [vmem:[#allocation7 + $0x30] sm:$0xff] %v3464_v28 }
0x29f1   :  { %3473 = vst [vmem:[#allocation7 + $0x38] sm:$0xff] %v3465_v13 }
0x2a2d   :  { %v5760_v55 = vpop.f32.mrf.mxu0 }
0x2a2e   :  { %v5794_v52 = vmul.f32 %v5760_v55, %v9416_v51 }
0x2a33   :  { %v5788_v47 = vpop.f32.mrf.mxu3 }
0x2a35   :  { %v9500_v2 = vpop.f32.mrf.mxu0 }
0x2a3b   :  { %v5790_v56 = vpop.f32.mrf.mxu3 }
0x2a3c   :  { %v5793_v3 = vpack.c.bf16 %v5790_v56, %v5788_v47 }
0x2a3d   :  { %v5774_v19 = vpop.f32.mrf.mxu0 }
0x2a3e   :  { %7591 = vmatmul.msk.bf16.vlgmr.msra.gmra.mxu0 %vm391_vm2, %v5793_v3  ;;  %7592 = vmatmul.msk.bf16.vlgmr.msrb.gmra.mxu1 %vm391_vm2, %v5793_v3  ;;  %v5795_v14 = vmul.f32 %v5774_v19, %v9418_v27 }
0x2a3f   :  { %6176 = vmatpush.bf16.msrb.mxu1 %v7638_v9 }
0x2a43   :  { %6177 = vmatpush.bf16.msrb.mxu1 %v7626_v42 }
0x2a45   :  { %v9502_v48 = vpop.f32.mrf.mxu0 }
0x2abb   :  { %v5810_v6 = vpop.f32.mrf.mxu0  ;;  %v5824_v20 = vpop.f32.mrf.mxu1 }
0x2abc   :  { %v5811_v57 = vadd.f32 1e-06, %v5810_v6  ;;  %v5825_v11 = vadd.f32 1e-06, %v5824_v20  ;;  %v5796_v6 = vmul.f32 %v9500_v2, %v9426_v39 }
0x2abe   :  { %8127 = vrcp.f32 %v5811_v57  ;;  %v5840_v30 = vand.u32 2147483648, %v5811_v57  ;;  %v5838_v60 = vand.u32 2147483647, %v5811_v57  ;;  %v5855_v45 = vand.u32 2147483648, %v5825_v11 }
0x2abf   :  { %8129 = vrcp.f32 %v5825_v11  ;;  %v5853_v0 = vand.u32 2147483647, %v5825_v11  ;;  %vm5834_vm15 = vweird.f32 %v5811_v57  ;;  %vm5849_vm4 = vweird.f32 %v5825_v11 }
0x2ac0   :  { %v5841_v26 = vor.u32 1.1754944e-38, %v5840_v30  ;;  %vm5839_vm5 = vcmp.eq.f32.partialorder %v5838_v60, 8.507059e+37  ;;  %v5856_v32 = vor.u32 1.1754944e-38, %v5855_v45  ;;  %v7871_v60 = vld [vmem:[#allocation3 + $0x34] sm:$0xf] }
0x2ac1   :  { %vm5854_vm7 = vcmp.eq.f32.partialorder %v5853_v0, 8.507059e+37  ;;  %v7688_v0 = vld [vmem:[#allocation2 + $0x48] sm:$0xf] }
0x2ac3   :  { %v5812_v53 = vpop.f32.mrf.mxu0  ;;  %v5826_v34 = vpop.f32.mrf.mxu1 }
0x2ac4   :  { %v8128_v37 = vpop.eup %8127  ;;  %v5813_v18 = vadd.f32 1e-06, %v5812_v53  ;;  %v9504_v31 = vadd.f32 1e-06, %v5826_v34 }
0x2ac5   :  { %v8130_v58 = vpop.eup %8129  ;;  %v5830_v12 = vmul.f32 %v8128_v37, %v5811_v57  ;;  %vm5835_vm13 = vweird.f32 %v8128_v37 }
0x2ac6   :  { %v5845_v41 = vmul.f32 %v8130_v58, %v5825_v11  ;;  %8131 = vrcp.f32 %v5813_v18  ;;  %vm5850_vm14 = vweird.f32 %v8130_v58  ;;  %vm5836_vm3 = vmor %vm5834_vm15, %vm5835_vm13  ;;  %v5870_v27 = vand.u32 2147483648, %v5813_v18 }
0x2ac7   :  { %v5831_v46 = vsub.f32 1.0, %v5830_v12  ;;  %8133 = vrcp.f32 %v9504_v31  ;;  %vm5851_vm6 = vmor %vm5849_vm4, %vm5850_vm14  ;;  %v5868_v3 = vand.u32 2147483647, %v5813_v18  ;;  %v5885_v63 = vand.u32 2147483648, %v9504_v31 }
0x2ac8   :  { %v5846_v59 = vsub.f32 1.0, %v5845_v41  ;;  %v5883_v21 = vand.u32 2147483647, %v9504_v31  ;;  %vm5864_vm10 = vweird.f32 %v5813_v18  ;;  %v5871_v55 = vor.u32 1.1754944e-38, %v5870_v27 }
0x2ac9   :  { %v5832_v49 = vmul.f32 %v8128_v37, %v5831_v46  ;;  %vm5879_vm12 = vweird.f32 %v9504_v31  ;;  %vm5869_vm13 = vcmp.eq.f32.partialorder %v5868_v3, 8.507059e+37  ;;  %v5886_v57 = vor.u32 1.1754944e-38, %v5885_v63 }
0x2aca   :  { %v5847_v8 = vmul.f32 %v8130_v58, %v5846_v59  ;;  %v5797_v11 = vmul.f32 %v9502_v48, %v9428_v35  ;;  %vm5884_vm15 = vcmp.eq.f32.partialorder %v5883_v21, 8.507059e+37  ;;  %v7872_v35 = vld [vmem:[#allocation3 + $0x34] sm:$0xf0]  ;;  %v7597_v48 = vld [vmem:[#allocation3 + $0x38] sm:$0xf0] }
0x2acb   :  { %v5833_v4 = vadd.f32 %v8128_v37, %v5832_v49  ;;  %v7893_v59 = vld [vmem:[#allocation2 + $0x50] sm:$0xf0]  ;;  %v7595_v49 = vld [vmem:[#allocation3 + $0x30] sm:$0xf] }
0x2acc   :  { %v8132_v16 = vpop.eup %8131  ;;  %v5848_v1 = vadd.f32 %v8130_v58, %v5847_v8  ;;  %v7596_v45 = vor.u32 %v7872_v35, %v7595_v49  ;;  %v7600_v8 = vor.u32 %v7871_v60, %v7597_v48 }
0x2acd   :  { %v8134_v29 = vpop.eup %8133  ;;  %v5837_v33 = vsel %vm5836_vm3, %v8128_v37, %v5833_v4  ;;  %v5860_v54 = vmul.f32 %v8132_v16, %v5813_v18  ;;  %vm5865_vm8 = vweird.f32 %v8132_v16  ;;  %v7890_v4 = vld [vmem:[#allocation2 + $0x38] sm:$0xf0] }
0x2ace   :  { %v5842_v50 = vsel %vm5839_vm5, %v5841_v26, %v5837_v33  ;;  %v5852_v10 = vsel %vm5851_vm6, %v8130_v58, %v5848_v1  ;;  %v5875_v51 = vmul.f32 %v8134_v29, %v9504_v31  ;;  %vm5880_vm9 = vweird.f32 %v8134_v29  ;;  %vm5866_vm11 = vmor %vm5864_vm10, %vm5865_vm8  ;;  %v7874_v26 = vld [vmem:[#allocation3 + $0x44] sm:$0xf0]  ;;  %v7605_v1 = vld [vmem:[#allocation3 + $0x48] sm:$0xf0] }
0x2acf   :  { %v5857_v62 = vsel %vm5854_vm7, %v5856_v32, %v5852_v10  ;;  %v5861_v28 = vsub.f32 1.0, %v5860_v54  ;;  %v9510_v13 = vmul.f32 %v5842_v50, %v5794_v52  ;;  %vm5881_vm14 = vmor %vm5879_vm12, %vm5880_vm9  ;;  %v7689_v52 = vor.u32 %v7893_v59, %v7688_v0  ;;  %v7873_v33 = vld [vmem:[#allocation3 + $0x44] sm:$0xf] }
0x2ad0   :  { %v5876_v47 = vsub.f32 1.0, %v5875_v51  ;;  %v9512_v36 = vmul.f32 %v5857_v62, %v5795_v14  ;;  %v7608_v54 = vor.u32 %v7873_v33, %v7605_v1 }
0x2ad1   :  { %v5862_v56 = vmul.f32 %v8132_v16, %v5861_v28 }
0x2ad2   :  { %v5877_v9 = vmul.f32 %v8134_v29, %v5876_v47  ;;  %v5889_v22 = vpack.c.bf16 %v9512_v36, %v9510_v13 }
0x2ad3   :  { %v5863_v42 = vadd.f32 %v8132_v16, %v5862_v56 }
0x2ad4   :  { %v5878_v19 = vadd.f32 %v8134_v29, %v5877_v9  ;;  %5891 = vst [vmem:[#allocation3 + $0x50] sm:$0xff] %v5889_v22  ;;  %v5931_v12 = vunpack.c.l.b16 %v5889_v22  ;;  %v5932_v2 = vunpack.c.h.b16 %v5889_v22 }
0x2ad5   :  { %v5867_v20 = vsel %vm5866_vm11, %v8132_v16, %v5863_v42  ;;  %v7676_v16 = vld [vmem:[#allocation2 + $0x30] sm:$0xf] }
0x2ad6   :  { %v5872_v53 = vsel %vm5869_vm13, %v5871_v55, %v5867_v20  ;;  %v5882_v34 = vsel %vm5881_vm14, %v8134_v29, %v5878_v19  ;;  %v7677_v14 = vor.u32 %v7890_v4, %v7676_v16  ;;  %v7603_v29 = vld [vmem:[#allocation3 + $0x40] sm:$0xf] }
0x2ad7   :  { %v5887_v37 = vsel %vm5884_vm15, %v5886_v57, %v5882_v34  ;;  %v9523_v18 = vmul.f32 %v5872_v53, %v5796_v6  ;;  %v7604_v32 = vor.u32 %v7874_v26, %v7603_v29 }
0x2ad8   :  { %v9525_v58 = vmul.f32 %v5887_v37, %v5797_v11 }
0x2ada   :  { %v5890_v31 = vpack.c.bf16 %v9525_v58, %v9523_v18 }
0x2adb   :  { %v7611_v51 = vld [vmem:[#allocation3 + $0x50] sm:$0xf]  ;;  %v7875_v62 = vld [vmem:[#allocation3 + $0x54] sm:$0xf] }
0x2adc   :  { %v5933_v39 = vunpack.c.l.b16 %v5890_v31  ;;  %5892 = vst [vmem:[#allocation3 + $0x58] sm:$0xff] %v5890_v31  ;;  %v5934_v41 = vunpack.c.h.b16 %v5890_v31 }
0x2ade   :  { %v9529_v46 = vpack.c.b16 %v5933_v39, %v5931_v12  ;;  %v5936_v30 = vpack.c.b16 %v5934_v41, %v5932_v2 }
0x2ae0   :  { %5946 = vmatpush.bf16.xpose.msrb.mxu2 %v9529_v46  ;;  %5970 = vmatpush.bf16.xpose.msra.mxu3 %v5936_v30 }
0x2ae3   :  { %v7876_v50 = vld [vmem:[#allocation3 + $0x54] sm:$0xf0]  ;;  %v7613_v10 = vld [vmem:[#allocation3 + $0x58] sm:$0xf0] }
0x2ae4   :  { %v7612_v28 = vor.u32 %v7876_v50, %v7611_v51  ;;  %v7616_v27 = vor.u32 %v7875_v62, %v7613_v10 }
0x2ae7   :  { %5947 = vmatmul.bf16.vlgmr.msrb.gmra.mxu2 %v7596_v45  ;;  %5971 = vmatmul.bf16.vlgmr.msra.gmra.mxu3 %v7600_v8 }
0x2ae8   :  { %6227 = vmatpush.bf16.msra.mxu2 %v5936_v30 }
0x2aec   :  { %6567 = vmatpush.bf16.msrb.mxu2 %v7689_v52 }
0x2af0   :  { %6568 = vmatpush.bf16.msrb.mxu2 %v7677_v14 }
0x2af7   :  { %5952 = vmatmul.bf16.gmra.mxu2 %v7604_v32  ;;  %5976 = vmatmul.bf16.gmra.mxu3 %v7608_v54 }
0x2b07   :  { %5957 = vmatmul.bf16.gmra.mxu2 %v7612_v28  ;;  %5981 = vmatmul.bf16.gmra.mxu3 %v7616_v27 }
0x2b6a   :  { %v5948_v47 = vpop.f32.mrf.mxu2  ;;  %v5972_v56 = vpop.f32.mrf.mxu3 }
0x2b6b   :  { %v5973_v3 = vadd.f32 %v5972_v56, %v5948_v47 }
0x2b6d   :  { %v5988_v14 = vmul.f32 %v5973_v3, %v9444_v43 }
0x2b72   :  { %v5950_v63 = vpop.f32.mrf.mxu2  ;;  %v5974_v9 = vpop.f32.mrf.mxu3 }
0x2b73   :  { %v5975_v21 = vadd.f32 %v5974_v9, %v5950_v63 }
0x2b75   :  { %v5989_v56 = vmul.f32 %v5975_v21, %v9450_v38 }
0x2b7a   :  { %v5953_v22 = vpop.f32.mrf.mxu2  ;;  %v5977_v42 = vpop.f32.mrf.mxu3 }
0x2b7b   :  { %v9532_v55 = vadd.f32 %v5977_v42, %v5953_v22 }
0x2b7d   :  { %v5990_v21 = vmul.f32 %v9532_v55, %v9459_v15 }
0x2b82   :  { %v5955_v19 = vpop.f32.mrf.mxu2  ;;  %v5979_v6 = vpop.f32.mrf.mxu3 }
0x2b83   :  { %v9534_v20 = vadd.f32 %v5979_v6, %v5955_v19 }
0x2b85   :  { %v5991_v55 = vmul.f32 %v9534_v20, %v9467_v23 }
0x2b8a   :  { %v5958_v57 = vpop.f32.mrf.mxu2  ;;  %v5982_v11 = vpop.f32.mrf.mxu3 }
0x2b8b   :  { %v5983_v37 = vadd.f32 %v5982_v11, %v5958_v57 }
0x2b92   :  { %v5960_v53 = vpop.f32.mrf.mxu2  ;;  %v5984_v34 = vpop.f32.mrf.mxu3 }
0x2b93   :  { %v5985_v31 = vadd.f32 %v5984_v34, %v5960_v53 }
0x2b95   :  { %v5987_v12 = vpack.c.bf16 %v5985_v31, %v5983_v37 }
0x2b97   :  { %6005 = vmatpush.bf16.msrb.mxu0 %v5987_v12 }
0x2b9a   :  { %7617 = vmatmul.msk.bf16.vlgmr.msrb.gmra.mxu0 %vm391_vm2, %v9457_v7 }
0x2baa   :  { %7618 = vmatmul.msk.bf16.gmra.mxu0 %vm391_vm2, %v9472_v5 }
0x2c17   :  { %v6007_v39 = vpop.f32.mrf.mxu0 }
0x2c18   :  { %v6008_v2 = vadd.f32 1e-06, %v6007_v39 }
0x2c1a   :  { %8135 = vrcp.f32 %v6008_v2  ;;  %v6028_v60 = vand.u32 2147483648, %v6008_v2  ;;  %v6026_v45 = vand.u32 2147483647, %v6008_v2  ;;  %vm6022_vm4 = vweird.f32 %v6008_v2 }
0x2c1c   :  { %v6029_v5 = vor.u32 1.1754944e-38, %v6028_v60  ;;  %vm6027_vm6 = vcmp.eq.f32.partialorder %v6026_v45, 8.507059e+37 }
0x2c1f   :  { %v6009_v41 = vpop.f32.mrf.mxu0 }
0x2c20   :  { %v8136_v30 = vpop.eup %8135  ;;  %v6010_v35 = vadd.f32 1e-06, %v6009_v41 }
0x2c21   :  { %v6018_v48 = vmul.f32 %v8136_v30, %v6008_v2  ;;  %vm6023_vm3 = vweird.f32 %v8136_v30 }
0x2c22   :  { %8137 = vrcp.f32 %v6010_v35  ;;  %vm6024_vm5 = vmor %vm6022_vm4, %vm6023_vm3  ;;  %v6043_v32 = vand.u32 2147483648, %v6010_v35  ;;  %v6041_v54 = vand.u32 2147483647, %v6010_v35  ;;  %vm6037_vm8 = vweird.f32 %v6010_v35 }
0x2c23   :  { %v6019_v59 = vsub.f32 1.0, %v6018_v48 }
0x2c24   :  { %v6044_v43 = vor.u32 1.1754944e-38, %v6043_v32  ;;  %vm6042_vm10 = vcmp.eq.f32.partialorder %v6041_v54, 8.507059e+37  ;;  %v3444_v32 = vld [vmem:[#allocation4 + $0x10] sm:$0xff]  ;;  %v3445_v54 = vld [vmem:[#allocation4 + $0x18] sm:$0xff] }
0x2c25   :  { %v6020_v49 = vmul.f32 %v8136_v30, %v6019_v59 }
0x2c27   :  { %v6021_v8 = vadd.f32 %v8136_v30, %v6020_v49  ;;  %v6012_v0 = vpop.f32.mrf.mxu0 }
0x2c28   :  { %v8138_v7 = vpop.eup %8137  ;;  %v6013_v52 = vadd.f32 1e-06, %v6012_v0 }
0x2c29   :  { %v6033_v4 = vmul.f32 %v8138_v7, %v6010_v35  ;;  %v6025_v16 = vsel %vm6024_vm5, %v8136_v30, %v6021_v8  ;;  %vm6038_vm7 = vweird.f32 %v8138_v7 }
0x2c2a   :  { %8139 = vrcp.f32 %v6013_v52  ;;  %v6030_v1 = vsel %vm6027_vm6, %v6029_v5, %v6025_v16  ;;  %vm6039_vm9 = vmor %vm6037_vm8, %vm6038_vm7  ;;  %v6058_v9 = vand.u32 2147483648, %v6013_v52  ;;  %v6056_v19 = vand.u32 2147483647, %v6013_v52 }
0x2c2b   :  { %v6034_v26 = vsub.f32 1.0, %v6033_v4  ;;  %v9541_v29 = vmul.f32 %v6030_v1, %v5988_v14  ;;  %vm6052_vm12 = vweird.f32 %v6013_v52  ;;  %v54_v1 = vld [vmem:[%s9719_s5 + $0x8] sm:$0xff] }
0x2c2c   :  { %v6059_v53 = vor.u32 1.1754944e-38, %v6058_v9  ;;  %vm6057_vm14 = vcmp.eq.f32.partialorder %v6056_v19, 8.507059e+37 }
0x2c2d   :  { %v6035_v33 = vmul.f32 %v8138_v7, %v6034_v26  ;;  %v6077_v50 = vpack.c.bf16 %v9541_v29, %v9541_v29 }
0x2c2f   :  { %v6036_v10 = vadd.f32 %v8138_v7, %v6035_v33  ;;  %v6014_v51 = vpop.f32.mrf.mxu0  ;;  %6081 = vst.msk [vmem:[#allocation2 + $0x38] sm:$0xf] %vm297_vm0, %v6077_v50  ;;  %v6097_v34 = vunpack.c.l.b16 %v6077_v50 }
0x2c30   :  { %v8140_v62 = vpop.eup %8139  ;;  %v6015_v28 = vadd.f32 1e-06, %v6014_v51 }
0x2c31   :  { %v6048_v27 = vmul.f32 %v8140_v62, %v6013_v52  ;;  %v6040_v47 = vsel %vm6039_vm9, %v8138_v7, %v6036_v10  ;;  %vm6053_vm11 = vweird.f32 %v8140_v62 }
0x2c32   :  { %8141 = vrcp.f32 %v6015_v28  ;;  %v6045_v63 = vsel %vm6042_vm10, %v6044_v43, %v6040_v47  ;;  %vm6054_vm13 = vmor %vm6052_vm12, %vm6053_vm11  ;;  %v6073_v30 = vand.u32 2147483648, %v6015_v28  ;;  %v6071_v48 = vand.u32 2147483647, %v6015_v28 }
0x2c33   :  { %v6049_v3 = vsub.f32 1.0, %v6048_v27  ;;  %v9547_v22 = vmul.f32 %v6045_v63, %v5989_v56  ;;  %vm6067_vm3 = vweird.f32 %v6015_v28  ;;  %v7892_v63 = vld [vmem:[#allocation2 + $0x4c] sm:$0xf] }
0x2c34   :  { %v6074_v15 = vor.u32 1.1754944e-38, %v6073_v30  ;;  %vm6072_vm5 = vcmp.eq.f32.partialorder %v6071_v48, 8.507059e+37 }
0x2c35   :  { %v6050_v42 = vmul.f32 %v8140_v62, %v6049_v3  ;;  %v6078_v6 = vpack.c.bf16 %v9547_v22, %v9547_v22 }
0x2c36   :  { %v7629_v20 = vld [vmem:[#allocation2 + $0x38] sm:$0xf] }
0x2c37   :  { %v6051_v57 = vadd.f32 %v8140_v62, %v6050_v42  ;;  %v6098_v38 = vunpack.c.l.b16 %v6078_v6  ;;  %6082 = vst.msk [vmem:[#allocation2 + $0x44] sm:$0xf] %vm297_vm0, %v6078_v6  ;;  %v7889_v42 = vld [vmem:[#allocation2 + $0x34] sm:$0xf] }
0x2c38   :  { %v8142_v11 = vpop.eup %8141 }
0x2c39   :  { %v6055_v37 = vsel %vm6054_vm13, %v8140_v62, %v6051_v57  ;;  %v6063_v31 = vmul.f32 %v8142_v11, %v6015_v28  ;;  %v9554_v12 = vpack.c.b16 %v6098_v38, %v6097_v34  ;;  %vm6068_vm15 = vweird.f32 %v8142_v11 }
0x2c3a   :  { %v6060_v39 = vsel %vm6057_vm14, %v6059_v53, %v6055_v37  ;;  %vm6069_vm4 = vmor %vm6067_vm3, %vm6068_vm15 }
0x2c3b   :  { %v6064_v2 = vsub.f32 1.0, %v6063_v31  ;;  %v9556_v41 = vmul.f32 %v6060_v39, %v5990_v21  ;;  %6105 = vxpose.xlu0.c.b16.start [1/2] (short) (narrow) %v9554_v12, 16 }
0x2c3d   :  { %v6065_v35 = vmul.f32 %v8142_v11, %v6064_v2  ;;  %v6079_v59 = vpack.c.bf16 %v9556_v41, %v9556_v41 }
0x2c3e   :  { %v7879_v23 = vld [vmem:[#allocation2 + $0x40] sm:$0xf0] }
0x2c3f   :  { %v6066_v49 = vadd.f32 %v8142_v11, %v6065_v35  ;;  %6083 = vst.msk [vmem:[#allocation2 + $0x50] sm:$0xf] %vm297_vm0, %v6079_v59  ;;  %v6099_v7 = vunpack.c.l.b16 %v6079_v59  ;;  %v7630_v26 = vor.u32 %v7879_v23, %v7629_v20 }
0x2c41   :  { %v6070_v60 = vsel %vm6069_vm4, %v8142_v11, %v6066_v49 }
0x2c42   :  { %v6075_v45 = vsel %vm6072_vm5, %v6074_v15, %v6070_v60 }
0x2c43   :  { %v9564_v8 = vmul.f32 %v6075_v45, %v5991_v55 }
0x2c45   :  { %v6080_v0 = vpack.c.bf16 %v9564_v8, %v9564_v8 }
0x2c46   :  { %v7641_v4 = vld [vmem:[#allocation2 + $0x50] sm:$0xf] }
0x2c47   :  { %v6100_v52 = vunpack.c.l.b16 %v6080_v0  ;;  %6084 = vst.msk [vmem:[#allocation2 + $0x5c] sm:$0xf] %vm297_vm0, %v6080_v0 }
0x2c49   :  { %v9569_v5 = vpack.c.b16 %v6100_v52, %v6099_v7  ;;  %v7660_v52 = vld [vmem:[#allocation3 + $0x48] sm:$0xf0] }
0x2c4b   :  { %6106 = vxpose.xlu0.c.b16.end [2/2] (short) (narrow) %v9569_v5, 16 }
0x2c4e   :  { %v7882_v16 = vld [vmem:[#allocation2 + $0x58] sm:$0xf0] }
0x2c4f   :  { %v7642_v14 = vor.u32 %v7882_v16, %v7641_v4 }
0x2c51   :  { %6190 = vmatpush.bf16.msra.mxu0 %v7642_v14 }
0x2c55   :  { %6191 = vmatpush.bf16.msra.mxu0 %v7630_v26 }
0x2cb9   :  { %3375 = vperm.xlu0 %7900, %v54_v1  }
0x2ce7   :  { %v6113_v33 = vpop.trf.xlu0 }
0x2ce8   :  { %7643 = vmatmul.msk.bf16.vlgmr.msra.gmra.mxu1 %vm99_vm1, %v6113_v33  ;;  %7645 = vmatmul.msk.bf16.vlgmr.msra.gmra.mxu0 %vm99_vm1, %v6113_v33 }
0x2ce9   :  { %6213 = vmatpush.bf16.msra.mxu1 %v9529_v46  ;;  %v7690_v46 = vld [vmem:[#allocation2 + $0x54] sm:$0xf0] }
0x2cea   :  { %v7693_v9 = vor.u32 %v7892_v63, %v7690_v46 }
0x2cf8   :  { %7644 = vmatmul.msk.bf16.vlgmr.msrb.gmra.mxu1 %vm99_vm1, %v6113_v33 }
0x2d2b   :  { %v9579_v50 = vpop.permute.xlu0 %3375 }
0x2d2c   :  { %v3416_v10 = vadd.f32 %v9058_v61, %v9579_v50  ;;  %v3435_v51 = vadd.f32 %v9060_v24, %v9579_v50  ;;  %v7678_v61 = vld [vmem:[#allocation2 + $0x3c] sm:$0xf0] }
0x2d2d   :  { %v7681_v24 = vor.u32 %v7889_v42, %v7678_v61 }
0x2d2e   :  { %v3452_v62 = vadd.f32 %v3444_v32, %v3416_v10  ;;  %v3453_v28 = vadd.f32 %v3445_v54, %v3435_v51 }
0x2d30   :  { %v3460_v43 = vmax.f32 %v3452_v62, 0.0  ;;  %v3461_v27 = vmax.f32 %v3453_v28, 0.0 }
0x2d32   :  { %3468 = vst [vmem:[#allocation7 + $0x10] sm:$0xff] %v3460_v43 }
0x2d33   :  { %3469 = vst [vmem:[#allocation7 + $0x18] sm:$0xff] %v3461_v27 }
0x2d65   :  { %v6193_v47 = vpop.f32.mrf.mxu0  ;;  %v6165_v19 = vpop.f32.mrf.mxu1 }
0x2d66   :  { %v6199_v33 = vmul.f32 %v6165_v19, %v9510_v13 }
0x2d6d   :  { %v6195_v56 = vpop.f32.mrf.mxu0  ;;  %v9587_v6 = vpop.f32.mrf.mxu1 }
0x2d6e   :  { %v6198_v3 = vpack.c.bf16 %v6195_v56, %v6193_v47 }
0x2d70   :  { %7646 = vmatmul.msk.bf16.vlgmr.msra.gmra.mxu1 %vm391_vm2, %v6198_v3  ;;  %7647 = vmatmul.msk.bf16.vlgmr.msra.gmra.mxu2 %vm391_vm2, %v6198_v3 }
0x2d71   :  { %6581 = vmatpush.bf16.msra.mxu2 %v7693_v9 }
0x2d75   :  { %6582 = vmatpush.bf16.msra.mxu2 %v7681_v24  ;;  %v6179_v57 = vpop.f32.mrf.mxu1 }
0x2d76   :  { %v6200_v10 = vmul.f32 %v6179_v57, %v9512_v36 }
0x2d7d   :  { %v9589_v11 = vpop.f32.mrf.mxu1 }
0x2ded   :  { %v6215_v53 = vpop.f32.mrf.mxu1 }
0x2dee   :  { %v6216_v34 = vadd.f32 1e-06, %v6215_v53 }
0x2df0   :  { %8143 = vrcp.f32 %v6216_v34  ;;  %v6245_v60 = vand.u32 2147483648, %v6216_v34  ;;  %vm6239_vm7 = vweird.f32 %v6216_v34  ;;  %v6243_v0 = vand.u32 2147483647, %v6216_v34 }
0x2df2   :  { %v6246_v26 = vor.u32 1.1754944e-38, %v6245_v60  ;;  %vm6244_vm10 = vcmp.eq.f32.partialorder %v6243_v0, 8.507059e+37  ;;  %v7883_v60 = vld [vmem:[#allocation3 + $0x34] sm:$0xf] }
0x2df3   :  { %v6229_v38 = vpop.f32.mrf.mxu2 }
0x2df4   :  { %v6230_v21 = vadd.f32 1e-06, %v6229_v38 }
0x2df5   :  { %v6217_v37 = vpop.f32.mrf.mxu1 }
0x2df6   :  { %v8144_v31 = vpop.eup %8143  ;;  %8145 = vrcp.f32 %v6230_v21  ;;  %v6218_v2 = vadd.f32 1e-06, %v6217_v37  ;;  %v6260_v4 = vand.u32 2147483648, %v6230_v21  ;;  %v6258_v20 = vand.u32 2147483647, %v6230_v21 }
0x2df7   :  { %v6235_v39 = vmul.f32 %v8144_v31, %v6216_v34  ;;  %vm6240_vm6 = vweird.f32 %v8144_v31  ;;  %vm6254_vm11 = vweird.f32 %v6230_v21  ;;  %v6202_v37 = vmul.f32 %v9589_v11, %v9525_v58  ;;  %v7884_v58 = vld [vmem:[#allocation3 + $0x34] sm:$0xf0]  ;;  %v7650_v11 = vld [vmem:[#allocation3 + $0x30] sm:$0xf] }
0x2df8   :  { %8147 = vrcp.f32 %v6218_v2  ;;  %vm9591_vm8 = vmor %vm6239_vm7, %vm6240_vm6  ;;  %v6261_v62 = vor.u32 1.1754944e-38, %v6260_v4  ;;  %vm6259_vm13 = vcmp.eq.f32.partialorder %v6258_v20, 8.507059e+37  ;;  %vm6269_vm15 = vweird.f32 %v6218_v2  ;;  %v7658_v4 = vld [vmem:[#allocation3 + $0x40] sm:$0xf] }
0x2df9   :  { %v6236_v30 = vsub.f32 1.0, %v6235_v39  ;;  %v6275_v56 = vand.u32 2147483648, %v6218_v2  ;;  %v6273_v3 = vand.u32 2147483647, %v6218_v2 }
0x2dfb   :  { %v6237_v35 = vmul.f32 %v8144_v31, %v6236_v30  ;;  %v6231_v48 = vpop.f32.mrf.mxu2  ;;  %v6276_v57 = vor.u32 1.1754944e-38, %v6275_v56  ;;  %vm6274_vm5 = vcmp.eq.f32.partialorder %v6273_v3, 8.507059e+37 }
0x2dfc   :  { %v8146_v59 = vpop.eup %8145  ;;  %v6232_v49 = vadd.f32 1e-06, %v6231_v48 }
0x2dfd   :  { %v6238_v15 = vadd.f32 %v8144_v31, %v6237_v35  ;;  %v6250_v55 = vmul.f32 %v8146_v59, %v6230_v21  ;;  %vm6255_vm9 = vweird.f32 %v8146_v59  ;;  %v6201_v21 = vmul.f32 %v9587_v6, %v9523_v18  ;;  %v7652_v6 = vld [vmem:[#allocation3 + $0x38] sm:$0xf0] }
0x2dfe   :  { %8149 = vrcp.f32 %v6232_v49  ;;  %v8148_v45 = vpop.eup %8147  ;;  %vm6256_vm12 = vmor %vm6254_vm11, %vm6255_vm9  ;;  %v6288_v36 = vand.u32 2147483647, %v6232_v49  ;;  %v6290_v61 = vand.u32 2147483648, %v6232_v49  ;;  %vm6284_vm6 = vweird.f32 %v6232_v49 }
0x2dff   :  { %v6251_v7 = vsub.f32 1.0, %v6250_v55  ;;  %v6265_v16 = vmul.f32 %v8148_v45, %v6218_v2  ;;  %v6242_v14 = vsel %vm9591_vm8, %v8144_v31, %v6238_v15  ;;  %vm6270_vm14 = vweird.f32 %v8148_v45 }
0x2e00   :  { %v6247_v51 = vsel %vm6244_vm10, %v6246_v26, %v6242_v14  ;;  %vm6271_vm3 = vmor %vm6269_vm15, %vm6270_vm14  ;;  %v6291_v38 = vor.u32 1.1754944e-38, %v6290_v61  ;;  %vm6289_vm8 = vcmp.eq.f32.partialorder %v6288_v36, 8.507059e+37  ;;  %v7655_v0 = vor.u32 %v7883_v60, %v7652_v6 }
0x2e01   :  { %v6252_v23 = vmul.f32 %v8146_v59, %v6251_v7  ;;  %v6266_v1 = vsub.f32 1.0, %v6265_v16  ;;  %v9599_v63 = vmul.f32 %v6247_v51, %v6199_v33  ;;  %v7886_v7 = vld [vmem:[#allocation3 + $0x44] sm:$0xf0]  ;;  %v7885_v16 = vld [vmem:[#allocation3 + $0x44] sm:$0xf] }
0x2e02   :  { %v7659_v14 = vor.u32 %v7886_v7, %v7658_v4 }
0x2e03   :  { %v6253_v32 = vadd.f32 %v8146_v59, %v6252_v23  ;;  %v6267_v28 = vmul.f32 %v8148_v45, %v6266_v1  ;;  %v7663_v23 = vor.u32 %v7885_v16, %v7660_v52 }
0x2e04   :  { %v8150_v54 = vpop.eup %8149 }
0x2e05   :  { %v6257_v43 = vsel %vm6256_vm12, %v8146_v59, %v6253_v32  ;;  %v6280_v27 = vmul.f32 %v8150_v54, %v6232_v49  ;;  %v6268_v46 = vadd.f32 %v8148_v45, %v6267_v28  ;;  %vm6285_vm4 = vweird.f32 %v8150_v54 }
0x2e06   :  { %v6262_v47 = vsel %vm6259_vm13, %v6261_v62, %v6257_v43  ;;  %vm6286_vm7 = vmor %vm6284_vm6, %vm6285_vm4 }
0x2e07   :  { %v6281_v13 = vsub.f32 1.0, %v6280_v27  ;;  %v9601_v9 = vmul.f32 %v6262_v47, %v6200_v10  ;;  %v6272_v42 = vsel %vm6271_vm3, %v8148_v45, %v6268_v46  ;;  %v7651_v45 = vor.u32 %v7884_v58, %v7650_v11 }
0x2e08   :  { %v6277_v34 = vsel %vm6274_vm5, %v6276_v57, %v6272_v42 }
0x2e09   :  { %v6282_v24 = vmul.f32 %v8150_v54, %v6281_v13  ;;  %v6294_v19 = vpack.c.bf16 %v9601_v9, %v9599_v63  ;;  %v9609_v2 = vmul.f32 %v6277_v34, %v6201_v21 }
0x2e0b   :  { %v6283_v53 = vadd.f32 %v8150_v54, %v6282_v24  ;;  %6296 = vst [vmem:[#allocation3 + $0x50] sm:$0xff] %v6294_v19  ;;  %v6336_v48 = vunpack.c.l.b16 %v6294_v19  ;;  %v6337_v49 = vunpack.c.h.b16 %v6294_v19 }
0x2e0d   :  { %v6287_v31 = vsel %vm6286_vm7, %v8150_v54, %v6283_v53 }
0x2e0e   :  { %v6292_v39 = vsel %vm6289_vm8, %v6291_v38, %v6287_v31 }
0x2e0f   :  { %v9611_v30 = vmul.f32 %v6292_v39, %v6202_v37 }
0x2e11   :  { %v6295_v35 = vpack.c.bf16 %v9611_v30, %v9609_v2 }
0x2e12   :  { %v7666_v1 = vld [vmem:[#allocation3 + $0x50] sm:$0xf]  ;;  %v7887_v33 = vld [vmem:[#allocation3 + $0x54] sm:$0xf] }
0x2e13   :  { %v6338_v59 = vunpack.c.l.b16 %v6295_v35  ;;  %6297 = vst [vmem:[#allocation3 + $0x58] sm:$0xff] %v6295_v35  ;;  %v6339_v15 = vunpack.c.h.b16 %v6295_v35 }
0x2e15   :  { %v9615_v55 = vpack.c.b16 %v6338_v59, %v6336_v48  ;;  %v6341_v18 = vpack.c.b16 %v6339_v15, %v6337_v49 }
0x2e17   :  { %6351 = vmatpush.bf16.xpose.msrb.mxu3 %v9615_v55  ;;  %6375 = vmatpush.bf16.xpose.msrb.mxu0 %v6341_v18 }
0x2e1a   :  { %v7888_v20 = vld [vmem:[#allocation3 + $0x54] sm:$0xf0]  ;;  %v7668_v26 = vld [vmem:[#allocation3 + $0x58] sm:$0xf0] }
0x2e1b   :  { %v7667_v32 = vor.u32 %v7888_v20, %v7666_v1  ;;  %v7671_v54 = vor.u32 %v7887_v33, %v7668_v26 }
0x2e1e   :  { %6352 = vmatmul.bf16.vlgmr.msrb.gmra.mxu3 %v7651_v45  ;;  %6376 = vmatmul.bf16.vlgmr.msrb.gmra.mxu0 %v7655_v0 }
0x2e1f   :  { %6632 = vmatpush.bf16.msra.mxu3 %v6341_v18 }
0x2e2e   :  { %6357 = vmatmul.bf16.gmra.mxu3 %v7659_v14  ;;  %6381 = vmatmul.bf16.gmra.mxu0 %v7663_v23 }
0x2e3e   :  { %6362 = vmatmul.bf16.gmra.mxu3 %v7667_v32  ;;  %6386 = vmatmul.bf16.gmra.mxu0 %v7671_v54 }
0x2e9b   :  { %v6377_v10 = vpop.f32.mrf.mxu0 }
0x2ea1   :  { %v6353_v51 = vpop.f32.mrf.mxu3 }
0x2ea2   :  { %v6378_v62 = vadd.f32 %v6377_v10, %v6353_v51 }
0x2ea3   :  { %v6379_v28 = vpop.f32.mrf.mxu0 }
0x2ea4   :  { %v6393_v45 = vmul.f32 %v6378_v62, %v9541_v29 }
0x2ea9   :  { %v6355_v43 = vpop.f32.mrf.mxu3 }
0x2eaa   :  { %v6380_v27 = vadd.f32 %v6379_v28, %v6355_v43 }
0x2eab   :  { %v6382_v47 = vpop.f32.mrf.mxu0 }
0x2eac   :  { %v6394_v10 = vmul.f32 %v6380_v27, %v9547_v22 }
0x2eb1   :  { %v6358_v46 = vpop.f32.mrf.mxu3 }
0x2eb2   :  { %v9618_v56 = vadd.f32 %v6382_v47, %v6358_v46 }
0x2eb3   :  { %v6384_v3 = vpop.f32.mrf.mxu0 }
0x2eb4   :  { %v6395_v22 = vmul.f32 %v9618_v56, %v9556_v41 }
0x2eb9   :  { %v6360_v13 = vpop.f32.mrf.mxu3 }
0x2eba   :  { %v9620_v36 = vadd.f32 %v6384_v3, %v6360_v13 }
0x2ebb   :  { %v6387_v61 = vpop.f32.mrf.mxu0 }
0x2ebc   :  { %v6396_v56 = vmul.f32 %v9620_v36, %v9564_v8  ;;  %v55_v36 = vld [vmem:[%s9719_s5 + $0x10] sm:$0xff] }
0x2ec1   :  { %v6363_v42 = vpop.f32.mrf.mxu3 }
0x2ec2   :  { %v6388_v57 = vadd.f32 %v6387_v61, %v6363_v42 }
0x2ec3   :  { %v6389_v24 = vpop.f32.mrf.mxu0 }
0x2ec9   :  { %v6365_v19 = vpop.f32.mrf.mxu3 }
0x2eca   :  { %v6390_v53 = vadd.f32 %v6389_v24, %v6365_v19 }
0x2ecc   :  { %v6392_v34 = vpack.c.bf16 %v6390_v53, %v6388_v57 }
0x2ece   :  { %6410 = vmatpush.bf16.msrb.mxu1 %v6392_v34 }
0x2ed1   :  { %7672 = vmatmul.msk.bf16.vlgmr.msrb.gmra.mxu1 %vm391_vm2, %v9554_v12 }
0x2ee1   :  { %7673 = vmatmul.msk.bf16.gmra.mxu1 %vm391_vm2, %v9569_v5 }
0x2f4e   :  { %v6412_v38 = vpop.f32.mrf.mxu1 }
0x2f4f   :  { %v6413_v21 = vadd.f32 1e-06, %v6412_v38 }
0x2f51   :  { %8151 = vrcp.f32 %v6413_v21  ;;  %v6433_v49 = vand.u32 2147483648, %v6413_v21  ;;  %v6431_v15 = vand.u32 2147483647, %v6413_v21  ;;  %vm6427_vm10 = vweird.f32 %v6413_v21 }
0x2f53   :  { %v6434_v5 = vor.u32 1.1754944e-38, %v6433_v49  ;;  %vm6432_vm12 = vcmp.eq.f32.partialorder %v6431_v15, 8.507059e+37 }
0x2f56   :  { %v6414_v37 = vpop.f32.mrf.mxu1 }
0x2f57   :  { %v8152_v31 = vpop.eup %8151  ;;  %v6415_v39 = vadd.f32 1e-06, %v6414_v37 }
0x2f58   :  { %v6423_v35 = vmul.f32 %v8152_v31, %v6413_v21  ;;  %vm6428_vm9 = vweird.f32 %v8152_v31 }
0x2f59   :  { %8153 = vrcp.f32 %v6415_v39  ;;  %vm6429_vm11 = vmor %vm6427_vm10, %vm6428_vm9  ;;  %v6448_v16 = vand.u32 2147483648, %v6415_v39  ;;  %v6446_v14 = vand.u32 2147483647, %v6415_v39  ;;  %vm6442_vm14 = vweird.f32 %v6415_v39 }
0x2f5a   :  { %v6424_v48 = vsub.f32 1.0, %v6423_v35 }
0x2f5b   :  { %v6449_v32 = vor.u32 1.1754944e-38, %v6448_v16  ;;  %vm6447_vm3 = vcmp.eq.f32.partialorder %v6446_v14, 8.507059e+37 }
0x2f5c   :  { %v6425_v59 = vmul.f32 %v8152_v31, %v6424_v48 }
0x2f5e   :  { %v6417_v18 = vpop.f32.mrf.mxu1  ;;  %v6426_v58 = vadd.f32 %v8152_v31, %v6425_v59 }
0x2f5f   :  { %v8154_v12 = vpop.eup %8153  ;;  %v6418_v6 = vadd.f32 1e-06, %v6417_v18 }
0x2f60   :  { %v6438_v11 = vmul.f32 %v8154_v12, %v6415_v39  ;;  %v6430_v60 = vsel %vm6429_vm11, %v8152_v31, %v6426_v58  ;;  %vm6443_vm13 = vweird.f32 %v8154_v12 }
0x2f61   :  { %8155 = vrcp.f32 %v6418_v6  ;;  %v6435_v7 = vsel %vm6432_vm12, %v6434_v5, %v6430_v60  ;;  %vm6444_vm15 = vmor %vm6442_vm14, %vm6443_vm13  ;;  %v6463_v28 = vand.u32 2147483648, %v6418_v6  ;;  %v6461_v46 = vand.u32 2147483647, %v6418_v6 }
0x2f62   :  { %v6439_v0 = vsub.f32 1.0, %v6438_v11  ;;  %v6436_v52 = vmul.f32 %v6435_v7, %v6393_v45  ;;  %vm6457_vm5 = vweird.f32 %v6418_v6 }
0x2f63   :  { %v6464_v42 = vor.u32 1.1754944e-38, %v6463_v28  ;;  %vm6462_vm7 = vcmp.eq.f32.partialorder %v6461_v46, 8.507059e+37 }
0x2f64   :  { %v6440_v4 = vmul.f32 %v8154_v12, %v6439_v0  ;;  %v6482_v23 = vpack.c.bf16 %v6436_v52, %v6436_v52  ;;  %v3446_v52 = vld [vmem:[#allocation4 + $0x20] sm:$0xff] }
0x2f66   :  { %v6419_v20 = vpop.f32.mrf.mxu1  ;;  %v6441_v26 = vadd.f32 %v8154_v12, %v6440_v4  ;;  %6486 = vst.msk [vmem:[#allocation2 + $0x38] sm:$0xf] %vm297_vm0, %v6482_v23  ;;  %v6502_v24 = vunpack.c.l.b16 %v6482_v23  ;;  %v3447_v4 = vld [vmem:[#allocation4 + $0x28] sm:$0xff] }
0x2f67   :  { %v8156_v1 = vpop.eup %8155  ;;  %v6420_v33 = vadd.f32 1e-06, %v6419_v20 }
0x2f68   :  { %v6453_v29 = vmul.f32 %v8156_v1, %v6418_v6  ;;  %v6445_v54 = vsel %vm6444_vm15, %v8154_v12, %v6441_v26  ;;  %vm6458_vm4 = vweird.f32 %v8156_v1 }
0x2f69   :  { %8157 = vrcp.f32 %v6420_v33  ;;  %v6450_v62 = vsel %vm6447_vm3, %v6449_v32, %v6445_v54  ;;  %vm6459_vm6 = vmor %vm6457_vm5, %vm6458_vm4  ;;  %v6478_v37 = vand.u32 2147483648, %v6420_v33  ;;  %v6476_v39 = vand.u32 2147483647, %v6420_v33 }
0x2f6a   :  { %v6454_v51 = vsub.f32 1.0, %v6453_v29  ;;  %v6451_v43 = vmul.f32 %v6450_v62, %v6394_v10  ;;  %vm6472_vm9 = vweird.f32 %v6420_v33 }
0x2f6b   :  { %v6479_v41 = vor.u32 1.1754944e-38, %v6478_v37  ;;  %vm6477_vm11 = vcmp.eq.f32.partialorder %v6476_v39, 8.507059e+37 }
0x2f6c   :  { %v6455_v47 = vmul.f32 %v8156_v1, %v6454_v51  ;;  %v6483_v3 = vpack.c.bf16 %v6451_v43, %v6451_v43 }
0x2f6d   :  { %v7684_v0 = vld [vmem:[#allocation2 + $0x38] sm:$0xf] }
0x2f6e   :  { %v6456_v13 = vadd.f32 %v8156_v1, %v6455_v47  ;;  %v6503_v19 = vunpack.c.l.b16 %v6483_v3  ;;  %6487 = vst.msk [vmem:[#allocation2 + $0x44] sm:$0xf] %vm297_vm0, %v6483_v3 }
0x2f6f   :  { %v8158_v61 = vpop.eup %8157 }
0x2f70   :  { %v6468_v27 = vmul.f32 %v8158_v61, %v6420_v33  ;;  %v6460_v57 = vsel %vm6459_vm6, %v8156_v1, %v6456_v13  ;;  %v9632_v53 = vpack.c.b16 %v6503_v19, %v6502_v24  ;;  %vm6473_vm8 = vweird.f32 %v8158_v61 }
0x2f71   :  { %v6465_v34 = vsel %vm6462_vm7, %v6464_v42, %v6460_v57  ;;  %vm6474_vm10 = vmor %vm6472_vm9, %vm6473_vm8 }
0x2f72   :  { %v6469_v38 = vsub.f32 1.0, %v6468_v27  ;;  %v6466_v21 = vmul.f32 %v6465_v34, %v6395_v22  ;;  %6510 = vxpose.xlu1.c.b16.start [1/2] (short) (narrow) %v9632_v53, 16 }
0x2f74   :  { %v6470_v31 = vmul.f32 %v8158_v61, %v6469_v38  ;;  %v6484_v35 = vpack.c.bf16 %v6466_v21, %v6466_v21 }
0x2f75   :  { %v7891_v45 = vld [vmem:[#allocation2 + $0x40] sm:$0xf0] }
0x2f76   :  { %v6471_v48 = vadd.f32 %v8158_v61, %v6470_v31  ;;  %6488 = vst.msk [vmem:[#allocation2 + $0x50] sm:$0xf] %vm297_vm0, %v6484_v35  ;;  %v6504_v58 = vunpack.c.l.b16 %v6484_v35  ;;  %v7685_v8 = vor.u32 %v7891_v45, %v7684_v0 }
0x2f78   :  { %v6475_v59 = vsel %vm6474_vm10, %v8158_v61, %v6471_v48 }
0x2f79   :  { %v6480_v49 = vsel %vm6477_vm11, %v6479_v41, %v6475_v59 }
0x2f7a   :  { %v6481_v15 = vmul.f32 %v6480_v49, %v6396_v56 }
0x2f7c   :  { %v6485_v18 = vpack.c.bf16 %v6481_v15, %v6481_v15 }
0x2f7d   :  { %v7696_v5 = vld [vmem:[#allocation2 + $0x50] sm:$0xf] }
0x2f7e   :  { %v6505_v12 = vunpack.c.l.b16 %v6485_v18  ;;  %6489 = vst.msk [vmem:[#allocation2 + $0x5c] sm:$0xf] %vm297_vm0, %v6485_v18 }
0x2f80   :  { %v9639_v6 = vpack.c.b16 %v6505_v12, %v6504_v58 }
0x2f82   :  { %6511 = vxpose.xlu1.c.b16.end [2/2] (short) (narrow) %v9639_v6, 16 }
0x2f85   :  { %v7894_v11 = vld [vmem:[#allocation2 + $0x58] sm:$0xf0] }
0x2f86   :  { %v7697_v60 = vor.u32 %v7894_v11, %v7696_v5  ;;  %v6791_v11 = vld [vmem:[#allocation4 + $0x60] sm:$0xff] }
0x2f88   :  { %6595 = vmatpush.bf16.msra.mxu1 %v7697_v60 }
0x2f8c   :  { %6596 = vmatpush.bf16.msra.mxu1 %v7685_v8 }
0x2fdc   :  { %3380 = vperm.xlu1 %7901, %v55_v36  }
0x301e   :  { %v6518_v7 = vpop.trf.xlu1 }
0x301f   :  { %7698 = vmatmul.msk.bf16.vlgmr.msrb.gmra.mxu2 %vm99_vm1, %v6518_v7  ;;  %7700 = vmatmul.msk.bf16.vlgmr.msra.gmra.mxu1 %vm99_vm1, %v6518_v7 }
0x3020   :  { %6618 = vmatpush.bf16.msrb.mxu2 %v9615_v55 }
0x302f   :  { %7699 = vmatmul.msk.bf16.vlgmr.msra.gmra.mxu2 %vm99_vm1, %v6518_v7 }
0x304e   :  { %v9649_v16 = vpop.permute.xlu1 %3380 }
0x304f   :  { %v3419_v14 = vadd.f32 %v9062_v44, %v9649_v16  ;;  %v3438_v23 = vadd.f32 %v9064_v25, %v9649_v16 }
0x3051   :  { %v3454_v20 = vadd.f32 %v3446_v52, %v3419_v14  ;;  %v3455_v26 = vadd.f32 %v3447_v4, %v3438_v23 }
0x3053   :  { %v3462_v1 = vmax.f32 %v3454_v20, 0.0  ;;  %v3463_v33 = vmax.f32 %v3455_v26, 0.0 }
0x3055   :  { %3470 = vst [vmem:[#allocation7 + $0x20] sm:$0xff] %v3462_v1 }
0x3056   :  { %3471 = vst [vmem:[#allocation7 + $0x28] sm:$0xff] %v3463_v33 }
0x309c   :  { %v6598_v32 = vpop.f32.mrf.mxu1 }
0x30a2   :  { %v6570_v54 = vpop.f32.mrf.mxu2 }
0x30a3   :  { %v6604_v37 = vmul.f32 %v6570_v54, %v9599_v63 }
0x30a4   :  { %v6600_v55 = vpop.f32.mrf.mxu1 }
0x30a5   :  { %v6603_v29 = vpack.c.bf16 %v6600_v55, %v6598_v32 }
0x30a7   :  { %7701 = vmatmul.msk.bf16.vlgmr.msrb.gmra.mxu2 %vm391_vm2, %v6603_v29  ;;  %7702 = vmatmul.msk.bf16.vlgmr.msra.gmra.mxu3 %vm391_vm2, %v6603_v29 }
0x30aa   :  { %v6572_v10 = vpop.f32.mrf.mxu2 }
0x30ab   :  { %v6606_v31 = vmul.f32 %v6572_v10, %v9609_v2 }
0x30b2   :  { %v6584_v51 = vpop.f32.mrf.mxu2 }
0x30b3   :  { %v6605_v39 = vmul.f32 %v6584_v51, %v9601_v9 }
0x30ba   :  { %v9657_v44 = vpop.f32.mrf.mxu2 }
0x30bb   :  { %v6607_v55 = vmul.f32 %v9657_v44, %v9611_v30 }
0x312a   :  { %v6620_v62 = vpop.f32.mrf.mxu2  ;;  %v6634_v25 = vpop.f32.mrf.mxu3 }
0x312b   :  { %v6621_v28 = vadd.f32 1e-06, %v6620_v62  ;;  %v6635_v43 = vadd.f32 1e-06, %v6634_v25 }
0x312d   :  { %8159 = vrcp.f32 %v6621_v28  ;;  %v6650_v38 = vand.u32 2147483648, %v6621_v28  ;;  %v6648_v35 = vand.u32 2147483647, %v6621_v28  ;;  %vm6644_vm0 = vweird.f32 %v6621_v28 }
0x312e   :  { %8161 = vrcp.f32 %v6635_v43  ;;  %vm6659_vm13 = vweird.f32 %v6635_v43  ;;  %v6663_v18 = vand.u32 2147483647, %v6635_v43  ;;  %v6665_v58 = vand.u32 2147483648, %v6635_v43 }
0x312f   :  { %v6651_v15 = vor.u32 1.1754944e-38, %v6650_v38  ;;  %vm9666_vm3 = vcmp.eq.f32.partialorder %v6648_v35, 8.507059e+37  ;;  %v6787_v38 = vld [vmem:[#allocation4 + $0x40] sm:$0xff] }
0x3130   :  { %v6666_v4 = vor.u32 1.1754944e-38, %v6665_v58  ;;  %vm6664_vm8 = vcmp.eq.f32.partialorder %v6663_v18, 8.507059e+37  ;;  %v6790_v58 = vld [vmem:[#allocation4 + $0x58] sm:$0xff] }
0x3132   :  { %v6622_v47 = vpop.f32.mrf.mxu2  ;;  %v6636_v46 = vpop.f32.mrf.mxu3 }
0x3133   :  { %v8160_v3 = vpop.eup %8159  ;;  %v6623_v13 = vadd.f32 1e-06, %v6622_v47  ;;  %v6637_v61 = vadd.f32 1e-06, %v6636_v46 }
0x3134   :  { %v8162_v42 = vpop.eup %8161  ;;  %v6640_v24 = vmul.f32 %v8160_v3, %v6621_v28  ;;  %vm6645_vm12 = vweird.f32 %v8160_v3 }
0x3135   :  { %v6655_v19 = vmul.f32 %v8162_v42, %v6635_v43  ;;  %8163 = vrcp.f32 %v6623_v13  ;;  %vm6660_vm14 = vweird.f32 %v8162_v42  ;;  %vm9662_vm15 = vmor %vm6644_vm0, %vm6645_vm12  ;;  %v6678_v2 = vand.u32 2147483647, %v6623_v13 }
0x3136   :  { %v6641_v22 = vsub.f32 1.0, %v6640_v24  ;;  %8165 = vrcp.f32 %v6637_v61  ;;  %v6680_v9 = vand.u32 2147483648, %v6623_v13  ;;  %vm9670_vm4 = vmor %vm6659_vm13, %vm6660_vm14  ;;  %v6695_v0 = vand.u32 2147483648, %v6637_v61 }
0x3137   :  { %v6656_v27 = vsub.f32 1.0, %v6655_v19  ;;  %v6693_v7 = vand.u32 2147483647, %v6637_v61  ;;  %vm6674_vm7 = vweird.f32 %v6623_v13  ;;  %vm6689_vm10 = vweird.f32 %v6637_v61 }
0x3138   :  { %v6642_v57 = vmul.f32 %v8160_v3, %v6641_v22  ;;  %v6681_v23 = vor.u32 1.1754944e-38, %v6680_v9  ;;  %v6696_v1 = vor.u32 1.1754944e-38, %v6695_v0  ;;  %vm6679_vm0 = vcmp.eq.f32.partialorder %v6678_v2, 8.507059e+37  ;;  %v6792_v0 = vld [vmem:[#allocation4 + $0x68] sm:$0xff] }
0x3139   :  { %v6657_v34 = vmul.f32 %v8162_v42, %v6656_v27  ;;  %vm6694_vm12 = vcmp.eq.f32.partialorder %v6693_v7, 8.507059e+37 }
0x313a   :  { %v6643_v56 = vadd.f32 %v8160_v3, %v6642_v57  ;;  %v8170_v57 = vld [vmem:[%s9718_s4 + $0x8] sm:$0xff] }
0x313b   :  { %v8164_v21 = vpop.eup %8163  ;;  %v6658_v49 = vadd.f32 %v8162_v42, %v6657_v34 }
0x313c   :  { %v8166_v48 = vpop.eup %8165  ;;  %v6670_v41 = vmul.f32 %v8164_v21, %v6623_v13  ;;  %vm6675_vm5 = vweird.f32 %v8164_v21  ;;  %v6647_v8 = vsel %vm9662_vm15, %v8160_v3, %v6643_v56 }
0x313d   :  { %v6685_v59 = vmul.f32 %v8166_v48, %v6637_v61  ;;  %vm6690_vm6 = vweird.f32 %v8166_v48  ;;  %v6662_v52 = vsel %vm9670_vm4, %v8162_v42, %v6658_v49  ;;  %vm6676_vm9 = vmor %vm6674_vm7, %vm6675_vm5  ;;  %v6652_v20 = vsel %vm9666_vm3, %v6651_v15, %v6647_v8  ;;  %v6789_v49 = vld [vmem:[#allocation4 + $0x50] sm:$0xff] }
0x313e   :  { %v6671_v12 = vsub.f32 1.0, %v6670_v41  ;;  %vm6691_vm11 = vmor %vm6689_vm10, %vm6690_vm6  ;;  %v6667_v32 = vsel %vm6664_vm8, %v6666_v4, %v6662_v52  ;;  %v6653_v10 = vmul.f32 %v6652_v20, %v6604_v37 }
0x313f   :  { %v6686_v5 = vsub.f32 1.0, %v6685_v59  ;;  %v6668_v25 = vmul.f32 %v6667_v32, %v6605_v39 }
0x3140   :  { %v6672_v45 = vmul.f32 %v8164_v21, %v6671_v12 }
0x3141   :  { %v6687_v36 = vmul.f32 %v8166_v48, %v6686_v5 }
0x3142   :  { %v6673_v14 = vadd.f32 %v8164_v21, %v6672_v45 }
0x3143   :  { %v6688_v26 = vadd.f32 %v8166_v48, %v6687_v36 }
0x3144   :  { %v6677_v33 = vsel %vm6676_vm9, %v8164_v21, %v6673_v14  ;;  %v6793_v14 = vld [vmem:[#allocation4 + $0x70] sm:$0xff] }
0x3145   :  { %v6682_v29 = vsel %vm6679_vm0, %v6681_v23, %v6677_v33  ;;  %v6692_v54 = vsel %vm6691_vm11, %v8166_v48, %v6688_v26  ;;  %v6794_v26 = vld [vmem:[#allocation4 + $0x78] sm:$0xff] }
0x3146   :  { %v6683_v51 = vmul.f32 %v6682_v29, %v6606_v31  ;;  %v6697_v62 = vsel %vm6694_vm12, %v6696_v1, %v6692_v54  ;;  %v6788_v31 = vld [vmem:[#allocation4 + $0x48] sm:$0xff] }
0x3147   :  { %v6698_v28 = vmul.f32 %v6697_v62, %v6607_v55 }
0x3148   :  { %v6699_v43 = vpack.c.bf16 %v6683_v51, %v6653_v10 }
0x3149   :  { %v6700_v47 = vpack.c.bf16 %v6698_v28, %v6668_v25 }
0x314a   :  { %6714 = vmatpush.bf16.msra.mxu0 %v6699_v43 }
0x314b   :  { %6733 = vmatpush.bf16.msrb.mxu1 %v6700_v47 }
0x314d   :  { %7703 = vmatmul.msk.bf16.vlgmr.msra.gmra.mxu0 %vm391_vm2, %v9632_v53 }
0x314e   :  { %7705 = vmatmul.msk.bf16.vlgmr.msrb.gmra.mxu1 %vm391_vm2, %v9632_v53 }
0x315d   :  { %7704 = vmatmul.msk.bf16.gmra.mxu0 %vm391_vm2, %v9639_v6 }
0x315e   :  { %7706 = vmatmul.msk.bf16.gmra.mxu1 %vm391_vm2, %v9639_v6  ;;  %v8169_v6 = vld [vmem:[%s9718_s4] sm:$0xff]  ;;  %s8227_s4 = smov [#allocation7]  }
0x315f   :  { %s6824_s23 = sshll.u32 %s8227_s4, 4  ;;  %s6825_s23 = int_to_ptr.vmem [resolvable:$true] %s6824_s23 }
0x31ca   :  { %v6716_v30 = vpop.f32.mrf.mxu0 }
0x31cb   :  { %v6735_v44 = vpop.f32.mrf.mxu1 }
0x31d2   :  { %v6718_v46 = vpop.f32.mrf.mxu0 }
0x31d3   :  { %v6737_v3 = vpop.f32.mrf.mxu1  ;;  %v6745_v27 = vpack.c.bf16 %v6718_v46, %v6716_v30 }
0x31d4   :  { %v6746_v53 = vpack.c.bf16 %v6737_v3, %v6735_v44 }
0x31da   :  { %v6721_v13 = vpop.f32.mrf.mxu0 }
0x31db   :  { %v6740_v61 = vpop.f32.mrf.mxu1 }
0x31e2   :  { %v6723_v42 = vpop.f32.mrf.mxu0 }
0x31e3   :  { %v6747_v24 = vpack.c.bf16 %v6723_v42, %v6721_v13  ;;  %v6742_v19 = vpop.f32.mrf.mxu1 }
0x31e4   :  { %v6748_v22 = vpack.c.bf16 %v6742_v19, %v6740_v61 }
0x31e5   :  { %6755 = vmatpush.bf16.msra.mxu2 %v6747_v24 }
0x31e6   :  { %6774 = vmatpush.bf16.msrb.mxu3 %v6748_v22 }
0x31e9   :  { %6756 = vmatpush.bf16.msra.mxu2 %v6745_v27 }
0x31ea   :  { %6775 = vmatpush.bf16.msrb.mxu3 %v6746_v53 }
0x31ec   :  { %7707 = vmatmul.msk.bf16.vlgmr.msra.gmra.mxu2 %vm99_vm1, %v8169_v6 }
0x31ed   :  { %7709 = vmatmul.msk.bf16.vlgmr.msrb.gmra.mxu3 %vm99_vm1, %v8169_v6 }
0x31fc   :  { %7708 = vmatmul.msk.bf16.gmra.mxu2 %vm99_vm1, %v8170_v57 }
0x31fd   :  { %7710 = vmatmul.msk.bf16.gmra.mxu3 %vm99_vm1, %v8170_v57 }
0x326f   :  { %v6758_v34 = vpop.f32.mrf.mxu2 }
0x3270   :  { %v6759_v21 = vadd.f32 %v6758_v34, %v9486_v17  ;;  %v6777_v37 = vpop.f32.mrf.mxu3 }
0x3271   :  { %v6778_v39 = vadd.f32 %v6777_v37, %v9486_v17 }
0x3272   :  { %v6795_v35 = vadd.f32 %v6787_v38, %v6759_v21 }
0x3273   :  { %v6796_v48 = vadd.f32 %v6788_v31, %v6778_v39 }
0x3274   :  { %v6803_v41 = vmax.f32 %v6795_v35, 0.0 }
0x3275   :  { %v6804_v56 = vmax.f32 %v6796_v48, 0.0 }
0x3276   :  { %6812 = vst [vmem:[#allocation7 + $0x40] sm:$0xff] %v6803_v41 }
0x3277   :  { %6813 = vst [vmem:[#allocation7 + $0x48] sm:$0xff] %v6804_v56  ;;  %v6760_v59 = vpop.f32.mrf.mxu2 }
0x3278   :  { %v6761_v15 = vadd.f32 %v6760_v59, %v9579_v50  ;;  %v6779_v18 = vpop.f32.mrf.mxu3 }
0x3279   :  { %v6780_v12 = vadd.f32 %v6779_v18, %v9579_v50 }
0x327a   :  { %v6797_v63 = vadd.f32 %v6789_v49, %v6761_v15 }
0x327b   :  { %v6798_v2 = vadd.f32 %v6790_v58, %v6780_v12 }
0x327c   :  { %v6805_v9 = vmax.f32 %v6797_v63, 0.0 }
0x327d   :  { %v6806_v5 = vmax.f32 %v6798_v2, 0.0 }
0x327e   :  { %6814 = vst [vmem:[#allocation7 + $0x50] sm:$0xff] %v6805_v9 }
0x327f   :  { %6815 = vst [vmem:[#allocation7 + $0x58] sm:$0xff] %v6806_v5  ;;  %v6763_v17 = vpop.f32.mrf.mxu2 }
0x3280   :  { %v6764_v60 = vadd.f32 %v6763_v17, %v9649_v16  ;;  %v6782_v45 = vpop.f32.mrf.mxu3 }
0x3281   :  { %v6783_v8 = vadd.f32 %v6782_v45, %v9649_v16 }
0x3282   :  { %v6799_v36 = vadd.f32 %v6791_v11, %v6764_v60 }
0x3283   :  { %v6800_v7 = vadd.f32 %v6792_v0, %v6783_v8 }
0x3284   :  { %v6807_v52 = vmax.f32 %v6799_v36, 0.0 }
0x3285   :  { %v6808_v4 = vmax.f32 %v6800_v7, 0.0 }
0x3286   :  { %6816 = vst [vmem:[#allocation7 + $0x60] sm:$0xff] %v6807_v52 }
0x3287   :  { %6817 = vst [vmem:[#allocation7 + $0x68] sm:$0xff] %v6808_v4  ;;  %v6765_v50 = vpop.f32.mrf.mxu2 }
0x3288   :  { %v6766_v23 = vadd.f32 %v6765_v50, %v9492_v40  ;;  %v6784_v20 = vpop.f32.mrf.mxu3 }
0x3289   :  { %v6785_v1 = vadd.f32 %v6784_v20, %v9492_v40 }
0x328a   :  { %v6801_v33 = vadd.f32 %v6793_v14, %v6766_v23 }
0x328b   :  { %v6802_v16 = vadd.f32 %v6794_v26, %v6785_v1 }
0x328c   :  { %v6809_v32 = vmax.f32 %v6801_v33, 0.0 }
0x328d   :  { %v6810_v55 = vmax.f32 %v6802_v16, 0.0 }
0x328e   :  { %6818 = vst [vmem:[#allocation7 + $0x70] sm:$0xff] %v6809_v32 }
0x328f   :  { %6819 = vst [vmem:[#allocation7 + $0x78] sm:$0xff] %v6810_v55 }
0x3290   :  { %6832 = dma.vmem_to_hbm [thread:$0]  %s6825_s23, 2048, %s6827_s0, [#allocation6], %s8224_s26, %s8224_s26, %s8225_s27  }
0x3291   :  { %8221 = dma.done.wait [#allocation6], 2048  }
0x3292   :  { %8222 = vsyncadd [#allocation6], 4294965248 }
0x3293   :  { %6837 = vsyncpa [#allocation5], 1 }
0x3294   :  { %6838 = vsyncpa [#allocation6], 1 }

</bundles_post_ra>
